<compile_context>
chip_gen: v5e
topology: v5e:2x2
jax: 0.10.0
libtpu: 0.0.40
codegen_flags: <defaults>
</compile_context>

<pallas_src>
import functools

import jax
import jax.numpy as jnp
from jax.experimental import pallas as pl
from jax.experimental.pallas import tpu as pltpu

LRELU_SLOPE = 0.2
BN_EPS = 1e-5
KW = 4                            # conv kernel size
PADW = 1                          # conv padding
LANE = 128                        # vreg lane width: pad Cout to this (dense stores)
TILE_M_MAX = 512                  # max rows per grid step (multiple of 8)
VMEM_BUDGET = 12 * 1024 * 1024    # per-step working-set budget (fits v5e/v6e/v7x)
VMEM_LIMIT = 32 * 1024 * 1024


def _round_up(x, m):
    return (x + m - 1) // m * m


def _choose_tile_m(m, k, c_pad, in_bytes, out_bytes):
    """Largest multiple-of-8 row tile whose double-buffered footprint fits budget."""
    fixed = 2 * k * c_pad * in_bytes                   # weight tile (double buffered)
    per_row = 2 * (k * in_bytes + c_pad * out_bytes)   # patches in + result out
    tile = (VMEM_BUDGET - fixed) // max(per_row, 1)
    tile = max(8, min(TILE_M_MAX, tile))
    tile = min(tile, _round_up(m, 8))
    return max(8, (tile // 8) * 8)


# -----------------------------------------------------------------------------
# Pallas kernels
# -----------------------------------------------------------------------------
def _conv_bias_act_kernel(p_ref, w_ref, b_ref, o_ref, *, use_act):
    """One M-tile: patches @ W (+bias) (+LeakyReLU).  f32 accumulate/epilogue."""
    y = jnp.dot(p_ref[...], w_ref[...], preferred_element_type=jnp.float32)
    y = y + b_ref[...]
    if use_act:
        y = jnp.where(y > 0, y, LRELU_SLOPE * y)
    o_ref[...] = y.astype(o_ref.dtype)


def _conv_stats_kernel(p_ref, w_ref, y_ref, sum_ref, ssq_ref):
    """One M-tile: patches @ W, plus cross-tile per-channel sum / sum-of-squares
    accumulated into revisited (1, C_pad) output blocks (grid axis 'arbitrary')."""
    y = jnp.dot(p_ref[...], w_ref[...], preferred_element_type=jnp.float32)
    y_ref[...] = y

    @pl.when(pl.program_id(0) == 0)
    def _():
        sum_ref[...] = jnp.zeros_like(sum_ref)
        ssq_ref[...] = jnp.zeros_like(ssq_ref)

    sum_ref[...] += jnp.sum(y, axis=0, keepdims=True)
    ssq_ref[...] += jnp.sum(y * y, axis=0, keepdims=True)


def _bn_act_kernel(y_ref, scale_ref, shift_ref, o_ref):
    """One M-tile: folded BatchNorm affine (y*scale + shift) + LeakyReLU."""
    y = y_ref[...] * scale_ref[...] + shift_ref[...]
    y = jnp.where(y > 0, y, LRELU_SLOPE * y)
    o_ref[...] = y.astype(o_ref.dtype)


# -----------------------------------------------------------------------------
# pallas_call wrappers
# -----------------------------------------------------------------------------
def _conv_bias_layer(patches, w_mat, bias_pad, *, tile_m, use_act, out_dtype):
    m_pad, k = patches.shape
    c_pad = w_mat.shape[1]
    kernel = functools.partial(_conv_bias_act_kernel, use_act=use_act)
    return pl.pallas_call(
        kernel,
        out_shape=jax.ShapeDtypeStruct((m_pad, c_pad), out_dtype),
        grid=(m_pad // tile_m,),
        in_specs=[
            pl.BlockSpec((tile_m, k), lambda i: (i, 0)),
            pl.BlockSpec((k, c_pad), lambda i: (0, 0)),
            pl.BlockSpec((1, c_pad), lambda i: (0, 0)),
        ],
        out_specs=pl.BlockSpec((tile_m, c_pad), lambda i: (i, 0)),
        compiler_params=pltpu.CompilerParams(
            dimension_semantics=("parallel",),        # independent row tiles
            vmem_limit_bytes=VMEM_LIMIT),
    )(patches, w_mat, bias_pad)


def _conv_stats_layer(patches, w_mat, *, tile_m):
    m_pad, k = patches.shape
    c_pad = w_mat.shape[1]
    return pl.pallas_call(
        _conv_stats_kernel,
        out_shape=(
            jax.ShapeDtypeStruct((m_pad, c_pad), jnp.float32),
            jax.ShapeDtypeStruct((1, c_pad), jnp.float32),
            jax.ShapeDtypeStruct((1, c_pad), jnp.float32),
        ),
        grid=(m_pad // tile_m,),
        in_specs=[
            pl.BlockSpec((tile_m, k), lambda i: (i, 0)),
            pl.BlockSpec((k, c_pad), lambda i: (0, 0)),
        ],
        out_specs=(
            pl.BlockSpec((tile_m, c_pad), lambda i: (i, 0)),
            pl.BlockSpec((1, c_pad), lambda i: (0, 0)),   # revisited accumulator
            pl.BlockSpec((1, c_pad), lambda i: (0, 0)),   # revisited accumulator
        ),
        compiler_params=pltpu.CompilerParams(
            dimension_semantics=("arbitrary",),           # cross-tile reduction
            vmem_limit_bytes=VMEM_LIMIT),
    )(patches, w_mat)


def _bn_act_layer(y, scale, shift, *, tile_m, out_dtype):
    m_pad, c_pad = y.shape
    return pl.pallas_call(
        _bn_act_kernel,
        out_shape=jax.ShapeDtypeStruct((m_pad, c_pad), out_dtype),
        grid=(m_pad // tile_m,),
        in_specs=[
            pl.BlockSpec((tile_m, c_pad), lambda i: (i, 0)),
            pl.BlockSpec((1, c_pad), lambda i: (0, 0)),
            pl.BlockSpec((1, c_pad), lambda i: (0, 0)),
        ],
        out_specs=pl.BlockSpec((tile_m, c_pad), lambda i: (i, 0)),
        compiler_params=pltpu.CompilerParams(
            dimension_semantics=("parallel",),
            vmem_limit_bytes=VMEM_LIMIT),
    )(y, scale, shift)


# -----------------------------------------------------------------------------
# XLA glue: im2col patch extraction, weight/param padding
# -----------------------------------------------------------------------------
def _im2col(x_nhwc, stride, dtype):
    x = jnp.pad(x_nhwc.astype(dtype), ((0, 0), (PADW, PADW), (PADW, PADW), (0, 0)))
    n, hp, wp, c = x.shape
    ho = (hp - KW) // stride + 1
    wo = (wp - KW) // stride + 1
    cols = []
    for i in range(KW):
        for j in range(KW):
            cols.append(x[:, i:i + stride * ho:stride, j:j + stride * wo:stride, :])
    p = jnp.concatenate(cols, axis=-1)              # (N, Ho, Wo, KW*KW*C)
    return p.reshape(n * ho * wo, KW * KW * c), (n, ho, wo)


def _weight_to_mat(w_oihw, c_pad, dtype):
    # (Cout, Cin, kh, kw) -> (kh*kw*Cin, Cout) padded to 128 lanes.
    cout, cin, kh, kw = w_oihw.shape
    m = jnp.transpose(w_oihw, (2, 3, 1, 0)).reshape(kh * kw * cin, cout)
    return jnp.pad(m, ((0, 0), (0, c_pad - cout))).astype(dtype)


def _pad_lanes(v, c_pad):
    return jnp.pad(v.astype(jnp.float32), ((0, 0), (0, c_pad - v.shape[1])))


# -----------------------------------------------------------------------------
# NLayerDiscriminator parameters + forward
# -----------------------------------------------------------------------------
def init_params(key, input_nc, ndf=8, n_layers=3):
    """Deterministic synthetic parameters matching the PyTorch module shapes."""
    params = []

    def conv_w(k, cout, cin):
        return 0.05 * jax.random.normal(k, (cout, cin, KW, KW), jnp.float32)

    keys = jax.random.split(key, 4 * (n_layers + 2))
    ki = 0

    # layer 0: Conv(input_nc -> ndf, s2, bias=True) + LeakyReLU
    params.append(dict(
        w=conv_w(keys[ki], ndf, input_nc),
        b=0.05 * jax.random.normal(keys[ki + 1], (1, ndf), jnp.float32),
        gamma=None, beta=None, stride=2, use_bias=True, use_bn=False, use_act=True))
    ki += 2

    nf_mult = 1
    for n in range(1, n_layers):
        nf_mult_prev, nf_mult = nf_mult, min(2 ** n, 8)
        cin, cout = ndf * nf_mult_prev, ndf * nf_mult
        params.append(dict(
            w=conv_w(keys[ki], cout, cin), b=None,       # bias=False for norm='batch'
            gamma=1.0 + 0.05 * jax.random.normal(keys[ki + 1], (1, cout), jnp.float32),
            beta=0.05 * jax.random.normal(keys[ki + 2], (1, cout), jnp.float32),
            stride=2, use_bias=False, use_bn=True, use_act=True))
        ki += 3

    nf_mult_prev, nf_mult = nf_mult, min(2 ** n_layers, 8)
    cin, cout = ndf * nf_mult_prev, ndf * nf_mult
    params.append(dict(
        w=conv_w(keys[ki], cout, cin), b=None,
        gamma=1.0 + 0.05 * jax.random.normal(keys[ki + 1], (1, cout), jnp.float32),
        beta=0.05 * jax.random.normal(keys[ki + 2], (1, cout), jnp.float32),
        stride=1, use_bias=False, use_bn=True, use_act=True))
    ki += 3

    # final: Conv(ndf*nf_mult -> 1, s1, bias=True), no norm, no activation
    params.append(dict(
        w=conv_w(keys[ki], 1, ndf * nf_mult),
        b=0.05 * jax.random.normal(keys[ki + 1], (1, 1), jnp.float32),
        gamma=None, beta=None, stride=1, use_bias=True, use_bn=False, use_act=False))
    return params


def nlayer_discriminator_forward(x_nchw, params, matmul_dtype=jnp.bfloat16):
    """PatchGAN forward. x_nchw: (N, C, H, W) float32 -> (N, 1, Ho, Wo) float32."""
    x = jnp.transpose(x_nchw, (0, 2, 3, 1))             # NHWC internally
    in_bytes = jnp.dtype(matmul_dtype).itemsize
    last = len(params) - 1
    for li, layer in enumerate(params):
        cout = layer['w'].shape[0]
        c_pad = _round_up(cout, LANE)
        patches, (n, ho, wo) = _im2col(x, layer['stride'], matmul_dtype)
        m, k = patches.shape

        act_dtype = jnp.float32 if li == last else matmul_dtype
        out_bytes = 4 if layer['use_bn'] else jnp.dtype(act_dtype).itemsize
        tile_m = _choose_tile_m(m, k, c_pad, in_bytes, out_bytes)
        m_pad = _round_up(m, tile_m)
        if m_pad != m:
            # zero rows: produce exactly-zero conv output -> no effect on BN stats
            patches = jnp.pad(patches, ((0, m_pad - m), (0, 0)))

        w_mat = _weight_to_mat(layer['w'], c_pad, matmul_dtype)

        if layer['use_bn']:
            y, s, ssq = _conv_stats_layer(patches, w_mat, tile_m=tile_m)
            count = jnp.float32(m)                       # true row count
            mean = s / count
            var = jnp.maximum(ssq / count - mean * mean, 0.0)   # biased (training BN)
            inv = jax.lax.rsqrt(var + BN_EPS)
            scale = _pad_lanes(layer['gamma'], c_pad) * inv     # folded gamma*rsqrt
            shift = _pad_lanes(layer['beta'], c_pad) - mean * scale
            y = _bn_act_layer(y, scale, shift, tile_m=tile_m, out_dtype=act_dtype)
        else:
            bias = _pad_lanes(layer['b'], c_pad)
            y = _conv_bias_layer(patches, w_mat, bias, tile_m=tile_m,
                                 use_act=layer['use_act'], out_dtype=act_dtype)

        x = y[:m, :cout].reshape(n, ho, wo, cout)
    return jnp.transpose(x, (0, 3, 1, 2)).astype(jnp.float32)   # back to NCHW


# -----------------------------------------------------------------------------
# Pure-JAX reference (for correctness check)
# -----------------------------------------------------------------------------
def _reference_forward(x_nchw, params, matmul_dtype=jnp.float32):
    x = x_nchw.astype(jnp.float32)
    for layer in params:
        y = jax.lax.conv_general_dilated(
            x.astype(matmul_dtype), layer['w'].astype(matmul_dtype),
            window_strides=(layer['stride'], layer['stride']),
            padding=[(PADW, PADW), (PADW, PADW)],
            dimension_numbers=('NCHW', 'OIHW', 'NCHW'),
            preferred_element_type=jnp.float32)
        if layer['use_bias']:
            y = y + layer['b'].reshape(1, -1, 1, 1)
        if layer['use_bn']:
            mean = jnp.mean(y, axis=(0, 2, 3), keepdims=True)
            var = jnp.mean((y - mean) ** 2, axis=(0, 2, 3), keepdims=True)
            y = (y - mean) * jax.lax.rsqrt(var + BN_EPS)
            y = y * layer['gamma'].reshape(1, -1, 1, 1) + layer['beta'].reshape(1, -1, 1, 1)
        if layer['use_act']:
            y = jnp.where(y > 0, y, LRELU_SLOPE * y)
        x = y
    return x


if __name__ == "__main__":
    key = jax.random.PRNGKey(0)
    k_x, k_p = jax.random.split(key)

    # Small but non-trivial: layer0 runs 9 x 512-row parallel tiles, layer1 runs
    # 3 tiles with cross-tile BN stats accumulation, later layers hit the
    # single-tile / padded-M paths.
    N, C, H, W = 2, 4, 96, 96
    x = jax.random.normal(k_x, (N, C, H, W), jnp.float32)
    params = init_params(k_p, input_nc=C, ndf=8, n_layers=3)

    # 1) f32 MXU path vs full-precision reference (tight tolerance).
    fwd_f32 = jax.jit(lambda a: nlayer_discriminator_forward(a, params, jnp.float32))
    out = jax.block_until_ready(fwd_f32(x))
    ref = jax.block_until_ready(_reference_forward(x, params, jnp.float32))
    assert out.shape == ref.shape, (out.shape, ref.shape)
    assert jnp.allclose(out, ref, atol=2e-4, rtol=2e-4), float(jnp.max(jnp.abs(out - ref)))

    # 2) bf16 MXU path (production config) vs a reference applying identical
    #    bf16 input/weight casts (f32 accumulation + f32 epilogue in both);
    #    looser tolerance covers accumulation-order / bf16 re-rounding effects.
    fwd_bf16 = jax.jit(lambda a: nlayer_discriminator_forward(a, params, jnp.bfloat16))
    out_bf = jax.block_until_ready(fwd_bf16(x))
    ref_bf = jax.block_until_ready(_reference_forward(x, params, jnp.bfloat16))
    assert out_bf.shape == ref_bf.shape, (out_bf.shape, ref_bf.shape)
    assert jnp.allclose(out_bf, ref_bf, atol=2e-2, rtol=2e-2), \
        float(jnp.max(jnp.abs(out_bf - ref_bf)))

    print("KERNEL_OK")
</pallas_src>

<mosaic_0001>
module attributes {stable_mosaic.version = 11 : i64} {
  func.func @_conv_bias_act_kernel(%arg0: i32, %arg1: memref<512x64xf32, #tpu.memory_space<vmem>>, %arg2: memref<64x128xf32, #tpu.memory_space<vmem>>, %arg3: memref<1x128xf32, #tpu.memory_space<vmem>>, %arg4: memref<512x128xf32, #tpu.memory_space<vmem>>) attributes {dimension_semantics = [#tpu.dimension_semantics<parallel>], iteration_bounds = array<i64: 9>, scalar_prefetch = 0 : i64, scratch_operands = 0 : i64, tpu.core_type = #tpu.core_type<tc>, window_params = [{transform_indices = @transform_0, window_bounds = array<i64: 512, 64>}, {pipeline_mode = #tpu.pipeline_mode<synchronous>, transform_indices = @transform_1, window_bounds = array<i64: 64, 128>}, {pipeline_mode = #tpu.pipeline_mode<synchronous>, transform_indices = @transform_2, window_bounds = array<i64: 1, 128>}, {transform_indices = @transform_3, window_bounds = array<i64: 512, 128>}]} {
    %c0 = arith.constant 0 : index
    %c0_0 = arith.constant 0 : index
    %0 = vector.load %arg1[%c0, %c0_0] : memref<512x64xf32, #tpu.memory_space<vmem>>, vector<512x64xf32>
    %c0_1 = arith.constant 0 : index
    %c0_2 = arith.constant 0 : index
    %1 = vector.load %arg2[%c0_1, %c0_2] : memref<64x128xf32, #tpu.memory_space<vmem>>, vector<64x128xf32>
    %cst = arith.constant dense<0.000000e+00> : vector<512x128xf32>
    %2 = tpu.matmul %0, %1, %cst {dimension_numbers = #tpu.dot_dimension_numbers<[1], [0], [0], [1], [0, 0, 1, 1], [], []>} : vector<512x64xf32>, vector<64x128xf32>, vector<512x128xf32> -> vector<512x128xf32>
    %c0_3 = arith.constant 0 : index
    %c0_4 = arith.constant 0 : index
    %3 = vector.load %arg3[%c0_3, %c0_4] : memref<1x128xf32, #tpu.memory_space<vmem>>, vector<1x128xf32>
    %4 = vector.broadcast %3 : vector<1x128xf32> to vector<512x128xf32>
    %5 = arith.addf %2, %4 : vector<512x128xf32>
    %cst_5 = arith.constant 0.000000e+00 : f32
    %6 = vector.broadcast %cst_5 : f32 to vector<512x128xf32>
    %7 = arith.cmpf ogt, %5, %6 : vector<512x128xf32>
    %cst_6 = arith.constant 2.000000e-01 : f32
    %8 = vector.broadcast %cst_6 : f32 to vector<512x128xf32>
    %9 = arith.mulf %8, %5 : vector<512x128xf32>
    %10 = arith.select %7, %5, %9 : vector<512x128xi1>, vector<512x128xf32>
    %c0_7 = arith.constant 0 : index
    %c0_8 = arith.constant 0 : index
    %11 = vector.load %arg4[%c0_7, %c0_8] : memref<512x128xf32, #tpu.memory_space<vmem>>, vector<512x128xf32>
    tpu.vector_store %arg4[%c0_7, %c0_8], %10 {strides = array<i32>} : memref<512x128xf32, #tpu.memory_space<vmem>>, vector<512x128xf32>,
    return
  }
  func.func @transform_0(%arg0: i32) -> (i32, i32) {
    %c0_i32 = arith.constant 0 : i32
    %c0_i32_0 = arith.constant 0 : i32
    return %arg0, %c0_i32 : i32, i32
  }
  func.func @transform_1(%arg0: i32) -> (i32, i32) {
    %c0_i32 = arith.constant 0 : i32
    %c0_i32_0 = arith.constant 0 : i32
    %c0_i32_1 = arith.constant 0 : i32
    return %c0_i32, %c0_i32_0 : i32, i32
  }
  func.func @transform_2(%arg0: i32) -> (i32, i32) {
    %c0_i32 = arith.constant 0 : i32
    %c0_i32_0 = arith.constant 0 : i32
    %c0_i32_1 = arith.constant 0 : i32
    return %c0_i32, %c0_i32_0 : i32, i32
  }
  func.func @transform_3(%arg0: i32) -> (i32, i32) {
    %c0_i32 = arith.constant 0 : i32
    %c0_i32_0 = arith.constant 0 : i32
    return %arg0, %c0_i32 : i32, i32
  }
}

module attributes {stable_mosaic.version = 11 : i64} {
  func.func @_conv_stats_kernel(%arg0: i32, %arg1: memref<512x128xf32, #tpu.memory_space<vmem>>, %arg2: memref<128x128xf32, #tpu.memory_space<vmem>>, %arg3: memref<512x128xf32, #tpu.memory_space<vmem>>, %arg4: memref<1x128xf32, #tpu.memory_space<vmem>>, %arg5: memref<1x128xf32, #tpu.memory_space<vmem>>) attributes {dimension_semantics = [#tpu.dimension_semantics<arbitrary>], iteration_bounds = array<i64: 3>, scalar_prefetch = 0 : i64, scratch_operands = 0 : i64, tpu.core_type = #tpu.core_type<tc>, window_params = [{transform_indices = @transform_0, window_bounds = array<i64: 512, 128>}, {pipeline_mode = #tpu.pipeline_mode<synchronous>, transform_indices = @transform_1, window_bounds = array<i64: 128, 128>}, {transform_indices = @transform_2, window_bounds = array<i64: 512, 128>}, {pipeline_mode = #tpu.pipeline_mode<synchronous>, transform_indices = @transform_3, window_bounds = array<i64: 1, 128>}, {pipeline_mode = #tpu.pipeline_mode<synchronous>, transform_indices = @transform_4, window_bounds = array<i64: 1, 128>}]} {
    %c0 = arith.constant 0 : index
    %c0_0 = arith.constant 0 : index
    %0 = vector.load %arg1[%c0, %c0_0] : memref<512x128xf32, #tpu.memory_space<vmem>>, vector<512x128xf32>
    %c0_1 = arith.constant 0 : index
    %c0_2 = arith.constant 0 : index
    %1 = vector.load %arg2[%c0_1, %c0_2] : memref<128x128xf32, #tpu.memory_space<vmem>>, vector<128x128xf32>
    %cst = arith.constant dense<0.000000e+00> : vector<512x128xf32>
    %2 = tpu.matmul %0, %1, %cst {dimension_numbers = #tpu.dot_dimension_numbers<[1], [0], [0], [1], [0, 0, 1, 1], [], []>} : vector<512x128xf32>, vector<128x128xf32>, vector<512x128xf32> -> vector<512x128xf32>
    %c0_3 = arith.constant 0 : index
    %c0_4 = arith.constant 0 : index
    %3 = vector.load %arg3[%c0_3, %c0_4] : memref<512x128xf32, #tpu.memory_space<vmem>>, vector<512x128xf32>
    tpu.vector_store %arg3[%c0_3, %c0_4], %2 {strides = array<i32>} : memref<512x128xf32, #tpu.memory_space<vmem>>, vector<512x128xf32>,
    %c0_i32 = arith.constant 0 : i32
    %4 = arith.cmpi eq, %arg0, %c0_i32 : i32
    %5 = arith.extui %4 : i1 to i32
    %c0_i32_5 = arith.constant 0 : i32
    %6 = arith.cmpi ne, %5, %c0_i32_5 : i32
    scf.if %6 {
      %cst_16 = arith.constant 0.000000e+00 : f32
      %18 = vector.broadcast %cst_16 : f32 to vector<1x128xf32>
      %c0_17 = arith.constant 0 : index
      %c0_18 = arith.constant 0 : index
      %19 = vector.load %arg4[%c0_17, %c0_18] : memref<1x128xf32, #tpu.memory_space<vmem>>, vector<1x128xf32>
      tpu.vector_store %arg4[%c0_17, %c0_18], %18 {strides = array<i32>} : memref<1x128xf32, #tpu.memory_space<vmem>>, vector<1x128xf32>,
      %cst_19 = arith.constant 0.000000e+00 : f32
      %20 = vector.broadcast %cst_19 : f32 to vector<1x128xf32>
      %c0_20 = arith.constant 0 : index
      %c0_21 = arith.constant 0 : index
      %21 = vector.load %arg5[%c0_20, %c0_21] : memref<1x128xf32, #tpu.memory_space<vmem>>, vector<1x128xf32>
      tpu.vector_store %arg5[%c0_20, %c0_21], %20 {strides = array<i32>} : memref<1x128xf32, #tpu.memory_space<vmem>>, vector<1x128xf32>,
    } else {
    }
    %c0_6 = arith.constant 0 : index
    %c0_7 = arith.constant 0 : index
    %7 = vector.load %arg4[%c0_6, %c0_7] : memref<1x128xf32, #tpu.memory_space<vmem>>, vector<1x128xf32>
    %cst_8 = arith.constant dense<0.000000e+00> : vector<128xf32>
    %8 = vector.multi_reduction <add>, %2, %cst_8 [0] : vector<512x128xf32> to vector<128xf32>
    %9 = vector.shape_cast %8 : vector<128xf32> to vector<1x128xf32>
    %10 = arith.addf %7, %9 : vector<1x128xf32>
    %c0_9 = arith.constant 0 : index
    %c0_10 = arith.constant 0 : index
    %11 = vector.load %arg4[%c0_9, %c0_10] : memref<1x128xf32, #tpu.memory_space<vmem>>, vector<1x128xf32>
    tpu.vector_store %arg4[%c0_9, %c0_10], %10 {strides = array<i32>} : memref<1x128xf32, #tpu.memory_space<vmem>>, vector<1x128xf32>,
    %c0_11 = arith.constant 0 : index
    %c0_12 = arith.constant 0 : index
    %12 = vector.load %arg5[%c0_11, %c0_12] : memref<1x128xf32, #tpu.memory_space<vmem>>, vector<1x128xf32>
    %13 = arith.mulf %2, %2 : vector<512x128xf32>
    %cst_13 = arith.constant dense<0.000000e+00> : vector<128xf32>
    %14 = vector.multi_reduction <add>, %13, %cst_13 [0] : vector<512x128xf32> to vector<128xf32>
    %15 = vector.shape_cast %14 : vector<128xf32> to vector<1x128xf32>
    %16 = arith.addf %12, %15 : vector<1x128xf32>
    %c0_14 = arith.constant 0 : index
    %c0_15 = arith.constant 0 : index
    %17 = vector.load %arg5[%c0_14, %c0_15] : memref<1x128xf32, #tpu.memory_space<vmem>>, vector<1x128xf32>
    tpu.vector_store %arg5[%c0_14, %c0_15], %16 {strides = array<i32>} : memref<1x128xf32, #tpu.memory_space<vmem>>, vector<1x128xf32>,
    return
  }
  func.func @transform_0(%arg0: i32) -> (i32, i32) {
    %c0_i32 = arith.constant 0 : i32
    %c0_i32_0 = arith.constant 0 : i32
    return %arg0, %c0_i32 : i32, i32
  }
  func.func @transform_1(%arg0: i32) -> (i32, i32) {
    %c0_i32 = arith.constant 0 : i32
    %c0_i32_0 = arith.constant 0 : i32
    %c0_i32_1 = arith.constant 0 : i32
    return %c0_i32, %c0_i32_0 : i32, i32
  }
  func.func @transform_2(%arg0: i32) -> (i32, i32) {
    %c0_i32 = arith.constant 0 : i32
    %c0_i32_0 = arith.constant 0 : i32
    return %arg0, %c0_i32 : i32, i32
  }
  func.func @transform_3(%arg0: i32) -> (i32, i32) {
    %c0_i32 = arith.constant 0 : i32
    %c0_i32_0 = arith.constant 0 : i32
    %c0_i32_1 = arith.constant 0 : i32
    return %c0_i32, %c0_i32_0 : i32, i32
  }
  func.func @transform_4(%arg0: i32) -> (i32, i32) {
    %c0_i32 = arith.constant 0 : i32
    %c0_i32_0 = arith.constant 0 : i32
    %c0_i32_1 = arith.constant 0 : i32
    return %c0_i32, %c0_i32_0 : i32, i32
  }
}

module attributes {stable_mosaic.version = 11 : i64} {
  func.func @_bn_act_kernel(%arg0: i32, %arg1: memref<512x128xf32, #tpu.memory_space<vmem>>, %arg2: memref<1x128xf32, #tpu.memory_space<vmem>>, %arg3: memref<1x128xf32, #tpu.memory_space<vmem>>, %arg4: memref<512x128xf32, #tpu.memory_space<vmem>>) attributes {dimension_semantics = [#tpu.dimension_semantics<parallel>], iteration_bounds = array<i64: 3>, scalar_prefetch = 0 : i64, scratch_operands = 0 : i64, tpu.core_type = #tpu.core_type<tc>, window_params = [{transform_indices = @transform_0, window_bounds = array<i64: 512, 128>}, {pipeline_mode = #tpu.pipeline_mode<synchronous>, transform_indices = @transform_1, window_bounds = array<i64: 1, 128>}, {pipeline_mode = #tpu.pipeline_mode<synchronous>, transform_indices = @transform_2, window_bounds = array<i64: 1, 128>}, {transform_indices = @transform_3, window_bounds = array<i64: 512, 128>}]} {
    %c0 = arith.constant 0 : index
    %c0_0 = arith.constant 0 : index
    %0 = vector.load %arg1[%c0, %c0_0] : memref<512x128xf32, #tpu.memory_space<vmem>>, vector<512x128xf32>
    %c0_1 = arith.constant 0 : index
    %c0_2 = arith.constant 0 : index
    %1 = vector.load %arg2[%c0_1, %c0_2] : memref<1x128xf32, #tpu.memory_space<vmem>>, vector<1x128xf32>
    %2 = vector.broadcast %1 : vector<1x128xf32> to vector<512x128xf32>
    %3 = arith.mulf %0, %2 : vector<512x128xf32>
    %c0_3 = arith.constant 0 : index
    %c0_4 = arith.constant 0 : index
    %4 = vector.load %arg3[%c0_3, %c0_4] : memref<1x128xf32, #tpu.memory_space<vmem>>, vector<1x128xf32>
    %5 = vector.broadcast %4 : vector<1x128xf32> to vector<512x128xf32>
    %6 = arith.addf %3, %5 : vector<512x128xf32>
    %cst = arith.constant 0.000000e+00 : f32
    %7 = vector.broadcast %cst : f32 to vector<512x128xf32>
    %8 = arith.cmpf ogt, %6, %7 : vector<512x128xf32>
    %cst_5 = arith.constant 2.000000e-01 : f32
    %9 = vector.broadcast %cst_5 : f32 to vector<512x128xf32>
    %10 = arith.mulf %9, %6 : vector<512x128xf32>
    %11 = arith.select %8, %6, %10 : vector<512x128xi1>, vector<512x128xf32>
    %c0_6 = arith.constant 0 : index
    %c0_7 = arith.constant 0 : index
    %12 = vector.load %arg4[%c0_6, %c0_7] : memref<512x128xf32, #tpu.memory_space<vmem>>, vector<512x128xf32>
    tpu.vector_store %arg4[%c0_6, %c0_7], %11 {strides = array<i32>} : memref<512x128xf32, #tpu.memory_space<vmem>>, vector<512x128xf32>,
    return
  }
  func.func @transform_0(%arg0: i32) -> (i32, i32) {
    %c0_i32 = arith.constant 0 : i32
    %c0_i32_0 = arith.constant 0 : i32
    return %arg0, %c0_i32 : i32, i32
  }
  func.func @transform_1(%arg0: i32) -> (i32, i32) {
    %c0_i32 = arith.constant 0 : i32
    %c0_i32_0 = arith.constant 0 : i32
    %c0_i32_1 = arith.constant 0 : i32
    return %c0_i32, %c0_i32_0 : i32, i32
  }
  func.func @transform_2(%arg0: i32) -> (i32, i32) {
    %c0_i32 = arith.constant 0 : i32
    %c0_i32_0 = arith.constant 0 : i32
    %c0_i32_1 = arith.constant 0 : i32
    return %c0_i32, %c0_i32_0 : i32, i32
  }
  func.func @transform_3(%arg0: i32) -> (i32, i32) {
    %c0_i32 = arith.constant 0 : i32
    %c0_i32_0 = arith.constant 0 : i32
    return %arg0, %c0_i32 : i32, i32
  }
}

module attributes {stable_mosaic.version = 11 : i64} {
  func.func @_bn_act_kernel(%arg0: i32, %arg1: memref<288x128xf32, #tpu.memory_space<vmem>>, %arg2: memref<1x128xf32, #tpu.memory_space<vmem>>, %arg3: memref<1x128xf32, #tpu.memory_space<vmem>>, %arg4: memref<288x128xf32, #tpu.memory_space<vmem>>) attributes {dimension_semantics = [#tpu.dimension_semantics<parallel>], iteration_bounds = array<i64: 1>, scalar_prefetch = 0 : i64, scratch_operands = 0 : i64, tpu.core_type = #tpu.core_type<tc>, window_params = [{transform_indices = @transform_0, window_bounds = array<i64: 288, 128>}, {pipeline_mode = #tpu.pipeline_mode<synchronous>, transform_indices = @transform_1, window_bounds = array<i64: 1, 128>}, {pipeline_mode = #tpu.pipeline_mode<synchronous>, transform_indices = @transform_2, window_bounds = array<i64: 1, 128>}, {transform_indices = @transform_3, window_bounds = array<i64: 288, 128>}]} {
    %c0 = arith.constant 0 : index
    %c0_0 = arith.constant 0 : index
    %0 = vector.load %arg1[%c0, %c0_0] : memref<288x128xf32, #tpu.memory_space<vmem>>, vector<288x128xf32>
    %c0_1 = arith.constant 0 : index
    %c0_2 = arith.constant 0 : index
    %1 = vector.load %arg2[%c0_1, %c0_2] : memref<1x128xf32, #tpu.memory_space<vmem>>, vector<1x128xf32>
    %2 = vector.broadcast %1 : vector<1x128xf32> to vector<288x128xf32>
    %3 = arith.mulf %0, %2 : vector<288x128xf32>
    %c0_3 = arith.constant 0 : index
    %c0_4 = arith.constant 0 : index
    %4 = vector.load %arg3[%c0_3, %c0_4] : memref<1x128xf32, #tpu.memory_space<vmem>>, vector<1x128xf32>
    %5 = vector.broadcast %4 : vector<1x128xf32> to vector<288x128xf32>
    %6 = arith.addf %3, %5 : vector<288x128xf32>
    %cst = arith.constant 0.000000e+00 : f32
    %7 = vector.broadcast %cst : f32 to vector<288x128xf32>
    %8 = arith.cmpf ogt, %6, %7 : vector<288x128xf32>
    %cst_5 = arith.constant 2.000000e-01 : f32
    %9 = vector.broadcast %cst_5 : f32 to vector<288x128xf32>
    %10 = arith.mulf %9, %6 : vector<288x128xf32>
    %11 = arith.select %8, %6, %10 : vector<288x128xi1>, vector<288x128xf32>
    %c0_6 = arith.constant 0 : index
    %c0_7 = arith.constant 0 : index
    %12 = vector.load %arg4[%c0_6, %c0_7] : memref<288x128xf32, #tpu.memory_space<vmem>>, vector<288x128xf32>
    tpu.vector_store %arg4[%c0_6, %c0_7], %11 {strides = array<i32>} : memref<288x128xf32, #tpu.memory_space<vmem>>, vector<288x128xf32>,
    return
  }
  func.func @transform_0(%arg0: i32) -> (i32, i32) {
    %c0_i32 = arith.constant 0 : i32
    %c0_i32_0 = arith.constant 0 : i32
    return %arg0, %c0_i32 : i32, i32
  }
  func.func @transform_1(%arg0: i32) -> (i32, i32) {
    %c0_i32 = arith.constant 0 : i32
    %c0_i32_0 = arith.constant 0 : i32
    %c0_i32_1 = arith.constant 0 : i32
    return %c0_i32, %c0_i32_0 : i32, i32
  }
  func.func @transform_2(%arg0: i32) -> (i32, i32) {
    %c0_i32 = arith.constant 0 : i32
    %c0_i32_0 = arith.constant 0 : i32
    %c0_i32_1 = arith.constant 0 : i32
    return %c0_i32, %c0_i32_0 : i32, i32
  }
  func.func @transform_3(%arg0: i32) -> (i32, i32) {
    %c0_i32 = arith.constant 0 : i32
    %c0_i32_0 = arith.constant 0 : i32
    return %arg0, %c0_i32 : i32, i32
  }
}

module attributes {stable_mosaic.version = 11 : i64} {
  func.func @_conv_stats_kernel(%arg0: i32, %arg1: memref<288x256xf32, #tpu.memory_space<vmem>>, %arg2: memref<256x128xf32, #tpu.memory_space<vmem>>, %arg3: memref<288x128xf32, #tpu.memory_space<vmem>>, %arg4: memref<1x128xf32, #tpu.memory_space<vmem>>, %arg5: memref<1x128xf32, #tpu.memory_space<vmem>>) attributes {dimension_semantics = [#tpu.dimension_semantics<arbitrary>], iteration_bounds = array<i64: 1>, scalar_prefetch = 0 : i64, scratch_operands = 0 : i64, tpu.core_type = #tpu.core_type<tc>, window_params = [{transform_indices = @transform_0, window_bounds = array<i64: 288, 256>}, {pipeline_mode = #tpu.pipeline_mode<synchronous>, transform_indices = @transform_1, window_bounds = array<i64: 256, 128>}, {transform_indices = @transform_2, window_bounds = array<i64: 288, 128>}, {pipeline_mode = #tpu.pipeline_mode<synchronous>, transform_indices = @transform_3, window_bounds = array<i64: 1, 128>}, {pipeline_mode = #tpu.pipeline_mode<synchronous>, transform_indices = @transform_4, window_bounds = array<i64: 1, 128>}]} {
    %c0 = arith.constant 0 : index
    %c0_0 = arith.constant 0 : index
    %0 = vector.load %arg1[%c0, %c0_0] : memref<288x256xf32, #tpu.memory_space<vmem>>, vector<288x256xf32>
    %c0_1 = arith.constant 0 : index
    %c0_2 = arith.constant 0 : index
    %1 = vector.load %arg2[%c0_1, %c0_2] : memref<256x128xf32, #tpu.memory_space<vmem>>, vector<256x128xf32>
    %cst = arith.constant dense<0.000000e+00> : vector<288x128xf32>
    %2 = tpu.matmul %0, %1, %cst {dimension_numbers = #tpu.dot_dimension_numbers<[1], [0], [0], [1], [0, 0, 1, 1], [], []>} : vector<288x256xf32>, vector<256x128xf32>, vector<288x128xf32> -> vector<288x128xf32>
    %c0_3 = arith.constant 0 : index
    %c0_4 = arith.constant 0 : index
    %3 = vector.load %arg3[%c0_3, %c0_4] : memref<288x128xf32, #tpu.memory_space<vmem>>, vector<288x128xf32>
    tpu.vector_store %arg3[%c0_3, %c0_4], %2 {strides = array<i32>} : memref<288x128xf32, #tpu.memory_space<vmem>>, vector<288x128xf32>,
    %c0_i32 = arith.constant 0 : i32
    %4 = arith.cmpi eq, %arg0, %c0_i32 : i32
    %5 = arith.extui %4 : i1 to i32
    %c0_i32_5 = arith.constant 0 : i32
    %6 = arith.cmpi ne, %5, %c0_i32_5 : i32
    scf.if %6 {
      %cst_16 = arith.constant 0.000000e+00 : f32
      %18 = vector.broadcast %cst_16 : f32 to vector<1x128xf32>
      %c0_17 = arith.constant 0 : index
      %c0_18 = arith.constant 0 : index
      %19 = vector.load %arg4[%c0_17, %c0_18] : memref<1x128xf32, #tpu.memory_space<vmem>>, vector<1x128xf32>
      tpu.vector_store %arg4[%c0_17, %c0_18], %18 {strides = array<i32>} : memref<1x128xf32, #tpu.memory_space<vmem>>, vector<1x128xf32>,
      %cst_19 = arith.constant 0.000000e+00 : f32
      %20 = vector.broadcast %cst_19 : f32 to vector<1x128xf32>
      %c0_20 = arith.constant 0 : index
      %c0_21 = arith.constant 0 : index
      %21 = vector.load %arg5[%c0_20, %c0_21] : memref<1x128xf32, #tpu.memory_space<vmem>>, vector<1x128xf32>
      tpu.vector_store %arg5[%c0_20, %c0_21], %20 {strides = array<i32>} : memref<1x128xf32, #tpu.memory_space<vmem>>, vector<1x128xf32>,
    } else {
    }
    %c0_6 = arith.constant 0 : index
    %c0_7 = arith.constant 0 : index
    %7 = vector.load %arg4[%c0_6, %c0_7] : memref<1x128xf32, #tpu.memory_space<vmem>>, vector<1x128xf32>
    %cst_8 = arith.constant dense<0.000000e+00> : vector<128xf32>
    %8 = vector.multi_reduction <add>, %2, %cst_8 [0] : vector<288x128xf32> to vector<128xf32>
    %9 = vector.shape_cast %8 : vector<128xf32> to vector<1x128xf32>
    %10 = arith.addf %7, %9 : vector<1x128xf32>
    %c0_9 = arith.constant 0 : index
    %c0_10 = arith.constant 0 : index
    %11 = vector.load %arg4[%c0_9, %c0_10] : memref<1x128xf32, #tpu.memory_space<vmem>>, vector<1x128xf32>
    tpu.vector_store %arg4[%c0_9, %c0_10], %10 {strides = array<i32>} : memref<1x128xf32, #tpu.memory_space<vmem>>, vector<1x128xf32>,
    %c0_11 = arith.constant 0 : index
    %c0_12 = arith.constant 0 : index
    %12 = vector.load %arg5[%c0_11, %c0_12] : memref<1x128xf32, #tpu.memory_space<vmem>>, vector<1x128xf32>
    %13 = arith.mulf %2, %2 : vector<288x128xf32>
    %cst_13 = arith.constant dense<0.000000e+00> : vector<128xf32>
    %14 = vector.multi_reduction <add>, %13, %cst_13 [0] : vector<288x128xf32> to vector<128xf32>
    %15 = vector.shape_cast %14 : vector<128xf32> to vector<1x128xf32>
    %16 = arith.addf %12, %15 : vector<1x128xf32>
    %c0_14 = arith.constant 0 : index
    %c0_15 = arith.constant 0 : index
    %17 = vector.load %arg5[%c0_14, %c0_15] : memref<1x128xf32, #tpu.memory_space<vmem>>, vector<1x128xf32>
    tpu.vector_store %arg5[%c0_14, %c0_15], %16 {strides = array<i32>} : memref<1x128xf32, #tpu.memory_space<vmem>>, vector<1x128xf32>,
    return
  }
  func.func @transform_0(%arg0: i32) -> (i32, i32) {
    %c0_i32 = arith.constant 0 : i32
    %c0_i32_0 = arith.constant 0 : i32
    return %arg0, %c0_i32 : i32, i32
  }
  func.func @transform_1(%arg0: i32) -> (i32, i32) {
    %c0_i32 = arith.constant 0 : i32
    %c0_i32_0 = arith.constant 0 : i32
    %c0_i32_1 = arith.constant 0 : i32
    return %c0_i32, %c0_i32_0 : i32, i32
  }
  func.func @transform_2(%arg0: i32) -> (i32, i32) {
    %c0_i32 = arith.constant 0 : i32
    %c0_i32_0 = arith.constant 0 : i32
    return %arg0, %c0_i32 : i32, i32
  }
  func.func @transform_3(%arg0: i32) -> (i32, i32) {
    %c0_i32 = arith.constant 0 : i32
    %c0_i32_0 = arith.constant 0 : i32
    %c0_i32_1 = arith.constant 0 : i32
    return %c0_i32, %c0_i32_0 : i32, i32
  }
  func.func @transform_4(%arg0: i32) -> (i32, i32) {
    %c0_i32 = arith.constant 0 : i32
    %c0_i32_0 = arith.constant 0 : i32
    %c0_i32_1 = arith.constant 0 : i32
    return %c0_i32, %c0_i32_0 : i32, i32
  }
}

module attributes {stable_mosaic.version = 11 : i64} {
  func.func @_conv_stats_kernel(%arg0: i32, %arg1: memref<248x512xf32, #tpu.memory_space<vmem>>, %arg2: memref<512x128xf32, #tpu.memory_space<vmem>>, %arg3: memref<248x128xf32, #tpu.memory_space<vmem>>, %arg4: memref<1x128xf32, #tpu.memory_space<vmem>>, %arg5: memref<1x128xf32, #tpu.memory_space<vmem>>) attributes {dimension_semantics = [#tpu.dimension_semantics<arbitrary>], iteration_bounds = array<i64: 1>, scalar_prefetch = 0 : i64, scratch_operands = 0 : i64, tpu.core_type = #tpu.core_type<tc>, window_params = [{transform_indices = @transform_0, window_bounds = array<i64: 248, 512>}, {pipeline_mode = #tpu.pipeline_mode<synchronous>, transform_indices = @transform_1, window_bounds = array<i64: 512, 128>}, {transform_indices = @transform_2, window_bounds = array<i64: 248, 128>}, {pipeline_mode = #tpu.pipeline_mode<synchronous>, transform_indices = @transform_3, window_bounds = array<i64: 1, 128>}, {pipeline_mode = #tpu.pipeline_mode<synchronous>, transform_indices = @transform_4, window_bounds = array<i64: 1, 128>}]} {
    %c0 = arith.constant 0 : index
    %c0_0 = arith.constant 0 : index
    %0 = vector.load %arg1[%c0, %c0_0] : memref<248x512xf32, #tpu.memory_space<vmem>>, vector<248x512xf32>
    %c0_1 = arith.constant 0 : index
    %c0_2 = arith.constant 0 : index
    %1 = vector.load %arg2[%c0_1, %c0_2] : memref<512x128xf32, #tpu.memory_space<vmem>>, vector<512x128xf32>
    %cst = arith.constant dense<0.000000e+00> : vector<248x128xf32>
    %2 = tpu.matmul %0, %1, %cst {dimension_numbers = #tpu.dot_dimension_numbers<[1], [0], [0], [1], [0, 0, 1, 1], [], []>} : vector<248x512xf32>, vector<512x128xf32>, vector<248x128xf32> -> vector<248x128xf32>
    %c0_3 = arith.constant 0 : index
    %c0_4 = arith.constant 0 : index
    %3 = vector.load %arg3[%c0_3, %c0_4] : memref<248x128xf32, #tpu.memory_space<vmem>>, vector<248x128xf32>
    tpu.vector_store %arg3[%c0_3, %c0_4], %2 {strides = array<i32>} : memref<248x128xf32, #tpu.memory_space<vmem>>, vector<248x128xf32>,
    %c0_i32 = arith.constant 0 : i32
    %4 = arith.cmpi eq, %arg0, %c0_i32 : i32
    %5 = arith.extui %4 : i1 to i32
    %c0_i32_5 = arith.constant 0 : i32
    %6 = arith.cmpi ne, %5, %c0_i32_5 : i32
    scf.if %6 {
      %cst_16 = arith.constant 0.000000e+00 : f32
      %18 = vector.broadcast %cst_16 : f32 to vector<1x128xf32>
      %c0_17 = arith.constant 0 : index
      %c0_18 = arith.constant 0 : index
      %19 = vector.load %arg4[%c0_17, %c0_18] : memref<1x128xf32, #tpu.memory_space<vmem>>, vector<1x128xf32>
      tpu.vector_store %arg4[%c0_17, %c0_18], %18 {strides = array<i32>} : memref<1x128xf32, #tpu.memory_space<vmem>>, vector<1x128xf32>,
      %cst_19 = arith.constant 0.000000e+00 : f32
      %20 = vector.broadcast %cst_19 : f32 to vector<1x128xf32>
      %c0_20 = arith.constant 0 : index
      %c0_21 = arith.constant 0 : index
      %21 = vector.load %arg5[%c0_20, %c0_21] : memref<1x128xf32, #tpu.memory_space<vmem>>, vector<1x128xf32>
      tpu.vector_store %arg5[%c0_20, %c0_21], %20 {strides = array<i32>} : memref<1x128xf32, #tpu.memory_space<vmem>>, vector<1x128xf32>,
    } else {
    }
    %c0_6 = arith.constant 0 : index
    %c0_7 = arith.constant 0 : index
    %7 = vector.load %arg4[%c0_6, %c0_7] : memref<1x128xf32, #tpu.memory_space<vmem>>, vector<1x128xf32>
    %cst_8 = arith.constant dense<0.000000e+00> : vector<128xf32>
    %8 = vector.multi_reduction <add>, %2, %cst_8 [0] : vector<248x128xf32> to vector<128xf32>
    %9 = vector.shape_cast %8 : vector<128xf32> to vector<1x128xf32>
    %10 = arith.addf %7, %9 : vector<1x128xf32>
    %c0_9 = arith.constant 0 : index
    %c0_10 = arith.constant 0 : index
    %11 = vector.load %arg4[%c0_9, %c0_10] : memref<1x128xf32, #tpu.memory_space<vmem>>, vector<1x128xf32>
    tpu.vector_store %arg4[%c0_9, %c0_10], %10 {strides = array<i32>} : memref<1x128xf32, #tpu.memory_space<vmem>>, vector<1x128xf32>,
    %c0_11 = arith.constant 0 : index
    %c0_12 = arith.constant 0 : index
    %12 = vector.load %arg5[%c0_11, %c0_12] : memref<1x128xf32, #tpu.memory_space<vmem>>, vector<1x128xf32>
    %13 = arith.mulf %2, %2 : vector<248x128xf32>
    %cst_13 = arith.constant dense<0.000000e+00> : vector<128xf32>
    %14 = vector.multi_reduction <add>, %13, %cst_13 [0] : vector<248x128xf32> to vector<128xf32>
    %15 = vector.shape_cast %14 : vector<128xf32> to vector<1x128xf32>
    %16 = arith.addf %12, %15 : vector<1x128xf32>
    %c0_14 = arith.constant 0 : index
    %c0_15 = arith.constant 0 : index
    %17 = vector.load %arg5[%c0_14, %c0_15] : memref<1x128xf32, #tpu.memory_space<vmem>>, vector<1x128xf32>
    tpu.vector_store %arg5[%c0_14, %c0_15], %16 {strides = array<i32>} : memref<1x128xf32, #tpu.memory_space<vmem>>, vector<1x128xf32>,
    return
  }
  func.func @transform_0(%arg0: i32) -> (i32, i32) {
    %c0_i32 = arith.constant 0 : i32
    %c0_i32_0 = arith.constant 0 : i32
    return %arg0, %c0_i32 : i32, i32
  }
  func.func @transform_1(%arg0: i32) -> (i32, i32) {
    %c0_i32 = arith.constant 0 : i32
    %c0_i32_0 = arith.constant 0 : i32
    %c0_i32_1 = arith.constant 0 : i32
    return %c0_i32, %c0_i32_0 : i32, i32
  }
  func.func @transform_2(%arg0: i32) -> (i32, i32) {
    %c0_i32 = arith.constant 0 : i32
    %c0_i32_0 = arith.constant 0 : i32
    return %arg0, %c0_i32 : i32, i32
  }
  func.func @transform_3(%arg0: i32) -> (i32, i32) {
    %c0_i32 = arith.constant 0 : i32
    %c0_i32_0 = arith.constant 0 : i32
    %c0_i32_1 = arith.constant 0 : i32
    return %c0_i32, %c0_i32_0 : i32, i32
  }
  func.func @transform_4(%arg0: i32) -> (i32, i32) {
    %c0_i32 = arith.constant 0 : i32
    %c0_i32_0 = arith.constant 0 : i32
    %c0_i32_1 = arith.constant 0 : i32
    return %c0_i32, %c0_i32_0 : i32, i32
  }
}

module attributes {stable_mosaic.version = 11 : i64} {
  func.func @_bn_act_kernel(%arg0: i32, %arg1: memref<248x128xf32, #tpu.memory_space<vmem>>, %arg2: memref<1x128xf32, #tpu.memory_space<vmem>>, %arg3: memref<1x128xf32, #tpu.memory_space<vmem>>, %arg4: memref<248x128xf32, #tpu.memory_space<vmem>>) attributes {dimension_semantics = [#tpu.dimension_semantics<parallel>], iteration_bounds = array<i64: 1>, scalar_prefetch = 0 : i64, scratch_operands = 0 : i64, tpu.core_type = #tpu.core_type<tc>, window_params = [{transform_indices = @transform_0, window_bounds = array<i64: 248, 128>}, {pipeline_mode = #tpu.pipeline_mode<synchronous>, transform_indices = @transform_1, window_bounds = array<i64: 1, 128>}, {pipeline_mode = #tpu.pipeline_mode<synchronous>, transform_indices = @transform_2, window_bounds = array<i64: 1, 128>}, {transform_indices = @transform_3, window_bounds = array<i64: 248, 128>}]} {
    %c0 = arith.constant 0 : index
    %c0_0 = arith.constant 0 : index
    %0 = vector.load %arg1[%c0, %c0_0] : memref<248x128xf32, #tpu.memory_space<vmem>>, vector<248x128xf32>
    %c0_1 = arith.constant 0 : index
    %c0_2 = arith.constant 0 : index
    %1 = vector.load %arg2[%c0_1, %c0_2] : memref<1x128xf32, #tpu.memory_space<vmem>>, vector<1x128xf32>
    %2 = vector.broadcast %1 : vector<1x128xf32> to vector<248x128xf32>
    %3 = arith.mulf %0, %2 : vector<248x128xf32>
    %c0_3 = arith.constant 0 : index
    %c0_4 = arith.constant 0 : index
    %4 = vector.load %arg3[%c0_3, %c0_4] : memref<1x128xf32, #tpu.memory_space<vmem>>, vector<1x128xf32>
    %5 = vector.broadcast %4 : vector<1x128xf32> to vector<248x128xf32>
    %6 = arith.addf %3, %5 : vector<248x128xf32>
    %cst = arith.constant 0.000000e+00 : f32
    %7 = vector.broadcast %cst : f32 to vector<248x128xf32>
    %8 = arith.cmpf ogt, %6, %7 : vector<248x128xf32>
    %cst_5 = arith.constant 2.000000e-01 : f32
    %9 = vector.broadcast %cst_5 : f32 to vector<248x128xf32>
    %10 = arith.mulf %9, %6 : vector<248x128xf32>
    %11 = arith.select %8, %6, %10 : vector<248x128xi1>, vector<248x128xf32>
    %c0_6 = arith.constant 0 : index
    %c0_7 = arith.constant 0 : index
    %12 = vector.load %arg4[%c0_6, %c0_7] : memref<248x128xf32, #tpu.memory_space<vmem>>, vector<248x128xf32>
    tpu.vector_store %arg4[%c0_6, %c0_7], %11 {strides = array<i32>} : memref<248x128xf32, #tpu.memory_space<vmem>>, vector<248x128xf32>,
    return
  }
  func.func @transform_0(%arg0: i32) -> (i32, i32) {
    %c0_i32 = arith.constant 0 : i32
    %c0_i32_0 = arith.constant 0 : i32
    return %arg0, %c0_i32 : i32, i32
  }
  func.func @transform_1(%arg0: i32) -> (i32, i32) {
    %c0_i32 = arith.constant 0 : i32
    %c0_i32_0 = arith.constant 0 : i32
    %c0_i32_1 = arith.constant 0 : i32
    return %c0_i32, %c0_i32_0 : i32, i32
  }
  func.func @transform_2(%arg0: i32) -> (i32, i32) {
    %c0_i32 = arith.constant 0 : i32
    %c0_i32_0 = arith.constant 0 : i32
    %c0_i32_1 = arith.constant 0 : i32
    return %c0_i32, %c0_i32_0 : i32, i32
  }
  func.func @transform_3(%arg0: i32) -> (i32, i32) {
    %c0_i32 = arith.constant 0 : i32
    %c0_i32_0 = arith.constant 0 : i32
    return %arg0, %c0_i32 : i32, i32
  }
}

module attributes {stable_mosaic.version = 11 : i64} {
  func.func @_conv_bias_act_kernel(%arg0: i32, %arg1: memref<200x1024xf32, #tpu.memory_space<vmem>>, %arg2: memref<1024x128xf32, #tpu.memory_space<vmem>>, %arg3: memref<1x128xf32, #tpu.memory_space<vmem>>, %arg4: memref<200x128xf32, #tpu.memory_space<vmem>>) attributes {dimension_semantics = [#tpu.dimension_semantics<parallel>], iteration_bounds = array<i64: 1>, scalar_prefetch = 0 : i64, scratch_operands = 0 : i64, tpu.core_type = #tpu.core_type<tc>, window_params = [{transform_indices = @transform_0, window_bounds = array<i64: 200, 1024>}, {pipeline_mode = #tpu.pipeline_mode<synchronous>, transform_indices = @transform_1, window_bounds = array<i64: 1024, 128>}, {pipeline_mode = #tpu.pipeline_mode<synchronous>, transform_indices = @transform_2, window_bounds = array<i64: 1, 128>}, {transform_indices = @transform_3, window_bounds = array<i64: 200, 128>}]} {
    %c0 = arith.constant 0 : index
    %c0_0 = arith.constant 0 : index
    %0 = vector.load %arg1[%c0, %c0_0] : memref<200x1024xf32, #tpu.memory_space<vmem>>, vector<200x1024xf32>
    %c0_1 = arith.constant 0 : index
    %c0_2 = arith.constant 0 : index
    %1 = vector.load %arg2[%c0_1, %c0_2] : memref<1024x128xf32, #tpu.memory_space<vmem>>, vector<1024x128xf32>
    %cst = arith.constant dense<0.000000e+00> : vector<200x128xf32>
    %2 = tpu.matmul %0, %1, %cst {dimension_numbers = #tpu.dot_dimension_numbers<[1], [0], [0], [1], [0, 0, 1, 1], [], []>} : vector<200x1024xf32>, vector<1024x128xf32>, vector<200x128xf32> -> vector<200x128xf32>
    %c0_3 = arith.constant 0 : index
    %c0_4 = arith.constant 0 : index
    %3 = vector.load %arg3[%c0_3, %c0_4] : memref<1x128xf32, #tpu.memory_space<vmem>>, vector<1x128xf32>
    %4 = vector.broadcast %3 : vector<1x128xf32> to vector<200x128xf32>
    %5 = arith.addf %2, %4 : vector<200x128xf32>
    %c0_5 = arith.constant 0 : index
    %c0_6 = arith.constant 0 : index
    %6 = vector.load %arg4[%c0_5, %c0_6] : memref<200x128xf32, #tpu.memory_space<vmem>>, vector<200x128xf32>
    tpu.vector_store %arg4[%c0_5, %c0_6], %5 {strides = array<i32>} : memref<200x128xf32, #tpu.memory_space<vmem>>, vector<200x128xf32>,
    return
  }
  func.func @transform_0(%arg0: i32) -> (i32, i32) {
    %c0_i32 = arith.constant 0 : i32
    %c0_i32_0 = arith.constant 0 : i32
    return %arg0, %c0_i32 : i32, i32
  }
  func.func @transform_1(%arg0: i32) -> (i32, i32) {
    %c0_i32 = arith.constant 0 : i32
    %c0_i32_0 = arith.constant 0 : i32
    %c0_i32_1 = arith.constant 0 : i32
    return %c0_i32, %c0_i32_0 : i32, i32
  }
  func.func @transform_2(%arg0: i32) -> (i32, i32) {
    %c0_i32 = arith.constant 0 : i32
    %c0_i32_0 = arith.constant 0 : i32
    %c0_i32_1 = arith.constant 0 : i32
    return %c0_i32, %c0_i32_0 : i32, i32
  }
  func.func @transform_3(%arg0: i32) -> (i32, i32) {
    %c0_i32 = arith.constant 0 : i32
    %c0_i32_0 = arith.constant 0 : i32
    return %arg0, %c0_i32 : i32, i32
  }
}

</mosaic_0001>

<bundles_post_ra>
// kernel: _lambda_.8
= control target key start
LH: loop header
LB: loop body
LE: loop exit
PB: predicated region body
PF: predicated region fallthrough
CT: control target
= control target key end

     0   :  { %s1100_s12 = smov 0   ;;  %s1413_s0 = inlined_call_operand.vmem [shape: f32[4608,64], index: 0, kind: input, shape index: {}]   ;;  %s1414_s1 = inlined_call_operand.vmem [shape: f32[64,128], index: 1, kind: input, shape index: {}]   ;;  %s1415_s2 = inlined_call_operand.vmem [shape: f32[1,128], index: 2, kind: input, shape index: {}]   ;;  %s1416_s3 = inlined_call_operand.vmem [shape: f32[4608,128], index: 3, kind: output, shape index: {}]  }
   0x1 LB: > { %s964_s13 = sadd.s32 4294967295, %s1078_s12   ;;  %p968_p0 = scmp.ge.s32.totalorder %s1078_s12, 1  ;;  %s1078_s12 = sphi %s1100_s12, %s13_s12  }
   0x2   : > { %p138_p1 = scmp.lt.s32.totalorder %s1078_s12, 10 }
   0x4   : > { %p139_p2 = pnand %p968_p0, %p138_p1 }
   0x5   : > { %s969_s18 = sshll.u32 (!%p139_p2), %s964_s13, 6 }
   0x6   : > { %142 = sbr.rel (%p139_p2) target bundleno = 286 (0x11e), region = 32  ;;  %p163_p3 = scmp.lt.s32.totalorder (!%p139_p2), %s969_s18, 575 }
   0xb   : > { %v245_v0 = vld [vmem:[%s1414_s1 + $0x38] sm:$0xff]  ;;  %v244_v1 = vld [vmem:[%s1414_s1 + $0x30] sm:$0xff]  ;;  %v243_v2 = vld [vmem:[%s1414_s1 + $0x28] sm:$0xff]  ;;  %s1418_s18 = smov (!%p163_p3, %s969_s18), 575  ;;  %vm250_vm0 = vcmask 523264  }
   0xc   : > { %1040 = vmatpush.msra.mxu2 %v245_v0  ;;  %1041 = vmatpush.msra.mxu3 %v245_v0  ;;  %v242_v3 = vld [vmem:[%s1414_s1 + $0x20] sm:$0xff]  ;;  %v241_v4 = vld [vmem:[%s1414_s1 + $0x18] sm:$0xff]  ;;  %s970_s25 = sshll.u32 %s1418_s18, 3  ;;  %v240_v5 = vld [vmem:[%s1414_s1 + $0x10] sm:$0xff] }
   0xd   : > { %451 = vmatpush.msra.mxu0 %v245_v0  ;;  %1039 = vmatpush.msra.mxu1 %v245_v0  ;;  %v239_v6 = vld [vmem:[%s1414_s1 + $0x8] sm:$0xff]  ;;  %s1137_s5 = scalar_lea.vmem %s1413_s0, %s970_s25  ;;  %v238_v7 = vld [vmem:[%s1414_s1] sm:$0xff]  ;;  %s1282_s13 = scalar_lea.vmem %s1416_s3, %s970_s25 }
   0xe   : > { %1043 = vmatpush.msra.mxu2 %v244_v1  ;;  %1044 = vmatpush.msra.mxu3 %v244_v1  ;;  %v206_v8 = vld [vmem:[%s1137_s5 + $0x100] sm:$0xff]  ;;  %v207_v12 = vld [vmem:[%s1137_s5 + $0x108] sm:$0xff]  ;;  %v208_v16 = vld [vmem:[%s1137_s5 + $0x110] sm:$0xff] }
   0xf   : > { %452 = vmatpush.msra.mxu0 %v244_v1  ;;  %1042 = vmatpush.msra.mxu1 %v244_v1  ;;  %v222_v9 = vld [vmem:[%s1137_s5 + $0x180] sm:$0xff]  ;;  %v223_v13 = vld [vmem:[%s1137_s5 + $0x188] sm:$0xff]  ;;  %v224_v17 = vld [vmem:[%s1137_s5 + $0x190] sm:$0xff] }
  0x10   : > { %1046 = vmatpush.msra.mxu2 %v243_v2  ;;  %1047 = vmatpush.msra.mxu3 %v243_v2  ;;  %v174_v10 = vld [vmem:[%s1137_s5] sm:$0xff]  ;;  %v175_v14 = vld [vmem:[%s1137_s5 + $0x8] sm:$0xff]  ;;  %v176_v18 = vld [vmem:[%s1137_s5 + $0x10] sm:$0xff] }
  0x11   : > { %453 = vmatpush.msra.mxu0 %v243_v2  ;;  %1045 = vmatpush.msra.mxu1 %v243_v2  ;;  %v190_v11 = vld [vmem:[%s1137_s5 + $0x80] sm:$0xff]  ;;  %v191_v15 = vld [vmem:[%s1137_s5 + $0x88] sm:$0xff]  ;;  %v192_v19 = vld [vmem:[%s1137_s5 + $0x90] sm:$0xff] }
  0x12   : > { %1049 = vmatpush.msra.mxu2 %v242_v3  ;;  %1050 = vmatpush.msra.mxu3 %v242_v3  ;;  %v209_v20 = vld [vmem:[%s1137_s5 + $0x118] sm:$0xff]  ;;  %v210_v24 = vld [vmem:[%s1137_s5 + $0x120] sm:$0xff]  ;;  %v211_v28 = vld [vmem:[%s1137_s5 + $0x128] sm:$0xff] }
  0x13   : > { %454 = vmatpush.msra.mxu0 %v242_v3  ;;  %1048 = vmatpush.msra.mxu1 %v242_v3  ;;  %v225_v21 = vld [vmem:[%s1137_s5 + $0x198] sm:$0xff]  ;;  %v226_v25 = vld [vmem:[%s1137_s5 + $0x1a0] sm:$0xff]  ;;  %v227_v29 = vld [vmem:[%s1137_s5 + $0x1a8] sm:$0xff] }
  0x14   : > { %1052 = vmatpush.msra.mxu2 %v241_v4  ;;  %1053 = vmatpush.msra.mxu3 %v241_v4  ;;  %v177_v22 = vld [vmem:[%s1137_s5 + $0x18] sm:$0xff]  ;;  %v178_v26 = vld [vmem:[%s1137_s5 + $0x20] sm:$0xff]  ;;  %v179_v30 = vld [vmem:[%s1137_s5 + $0x28] sm:$0xff] }
  0x15   : > { %455 = vmatpush.msra.mxu0 %v241_v4  ;;  %1051 = vmatpush.msra.mxu1 %v241_v4  ;;  %v193_v23 = vld [vmem:[%s1137_s5 + $0x98] sm:$0xff]  ;;  %v194_v27 = vld [vmem:[%s1137_s5 + $0xa0] sm:$0xff]  ;;  %v195_v31 = vld [vmem:[%s1137_s5 + $0xa8] sm:$0xff] }
  0x16   : > { %1055 = vmatpush.msra.mxu2 %v240_v5  ;;  %1056 = vmatpush.msra.mxu3 %v240_v5  ;;  %v212_v32 = vld [vmem:[%s1137_s5 + $0x130] sm:$0xff]  ;;  %v213_v36 = vld [vmem:[%s1137_s5 + $0x138] sm:$0xff]  ;;  %v214_v40 = vld [vmem:[%s1137_s5 + $0x140] sm:$0xff] }
  0x17   : > { %456 = vmatpush.msra.mxu0 %v240_v5  ;;  %1054 = vmatpush.msra.mxu1 %v240_v5  ;;  %v228_v33 = vld [vmem:[%s1137_s5 + $0x1b0] sm:$0xff]  ;;  %v229_v37 = vld [vmem:[%s1137_s5 + $0x1b8] sm:$0xff]  ;;  %v230_v41 = vld [vmem:[%s1137_s5 + $0x1c0] sm:$0xff] }
  0x18   : > { %1058 = vmatpush.msra.mxu2 %v239_v6  ;;  %1059 = vmatpush.msra.mxu3 %v239_v6  ;;  %v180_v34 = vld [vmem:[%s1137_s5 + $0x30] sm:$0xff]  ;;  %v181_v38 = vld [vmem:[%s1137_s5 + $0x38] sm:$0xff]  ;;  %v182_v42 = vld [vmem:[%s1137_s5 + $0x40] sm:$0xff] }
  0x19   : > { %457 = vmatpush.msra.mxu0 %v239_v6  ;;  %1057 = vmatpush.msra.mxu1 %v239_v6  ;;  %v196_v35 = vld [vmem:[%s1137_s5 + $0xb0] sm:$0xff]  ;;  %v197_v39 = vld [vmem:[%s1137_s5 + $0xb8] sm:$0xff]  ;;  %v198_v43 = vld [vmem:[%s1137_s5 + $0xc0] sm:$0xff] }
  0x1a   : > { %1061 = vmatpush.msra.mxu2 %v238_v7  ;;  %1062 = vmatpush.msra.mxu3 %v238_v7  ;;  %v215_v44 = vld [vmem:[%s1137_s5 + $0x148] sm:$0xff]  ;;  %v216_v48 = vld [vmem:[%s1137_s5 + $0x150] sm:$0xff]  ;;  %v217_v52 = vld [vmem:[%s1137_s5 + $0x158] sm:$0xff] }
  0x1b   : > { %1005 = vmatmul.msk.f32.vlgmr.msra.gmra.mxu2 %vm250_vm0, %v206_v8  ;;  %1021 = vmatmul.msk.f32.vlgmr.msra.gmra.mxu3 %vm250_vm0, %v222_v9  ;;  %v231_v45 = vld [vmem:[%s1137_s5 + $0x1c8] sm:$0xff]  ;;  %v232_v49 = vld [vmem:[%s1137_s5 + $0x1d0] sm:$0xff]  ;;  %v233_v53 = vld [vmem:[%s1137_s5 + $0x1d8] sm:$0xff] }
  0x1c   : > { %458 = vmatpush.msra.mxu0 %v238_v7  ;;  %1060 = vmatpush.msra.mxu1 %v238_v7  ;;  %v183_v46 = vld [vmem:[%s1137_s5 + $0x48] sm:$0xff]  ;;  %v184_v50 = vld [vmem:[%s1137_s5 + $0x50] sm:$0xff]  ;;  %v185_v54 = vld [vmem:[%s1137_s5 + $0x58] sm:$0xff] }
  0x1d   : > { %973 = vmatmul.msk.f32.vlgmr.msra.gmra.mxu0 %vm250_vm0, %v174_v10  ;;  %989 = vmatmul.msk.f32.vlgmr.msra.gmra.mxu1 %vm250_vm0, %v190_v11  ;;  %v199_v47 = vld [vmem:[%s1137_s5 + $0xc8] sm:$0xff]  ;;  %v200_v51 = vld [vmem:[%s1137_s5 + $0xd0] sm:$0xff]  ;;  %v201_v55 = vld [vmem:[%s1137_s5 + $0xd8] sm:$0xff] }
  0x1e   : > { %v218_v56 = vld [vmem:[%s1137_s5 + $0x160] sm:$0xff]  ;;  %v219_v60 = vld [vmem:[%s1137_s5 + $0x168] sm:$0xff]  ;;  %v220_v0 = vld [vmem:[%s1137_s5 + $0x170] sm:$0xff] }
  0x1f   : > { %v234_v57 = vld [vmem:[%s1137_s5 + $0x1e0] sm:$0xff]  ;;  %v235_v61 = vld [vmem:[%s1137_s5 + $0x1e8] sm:$0xff]  ;;  %v236_v1 = vld [vmem:[%s1137_s5 + $0x1f0] sm:$0xff] }
  0x20   : > { %v186_v58 = vld [vmem:[%s1137_s5 + $0x60] sm:$0xff]  ;;  %v187_v62 = vld [vmem:[%s1137_s5 + $0x68] sm:$0xff]  ;;  %v188_v2 = vld [vmem:[%s1137_s5 + $0x70] sm:$0xff] }
  0x21   : > { %v202_v59 = vld [vmem:[%s1137_s5 + $0xe0] sm:$0xff]  ;;  %v203_v63 = vld [vmem:[%s1137_s5 + $0xe8] sm:$0xff]  ;;  %v204_v3 = vld [vmem:[%s1137_s5 + $0xf0] sm:$0xff] }
  0x22   : > { %v221_v4 = vld [vmem:[%s1137_s5 + $0x178] sm:$0xff]  ;;  %v1273_v8 = vld [vmem:[%s1415_s2] ss:$0 sm:$0xff] }
  0x23   : > { %1006 = vmatmul.msk.f32.gmra.mxu2 %vm250_vm0, %v207_v12  ;;  %1022 = vmatmul.msk.f32.gmra.mxu3 %vm250_vm0, %v223_v13  ;;  %v237_v5 = vld [vmem:[%s1137_s5 + $0x1f8] sm:$0xff] }
  0x24   : > { %v189_v6 = vld [vmem:[%s1137_s5 + $0x78] sm:$0xff] }
  0x25   : > { %974 = vmatmul.msk.f32.gmra.mxu0 %vm250_vm0, %v175_v14  ;;  %990 = vmatmul.msk.f32.gmra.mxu1 %vm250_vm0, %v191_v15  ;;  %v205_v7 = vld [vmem:[%s1137_s5 + $0xf8] sm:$0xff] }
  0x2b   : > { %1007 = vmatmul.msk.f32.gmra.mxu2 %vm250_vm0, %v208_v16  ;;  %1023 = vmatmul.msk.f32.gmra.mxu3 %vm250_vm0, %v224_v17 }
  0x2d   : > { %975 = vmatmul.msk.f32.gmra.mxu0 %vm250_vm0, %v176_v18  ;;  %991 = vmatmul.msk.f32.gmra.mxu1 %vm250_vm0, %v192_v19 }
  0x33   : > { %1008 = vmatmul.msk.f32.gmra.mxu2 %vm250_vm0, %v209_v20  ;;  %1024 = vmatmul.msk.f32.gmra.mxu3 %vm250_vm0, %v225_v21 }
  0x35   : > { %976 = vmatmul.msk.f32.gmra.mxu0 %vm250_vm0, %v177_v22  ;;  %992 = vmatmul.msk.f32.gmra.mxu1 %vm250_vm0, %v193_v23 }
  0x3b   : > { %1009 = vmatmul.msk.f32.gmra.mxu2 %vm250_vm0, %v210_v24  ;;  %1025 = vmatmul.msk.f32.gmra.mxu3 %vm250_vm0, %v226_v25 }
  0x3d   : > { %977 = vmatmul.msk.f32.gmra.mxu0 %vm250_vm0, %v178_v26  ;;  %993 = vmatmul.msk.f32.gmra.mxu1 %vm250_vm0, %v194_v27 }
  0x43   : > { %1010 = vmatmul.msk.f32.gmra.mxu2 %vm250_vm0, %v211_v28  ;;  %1026 = vmatmul.msk.f32.gmra.mxu3 %vm250_vm0, %v227_v29 }
  0x45   : > { %978 = vmatmul.msk.f32.gmra.mxu0 %vm250_vm0, %v179_v30  ;;  %994 = vmatmul.msk.f32.gmra.mxu1 %vm250_vm0, %v195_v31 }
  0x4b   : > { %1011 = vmatmul.msk.f32.gmra.mxu2 %vm250_vm0, %v212_v32  ;;  %1027 = vmatmul.msk.f32.gmra.mxu3 %vm250_vm0, %v228_v33 }
  0x4d   : > { %979 = vmatmul.msk.f32.gmra.mxu0 %vm250_vm0, %v180_v34  ;;  %995 = vmatmul.msk.f32.gmra.mxu1 %vm250_vm0, %v196_v35 }
  0x53   : > { %1012 = vmatmul.msk.f32.gmra.mxu2 %vm250_vm0, %v213_v36  ;;  %1028 = vmatmul.msk.f32.gmra.mxu3 %vm250_vm0, %v229_v37 }
  0x55   : > { %980 = vmatmul.msk.f32.gmra.mxu0 %vm250_vm0, %v181_v38  ;;  %996 = vmatmul.msk.f32.gmra.mxu1 %vm250_vm0, %v197_v39 }
  0x5b   : > { %1013 = vmatmul.msk.f32.gmra.mxu2 %vm250_vm0, %v214_v40  ;;  %1029 = vmatmul.msk.f32.gmra.mxu3 %vm250_vm0, %v230_v41 }
  0x5d   : > { %981 = vmatmul.msk.f32.gmra.mxu0 %vm250_vm0, %v182_v42  ;;  %997 = vmatmul.msk.f32.gmra.mxu1 %vm250_vm0, %v198_v43 }
  0x63   : > { %1014 = vmatmul.msk.f32.gmra.mxu2 %vm250_vm0, %v215_v44  ;;  %1030 = vmatmul.msk.f32.gmra.mxu3 %vm250_vm0, %v231_v45 }
  0x65   : > { %982 = vmatmul.msk.f32.gmra.mxu0 %vm250_vm0, %v183_v46  ;;  %998 = vmatmul.msk.f32.gmra.mxu1 %vm250_vm0, %v199_v47 }
  0x6b   : > { %1015 = vmatmul.msk.f32.gmra.mxu2 %vm250_vm0, %v216_v48  ;;  %1031 = vmatmul.msk.f32.gmra.mxu3 %vm250_vm0, %v232_v49 }
  0x6d   : > { %983 = vmatmul.msk.f32.gmra.mxu0 %vm250_vm0, %v184_v50  ;;  %999 = vmatmul.msk.f32.gmra.mxu1 %vm250_vm0, %v200_v51 }
  0x73   : > { %1016 = vmatmul.msk.f32.gmra.mxu2 %vm250_vm0, %v217_v52  ;;  %1032 = vmatmul.msk.f32.gmra.mxu3 %vm250_vm0, %v233_v53 }
  0x75   : > { %984 = vmatmul.msk.f32.gmra.mxu0 %vm250_vm0, %v185_v54  ;;  %1000 = vmatmul.msk.f32.gmra.mxu1 %vm250_vm0, %v201_v55 }
  0x7b   : > { %1017 = vmatmul.msk.f32.gmra.mxu2 %vm250_vm0, %v218_v56  ;;  %1033 = vmatmul.msk.f32.gmra.mxu3 %vm250_vm0, %v234_v57 }
  0x7d   : > { %985 = vmatmul.msk.f32.gmra.mxu0 %vm250_vm0, %v186_v58  ;;  %1001 = vmatmul.msk.f32.gmra.mxu1 %vm250_vm0, %v202_v59 }
  0x83   : > { %1018 = vmatmul.msk.f32.gmra.mxu2 %vm250_vm0, %v219_v60  ;;  %1034 = vmatmul.msk.f32.gmra.mxu3 %vm250_vm0, %v235_v61 }
  0x85   : > { %986 = vmatmul.msk.f32.gmra.mxu0 %vm250_vm0, %v187_v62  ;;  %1002 = vmatmul.msk.f32.gmra.mxu1 %vm250_vm0, %v203_v63 }
  0x8b   : > { %1019 = vmatmul.msk.f32.gmra.mxu2 %vm250_vm0, %v220_v0  ;;  %1035 = vmatmul.msk.f32.gmra.mxu3 %vm250_vm0, %v236_v1 }
  0x8d   : > { %987 = vmatmul.msk.f32.gmra.mxu0 %vm250_vm0, %v188_v2  ;;  %1003 = vmatmul.msk.f32.gmra.mxu1 %vm250_vm0, %v204_v3 }
  0x93   : > { %1020 = vmatmul.msk.f32.gmra.mxu2 %vm250_vm0, %v221_v4  ;;  %1036 = vmatmul.msk.f32.gmra.mxu3 %vm250_vm0, %v237_v5 }
  0x95   : > { %988 = vmatmul.msk.f32.gmra.mxu0 %vm250_vm0, %v189_v6  ;;  %1004 = vmatmul.msk.f32.gmra.mxu1 %vm250_vm0, %v205_v7 }
  0x9a   : > { %v460_v9 = vpop.f32.mrf.mxu0  ;;  %v508_v10 = vpop.f32.mrf.mxu1 }
  0x9b   : > { %v461_v11 = vadd.f32 %v1273_v8, %v460_v9  ;;  %v509_v12 = vadd.f32 %v1273_v8, %v508_v10 }
  0x9d   : > { %vm652_vm1 = vcmp.gt.f32.partialorder %v461_v11, 0.0  ;;  %v716_v13 = vmul.f32 0.2, %v461_v11  ;;  %vm668_vm2 = vcmp.gt.f32.partialorder %v509_v12, 0.0  ;;  %v732_v14 = vmul.f32 0.2, %v509_v12 }
  0x9e   : > { %v556_v15 = vpop.f32.mrf.mxu2  ;;  %v604_v16 = vpop.f32.mrf.mxu3 }
  0x9f   : > { %v780_v17 = vsel %vm652_vm1, %v461_v11, %v716_v13  ;;  %v796_v18 = vsel %vm668_vm2, %v509_v12, %v732_v14  ;;  %v557_v19 = vadd.f32 %v1273_v8, %v556_v15  ;;  %v605_v20 = vadd.f32 %v1273_v8, %v604_v16 }
  0xa0   : > { %844 = vst [vmem:[%s1282_s13] sm:$0xff] %v780_v17 }
  0xa1   : > { %860 = vst [vmem:[%s1282_s13 + $0x80] sm:$0xff] %v796_v18  ;;  %vm684_vm3 = vcmp.gt.f32.partialorder %v557_v19, 0.0  ;;  %v748_v21 = vmul.f32 0.2, %v557_v19  ;;  %vm700_vm4 = vcmp.gt.f32.partialorder %v605_v20, 0.0 }
  0xa2   : > { %v764_v22 = vmul.f32 0.2, %v605_v20  ;;  %v463_v23 = vpop.f32.mrf.mxu0  ;;  %v511_v24 = vpop.f32.mrf.mxu1 }
  0xa3   : > { %v812_v25 = vsel %vm684_vm3, %v557_v19, %v748_v21  ;;  %v464_v26 = vadd.f32 %v1273_v8, %v463_v23  ;;  %v512_v27 = vadd.f32 %v1273_v8, %v511_v24 }
  0xa4   : > { %876 = vst [vmem:[%s1282_s13 + $0x100] sm:$0xff] %v812_v25  ;;  %v828_v28 = vsel %vm700_vm4, %v605_v20, %v764_v22 }
  0xa5   : > { %892 = vst [vmem:[%s1282_s13 + $0x180] sm:$0xff] %v828_v28  ;;  %vm653_vm5 = vcmp.gt.f32.partialorder %v464_v26, 0.0  ;;  %v717_v29 = vmul.f32 0.2, %v464_v26  ;;  %vm669_vm6 = vcmp.gt.f32.partialorder %v512_v27, 0.0 }
  0xa6   : > { %v733_v30 = vmul.f32 0.2, %v512_v27  ;;  %v559_v31 = vpop.f32.mrf.mxu2  ;;  %v607_v32 = vpop.f32.mrf.mxu3 }
  0xa7   : > { %v781_v33 = vsel %vm653_vm5, %v464_v26, %v717_v29  ;;  %v560_v34 = vadd.f32 %v1273_v8, %v559_v31  ;;  %v608_v35 = vadd.f32 %v1273_v8, %v607_v32 }
  0xa8   : > { %845 = vst [vmem:[%s1282_s13 + $0x8] sm:$0xff] %v781_v33  ;;  %v797_v36 = vsel %vm669_vm6, %v512_v27, %v733_v30 }
  0xa9   : > { %861 = vst [vmem:[%s1282_s13 + $0x88] sm:$0xff] %v797_v36  ;;  %vm685_vm7 = vcmp.gt.f32.partialorder %v560_v34, 0.0  ;;  %v749_v37 = vmul.f32 0.2, %v560_v34  ;;  %vm701_vm8 = vcmp.gt.f32.partialorder %v608_v35, 0.0 }
  0xaa   : > { %v765_v38 = vmul.f32 0.2, %v608_v35  ;;  %v466_v39 = vpop.f32.mrf.mxu0  ;;  %v514_v40 = vpop.f32.mrf.mxu1 }
  0xab   : > { %v813_v41 = vsel %vm685_vm7, %v560_v34, %v749_v37  ;;  %v467_v42 = vadd.f32 %v1273_v8, %v466_v39  ;;  %v515_v43 = vadd.f32 %v1273_v8, %v514_v40 }
  0xac   : > { %877 = vst [vmem:[%s1282_s13 + $0x108] sm:$0xff] %v813_v41  ;;  %v829_v44 = vsel %vm701_vm8, %v608_v35, %v765_v38 }
  0xad   : > { %893 = vst [vmem:[%s1282_s13 + $0x188] sm:$0xff] %v829_v44  ;;  %vm654_vm9 = vcmp.gt.f32.partialorder %v467_v42, 0.0  ;;  %v718_v45 = vmul.f32 0.2, %v467_v42  ;;  %vm670_vm10 = vcmp.gt.f32.partialorder %v515_v43, 0.0 }
  0xae   : > { %v734_v46 = vmul.f32 0.2, %v515_v43  ;;  %v562_v47 = vpop.f32.mrf.mxu2  ;;  %v610_v48 = vpop.f32.mrf.mxu3 }
  0xaf   : > { %v782_v49 = vsel %vm654_vm9, %v467_v42, %v718_v45  ;;  %v563_v50 = vadd.f32 %v1273_v8, %v562_v47  ;;  %v611_v51 = vadd.f32 %v1273_v8, %v610_v48 }
  0xb0   : > { %846 = vst [vmem:[%s1282_s13 + $0x10] sm:$0xff] %v782_v49  ;;  %v798_v52 = vsel %vm670_vm10, %v515_v43, %v734_v46 }
  0xb1   : > { %862 = vst [vmem:[%s1282_s13 + $0x90] sm:$0xff] %v798_v52  ;;  %vm686_vm11 = vcmp.gt.f32.partialorder %v563_v50, 0.0  ;;  %v750_v53 = vmul.f32 0.2, %v563_v50  ;;  %vm702_vm12 = vcmp.gt.f32.partialorder %v611_v51, 0.0 }
  0xb2   : > { %v766_v54 = vmul.f32 0.2, %v611_v51  ;;  %v469_v55 = vpop.f32.mrf.mxu0  ;;  %v517_v56 = vpop.f32.mrf.mxu1 }
  0xb3   : > { %v814_v57 = vsel %vm686_vm11, %v563_v50, %v750_v53  ;;  %v470_v58 = vadd.f32 %v1273_v8, %v469_v55  ;;  %v518_v59 = vadd.f32 %v1273_v8, %v517_v56 }
  0xb4   : > { %878 = vst [vmem:[%s1282_s13 + $0x110] sm:$0xff] %v814_v57  ;;  %v830_v60 = vsel %vm702_vm12, %v611_v51, %v766_v54 }
  0xb5   : > { %894 = vst [vmem:[%s1282_s13 + $0x190] sm:$0xff] %v830_v60  ;;  %vm655_vm13 = vcmp.gt.f32.partialorder %v470_v58, 0.0  ;;  %v719_v61 = vmul.f32 0.2, %v470_v58  ;;  %vm671_vm14 = vcmp.gt.f32.partialorder %v518_v59, 0.0 }
  0xb6   : > { %v735_v62 = vmul.f32 0.2, %v518_v59  ;;  %v565_v63 = vpop.f32.mrf.mxu2  ;;  %v613_v0 = vpop.f32.mrf.mxu3 }
  0xb7   : > { %v783_v1 = vsel %vm655_vm13, %v470_v58, %v719_v61  ;;  %v566_v2 = vadd.f32 %v1273_v8, %v565_v63  ;;  %v614_v3 = vadd.f32 %v1273_v8, %v613_v0 }
  0xb8   : > { %847 = vst [vmem:[%s1282_s13 + $0x18] sm:$0xff] %v783_v1  ;;  %v799_v4 = vsel %vm671_vm14, %v518_v59, %v735_v62 }
  0xb9   : > { %863 = vst [vmem:[%s1282_s13 + $0x98] sm:$0xff] %v799_v4  ;;  %vm687_vm15 = vcmp.gt.f32.partialorder %v566_v2, 0.0  ;;  %v751_v5 = vmul.f32 0.2, %v566_v2  ;;  %vm703_vm0 = vcmp.gt.f32.partialorder %v614_v3, 0.0 }
  0xba   : > { %v767_v6 = vmul.f32 0.2, %v614_v3  ;;  %v472_v7 = vpop.f32.mrf.mxu0  ;;  %v520_v9 = vpop.f32.mrf.mxu1 }
  0xbb   : > { %v815_v10 = vsel %vm687_vm15, %v566_v2, %v751_v5  ;;  %v473_v11 = vadd.f32 %v1273_v8, %v472_v7  ;;  %v521_v12 = vadd.f32 %v1273_v8, %v520_v9 }
  0xbc   : > { %879 = vst [vmem:[%s1282_s13 + $0x118] sm:$0xff] %v815_v10  ;;  %v831_v13 = vsel %vm703_vm0, %v614_v3, %v767_v6 }
  0xbd   : > { %895 = vst [vmem:[%s1282_s13 + $0x198] sm:$0xff] %v831_v13  ;;  %vm656_vm1 = vcmp.gt.f32.partialorder %v473_v11, 0.0  ;;  %v720_v14 = vmul.f32 0.2, %v473_v11  ;;  %vm672_vm2 = vcmp.gt.f32.partialorder %v521_v12, 0.0 }
  0xbe   : > { %v736_v15 = vmul.f32 0.2, %v521_v12  ;;  %v568_v16 = vpop.f32.mrf.mxu2  ;;  %v616_v17 = vpop.f32.mrf.mxu3 }
  0xbf   : > { %v784_v18 = vsel %vm656_vm1, %v473_v11, %v720_v14  ;;  %v569_v19 = vadd.f32 %v1273_v8, %v568_v16  ;;  %v617_v20 = vadd.f32 %v1273_v8, %v616_v17 }
  0xc0   : > { %848 = vst [vmem:[%s1282_s13 + $0x20] sm:$0xff] %v784_v18  ;;  %v800_v21 = vsel %vm672_vm2, %v521_v12, %v736_v15 }
  0xc1   : > { %864 = vst [vmem:[%s1282_s13 + $0xa0] sm:$0xff] %v800_v21  ;;  %vm688_vm3 = vcmp.gt.f32.partialorder %v569_v19, 0.0  ;;  %v752_v22 = vmul.f32 0.2, %v569_v19  ;;  %vm704_vm4 = vcmp.gt.f32.partialorder %v617_v20, 0.0 }
  0xc2   : > { %v768_v23 = vmul.f32 0.2, %v617_v20  ;;  %v475_v24 = vpop.f32.mrf.mxu0  ;;  %v523_v25 = vpop.f32.mrf.mxu1 }
  0xc3   : > { %v816_v26 = vsel %vm688_vm3, %v569_v19, %v752_v22  ;;  %v476_v27 = vadd.f32 %v1273_v8, %v475_v24  ;;  %v524_v28 = vadd.f32 %v1273_v8, %v523_v25 }
  0xc4   : > { %880 = vst [vmem:[%s1282_s13 + $0x120] sm:$0xff] %v816_v26  ;;  %v832_v29 = vsel %vm704_vm4, %v617_v20, %v768_v23 }
  0xc5   : > { %896 = vst [vmem:[%s1282_s13 + $0x1a0] sm:$0xff] %v832_v29  ;;  %vm657_vm5 = vcmp.gt.f32.partialorder %v476_v27, 0.0  ;;  %v721_v30 = vmul.f32 0.2, %v476_v27  ;;  %vm673_vm6 = vcmp.gt.f32.partialorder %v524_v28, 0.0 }
  0xc6   : > { %v737_v31 = vmul.f32 0.2, %v524_v28  ;;  %v571_v32 = vpop.f32.mrf.mxu2  ;;  %v619_v33 = vpop.f32.mrf.mxu3 }
  0xc7   : > { %v785_v34 = vsel %vm657_vm5, %v476_v27, %v721_v30  ;;  %v572_v35 = vadd.f32 %v1273_v8, %v571_v32  ;;  %v620_v36 = vadd.f32 %v1273_v8, %v619_v33 }
  0xc8   : > { %849 = vst [vmem:[%s1282_s13 + $0x28] sm:$0xff] %v785_v34  ;;  %v801_v37 = vsel %vm673_vm6, %v524_v28, %v737_v31 }
  0xc9   : > { %865 = vst [vmem:[%s1282_s13 + $0xa8] sm:$0xff] %v801_v37  ;;  %vm689_vm7 = vcmp.gt.f32.partialorder %v572_v35, 0.0  ;;  %v753_v38 = vmul.f32 0.2, %v572_v35  ;;  %vm705_vm8 = vcmp.gt.f32.partialorder %v620_v36, 0.0 }
  0xca   : > { %v769_v39 = vmul.f32 0.2, %v620_v36  ;;  %v478_v40 = vpop.f32.mrf.mxu0  ;;  %v526_v41 = vpop.f32.mrf.mxu1 }
  0xcb   : > { %v817_v42 = vsel %vm689_vm7, %v572_v35, %v753_v38  ;;  %v479_v43 = vadd.f32 %v1273_v8, %v478_v40  ;;  %v527_v44 = vadd.f32 %v1273_v8, %v526_v41 }
  0xcc   : > { %881 = vst [vmem:[%s1282_s13 + $0x128] sm:$0xff] %v817_v42  ;;  %v833_v45 = vsel %vm705_vm8, %v620_v36, %v769_v39 }
  0xcd   : > { %897 = vst [vmem:[%s1282_s13 + $0x1a8] sm:$0xff] %v833_v45  ;;  %vm658_vm9 = vcmp.gt.f32.partialorder %v479_v43, 0.0  ;;  %v722_v46 = vmul.f32 0.2, %v479_v43  ;;  %vm674_vm10 = vcmp.gt.f32.partialorder %v527_v44, 0.0 }
  0xce   : > { %v738_v47 = vmul.f32 0.2, %v527_v44  ;;  %v574_v48 = vpop.f32.mrf.mxu2  ;;  %v622_v49 = vpop.f32.mrf.mxu3 }
  0xcf   : > { %v786_v50 = vsel %vm658_vm9, %v479_v43, %v722_v46  ;;  %v575_v51 = vadd.f32 %v1273_v8, %v574_v48  ;;  %v623_v52 = vadd.f32 %v1273_v8, %v622_v49 }
  0xd0   : > { %850 = vst [vmem:[%s1282_s13 + $0x30] sm:$0xff] %v786_v50  ;;  %v802_v53 = vsel %vm674_vm10, %v527_v44, %v738_v47 }
  0xd1   : > { %866 = vst [vmem:[%s1282_s13 + $0xb0] sm:$0xff] %v802_v53  ;;  %vm690_vm11 = vcmp.gt.f32.partialorder %v575_v51, 0.0  ;;  %v754_v54 = vmul.f32 0.2, %v575_v51  ;;  %vm706_vm12 = vcmp.gt.f32.partialorder %v623_v52, 0.0 }
  0xd2   : > { %v770_v55 = vmul.f32 0.2, %v623_v52  ;;  %v481_v56 = vpop.f32.mrf.mxu0  ;;  %v529_v57 = vpop.f32.mrf.mxu1 }
  0xd3   : > { %v818_v58 = vsel %vm690_vm11, %v575_v51, %v754_v54  ;;  %v482_v59 = vadd.f32 %v1273_v8, %v481_v56  ;;  %v530_v60 = vadd.f32 %v1273_v8, %v529_v57 }
  0xd4   : > { %882 = vst [vmem:[%s1282_s13 + $0x130] sm:$0xff] %v818_v58  ;;  %v834_v61 = vsel %vm706_vm12, %v623_v52, %v770_v55 }
  0xd5   : > { %898 = vst [vmem:[%s1282_s13 + $0x1b0] sm:$0xff] %v834_v61  ;;  %vm659_vm13 = vcmp.gt.f32.partialorder %v482_v59, 0.0  ;;  %v723_v62 = vmul.f32 0.2, %v482_v59  ;;  %vm675_vm14 = vcmp.gt.f32.partialorder %v530_v60, 0.0 }
  0xd6   : > { %v739_v63 = vmul.f32 0.2, %v530_v60  ;;  %v577_v0 = vpop.f32.mrf.mxu2  ;;  %v625_v1 = vpop.f32.mrf.mxu3 }
  0xd7   : > { %v787_v2 = vsel %vm659_vm13, %v482_v59, %v723_v62  ;;  %v578_v3 = vadd.f32 %v1273_v8, %v577_v0  ;;  %v626_v4 = vadd.f32 %v1273_v8, %v625_v1 }
  0xd8   : > { %851 = vst [vmem:[%s1282_s13 + $0x38] sm:$0xff] %v787_v2  ;;  %v803_v5 = vsel %vm675_vm14, %v530_v60, %v739_v63 }
  0xd9   : > { %867 = vst [vmem:[%s1282_s13 + $0xb8] sm:$0xff] %v803_v5  ;;  %vm691_vm15 = vcmp.gt.f32.partialorder %v578_v3, 0.0  ;;  %v755_v6 = vmul.f32 0.2, %v578_v3  ;;  %vm707_vm0 = vcmp.gt.f32.partialorder %v626_v4, 0.0 }
  0xda   : > { %v771_v7 = vmul.f32 0.2, %v626_v4  ;;  %v484_v9 = vpop.f32.mrf.mxu0  ;;  %v532_v10 = vpop.f32.mrf.mxu1 }
  0xdb   : > { %v819_v11 = vsel %vm691_vm15, %v578_v3, %v755_v6  ;;  %v485_v12 = vadd.f32 %v1273_v8, %v484_v9  ;;  %v533_v13 = vadd.f32 %v1273_v8, %v532_v10 }
  0xdc   : > { %883 = vst [vmem:[%s1282_s13 + $0x138] sm:$0xff] %v819_v11  ;;  %v835_v14 = vsel %vm707_vm0, %v626_v4, %v771_v7 }
  0xdd   : > { %899 = vst [vmem:[%s1282_s13 + $0x1b8] sm:$0xff] %v835_v14  ;;  %vm660_vm1 = vcmp.gt.f32.partialorder %v485_v12, 0.0  ;;  %v724_v15 = vmul.f32 0.2, %v485_v12  ;;  %vm676_vm2 = vcmp.gt.f32.partialorder %v533_v13, 0.0 }
  0xde   : > { %v740_v16 = vmul.f32 0.2, %v533_v13  ;;  %v580_v17 = vpop.f32.mrf.mxu2  ;;  %v628_v18 = vpop.f32.mrf.mxu3 }
  0xdf   : > { %v788_v19 = vsel %vm660_vm1, %v485_v12, %v724_v15  ;;  %v581_v20 = vadd.f32 %v1273_v8, %v580_v17  ;;  %v629_v21 = vadd.f32 %v1273_v8, %v628_v18 }
  0xe0   : > { %852 = vst [vmem:[%s1282_s13 + $0x40] sm:$0xff] %v788_v19  ;;  %v804_v22 = vsel %vm676_vm2, %v533_v13, %v740_v16 }
  0xe1   : > { %868 = vst [vmem:[%s1282_s13 + $0xc0] sm:$0xff] %v804_v22  ;;  %vm692_vm3 = vcmp.gt.f32.partialorder %v581_v20, 0.0  ;;  %v756_v23 = vmul.f32 0.2, %v581_v20  ;;  %vm708_vm4 = vcmp.gt.f32.partialorder %v629_v21, 0.0 }
  0xe2   : > { %v772_v24 = vmul.f32 0.2, %v629_v21  ;;  %v487_v25 = vpop.f32.mrf.mxu0  ;;  %v535_v26 = vpop.f32.mrf.mxu1 }
  0xe3   : > { %v820_v27 = vsel %vm692_vm3, %v581_v20, %v756_v23  ;;  %v488_v28 = vadd.f32 %v1273_v8, %v487_v25  ;;  %v536_v29 = vadd.f32 %v1273_v8, %v535_v26 }
  0xe4   : > { %884 = vst [vmem:[%s1282_s13 + $0x140] sm:$0xff] %v820_v27  ;;  %v836_v30 = vsel %vm708_vm4, %v629_v21, %v772_v24 }
  0xe5   : > { %900 = vst [vmem:[%s1282_s13 + $0x1c0] sm:$0xff] %v836_v30  ;;  %vm661_vm5 = vcmp.gt.f32.partialorder %v488_v28, 0.0  ;;  %v725_v31 = vmul.f32 0.2, %v488_v28  ;;  %vm677_vm6 = vcmp.gt.f32.partialorder %v536_v29, 0.0 }
  0xe6   : > { %v741_v32 = vmul.f32 0.2, %v536_v29  ;;  %v583_v33 = vpop.f32.mrf.mxu2  ;;  %v631_v34 = vpop.f32.mrf.mxu3 }
  0xe7   : > { %v789_v35 = vsel %vm661_vm5, %v488_v28, %v725_v31  ;;  %v584_v36 = vadd.f32 %v1273_v8, %v583_v33  ;;  %v632_v37 = vadd.f32 %v1273_v8, %v631_v34 }
  0xe8   : > { %853 = vst [vmem:[%s1282_s13 + $0x48] sm:$0xff] %v789_v35  ;;  %v805_v38 = vsel %vm677_vm6, %v536_v29, %v741_v32 }
  0xe9   : > { %869 = vst [vmem:[%s1282_s13 + $0xc8] sm:$0xff] %v805_v38  ;;  %vm693_vm7 = vcmp.gt.f32.partialorder %v584_v36, 0.0  ;;  %v757_v39 = vmul.f32 0.2, %v584_v36  ;;  %vm709_vm8 = vcmp.gt.f32.partialorder %v632_v37, 0.0 }
  0xea   : > { %v773_v40 = vmul.f32 0.2, %v632_v37  ;;  %v490_v41 = vpop.f32.mrf.mxu0  ;;  %v538_v42 = vpop.f32.mrf.mxu1 }
  0xeb   : > { %v821_v43 = vsel %vm693_vm7, %v584_v36, %v757_v39  ;;  %v491_v44 = vadd.f32 %v1273_v8, %v490_v41  ;;  %v539_v45 = vadd.f32 %v1273_v8, %v538_v42 }
  0xec   : > { %885 = vst [vmem:[%s1282_s13 + $0x148] sm:$0xff] %v821_v43  ;;  %v837_v46 = vsel %vm709_vm8, %v632_v37, %v773_v40 }
  0xed   : > { %901 = vst [vmem:[%s1282_s13 + $0x1c8] sm:$0xff] %v837_v46  ;;  %vm662_vm9 = vcmp.gt.f32.partialorder %v491_v44, 0.0  ;;  %v726_v47 = vmul.f32 0.2, %v491_v44  ;;  %vm678_vm10 = vcmp.gt.f32.partialorder %v539_v45, 0.0 }
  0xee   : > { %v742_v48 = vmul.f32 0.2, %v539_v45  ;;  %v586_v49 = vpop.f32.mrf.mxu2  ;;  %v634_v50 = vpop.f32.mrf.mxu3 }
  0xef   : > { %v790_v51 = vsel %vm662_vm9, %v491_v44, %v726_v47  ;;  %v587_v52 = vadd.f32 %v1273_v8, %v586_v49  ;;  %v635_v53 = vadd.f32 %v1273_v8, %v634_v50 }
  0xf0   : > { %854 = vst [vmem:[%s1282_s13 + $0x50] sm:$0xff] %v790_v51  ;;  %v806_v54 = vsel %vm678_vm10, %v539_v45, %v742_v48 }
  0xf1   : > { %870 = vst [vmem:[%s1282_s13 + $0xd0] sm:$0xff] %v806_v54  ;;  %vm694_vm11 = vcmp.gt.f32.partialorder %v587_v52, 0.0  ;;  %v758_v55 = vmul.f32 0.2, %v587_v52  ;;  %vm710_vm12 = vcmp.gt.f32.partialorder %v635_v53, 0.0 }
  0xf2   : > { %v774_v56 = vmul.f32 0.2, %v635_v53  ;;  %v493_v57 = vpop.f32.mrf.mxu0  ;;  %v541_v58 = vpop.f32.mrf.mxu1 }
  0xf3   : > { %v822_v59 = vsel %vm694_vm11, %v587_v52, %v758_v55  ;;  %v494_v60 = vadd.f32 %v1273_v8, %v493_v57  ;;  %v542_v61 = vadd.f32 %v1273_v8, %v541_v58 }
  0xf4   : > { %886 = vst [vmem:[%s1282_s13 + $0x150] sm:$0xff] %v822_v59  ;;  %v838_v62 = vsel %vm710_vm12, %v635_v53, %v774_v56 }
  0xf5   : > { %902 = vst [vmem:[%s1282_s13 + $0x1d0] sm:$0xff] %v838_v62  ;;  %vm663_vm13 = vcmp.gt.f32.partialorder %v494_v60, 0.0  ;;  %v727_v63 = vmul.f32 0.2, %v494_v60  ;;  %vm679_vm14 = vcmp.gt.f32.partialorder %v542_v61, 0.0 }
  0xf6   : > { %v743_v0 = vmul.f32 0.2, %v542_v61  ;;  %v589_v1 = vpop.f32.mrf.mxu2  ;;  %v637_v2 = vpop.f32.mrf.mxu3 }
  0xf7   : > { %v791_v3 = vsel %vm663_vm13, %v494_v60, %v727_v63  ;;  %v590_v4 = vadd.f32 %v1273_v8, %v589_v1  ;;  %v638_v5 = vadd.f32 %v1273_v8, %v637_v2 }
  0xf8   : > { %855 = vst [vmem:[%s1282_s13 + $0x58] sm:$0xff] %v791_v3  ;;  %v807_v6 = vsel %vm679_vm14, %v542_v61, %v743_v0 }
  0xf9   : > { %871 = vst [vmem:[%s1282_s13 + $0xd8] sm:$0xff] %v807_v6  ;;  %vm695_vm15 = vcmp.gt.f32.partialorder %v590_v4, 0.0  ;;  %v759_v7 = vmul.f32 0.2, %v590_v4  ;;  %vm711_vm0 = vcmp.gt.f32.partialorder %v638_v5, 0.0 }
  0xfa   : > { %v775_v9 = vmul.f32 0.2, %v638_v5  ;;  %v496_v10 = vpop.f32.mrf.mxu0  ;;  %v544_v11 = vpop.f32.mrf.mxu1 }
  0xfb   : > { %v823_v12 = vsel %vm695_vm15, %v590_v4, %v759_v7  ;;  %v497_v13 = vadd.f32 %v1273_v8, %v496_v10  ;;  %v545_v14 = vadd.f32 %v1273_v8, %v544_v11 }
  0xfc   : > { %887 = vst [vmem:[%s1282_s13 + $0x158] sm:$0xff] %v823_v12  ;;  %v839_v15 = vsel %vm711_vm0, %v638_v5, %v775_v9 }
  0xfd   : > { %903 = vst [vmem:[%s1282_s13 + $0x1d8] sm:$0xff] %v839_v15  ;;  %vm664_vm1 = vcmp.gt.f32.partialorder %v497_v13, 0.0  ;;  %v728_v16 = vmul.f32 0.2, %v497_v13  ;;  %vm680_vm2 = vcmp.gt.f32.partialorder %v545_v14, 0.0 }
  0xfe   : > { %v744_v17 = vmul.f32 0.2, %v545_v14  ;;  %v592_v18 = vpop.f32.mrf.mxu2  ;;  %v640_v19 = vpop.f32.mrf.mxu3 }
  0xff   : > { %v792_v20 = vsel %vm664_vm1, %v497_v13, %v728_v16  ;;  %v593_v21 = vadd.f32 %v1273_v8, %v592_v18  ;;  %v641_v22 = vadd.f32 %v1273_v8, %v640_v19 }
 0x100   : > { %856 = vst [vmem:[%s1282_s13 + $0x60] sm:$0xff] %v792_v20  ;;  %v808_v23 = vsel %vm680_vm2, %v545_v14, %v744_v17 }
 0x101   : > { %872 = vst [vmem:[%s1282_s13 + $0xe0] sm:$0xff] %v808_v23  ;;  %vm696_vm3 = vcmp.gt.f32.partialorder %v593_v21, 0.0  ;;  %v760_v24 = vmul.f32 0.2, %v593_v21  ;;  %vm712_vm4 = vcmp.gt.f32.partialorder %v641_v22, 0.0 }
 0x102   : > { %v776_v25 = vmul.f32 0.2, %v641_v22  ;;  %v499_v26 = vpop.f32.mrf.mxu0  ;;  %v547_v27 = vpop.f32.mrf.mxu1 }
 0x103   : > { %v824_v28 = vsel %vm696_vm3, %v593_v21, %v760_v24  ;;  %v500_v29 = vadd.f32 %v1273_v8, %v499_v26  ;;  %v548_v30 = vadd.f32 %v1273_v8, %v547_v27 }
 0x104   : > { %888 = vst [vmem:[%s1282_s13 + $0x160] sm:$0xff] %v824_v28  ;;  %v840_v31 = vsel %vm712_vm4, %v641_v22, %v776_v25 }
 0x105   : > { %904 = vst [vmem:[%s1282_s13 + $0x1e0] sm:$0xff] %v840_v31  ;;  %vm665_vm5 = vcmp.gt.f32.partialorder %v500_v29, 0.0  ;;  %v729_v32 = vmul.f32 0.2, %v500_v29  ;;  %vm681_vm6 = vcmp.gt.f32.partialorder %v548_v30, 0.0 }
 0x106   : > { %v745_v33 = vmul.f32 0.2, %v548_v30  ;;  %v595_v34 = vpop.f32.mrf.mxu2  ;;  %v643_v35 = vpop.f32.mrf.mxu3 }
 0x107   : > { %v793_v36 = vsel %vm665_vm5, %v500_v29, %v729_v32  ;;  %v596_v37 = vadd.f32 %v1273_v8, %v595_v34  ;;  %v644_v38 = vadd.f32 %v1273_v8, %v643_v35 }
 0x108   : > { %857 = vst [vmem:[%s1282_s13 + $0x68] sm:$0xff] %v793_v36  ;;  %v809_v39 = vsel %vm681_vm6, %v548_v30, %v745_v33 }
 0x109   : > { %873 = vst [vmem:[%s1282_s13 + $0xe8] sm:$0xff] %v809_v39  ;;  %vm697_vm7 = vcmp.gt.f32.partialorder %v596_v37, 0.0  ;;  %v761_v40 = vmul.f32 0.2, %v596_v37  ;;  %vm713_vm8 = vcmp.gt.f32.partialorder %v644_v38, 0.0 }
 0x10a   : > { %v777_v41 = vmul.f32 0.2, %v644_v38  ;;  %v502_v42 = vpop.f32.mrf.mxu0  ;;  %v550_v43 = vpop.f32.mrf.mxu1 }
 0x10b   : > { %v825_v44 = vsel %vm697_vm7, %v596_v37, %v761_v40  ;;  %v503_v45 = vadd.f32 %v1273_v8, %v502_v42  ;;  %v551_v46 = vadd.f32 %v1273_v8, %v550_v43 }
 0x10c   : > { %889 = vst [vmem:[%s1282_s13 + $0x168] sm:$0xff] %v825_v44  ;;  %v841_v47 = vsel %vm713_vm8, %v644_v38, %v777_v41 }
 0x10d   : > { %905 = vst [vmem:[%s1282_s13 + $0x1e8] sm:$0xff] %v841_v47  ;;  %vm666_vm9 = vcmp.gt.f32.partialorder %v503_v45, 0.0  ;;  %v730_v48 = vmul.f32 0.2, %v503_v45  ;;  %vm682_vm10 = vcmp.gt.f32.partialorder %v551_v46, 0.0 }
 0x10e   : > { %v746_v49 = vmul.f32 0.2, %v551_v46  ;;  %v598_v50 = vpop.f32.mrf.mxu2  ;;  %v646_v51 = vpop.f32.mrf.mxu3 }
 0x10f   : > { %v794_v52 = vsel %vm666_vm9, %v503_v45, %v730_v48  ;;  %v599_v53 = vadd.f32 %v1273_v8, %v598_v50  ;;  %v647_v54 = vadd.f32 %v1273_v8, %v646_v51 }
 0x110   : > { %858 = vst [vmem:[%s1282_s13 + $0x70] sm:$0xff] %v794_v52  ;;  %v810_v55 = vsel %vm682_vm10, %v551_v46, %v746_v49 }
 0x111   : > { %874 = vst [vmem:[%s1282_s13 + $0xf0] sm:$0xff] %v810_v55  ;;  %vm698_vm11 = vcmp.gt.f32.partialorder %v599_v53, 0.0  ;;  %v762_v56 = vmul.f32 0.2, %v599_v53  ;;  %vm714_vm12 = vcmp.gt.f32.partialorder %v647_v54, 0.0 }
 0x112   : > { %v778_v57 = vmul.f32 0.2, %v647_v54  ;;  %v505_v58 = vpop.f32.mrf.mxu0  ;;  %v553_v59 = vpop.f32.mrf.mxu1 }
 0x113   : > { %v826_v60 = vsel %vm698_vm11, %v599_v53, %v762_v56  ;;  %v506_v61 = vadd.f32 %v1273_v8, %v505_v58  ;;  %v554_v62 = vadd.f32 %v1273_v8, %v553_v59 }
 0x114   : > { %890 = vst [vmem:[%s1282_s13 + $0x170] sm:$0xff] %v826_v60  ;;  %v842_v63 = vsel %vm714_vm12, %v647_v54, %v778_v57 }
 0x115   : > { %906 = vst [vmem:[%s1282_s13 + $0x1f0] sm:$0xff] %v842_v63  ;;  %vm667_vm13 = vcmp.gt.f32.partialorder %v506_v61, 0.0  ;;  %v731_v0 = vmul.f32 0.2, %v506_v61  ;;  %vm683_vm14 = vcmp.gt.f32.partialorder %v554_v62, 0.0 }
 0x116   : > { %v747_v1 = vmul.f32 0.2, %v554_v62  ;;  %v601_v2 = vpop.f32.mrf.mxu2  ;;  %v649_v3 = vpop.f32.mrf.mxu3 }
 0x117   : > { %v795_v4 = vsel %vm667_vm13, %v506_v61, %v731_v0  ;;  %v602_v5 = vadd.f32 %v1273_v8, %v601_v2  ;;  %v650_v6 = vadd.f32 %v1273_v8, %v649_v3 }
 0x118   : > { %859 = vst [vmem:[%s1282_s13 + $0x78] sm:$0xff] %v795_v4  ;;  %v811_v7 = vsel %vm683_vm14, %v554_v62, %v747_v1 }
 0x119   : > { %875 = vst [vmem:[%s1282_s13 + $0xf8] sm:$0xff] %v811_v7  ;;  %vm699_vm15 = vcmp.gt.f32.partialorder %v602_v5, 0.0  ;;  %v763_v9 = vmul.f32 0.2, %v602_v5  ;;  %vm715_vm0 = vcmp.gt.f32.partialorder %v650_v6, 0.0 }
 0x11a   : > { %v779_v10 = vmul.f32 0.2, %v650_v6 }
 0x11b   : > { %v827_v11 = vsel %vm699_vm15, %v602_v5, %v763_v9 }
 0x11c   : > { %891 = vst [vmem:[%s1282_s13 + $0x178] sm:$0xff] %v827_v11  ;;  %v843_v12 = vsel %vm715_vm0, %v650_v6, %v779_v10 }
 0x11d   : > { %907 = vst [vmem:[%s1282_s13 + $0x1f8] sm:$0xff] %v843_v12 }
 0x11e PF: > { %s13_s12 = sadd.s32 1, %s1078_s12  }
 0x11f   : > { %p10_p4 = scmp.ge.s32.totalorder %s13_s12, 11  }
 0x121   :  { %12 = sbr.rel (!%p10_p4) target bundleno = 1 (0x1), region = 62 }

// kernel: _lambda_.9
= control target key start
LH: loop header
LB: loop body
LE: loop exit
PB: predicated region body
PF: predicated region fallthrough
CT: control target
= control target key end

     0   :  { %s934_s15 = smov 0   ;;  %s1532_s0 = inlined_call_operand.vmem [shape: f32[1536,128], index: 0, kind: input, shape index: {}]   ;;  %s1533_s1 = inlined_call_operand.vmem [shape: f32[128,128], index: 1, kind: input, shape index: {}]   ;;  %s1534_s2 = inlined_call_operand.vmem [shape: f32[1536,128], index: 2, kind: output, shape index: {0}]   ;;  %s1535_s3 = inlined_call_operand.vmem [shape: f32[1,128], index: 3, kind: output, shape index: {1}]   ;;  %s1536_s4 = inlined_call_operand.vmem [shape: f32[1,128], index: 4, kind: output, shape index: {2}]  }
   0x1 LB: > { %s831_s16 = sadd.s32 4294967295, %s906_s15   ;;  %p835_p0 = scmp.ge.s32.totalorder %s906_s15, 1  ;;  %s906_s15 = sphi %s934_s15, %s15_s15  }
   0x2   : > { %p158_p1 = scmp.lt.s32.totalorder %s906_s15, 4 }
   0x4   : > { %p159_p2 = pnand %p835_p0, %p158_p1 }
   0x6   : > { %162 = sbr.rel (%p159_p2) target bundleno = 444 (0x1bc), region = 28 }
   0xb   : > { %v275_v0 = vld [vmem:[%s1533_s1 + $0x78] sm:$0xff]  ;;  %v274_v1 = vld [vmem:[%s1533_s1 + $0x70] sm:$0xff]  ;;  %v273_v2 = vld [vmem:[%s1533_s1 + $0x68] sm:$0xff]  ;;  %s836_s7 = sshll.u32 %s831_s16, 6  ;;  %p840_p4 = scmp.ne.s32.totalorder %s831_s16, 0 }
   0xc   : > { %844 = vmatpush.msra.mxu2 %v275_v0  ;;  %845 = vmatpush.msra.mxu3 %v275_v0  ;;  %v272_v3 = vld [vmem:[%s1533_s1 + $0x60] sm:$0xff]  ;;  %v271_v4 = vld [vmem:[%s1533_s1 + $0x58] sm:$0xff]  ;;  %v270_v5 = vld [vmem:[%s1533_s1 + $0x50] sm:$0xff]  ;;  %p185_p3 = scmp.lt.s32.totalorder %s836_s7, 191 }
   0xd   : > { %276 = vmatpush.msra.mxu0 %v275_v0  ;;  %843 = vmatpush.msra.mxu1 %v275_v0  ;;  %v269_v6 = vld [vmem:[%s1533_s1 + $0x48] sm:$0xff]  ;;  %v268_v7 = vld [vmem:[%s1533_s1 + $0x40] sm:$0xff]  ;;  %v267_v8 = vld [vmem:[%s1533_s1 + $0x38] sm:$0xff] }
   0xe   : > { %847 = vmatpush.msra.mxu2 %v274_v1  ;;  %848 = vmatpush.msra.mxu3 %v274_v1  ;;  %v266_v9 = vld [vmem:[%s1533_s1 + $0x30] sm:$0xff]  ;;  %v265_v10 = vld [vmem:[%s1533_s1 + $0x28] sm:$0xff]  ;;  %s1586_s7 = smov (!%p185_p3, %s836_s7), 191  ;;  %v264_v11 = vld [vmem:[%s1533_s1 + $0x20] sm:$0xff] }
   0xf   : > { %277 = vmatpush.msra.mxu0 %v274_v1  ;;  %846 = vmatpush.msra.mxu1 %v274_v1  ;;  %v263_v12 = vld [vmem:[%s1533_s1 + $0x18] sm:$0xff]  ;;  %s837_s20 = sshll.u32 %s1586_s7, 3  ;;  %v262_v13 = vld [vmem:[%s1533_s1 + $0x10] sm:$0xff]  ;;  %v261_v14 = vld [vmem:[%s1533_s1 + $0x8] sm:$0xff] }
  0x10   : > { %850 = vmatpush.msra.mxu2 %v273_v2  ;;  %851 = vmatpush.msra.mxu3 %v273_v2  ;;  %s997_s27 = scalar_lea.vmem %s1532_s0, %s837_s20  ;;  %v260_v15 = vld [vmem:[%s1533_s1] sm:$0xff]  ;;  %s1071_s6 = scalar_lea.vmem %s1534_s2, %s837_s20 }
  0x11   : > { %278 = vmatpush.msra.mxu0 %v273_v2  ;;  %849 = vmatpush.msra.mxu1 %v273_v2  ;;  %v228_v16 = vld [vmem:[%s997_s27 + $0x100] sm:$0xff]  ;;  %v229_v20 = vld [vmem:[%s997_s27 + $0x108] sm:$0xff]  ;;  %v230_v24 = vld [vmem:[%s997_s27 + $0x110] sm:$0xff] }
  0x12   : > { %853 = vmatpush.msra.mxu2 %v272_v3  ;;  %854 = vmatpush.msra.mxu3 %v272_v3  ;;  %v244_v17 = vld [vmem:[%s997_s27 + $0x180] sm:$0xff]  ;;  %v245_v21 = vld [vmem:[%s997_s27 + $0x188] sm:$0xff]  ;;  %v246_v25 = vld [vmem:[%s997_s27 + $0x190] sm:$0xff] }
  0x13   : > { %279 = vmatpush.msra.mxu0 %v272_v3  ;;  %852 = vmatpush.msra.mxu1 %v272_v3  ;;  %v196_v18 = vld [vmem:[%s997_s27] sm:$0xff]  ;;  %v197_v22 = vld [vmem:[%s997_s27 + $0x8] sm:$0xff]  ;;  %v198_v26 = vld [vmem:[%s997_s27 + $0x10] sm:$0xff] }
  0x14   : > { %856 = vmatpush.msra.mxu2 %v271_v4  ;;  %857 = vmatpush.msra.mxu3 %v271_v4  ;;  %v212_v19 = vld [vmem:[%s997_s27 + $0x80] sm:$0xff]  ;;  %v213_v23 = vld [vmem:[%s997_s27 + $0x88] sm:$0xff]  ;;  %v214_v27 = vld [vmem:[%s997_s27 + $0x90] sm:$0xff] }
  0x15   : > { %280 = vmatpush.msra.mxu0 %v271_v4  ;;  %855 = vmatpush.msra.mxu1 %v271_v4  ;;  %v231_v28 = vld [vmem:[%s997_s27 + $0x118] sm:$0xff]  ;;  %v232_v32 = vld [vmem:[%s997_s27 + $0x120] sm:$0xff]  ;;  %v233_v36 = vld [vmem:[%s997_s27 + $0x128] sm:$0xff] }
  0x16   : > { %859 = vmatpush.msra.mxu2 %v270_v5  ;;  %860 = vmatpush.msra.mxu3 %v270_v5  ;;  %v247_v29 = vld [vmem:[%s997_s27 + $0x198] sm:$0xff]  ;;  %v248_v33 = vld [vmem:[%s997_s27 + $0x1a0] sm:$0xff]  ;;  %v249_v37 = vld [vmem:[%s997_s27 + $0x1a8] sm:$0xff] }
  0x17   : > { %281 = vmatpush.msra.mxu0 %v270_v5  ;;  %858 = vmatpush.msra.mxu1 %v270_v5  ;;  %v199_v30 = vld [vmem:[%s997_s27 + $0x18] sm:$0xff]  ;;  %v200_v34 = vld [vmem:[%s997_s27 + $0x20] sm:$0xff]  ;;  %v201_v38 = vld [vmem:[%s997_s27 + $0x28] sm:$0xff] }
  0x18   : > { %862 = vmatpush.msra.mxu2 %v269_v6  ;;  %863 = vmatpush.msra.mxu3 %v269_v6  ;;  %v215_v31 = vld [vmem:[%s997_s27 + $0x98] sm:$0xff]  ;;  %v216_v35 = vld [vmem:[%s997_s27 + $0xa0] sm:$0xff]  ;;  %v217_v39 = vld [vmem:[%s997_s27 + $0xa8] sm:$0xff] }
  0x19   : > { %282 = vmatpush.msra.mxu0 %v269_v6  ;;  %861 = vmatpush.msra.mxu1 %v269_v6  ;;  %v234_v40 = vld [vmem:[%s997_s27 + $0x130] sm:$0xff]  ;;  %v235_v44 = vld [vmem:[%s997_s27 + $0x138] sm:$0xff]  ;;  %v236_v48 = vld [vmem:[%s997_s27 + $0x140] sm:$0xff] }
  0x1a   : > { %865 = vmatpush.msra.mxu2 %v268_v7  ;;  %866 = vmatpush.msra.mxu3 %v268_v7  ;;  %v250_v41 = vld [vmem:[%s997_s27 + $0x1b0] sm:$0xff]  ;;  %v251_v45 = vld [vmem:[%s997_s27 + $0x1b8] sm:$0xff]  ;;  %v252_v49 = vld [vmem:[%s997_s27 + $0x1c0] sm:$0xff] }
  0x1b   : > { %283 = vmatpush.msra.mxu0 %v268_v7  ;;  %864 = vmatpush.msra.mxu1 %v268_v7  ;;  %v202_v42 = vld [vmem:[%s997_s27 + $0x30] sm:$0xff]  ;;  %v203_v46 = vld [vmem:[%s997_s27 + $0x38] sm:$0xff]  ;;  %v204_v50 = vld [vmem:[%s997_s27 + $0x40] sm:$0xff] }
  0x1c   : > { %868 = vmatpush.msra.mxu2 %v267_v8  ;;  %869 = vmatpush.msra.mxu3 %v267_v8  ;;  %v218_v43 = vld [vmem:[%s997_s27 + $0xb0] sm:$0xff]  ;;  %v219_v47 = vld [vmem:[%s997_s27 + $0xb8] sm:$0xff]  ;;  %v220_v51 = vld [vmem:[%s997_s27 + $0xc0] sm:$0xff] }
  0x1d   : > { %284 = vmatpush.msra.mxu0 %v267_v8  ;;  %867 = vmatpush.msra.mxu1 %v267_v8  ;;  %v237_v52 = vld [vmem:[%s997_s27 + $0x148] sm:$0xff]  ;;  %v238_v56 = vld [vmem:[%s997_s27 + $0x150] sm:$0xff]  ;;  %v239_v60 = vld [vmem:[%s997_s27 + $0x158] sm:$0xff] }
  0x1e   : > { %871 = vmatpush.msra.mxu2 %v266_v9  ;;  %872 = vmatpush.msra.mxu3 %v266_v9  ;;  %v253_v53 = vld [vmem:[%s997_s27 + $0x1c8] sm:$0xff]  ;;  %v254_v57 = vld [vmem:[%s997_s27 + $0x1d0] sm:$0xff]  ;;  %v255_v61 = vld [vmem:[%s997_s27 + $0x1d8] sm:$0xff] }
  0x1f   : > { %285 = vmatpush.msra.mxu0 %v266_v9  ;;  %870 = vmatpush.msra.mxu1 %v266_v9  ;;  %v205_v54 = vld [vmem:[%s997_s27 + $0x48] sm:$0xff]  ;;  %v206_v58 = vld [vmem:[%s997_s27 + $0x50] sm:$0xff]  ;;  %v207_v62 = vld [vmem:[%s997_s27 + $0x58] sm:$0xff] }
  0x20   : > { %874 = vmatpush.msra.mxu2 %v265_v10  ;;  %875 = vmatpush.msra.mxu3 %v265_v10  ;;  %v221_v55 = vld [vmem:[%s997_s27 + $0xc8] sm:$0xff]  ;;  %v222_v59 = vld [vmem:[%s997_s27 + $0xd0] sm:$0xff]  ;;  %v223_v63 = vld [vmem:[%s997_s27 + $0xd8] sm:$0xff] }
  0x21   : > { %286 = vmatpush.msra.mxu0 %v265_v10  ;;  %873 = vmatpush.msra.mxu1 %v265_v10  ;;  %v240_v0 = vld [vmem:[%s997_s27 + $0x160] sm:$0xff]  ;;  %v241_v4 = vld [vmem:[%s997_s27 + $0x168] sm:$0xff]  ;;  %v242_v8 = vld [vmem:[%s997_s27 + $0x170] sm:$0xff] }
  0x22   : > { %877 = vmatpush.msra.mxu2 %v264_v11  ;;  %878 = vmatpush.msra.mxu3 %v264_v11  ;;  %v256_v1 = vld [vmem:[%s997_s27 + $0x1e0] sm:$0xff]  ;;  %v257_v5 = vld [vmem:[%s997_s27 + $0x1e8] sm:$0xff]  ;;  %v258_v9 = vld [vmem:[%s997_s27 + $0x1f0] sm:$0xff] }
  0x23   : > { %287 = vmatpush.msra.mxu0 %v264_v11  ;;  %876 = vmatpush.msra.mxu1 %v264_v11  ;;  %v208_v2 = vld [vmem:[%s997_s27 + $0x60] sm:$0xff]  ;;  %v209_v6 = vld [vmem:[%s997_s27 + $0x68] sm:$0xff]  ;;  %v210_v10 = vld [vmem:[%s997_s27 + $0x70] sm:$0xff] }
  0x24   : > { %880 = vmatpush.msra.mxu2 %v263_v12  ;;  %881 = vmatpush.msra.mxu3 %v263_v12  ;;  %v224_v3 = vld [vmem:[%s997_s27 + $0xe0] sm:$0xff]  ;;  %v225_v7 = vld [vmem:[%s997_s27 + $0xe8] sm:$0xff]  ;;  %v226_v11 = vld [vmem:[%s997_s27 + $0xf0] sm:$0xff] }
  0x25   : > { %288 = vmatpush.msra.mxu0 %v263_v12  ;;  %879 = vmatpush.msra.mxu1 %v263_v12  ;;  %v243_v12 = vld [vmem:[%s997_s27 + $0x178] sm:$0xff] }
  0x26   : > { %883 = vmatpush.msra.mxu2 %v262_v13  ;;  %884 = vmatpush.msra.mxu3 %v262_v13 }
  0x27   : > { %289 = vmatpush.msra.mxu0 %v262_v13  ;;  %882 = vmatpush.msra.mxu1 %v262_v13  ;;  %v259_v13 = vld [vmem:[%s997_s27 + $0x1f8] sm:$0xff] }
  0x28   : > { %886 = vmatpush.msra.mxu2 %v261_v14  ;;  %887 = vmatpush.msra.mxu3 %v261_v14 }
  0x29   : > { %290 = vmatpush.msra.mxu0 %v261_v14  ;;  %885 = vmatpush.msra.mxu1 %v261_v14  ;;  %v211_v14 = vld [vmem:[%s997_s27 + $0x78] sm:$0xff] }
  0x2a   : > { %889 = vmatpush.msra.mxu2 %v260_v15  ;;  %890 = vmatpush.msra.mxu3 %v260_v15 }
  0x2b   : > { %388 = vmatmul.f32.vlgmr.msra.gmra.mxu2 %v228_v16  ;;  %436 = vmatmul.f32.vlgmr.msra.gmra.mxu3 %v244_v17 }
  0x2c   : > { %291 = vmatpush.msra.mxu0 %v260_v15  ;;  %888 = vmatpush.msra.mxu1 %v260_v15  ;;  %v227_v15 = vld [vmem:[%s997_s27 + $0xf8] sm:$0xff] }
  0x2d   : > { %292 = vmatmul.f32.vlgmr.msra.gmra.mxu0 %v196_v18  ;;  %340 = vmatmul.f32.vlgmr.msra.gmra.mxu1 %v212_v19 }
  0x33   : > { %391 = vmatmul.f32.gmra.mxu2 %v229_v20  ;;  %439 = vmatmul.f32.gmra.mxu3 %v245_v21 }
  0x35   : > { %295 = vmatmul.f32.gmra.mxu0 %v197_v22  ;;  %343 = vmatmul.f32.gmra.mxu1 %v213_v23 }
  0x3b   : > { %394 = vmatmul.f32.gmra.mxu2 %v230_v24  ;;  %442 = vmatmul.f32.gmra.mxu3 %v246_v25 }
  0x3d   : > { %298 = vmatmul.f32.gmra.mxu0 %v198_v26  ;;  %346 = vmatmul.f32.gmra.mxu1 %v214_v27 }
  0x43   : > { %397 = vmatmul.f32.gmra.mxu2 %v231_v28  ;;  %445 = vmatmul.f32.gmra.mxu3 %v247_v29 }
  0x45   : > { %301 = vmatmul.f32.gmra.mxu0 %v199_v30  ;;  %349 = vmatmul.f32.gmra.mxu1 %v215_v31 }
  0x4b   : > { %400 = vmatmul.f32.gmra.mxu2 %v232_v32  ;;  %448 = vmatmul.f32.gmra.mxu3 %v248_v33 }
  0x4d   : > { %304 = vmatmul.f32.gmra.mxu0 %v200_v34  ;;  %352 = vmatmul.f32.gmra.mxu1 %v216_v35 }
  0x53   : > { %403 = vmatmul.f32.gmra.mxu2 %v233_v36  ;;  %451 = vmatmul.f32.gmra.mxu3 %v249_v37 }
  0x55   : > { %307 = vmatmul.f32.gmra.mxu0 %v201_v38  ;;  %355 = vmatmul.f32.gmra.mxu1 %v217_v39 }
  0x5b   : > { %406 = vmatmul.f32.gmra.mxu2 %v234_v40  ;;  %454 = vmatmul.f32.gmra.mxu3 %v250_v41 }
  0x5d   : > { %310 = vmatmul.f32.gmra.mxu0 %v202_v42  ;;  %358 = vmatmul.f32.gmra.mxu1 %v218_v43 }
  0x63   : > { %409 = vmatmul.f32.gmra.mxu2 %v235_v44  ;;  %457 = vmatmul.f32.gmra.mxu3 %v251_v45 }
  0x65   : > { %313 = vmatmul.f32.gmra.mxu0 %v203_v46  ;;  %361 = vmatmul.f32.gmra.mxu1 %v219_v47 }
  0x6b   : > { %412 = vmatmul.f32.gmra.mxu2 %v236_v48  ;;  %460 = vmatmul.f32.gmra.mxu3 %v252_v49 }
  0x6d   : > { %316 = vmatmul.f32.gmra.mxu0 %v204_v50  ;;  %364 = vmatmul.f32.gmra.mxu1 %v220_v51 }
  0x73   : > { %415 = vmatmul.f32.gmra.mxu2 %v237_v52  ;;  %463 = vmatmul.f32.gmra.mxu3 %v253_v53 }
  0x75   : > { %319 = vmatmul.f32.gmra.mxu0 %v205_v54  ;;  %367 = vmatmul.f32.gmra.mxu1 %v221_v55 }
  0x7b   : > { %418 = vmatmul.f32.gmra.mxu2 %v238_v56  ;;  %466 = vmatmul.f32.gmra.mxu3 %v254_v57 }
  0x7d   : > { %322 = vmatmul.f32.gmra.mxu0 %v206_v58  ;;  %370 = vmatmul.f32.gmra.mxu1 %v222_v59 }
  0x83   : > { %421 = vmatmul.f32.gmra.mxu2 %v239_v60  ;;  %469 = vmatmul.f32.gmra.mxu3 %v255_v61 }
  0x85   : > { %325 = vmatmul.f32.gmra.mxu0 %v207_v62  ;;  %373 = vmatmul.f32.gmra.mxu1 %v223_v63 }
  0x8b   : > { %424 = vmatmul.f32.gmra.mxu2 %v240_v0  ;;  %472 = vmatmul.f32.gmra.mxu3 %v256_v1 }
  0x8d   : > { %328 = vmatmul.f32.gmra.mxu0 %v208_v2  ;;  %376 = vmatmul.f32.gmra.mxu1 %v224_v3 }
  0x93   : > { %427 = vmatmul.f32.gmra.mxu2 %v241_v4  ;;  %475 = vmatmul.f32.gmra.mxu3 %v257_v5 }
  0x95   : > { %331 = vmatmul.f32.gmra.mxu0 %v209_v6  ;;  %379 = vmatmul.f32.gmra.mxu1 %v225_v7 }
  0x9b   : > { %430 = vmatmul.f32.gmra.mxu2 %v242_v8  ;;  %478 = vmatmul.f32.gmra.mxu3 %v258_v9 }
  0x9d   : > { %334 = vmatmul.f32.gmra.mxu0 %v210_v10  ;;  %382 = vmatmul.f32.gmra.mxu1 %v226_v11 }
  0xa3   : > { %433 = vmatmul.f32.gmra.mxu2 %v243_v12  ;;  %481 = vmatmul.f32.gmra.mxu3 %v259_v13 }
  0xa5   : > { %337 = vmatmul.f32.gmra.mxu0 %v211_v14  ;;  %385 = vmatmul.f32.gmra.mxu1 %v227_v15 }
  0xaa   : > { %v1073_v16 = vpop.f32.mrf.mxu0  ;;  %v1075_v17 = vpop.f32.mrf.mxu1 }
  0xab   : > { %485 = vst [vmem:[%s1071_s6] sm:$0xff] %v1073_v16 }
  0xac   : > { %501 = vst [vmem:[%s1071_s6 + $0x80] sm:$0xff] %v1075_v17 }
  0xae   : > { %v1081_v18 = vpop.f32.mrf.mxu2  ;;  %v1083_v19 = vpop.f32.mrf.mxu3 }
  0xaf   : > { %517 = vst [vmem:[%s1071_s6 + $0x100] sm:$0xff] %v1081_v18 }
  0xb0   : > { %533 = vst [vmem:[%s1071_s6 + $0x180] sm:$0xff] %v1083_v19 }
  0xb2   : > { %v1089_v20 = vpop.f32.mrf.mxu0  ;;  %v1091_v21 = vpop.f32.mrf.mxu1 }
  0xb3   : > { %486 = vst [vmem:[%s1071_s6 + $0x8] sm:$0xff] %v1089_v20 }
  0xb4   : > { %502 = vst [vmem:[%s1071_s6 + $0x88] sm:$0xff] %v1091_v21 }
  0xb6   : > { %v1097_v22 = vpop.f32.mrf.mxu2  ;;  %v1099_v23 = vpop.f32.mrf.mxu3 }
  0xb7   : > { %518 = vst [vmem:[%s1071_s6 + $0x108] sm:$0xff] %v1097_v22 }
  0xb8   : > { %534 = vst [vmem:[%s1071_s6 + $0x188] sm:$0xff] %v1099_v23 }
  0xba   : > { %v1105_v24 = vpop.f32.mrf.mxu0  ;;  %v1107_v25 = vpop.f32.mrf.mxu1 }
  0xbb   : > { %487 = vst [vmem:[%s1071_s6 + $0x10] sm:$0xff] %v1105_v24 }
  0xbc   : > { %503 = vst [vmem:[%s1071_s6 + $0x90] sm:$0xff] %v1107_v25 }
  0xbe   : > { %v1113_v26 = vpop.f32.mrf.mxu2  ;;  %v1115_v27 = vpop.f32.mrf.mxu3 }
  0xbf   : > { %519 = vst [vmem:[%s1071_s6 + $0x110] sm:$0xff] %v1113_v26 }
  0xc0   : > { %535 = vst [vmem:[%s1071_s6 + $0x190] sm:$0xff] %v1115_v27 }
  0xc2   : > { %v1121_v28 = vpop.f32.mrf.mxu0  ;;  %v1123_v29 = vpop.f32.mrf.mxu1 }
  0xc3   : > { %488 = vst [vmem:[%s1071_s6 + $0x18] sm:$0xff] %v1121_v28 }
  0xc4   : > { %504 = vst [vmem:[%s1071_s6 + $0x98] sm:$0xff] %v1123_v29 }
  0xc6   : > { %v1129_v30 = vpop.f32.mrf.mxu2  ;;  %v1131_v31 = vpop.f32.mrf.mxu3 }
  0xc7   : > { %520 = vst [vmem:[%s1071_s6 + $0x118] sm:$0xff] %v1129_v30 }
  0xc8   : > { %536 = vst [vmem:[%s1071_s6 + $0x198] sm:$0xff] %v1131_v31 }
  0xca   : > { %v1137_v32 = vpop.f32.mrf.mxu0  ;;  %v1139_v33 = vpop.f32.mrf.mxu1 }
  0xcb   : > { %489 = vst [vmem:[%s1071_s6 + $0x20] sm:$0xff] %v1137_v32 }
  0xcc   : > { %505 = vst [vmem:[%s1071_s6 + $0xa0] sm:$0xff] %v1139_v33 }
  0xce   : > { %v1145_v34 = vpop.f32.mrf.mxu2  ;;  %v1147_v35 = vpop.f32.mrf.mxu3 }
  0xcf   : > { %1561 = vst [vmem:[#allocation2_spill] sm:$0xff] %v1147_v35 }
  0xd0   : > { %521 = vst [vmem:[%s1071_s6 + $0x120] sm:$0xff] %v1145_v34 }
  0xd1   : > { %537 = vst [vmem:[%s1071_s6 + $0x1a0] sm:$0xff] %v1147_v35 }
  0xd2   : > { %v1153_v36 = vpop.f32.mrf.mxu0  ;;  %v1155_v37 = vpop.f32.mrf.mxu1 }
  0xd3   : > { %490 = vst [vmem:[%s1071_s6 + $0x28] sm:$0xff] %v1153_v36 }
  0xd4   : > { %506 = vst [vmem:[%s1071_s6 + $0xa8] sm:$0xff] %v1155_v37 }
  0xd6   : > { %v1161_v38 = vpop.f32.mrf.mxu2  ;;  %v1163_v39 = vpop.f32.mrf.mxu3 }
  0xd7   : > { %1562 = vst [vmem:[#allocation3_spill] sm:$0xff] %v1163_v39 }
  0xd8   : > { %522 = vst [vmem:[%s1071_s6 + $0x128] sm:$0xff] %v1161_v38 }
  0xd9   : > { %538 = vst [vmem:[%s1071_s6 + $0x1a8] sm:$0xff] %v1163_v39 }
  0xda   : > { %v1169_v40 = vpop.f32.mrf.mxu0  ;;  %v1171_v41 = vpop.f32.mrf.mxu1 }
  0xdb   : > { %491 = vst [vmem:[%s1071_s6 + $0x30] sm:$0xff] %v1169_v40 }
  0xdc   : > { %507 = vst [vmem:[%s1071_s6 + $0xb0] sm:$0xff] %v1171_v41 }
  0xde   : > { %v1177_v42 = vpop.f32.mrf.mxu2  ;;  %v1179_v43 = vpop.f32.mrf.mxu3 }
  0xdf   : > { %1563 = vst [vmem:[#allocation4_spill] sm:$0xff] %v1179_v43 }
  0xe0   : > { %523 = vst [vmem:[%s1071_s6 + $0x130] sm:$0xff] %v1177_v42 }
  0xe1   : > { %539 = vst [vmem:[%s1071_s6 + $0x1b0] sm:$0xff] %v1179_v43 }
  0xe2   : > { %v1185_v44 = vpop.f32.mrf.mxu0  ;;  %v1187_v45 = vpop.f32.mrf.mxu1 }
  0xe3   : > { %492 = vst [vmem:[%s1071_s6 + $0x38] sm:$0xff] %v1185_v44 }
  0xe4   : > { %508 = vst [vmem:[%s1071_s6 + $0xb8] sm:$0xff] %v1187_v45 }
  0xe6   : > { %v1193_v46 = vpop.f32.mrf.mxu2  ;;  %v1195_v47 = vpop.f32.mrf.mxu3 }
  0xe7   : > { %1564 = vst [vmem:[#allocation5_spill] sm:$0xff] %v1195_v47 }
  0xe8   : > { %524 = vst [vmem:[%s1071_s6 + $0x138] sm:$0xff] %v1193_v46 }
  0xe9   : > { %540 = vst [vmem:[%s1071_s6 + $0x1b8] sm:$0xff] %v1195_v47 }
  0xea   : > { %v1201_v48 = vpop.f32.mrf.mxu0  ;;  %v1203_v49 = vpop.f32.mrf.mxu1 }
  0xeb   : > { %493 = vst [vmem:[%s1071_s6 + $0x40] sm:$0xff] %v1201_v48 }
  0xec   : > { %509 = vst [vmem:[%s1071_s6 + $0xc0] sm:$0xff] %v1203_v49 }
  0xee   : > { %v1209_v50 = vpop.f32.mrf.mxu2  ;;  %v1211_v51 = vpop.f32.mrf.mxu3 }
  0xef   : > { %1565 = vst [vmem:[#allocation6_spill] sm:$0xff] %v1211_v51 }
  0xf0   : > { %525 = vst [vmem:[%s1071_s6 + $0x140] sm:$0xff] %v1209_v50 }
  0xf1   : > { %541 = vst [vmem:[%s1071_s6 + $0x1c0] sm:$0xff] %v1211_v51 }
  0xf2   : > { %v1217_v52 = vpop.f32.mrf.mxu0  ;;  %v1219_v53 = vpop.f32.mrf.mxu1 }
  0xf3   : > { %494 = vst [vmem:[%s1071_s6 + $0x48] sm:$0xff] %v1217_v52 }
  0xf4   : > { %510 = vst [vmem:[%s1071_s6 + $0xc8] sm:$0xff] %v1219_v53 }
  0xf6   : > { %v1225_v54 = vpop.f32.mrf.mxu2  ;;  %v1227_v55 = vpop.f32.mrf.mxu3 }
  0xf7   : > { %1566 = vst [vmem:[#allocation7_spill] sm:$0xff] %v1227_v55 }
  0xf8   : > { %526 = vst [vmem:[%s1071_s6 + $0x148] sm:$0xff] %v1225_v54 }
  0xf9   : > { %542 = vst [vmem:[%s1071_s6 + $0x1c8] sm:$0xff] %v1227_v55 }
  0xfa   : > { %v1233_v56 = vpop.f32.mrf.mxu0  ;;  %v1235_v57 = vpop.f32.mrf.mxu1 }
  0xfb   : > { %495 = vst [vmem:[%s1071_s6 + $0x50] sm:$0xff] %v1233_v56 }
  0xfc   : > { %511 = vst [vmem:[%s1071_s6 + $0xd0] sm:$0xff] %v1235_v57 }
  0xfe   : > { %v1241_v58 = vpop.f32.mrf.mxu2  ;;  %v1243_v59 = vpop.f32.mrf.mxu3 }
  0xff   : > { %1567 = vst [vmem:[#allocation8_spill] sm:$0xff] %v1243_v59 }
 0x100   : > { %527 = vst [vmem:[%s1071_s6 + $0x150] sm:$0xff] %v1241_v58 }
 0x101   : > { %543 = vst [vmem:[%s1071_s6 + $0x1d0] sm:$0xff] %v1243_v59 }
 0x102   : > { %v1249_v60 = vpop.f32.mrf.mxu0  ;;  %v1251_v61 = vpop.f32.mrf.mxu1 }
 0x103   : > { %496 = vst [vmem:[%s1071_s6 + $0x58] sm:$0xff] %v1249_v60 }
 0x104   : > { %512 = vst [vmem:[%s1071_s6 + $0xd8] sm:$0xff] %v1251_v61 }
 0x106   : > { %v1257_v62 = vpop.f32.mrf.mxu2  ;;  %v1259_v63 = vpop.f32.mrf.mxu3 }
 0x107   : > { %1568 = vst [vmem:[#allocation9_spill] sm:$0xff] %v1259_v63 }
 0x108   : > { %528 = vst [vmem:[%s1071_s6 + $0x158] sm:$0xff] %v1257_v62 }
 0x109   : > { %544 = vst [vmem:[%s1071_s6 + $0x1d8] sm:$0xff] %v1259_v63 }
 0x10a   : > { %v1265_v0 = vpop.f32.mrf.mxu0  ;;  %v1267_v1 = vpop.f32.mrf.mxu1 }
 0x10b   : > { %497 = vst [vmem:[%s1071_s6 + $0x60] sm:$0xff] %v1265_v0 }
 0x10c   : > { %513 = vst [vmem:[%s1071_s6 + $0xe0] sm:$0xff] %v1267_v1 }
 0x10e   : > { %v1273_v2 = vpop.f32.mrf.mxu2  ;;  %v1275_v3 = vpop.f32.mrf.mxu3 }
 0x10f   : > { %1569 = vst [vmem:[#allocation10_spill] sm:$0xff] %v1275_v3 }
 0x110   : > { %529 = vst [vmem:[%s1071_s6 + $0x160] sm:$0xff] %v1273_v2 }
 0x111   : > { %545 = vst [vmem:[%s1071_s6 + $0x1e0] sm:$0xff] %v1275_v3 }
 0x112   : > { %v1281_v4 = vpop.f32.mrf.mxu0  ;;  %v1283_v5 = vpop.f32.mrf.mxu1 }
 0x113   : > { %498 = vst [vmem:[%s1071_s6 + $0x68] sm:$0xff] %v1281_v4 }
 0x114   : > { %514 = vst [vmem:[%s1071_s6 + $0xe8] sm:$0xff] %v1283_v5 }
 0x116   : > { %v1289_v6 = vpop.f32.mrf.mxu2  ;;  %v1291_v7 = vpop.f32.mrf.mxu3 }
 0x117   : > { %1570 = vst [vmem:[#allocation11_spill] sm:$0xff] %v1291_v7 }
 0x118   : > { %530 = vst [vmem:[%s1071_s6 + $0x168] sm:$0xff] %v1289_v6 }
 0x119   : > { %546 = vst [vmem:[%s1071_s6 + $0x1e8] sm:$0xff] %v1291_v7 }
 0x11a   : > { %v335_v8 = vpop.f32.mrf.mxu0  ;;  %v1297_v9 = vpop.f32.mrf.mxu1 }
 0x11b   : > { %499 = vst [vmem:[%s1071_s6 + $0x70] sm:$0xff] %v335_v8 }
 0x11c   : > { %515 = vst [vmem:[%s1071_s6 + $0xf0] sm:$0xff] %v1297_v9 }
 0x11e   : > { %v1302_v10 = vpop.f32.mrf.mxu2  ;;  %v1304_v11 = vpop.f32.mrf.mxu3 }
 0x11f   : > { %1571 = vst [vmem:[#allocation12_spill] sm:$0xff] %v1304_v11 }
 0x120   : > { %531 = vst [vmem:[%s1071_s6 + $0x170] sm:$0xff] %v1302_v10 }
 0x121   : > { %547 = vst [vmem:[%s1071_s6 + $0x1f0] sm:$0xff] %v1304_v11 }
 0x122   : > { %v338_v12 = vpop.f32.mrf.mxu0  ;;  %v1310_v13 = vpop.f32.mrf.mxu1 }
 0x123   : > { %500 = vst [vmem:[%s1071_s6 + $0x78] sm:$0xff] %v338_v12 }
 0x124   : > { %516 = vst [vmem:[%s1071_s6 + $0xf8] sm:$0xff] %v1310_v13 }
 0x125   : > { %552 = sbr.rel (%p840_p4) target bundleno = 301 (0x12d), region = 32 }
 0x126   : > { %v1315_v14 = vpop.f32.mrf.mxu2  ;;  %v1317_v15 = vpop.f32.mrf.mxu3 }
 0x127   : > { %1572 = vst [vmem:[#allocation13_spill] sm:$0xff] %v1317_v15 }
 0x128   : > { %532 = vst [vmem:[%s1071_s6 + $0x178] sm:$0xff] %v1315_v14 }
 0x129   : > { %548 = vst [vmem:[%s1071_s6 + $0x1f8] sm:$0xff] %v1317_v15 }
 0x12a   : > { %v908_v7 = vmov 0.0  }
 0x12b   : > { %553 = vst [vmem:[%s1535_s3] sm:$0x1] %v908_v7 }
 0x12c   : > { %554 = vst [vmem:[%s1536_s4] sm:$0x1] %v908_v7 }
 0x12d PF: > { %v556_v11 = vadd.f32 %v1089_v20, %v1073_v16  ;;  %v628_v15 = vmul.f32 %v1073_v16, %v1073_v16  ;;  %v629_v3 = vmul.f32 %v1089_v20, %v1089_v20  ;;  %v630_v59 = vmul.f32 %v1105_v24, %v1105_v24 }
 0x12e   : > { %v631_v7 = vmul.f32 %v1121_v28, %v1121_v28  ;;  %v632_v43 = vmul.f32 %v1137_v32, %v1137_v32  ;;  %v633_v20 = vmul.f32 %v1153_v36, %v1153_v36 }
 0x12f   : > { %v557_v63 = vadd.f32 %v556_v11, %v1105_v24  ;;  %v692_v51 = vadd.f32 %v629_v3, %v628_v15 }
 0x131   : > { %v558_v55 = vadd.f32 %v557_v63, %v1121_v28  ;;  %v693_v16 = vadd.f32 %v692_v51, %v630_v59  ;;  %v634_v63 = vmul.f32 %v1169_v40, %v1169_v40 }
 0x133   : > { %v559_v47 = vadd.f32 %v558_v55, %v1137_v32  ;;  %v694_v11 = vadd.f32 %v693_v16, %v631_v7  ;;  %v635_v55 = vmul.f32 %v1185_v44, %v1185_v44  ;;  %v640_v16 = vmul.f32 %v1265_v0, %v1265_v0 }
 0x135   : > { %v560_v39 = vadd.f32 %v559_v47, %v1153_v36  ;;  %v695_v35 = vadd.f32 %v694_v11, %v632_v43  ;;  %v636_v47 = vmul.f32 %v1201_v48, %v1201_v48  ;;  %v638_v43 = vmul.f32 %v1233_v56, %v1233_v56 }
 0x136   : > { %v641_v11 = vmul.f32 %v1281_v4, %v1281_v4 }
 0x137   : > { %v561_v24 = vadd.f32 %v560_v39, %v1169_v40  ;;  %v696_v3 = vadd.f32 %v695_v35, %v633_v20  ;;  %v637_v39 = vmul.f32 %v1217_v52, %v1217_v52 }
 0x139   : > { %v562_v28 = vadd.f32 %v561_v24, %v1185_v44  ;;  %v697_v51 = vadd.f32 %v696_v3, %v634_v63  ;;  %v639_v44 = vmul.f32 %v1249_v60, %v1249_v60  ;;  %v642_v63 = vmul.f32 %v335_v8, %v335_v8 }
 0x13a   : > { %v643_v3 = vmul.f32 %v338_v12, %v338_v12 }
 0x13b   : > { %v563_v32 = vadd.f32 %v562_v28, %v1201_v48  ;;  %v698_v59 = vadd.f32 %v697_v51, %v635_v55 }
 0x13d   : > { %v564_v36 = vadd.f32 %v563_v32, %v1217_v52  ;;  %v699_v15 = vadd.f32 %v698_v59, %v636_v47  ;;  %v644_v47 = vmul.f32 %v1075_v17, %v1075_v17 }
 0x13f   : > { %v565_v40 = vadd.f32 %v564_v36, %v1233_v56  ;;  %v700_v7 = vadd.f32 %v699_v15, %v637_v39  ;;  %v645_v36 = vmul.f32 %v1091_v21, %v1091_v21  ;;  %v648_v15 = vmul.f32 %v1139_v33, %v1139_v33 }
 0x141   : > { %v566_v35 = vadd.f32 %v565_v40, %v1249_v60  ;;  %v701_v20 = vadd.f32 %v700_v7, %v638_v43  ;;  %v647_v40 = vmul.f32 %v1123_v29, %v1123_v29 }
 0x143   : > { %v567_v48 = vadd.f32 %v566_v35, %v1265_v0  ;;  %v702_v24 = vadd.f32 %v701_v20, %v639_v44  ;;  %v649_v44 = vmul.f32 %v1155_v37, %v1155_v37  ;;  %v651_v20 = vmul.f32 %v1187_v45, %v1187_v45 }
 0x145   : > { %v568_v52 = vadd.f32 %v567_v48, %v1281_v4  ;;  %v703_v28 = vadd.f32 %v702_v24, %v640_v16  ;;  %v650_v48 = vmul.f32 %v1171_v41, %v1171_v41 }
 0x147   : > { %v569_v56 = vadd.f32 %v568_v52, %v335_v8  ;;  %v704_v32 = vadd.f32 %v703_v28, %v641_v11  ;;  %v646_v8 = vmul.f32 %v1107_v25, %v1107_v25  ;;  %v652_v11 = vmul.f32 %v1203_v49, %v1203_v49 }
 0x148   : > { %v654_v28 = vmul.f32 %v1235_v57, %v1235_v57 }
 0x149   : > { %v570_v55 = vadd.f32 %v569_v56, %v338_v12  ;;  %v705_v51 = vadd.f32 %v704_v32, %v642_v63  ;;  %v653_v56 = vmul.f32 %v1219_v53, %v1219_v53 }
 0x14b   : > { %v571_v60 = vadd.f32 %v570_v55, %v1075_v17  ;;  %v706_v39 = vadd.f32 %v705_v51, %v643_v3  ;;  %v655_v3 = vmul.f32 %v1251_v61, %v1251_v61  ;;  %v657_v51 = vmul.f32 %v1283_v5, %v1283_v5 }
 0x14d   : > { %v572_v0 = vadd.f32 %v571_v60, %v1091_v21  ;;  %v707_v59 = vadd.f32 %v706_v39, %v644_v47  ;;  %v656_v60 = vmul.f32 %v1267_v1, %v1267_v1 }
 0x14f   : > { %v573_v4 = vadd.f32 %v572_v0, %v1107_v25  ;;  %v708_v43 = vadd.f32 %v707_v59, %v645_v36  ;;  %v658_v36 = vmul.f32 %v1297_v9, %v1297_v9  ;;  %v660_v59 = vmul.f32 %v1081_v18, %v1081_v18 }
 0x151   : > { %v574_v12 = vadd.f32 %v573_v4, %v1123_v29  ;;  %v709_v35 = vadd.f32 %v708_v43, %v646_v8  ;;  %v659_v4 = vmul.f32 %v1310_v13, %v1310_v13 }
 0x153   : > { %v575_v17 = vadd.f32 %v574_v12, %v1139_v33  ;;  %v710_v7 = vadd.f32 %v709_v35, %v647_v40  ;;  %v661_v40 = vmul.f32 %v1097_v22, %v1097_v22  ;;  %v663_v35 = vmul.f32 %v1129_v30, %v1129_v30 }
 0x155   : > { %v576_v21 = vadd.f32 %v575_v17, %v1155_v37  ;;  %v711_v16 = vadd.f32 %v710_v7, %v648_v15  ;;  %v662_v17 = vmul.f32 %v1113_v26, %v1113_v26 }
 0x157   : > { %v577_v25 = vadd.f32 %v576_v21, %v1171_v41  ;;  %v712_v52 = vadd.f32 %v711_v16, %v649_v44  ;;  %v664_v44 = vmul.f32 %v1145_v34, %v1145_v34  ;;  %v666_v16 = vmul.f32 %v1177_v42, %v1177_v42 }
 0x159   : > { %v578_v29 = vadd.f32 %v577_v25, %v1187_v45  ;;  %v713_v24 = vadd.f32 %v712_v52, %v650_v48  ;;  %v665_v25 = vmul.f32 %v1161_v38, %v1161_v38 }
 0x15b   : > { %v579_v33 = vadd.f32 %v578_v29, %v1203_v49  ;;  %v714_v63 = vadd.f32 %v713_v24, %v651_v20  ;;  %v667_v20 = vmul.f32 %v1193_v46, %v1193_v46  ;;  %v669_v24 = vmul.f32 %v1225_v54, %v1225_v54 }
 0x15d   : > { %v580_v37 = vadd.f32 %v579_v33, %v1219_v53  ;;  %v715_v55 = vadd.f32 %v714_v63, %v652_v11  ;;  %v668_v33 = vmul.f32 %v1209_v50, %v1209_v50 }
 0x15f   : > { %v581_v41 = vadd.f32 %v580_v37, %v1235_v57  ;;  %v716_v32 = vadd.f32 %v715_v55, %v653_v56  ;;  %v670_v56 = vmul.f32 %v1241_v58, %v1241_v58  ;;  %v672_v55 = vmul.f32 %v1273_v2, %v1273_v2 }
 0x161   : > { %v582_v45 = vadd.f32 %v581_v41, %v1251_v61  ;;  %v717_v47 = vadd.f32 %v716_v32, %v654_v28  ;;  %v671_v41 = vmul.f32 %v1257_v62, %v1257_v62 }
 0x163   : > { %v583_v49 = vadd.f32 %v582_v45, %v1267_v1  ;;  %v718_v0 = vadd.f32 %v717_v47, %v655_v3  ;;  %v673_v3 = vmul.f32 %v1289_v6, %v1289_v6  ;;  %v675_v47 = vmul.f32 %v1315_v14, %v1315_v14 }
 0x165   : > { %v584_v53 = vadd.f32 %v583_v49, %v1283_v5  ;;  %v719_v39 = vadd.f32 %v718_v0, %v656_v60  ;;  %v674_v49 = vmul.f32 %v1302_v10, %v1302_v10 }
 0x167   : > { %v585_v57 = vadd.f32 %v584_v53, %v1297_v9  ;;  %v720_v8 = vadd.f32 %v719_v39, %v657_v51  ;;  %v676_v51 = vmul.f32 %v1083_v19, %v1083_v19  ;;  %v678_v39 = vmul.f32 %v1115_v27, %v1115_v27 }
 0x169   : > { %v586_v61 = vadd.f32 %v585_v57, %v1310_v13  ;;  %v721_v12 = vadd.f32 %v720_v8, %v658_v36  ;;  %v677_v57 = vmul.f32 %v1099_v23, %v1099_v23 }
 0x16b   : > { %v587_v1 = vadd.f32 %v586_v61, %v1081_v18  ;;  %v722_v43 = vadd.f32 %v721_v12, %v659_v4  ;;  %v679_v4 = vmul.f32 %v1131_v31, %v1131_v31 }
 0x16d   : > { %v588_v5 = vadd.f32 %v587_v1, %v1097_v22  ;;  %v723_v15 = vadd.f32 %v722_v43, %v660_v59 }
 0x16f   : > { %v589_v9 = vadd.f32 %v588_v5, %v1113_v26  ;;  %v724_v21 = vadd.f32 %v723_v15, %v661_v40 }
 0x171   : > { %v590_v13 = vadd.f32 %v589_v9, %v1129_v30  ;;  %v725_v7 = vadd.f32 %v724_v21, %v662_v17 }
 0x173   : > { %v591_v18 = vadd.f32 %v590_v13, %v1145_v34  ;;  %v726_v48 = vadd.f32 %v725_v7, %v663_v35 }
 0x175   : > { %v592_v22 = vadd.f32 %v591_v18, %v1161_v38  ;;  %v727_v29 = vadd.f32 %v726_v48, %v664_v44  ;;  %v1577_v18 = vld [vmem:[#allocation6_spill] sm:$0xff] }
 0x176   : > { %v684_v7 = vmul.f32 %v1577_v18, %v1577_v18 }
 0x177   : > { %v593_v26 = vadd.f32 %v592_v22, %v1177_v42  ;;  %v728_v52 = vadd.f32 %v727_v29, %v665_v25  ;;  %v1578_v25 = vld [vmem:[#allocation7_spill] sm:$0xff]  ;;  %v1579_v29 = vld [vmem:[#allocation8_spill] sm:$0xff] }
 0x179   : > { %v594_v30 = vadd.f32 %v593_v26, %v1193_v46  ;;  %v729_v11 = vadd.f32 %v728_v52, %v666_v16  ;;  %v685_v26 = vmul.f32 %v1578_v25, %v1578_v25 }
 0x17b   : > { %v595_v34 = vadd.f32 %v594_v30, %v1209_v50  ;;  %v730_v37 = vadd.f32 %v729_v11, %v667_v20  ;;  %v686_v20 = vmul.f32 %v1579_v29, %v1579_v29 }
 0x17d   : > { %v596_v38 = vadd.f32 %v595_v34, %v1225_v54  ;;  %v731_v63 = vadd.f32 %v730_v37, %v668_v33  ;;  %v1580_v34 = vld [vmem:[#allocation9_spill] sm:$0xff] }
 0x17e   : > { %v687_v11 = vmul.f32 %v1580_v34, %v1580_v34 }
 0x17f   : > { %v597_v42 = vadd.f32 %v596_v38, %v1241_v58  ;;  %v732_v28 = vadd.f32 %v731_v63, %v669_v24  ;;  %v1581_v24 = vld [vmem:[#allocation10_spill] sm:$0xff]  ;;  %v1582_v63 = vld [vmem:[#allocation11_spill] sm:$0xff] }
 0x181   : > { %v598_v46 = vadd.f32 %v597_v42, %v1257_v62  ;;  %v733_v45 = vadd.f32 %v732_v28, %v670_v56  ;;  %v688_v42 = vmul.f32 %v1581_v24, %v1581_v24 }
 0x183   : > { %v599_v50 = vadd.f32 %v598_v46, %v1273_v2  ;;  %v734_v32 = vadd.f32 %v733_v45, %v671_v41  ;;  %v689_v41 = vmul.f32 %v1582_v63, %v1582_v63 }
 0x185   : > { %v600_v54 = vadd.f32 %v599_v50, %v1289_v6  ;;  %v735_v60 = vadd.f32 %v734_v32, %v672_v55  ;;  %v1583_v50 = vld [vmem:[#allocation12_spill] sm:$0xff] }
 0x186   : > { %v690_v45 = vmul.f32 %v1583_v50, %v1583_v50 }
 0x187   : > { %v601_v58 = vadd.f32 %v600_v54, %v1302_v10  ;;  %v736_v53 = vadd.f32 %v735_v60, %v673_v3  ;;  %v1584_v3 = vld [vmem:[#allocation13_spill] sm:$0xff] }
 0x189   : > { %v602_v62 = vadd.f32 %v601_v58, %v1315_v14  ;;  %v737_v0 = vadd.f32 %v736_v53, %v674_v49  ;;  %v691_v58 = vmul.f32 %v1584_v3, %v1584_v3 }
 0x18b   : > { %v603_v2 = vadd.f32 %v602_v62, %v1083_v19  ;;  %v738_v36 = vadd.f32 %v737_v0, %v675_v47  ;;  %v1573_v19 = vld [vmem:[#allocation2_spill] sm:$0xff] }
 0x18c   : > { %v680_v59 = vmul.f32 %v1573_v19, %v1573_v19 }
 0x18d   : > { %v604_v6 = vadd.f32 %v603_v2, %v1099_v23  ;;  %v739_v61 = vadd.f32 %v738_v36, %v676_v51  ;;  %v1574_v23 = vld [vmem:[#allocation3_spill] sm:$0xff]  ;;  %v555_v36 = vld [vmem:[%s1535_s3] sm:$0x1] }
 0x18e   : > { %v681_v40 = vmul.f32 %v1574_v23, %v1574_v23 }
 0x18f   : > { %v605_v10 = vadd.f32 %v604_v6, %v1115_v27  ;;  %v740_v8 = vadd.f32 %v739_v61, %v677_v57  ;;  %v1575_v27 = vld [vmem:[#allocation4_spill] sm:$0xff] }
 0x190   : > { %v682_v17 = vmul.f32 %v1575_v27, %v1575_v27 }
 0x191   : > { %v606_v14 = vadd.f32 %v605_v10, %v1131_v31  ;;  %v741_v12 = vadd.f32 %v740_v8, %v678_v39  ;;  %v1576_v31 = vld [vmem:[#allocation5_spill] sm:$0xff]  ;;  %v627_v8 = vld [vmem:[%s1536_s4] sm:$0x1] }
 0x192   : > { %v683_v35 = vmul.f32 %v1576_v31, %v1576_v31 }
 0x193   : > { %v607_v1 = vadd.f32 %v606_v14, %v1573_v19  ;;  %v742_v43 = vadd.f32 %v741_v12, %v679_v4 }
 0x195   : > { %v608_v5 = vadd.f32 %v607_v1, %v1574_v23  ;;  %v743_v15 = vadd.f32 %v742_v43, %v680_v59 }
 0x197   : > { %v609_v9 = vadd.f32 %v608_v5, %v1575_v27  ;;  %v744_v21 = vadd.f32 %v743_v15, %v681_v40 }
 0x199   : > { %v610_v13 = vadd.f32 %v609_v9, %v1576_v31  ;;  %v745_v22 = vadd.f32 %v744_v21, %v682_v17 }
 0x19b   : > { %v611_v44 = vadd.f32 %v610_v13, %v1577_v18  ;;  %v746_v16 = vadd.f32 %v745_v22, %v683_v35 }
 0x19d   : > { %v612_v48 = vadd.f32 %v611_v44, %v1578_v25  ;;  %v747_v52 = vadd.f32 %v746_v16, %v684_v7 }
 0x19f   : > { %v613_v30 = vadd.f32 %v612_v48, %v1579_v29  ;;  %v748_v38 = vadd.f32 %v747_v52, %v685_v26 }
 0x1a1   : > { %v614_v33 = vadd.f32 %v613_v30, %v1580_v34  ;;  %v749_v56 = vadd.f32 %v748_v38, %v686_v20 }
 0x1a3   : > { %v615_v37 = vadd.f32 %v614_v33, %v1581_v24  ;;  %v750_v28 = vadd.f32 %v749_v56, %v687_v11 }
 0x1a5   : > { %v616_v46 = vadd.f32 %v615_v37, %v1582_v63  ;;  %v751_v54 = vadd.f32 %v750_v28, %v688_v42 }
 0x1a7   : > { %v617_v55 = vadd.f32 %v616_v46, %v1583_v50  ;;  %v752_v49 = vadd.f32 %v751_v54, %v689_v41 }
 0x1a9   : > { %v618_v32 = vadd.f32 %v617_v55, %v1584_v3  ;;  %v753_v62 = vadd.f32 %v752_v49, %v690_v45 }
 0x1ab   : > { %v619_v60 = vrot.slane %v618_v32, 4  ;;  %v754_v53 = vadd.f32 %v753_v62, %v691_v58 }
 0x1ad   : > { %v620_v47 = vadd.f32 %v619_v60, %v618_v32  ;;  %v755_v51 = vrot.slane %v754_v53, 4 }
 0x1af   : > { %v621_v2 = vrot.slane %v620_v47, 2  ;;  %v756_v6 = vadd.f32 %v755_v51, %v754_v53 }
 0x1b1   : > { %v622_v0 = vadd.f32 %v621_v2, %v620_v47  ;;  %v757_v10 = vrot.slane %v756_v6, 2 }
 0x1b3   : > { %v623_v57 = vrot.slane %v622_v0, 1  ;;  %v758_v61 = vadd.f32 %v757_v10, %v756_v6 }
 0x1b5   : > { %v624_v39 = vadd.f32 %v623_v57, %v622_v0  ;;  %v759_v4 = vrot.slane %v758_v61, 1 }
 0x1b7   : > { %v625_v14 = vadd.f32 %v624_v39, %v555_v36  ;;  %v760_v19 = vadd.f32 %v759_v4, %v758_v61 }
 0x1b9   : > { %626 = vst [vmem:[%s1535_s3] sm:$0x1] %v625_v14  ;;  %v761_v1 = vadd.f32 %v760_v19, %v627_v8 }
 0x1bb   : > { %762 = vst [vmem:[%s1536_s4] sm:$0x1] %v761_v1 }
 0x1bc PF: > { %s15_s15 = sadd.s32 1, %s906_s15  }
 0x1bd   : > { %p12_p5 = scmp.ge.s32.totalorder %s15_s15, 5  }
 0x1bf   :  { %14 = sbr.rel (!%p12_p5) target bundleno = 1 (0x1), region = 78 }

// kernel: _lambda_.10
= control target key start
LH: loop header
LB: loop body
LE: loop exit
PB: predicated region body
PF: predicated region fallthrough
CT: control target
= control target key end

     0   :  { %s735_s12 = smov 0   ;;  %s1027_s0 = inlined_call_operand.vmem [shape: f32[1536,128], index: 0, kind: input, shape index: {}]   ;;  %s1028_s1 = inlined_call_operand.vmem [shape: f32[1,128], index: 1, kind: input, shape index: {}]   ;;  %s1029_s2 = inlined_call_operand.vmem [shape: f32[1,128], index: 2, kind: input, shape index: {}]   ;;  %s1030_s3 = inlined_call_operand.vmem [shape: f32[1536,128], index: 3, kind: output, shape index: {}]  }
   0x1 LB: > { %s686_s13 = sadd.s32 4294967295, %s713_s12   ;;  %p690_p0 = scmp.ge.s32.totalorder %s713_s12, 1  ;;  %s713_s12 = sphi %s735_s12, %s13_s12  }
   0x2   : > { %p138_p1 = scmp.lt.s32.totalorder %s713_s12, 4 }
   0x4   : > { %p139_p2 = pnand %p690_p0, %p138_p1 }
   0x5   : > { %s691_s14 = sshll.u32 (!%p139_p2), %s686_s13, 6 }
   0x6   : > { %142 = sbr.rel (%p139_p2) target bundleno = 100 (0x64), region = 32  ;;  %p163_p3 = scmp.lt.s32.totalorder (!%p139_p2), %s691_s14, 191 }
   0xb   : > { %s1032_s14 = smov (!%p163_p3, %s691_s14), 191  ;;  %v748_v0 = vld [vmem:[%s1028_s1] ss:$0 sm:$0xff] }
   0xc   : > { %s692_s17 = sshll.u32 %s1032_s14, 3  ;;  %v759_v1 = vld [vmem:[%s1029_s2] ss:$0 sm:$0xff] }
   0xd   : > { %s754_s20 = scalar_lea.vmem %s1027_s0, %s692_s17  ;;  %s787_s25 = scalar_lea.vmem %s1030_s3, %s692_s17 }
   0xe   : > { %v174_v2 = vld [vmem:[%s754_s20] sm:$0xff]  ;;  %v175_v3 = vld [vmem:[%s754_s20 + $0x8] sm:$0xff]  ;;  %v176_v4 = vld [vmem:[%s754_s20 + $0x10] sm:$0xff] }
   0xf   : > { %v242_v5 = vmul.f32 %v748_v0, %v174_v2  ;;  %v243_v6 = vmul.f32 %v748_v0, %v175_v3  ;;  %v244_v7 = vmul.f32 %v748_v0, %v176_v4  ;;  %v177_v8 = vld [vmem:[%s754_s20 + $0x18] sm:$0xff]  ;;  %v178_v9 = vld [vmem:[%s754_s20 + $0x20] sm:$0xff]  ;;  %v179_v10 = vld [vmem:[%s754_s20 + $0x28] sm:$0xff] }
  0x10   : > { %v245_v11 = vmul.f32 %v748_v0, %v177_v8  ;;  %v246_v12 = vmul.f32 %v748_v0, %v178_v9  ;;  %v247_v13 = vmul.f32 %v748_v0, %v179_v10  ;;  %v180_v14 = vld [vmem:[%s754_s20 + $0x30] sm:$0xff]  ;;  %v181_v15 = vld [vmem:[%s754_s20 + $0x38] sm:$0xff]  ;;  %v182_v24 = vld [vmem:[%s754_s20 + $0x40] sm:$0xff] }
  0x11   : > { %v310_v16 = vadd.f32 %v759_v1, %v242_v5  ;;  %v311_v17 = vadd.f32 %v759_v1, %v243_v6  ;;  %v312_v18 = vadd.f32 %v759_v1, %v244_v7  ;;  %v248_v19 = vmul.f32 %v748_v0, %v180_v14  ;;  %v183_v32 = vld [vmem:[%s754_s20 + $0x48] sm:$0xff]  ;;  %v184_v33 = vld [vmem:[%s754_s20 + $0x50] sm:$0xff]  ;;  %v185_v34 = vld [vmem:[%s754_s20 + $0x58] sm:$0xff] }
  0x12   : > { %v313_v20 = vadd.f32 %v759_v1, %v245_v11  ;;  %v314_v21 = vadd.f32 %v759_v1, %v246_v12  ;;  %v315_v22 = vadd.f32 %v759_v1, %v247_v13  ;;  %v249_v23 = vmul.f32 %v748_v0, %v181_v15  ;;  %v186_v46 = vld [vmem:[%s754_s20 + $0x60] sm:$0xff]  ;;  %v187_v53 = vld [vmem:[%s754_s20 + $0x68] sm:$0xff]  ;;  %v188_v57 = vld [vmem:[%s754_s20 + $0x70] sm:$0xff] }
  0x13   : > { %vm374_vm0 = vcmp.gt.f32.partialorder %v310_v16, 0.0  ;;  %v438_v25 = vmul.f32 0.2, %v310_v16  ;;  %vm375_vm1 = vcmp.gt.f32.partialorder %v311_v17, 0.0  ;;  %v439_v26 = vmul.f32 0.2, %v311_v17 }
  0x14   : > { %vm376_vm2 = vcmp.gt.f32.partialorder %v312_v18, 0.0  ;;  %v440_v27 = vmul.f32 0.2, %v312_v18  ;;  %vm377_vm3 = vcmp.gt.f32.partialorder %v313_v20, 0.0  ;;  %v441_v28 = vmul.f32 0.2, %v313_v20 }
  0x15   : > { %v502_v29 = vsel %vm374_vm0, %v310_v16, %v438_v25  ;;  %v503_v30 = vsel %vm375_vm1, %v311_v17, %v439_v26  ;;  %vm378_vm4 = vcmp.gt.f32.partialorder %v314_v21, 0.0  ;;  %v442_v31 = vmul.f32 0.2, %v314_v21  ;;  %v189_v58 = vld [vmem:[%s754_s20 + $0x78] sm:$0xff]  ;;  %v190_v61 = vld [vmem:[%s754_s20 + $0x80] sm:$0xff]  ;;  %v191_v7 = vld [vmem:[%s754_s20 + $0x88] sm:$0xff] }
  0x16   : > { %566 = vst [vmem:[%s787_s25] sm:$0xff] %v502_v29  ;;  %v504_v35 = vsel %vm376_vm2, %v312_v18, %v440_v27  ;;  %v505_v36 = vsel %vm377_vm3, %v313_v20, %v441_v28  ;;  %vm379_vm5 = vcmp.gt.f32.partialorder %v315_v22, 0.0  ;;  %v443_v37 = vmul.f32 0.2, %v315_v22  ;;  %v192_v8 = vld [vmem:[%s754_s20 + $0x90] sm:$0xff]  ;;  %v194_v29 = vld [vmem:[%s754_s20 + $0xa0] sm:$0xff] }
  0x17   : > { %567 = vst [vmem:[%s787_s25 + $0x8] sm:$0xff] %v503_v30  ;;  %v506_v38 = vsel %vm378_vm4, %v314_v21, %v442_v31  ;;  %v316_v39 = vadd.f32 %v759_v1, %v248_v19  ;;  %v317_v40 = vadd.f32 %v759_v1, %v249_v23  ;;  %v250_v41 = vmul.f32 %v748_v0, %v182_v24  ;;  %v195_v30 = vld [vmem:[%s754_s20 + $0xa8] sm:$0xff]  ;;  %v196_v31 = vld [vmem:[%s754_s20 + $0xb0] sm:$0xff] }
  0x18   : > { %568 = vst [vmem:[%s787_s25 + $0x10] sm:$0xff] %v504_v35  ;;  %v507_v42 = vsel %vm379_vm5, %v315_v22, %v443_v37  ;;  %v251_v43 = vmul.f32 %v748_v0, %v183_v32  ;;  %v252_v44 = vmul.f32 %v748_v0, %v184_v33  ;;  %v253_v45 = vmul.f32 %v748_v0, %v185_v34  ;;  %v193_v22 = vld [vmem:[%s754_s20 + $0x98] sm:$0xff] }
  0x19   : > { %569 = vst [vmem:[%s787_s25 + $0x18] sm:$0xff] %v505_v36  ;;  %vm380_vm6 = vcmp.gt.f32.partialorder %v316_v39, 0.0  ;;  %v444_v47 = vmul.f32 0.2, %v316_v39  ;;  %vm381_vm7 = vcmp.gt.f32.partialorder %v317_v40, 0.0  ;;  %v318_v48 = vadd.f32 %v759_v1, %v250_v41  ;;  %v197_v35 = vld [vmem:[%s754_s20 + $0xb8] sm:$0xff] }
  0x1a   : > { %570 = vst [vmem:[%s787_s25 + $0x20] sm:$0xff] %v506_v38  ;;  %v445_v49 = vmul.f32 0.2, %v317_v40  ;;  %v319_v50 = vadd.f32 %v759_v1, %v251_v43  ;;  %v320_v51 = vadd.f32 %v759_v1, %v252_v44  ;;  %v321_v52 = vadd.f32 %v759_v1, %v253_v45  ;;  %v198_v36 = vld [vmem:[%s754_s20 + $0xc0] sm:$0xff] }
  0x1b   : > { %571 = vst [vmem:[%s787_s25 + $0x28] sm:$0xff] %v507_v42  ;;  %v508_v54 = vsel %vm380_vm6, %v316_v39, %v444_v47  ;;  %vm382_vm8 = vcmp.gt.f32.partialorder %v318_v48, 0.0  ;;  %v446_v55 = vmul.f32 0.2, %v318_v48  ;;  %v254_v56 = vmul.f32 %v748_v0, %v186_v46 }
  0x1c   : > { %572 = vst [vmem:[%s787_s25 + $0x30] sm:$0xff] %v508_v54  ;;  %v509_v59 = vsel %vm381_vm7, %v317_v40, %v445_v49  ;;  %vm383_vm9 = vcmp.gt.f32.partialorder %v319_v50, 0.0  ;;  %v447_v60 = vmul.f32 0.2, %v319_v50  ;;  %vm384_vm10 = vcmp.gt.f32.partialorder %v320_v51, 0.0  ;;  %v199_v40 = vld [vmem:[%s754_s20 + $0xc8] sm:$0xff] }
  0x1d   : > { %573 = vst [vmem:[%s787_s25 + $0x38] sm:$0xff] %v509_v59  ;;  %v510_v62 = vsel %vm382_vm8, %v318_v48, %v446_v55  ;;  %v448_v63 = vmul.f32 0.2, %v320_v51  ;;  %vm385_vm11 = vcmp.gt.f32.partialorder %v321_v52, 0.0  ;;  %v449_v2 = vmul.f32 0.2, %v321_v52 }
  0x1e   : > { %574 = vst [vmem:[%s787_s25 + $0x40] sm:$0xff] %v510_v62  ;;  %v511_v3 = vsel %vm383_vm9, %v319_v50, %v447_v60  ;;  %v322_v4 = vadd.f32 %v759_v1, %v254_v56  ;;  %v255_v5 = vmul.f32 %v748_v0, %v187_v53  ;;  %v256_v6 = vmul.f32 %v748_v0, %v188_v57  ;;  %v200_v56 = vld [vmem:[%s754_s20 + $0xd0] sm:$0xff]  ;;  %v201_v57 = vld [vmem:[%s754_s20 + $0xd8] sm:$0xff]  ;;  %v202_v62 = vld [vmem:[%s754_s20 + $0xe0] sm:$0xff] }
  0x1f   : > { %575 = vst [vmem:[%s787_s25 + $0x48] sm:$0xff] %v511_v3  ;;  %v512_v9 = vsel %vm384_vm10, %v320_v51, %v448_v63  ;;  %v513_v10 = vsel %vm385_vm11, %v321_v52, %v449_v2  ;;  %v257_v11 = vmul.f32 %v748_v0, %v189_v58  ;;  %v258_v12 = vmul.f32 %v748_v0, %v190_v61  ;;  %v203_v63 = vld [vmem:[%s754_s20 + $0xe8] sm:$0xff] }
  0x20   : > { %576 = vst [vmem:[%s787_s25 + $0x50] sm:$0xff] %v512_v9  ;;  %vm386_vm12 = vcmp.gt.f32.partialorder %v322_v4, 0.0  ;;  %v450_v13 = vmul.f32 0.2, %v322_v4  ;;  %v323_v14 = vadd.f32 %v759_v1, %v255_v5  ;;  %v324_v15 = vadd.f32 %v759_v1, %v256_v6  ;;  %v204_v9 = vld [vmem:[%s754_s20 + $0xf0] sm:$0xff] }
  0x21   : > { %577 = vst [vmem:[%s787_s25 + $0x58] sm:$0xff] %v513_v10  ;;  %v325_v16 = vadd.f32 %v759_v1, %v257_v11  ;;  %v326_v17 = vadd.f32 %v759_v1, %v258_v12  ;;  %v259_v18 = vmul.f32 %v748_v0, %v191_v7  ;;  %v260_v19 = vmul.f32 %v748_v0, %v192_v8 }
  0x22   : > { %v514_v20 = vsel %vm386_vm12, %v322_v4, %v450_v13  ;;  %vm387_vm13 = vcmp.gt.f32.partialorder %v323_v14, 0.0  ;;  %v451_v21 = vmul.f32 0.2, %v323_v14  ;;  %vm388_vm14 = vcmp.gt.f32.partialorder %v324_v15, 0.0 }
  0x23   : > { %578 = vst [vmem:[%s787_s25 + $0x60] sm:$0xff] %v514_v20  ;;  %v452_v23 = vmul.f32 0.2, %v324_v15  ;;  %vm389_vm15 = vcmp.gt.f32.partialorder %v325_v16, 0.0  ;;  %v453_v24 = vmul.f32 0.2, %v325_v16  ;;  %v327_v25 = vadd.f32 %v759_v1, %v259_v18 }
  0x24   : > { %v515_v26 = vsel %vm387_vm13, %v323_v14, %v451_v21  ;;  %vm390_vm0 = vcmp.gt.f32.partialorder %v326_v17, 0.0  ;;  %v454_v27 = vmul.f32 0.2, %v326_v17  ;;  %v328_v28 = vadd.f32 %v759_v1, %v260_v19  ;;  %v205_v14 = vld [vmem:[%s754_s20 + $0xf8] sm:$0xff] }
  0x25   : > { %579 = vst [vmem:[%s787_s25 + $0x68] sm:$0xff] %v515_v26  ;;  %v516_v32 = vsel %vm388_vm14, %v324_v15, %v452_v23  ;;  %v517_v33 = vsel %vm389_vm15, %v325_v16, %v453_v24  ;;  %vm391_vm1 = vcmp.gt.f32.partialorder %v327_v25, 0.0  ;;  %v455_v34 = vmul.f32 0.2, %v327_v25  ;;  %v207_v26 = vld [vmem:[%s754_s20 + $0x108] sm:$0xff] }
  0x26   : > { %580 = vst [vmem:[%s787_s25 + $0x70] sm:$0xff] %v516_v32  ;;  %v518_v37 = vsel %vm390_vm0, %v326_v17, %v454_v27  ;;  %vm392_vm2 = vcmp.gt.f32.partialorder %v328_v28, 0.0  ;;  %v456_v38 = vmul.f32 0.2, %v328_v28  ;;  %v261_v39 = vmul.f32 %v748_v0, %v193_v22 }
  0x27   : > { %581 = vst [vmem:[%s787_s25 + $0x78] sm:$0xff] %v517_v33  ;;  %v519_v41 = vsel %vm391_vm1, %v327_v25, %v455_v34  ;;  %v262_v42 = vmul.f32 %v748_v0, %v194_v29  ;;  %v263_v43 = vmul.f32 %v748_v0, %v195_v30  ;;  %v264_v44 = vmul.f32 %v748_v0, %v196_v31  ;;  %v206_v25 = vld [vmem:[%s754_s20 + $0x100] sm:$0xff] }
  0x28   : > { %582 = vst [vmem:[%s787_s25 + $0x80] sm:$0xff] %v518_v37  ;;  %v520_v45 = vsel %vm392_vm2, %v328_v28, %v456_v38  ;;  %v329_v46 = vadd.f32 %v759_v1, %v261_v39  ;;  %v265_v47 = vmul.f32 %v748_v0, %v197_v35  ;;  %v266_v48 = vmul.f32 %v748_v0, %v198_v36  ;;  %v208_v36 = vld [vmem:[%s754_s20 + $0x110] sm:$0xff]  ;;  %v209_v37 = vld [vmem:[%s754_s20 + $0x118] sm:$0xff]  ;;  %v210_v38 = vld [vmem:[%s754_s20 + $0x120] sm:$0xff] }
  0x29   : > { %583 = vst [vmem:[%s787_s25 + $0x88] sm:$0xff] %v519_v41  ;;  %v330_v49 = vadd.f32 %v759_v1, %v262_v42  ;;  %v331_v50 = vadd.f32 %v759_v1, %v263_v43  ;;  %v332_v51 = vadd.f32 %v759_v1, %v264_v44  ;;  %v267_v52 = vmul.f32 %v748_v0, %v199_v40 }
  0x2a   : > { %584 = vst [vmem:[%s787_s25 + $0x90] sm:$0xff] %v520_v45  ;;  %vm393_vm3 = vcmp.gt.f32.partialorder %v329_v46, 0.0  ;;  %v457_v53 = vmul.f32 0.2, %v329_v46  ;;  %v333_v54 = vadd.f32 %v759_v1, %v265_v47  ;;  %v334_v55 = vadd.f32 %v759_v1, %v266_v48 }
  0x2b   : > { %vm394_vm4 = vcmp.gt.f32.partialorder %v330_v49, 0.0  ;;  %v458_v58 = vmul.f32 0.2, %v330_v49  ;;  %vm395_vm5 = vcmp.gt.f32.partialorder %v331_v50, 0.0  ;;  %v459_v59 = vmul.f32 0.2, %v331_v50 }
  0x2c   : > { %v521_v60 = vsel %vm393_vm3, %v329_v46, %v457_v53  ;;  %vm396_vm6 = vcmp.gt.f32.partialorder %v332_v51, 0.0  ;;  %v460_v61 = vmul.f32 0.2, %v332_v51  ;;  %vm397_vm7 = vcmp.gt.f32.partialorder %v333_v54, 0.0 }
  0x2d   : > { %585 = vst [vmem:[%s787_s25 + $0x98] sm:$0xff] %v521_v60  ;;  %v522_v2 = vsel %vm394_vm4, %v330_v49, %v458_v58  ;;  %v523_v3 = vsel %vm395_vm5, %v331_v50, %v459_v59  ;;  %v461_v4 = vmul.f32 0.2, %v333_v54  ;;  %vm398_vm8 = vcmp.gt.f32.partialorder %v334_v55, 0.0  ;;  %v211_v49 = vld [vmem:[%s754_s20 + $0x128] sm:$0xff]  ;;  %v212_v50 = vld [vmem:[%s754_s20 + $0x130] sm:$0xff] }
  0x2e   : > { %586 = vst [vmem:[%s787_s25 + $0xa0] sm:$0xff] %v522_v2  ;;  %v524_v5 = vsel %vm396_vm6, %v332_v51, %v460_v61  ;;  %v462_v6 = vmul.f32 0.2, %v334_v55  ;;  %v335_v7 = vadd.f32 %v759_v1, %v267_v52  ;;  %v268_v8 = vmul.f32 %v748_v0, %v200_v56  ;;  %v213_v51 = vld [vmem:[%s754_s20 + $0x138] sm:$0xff] }
  0x2f   : > { %587 = vst [vmem:[%s787_s25 + $0xa8] sm:$0xff] %v523_v3  ;;  %v525_v10 = vsel %vm397_vm7, %v333_v54, %v461_v4  ;;  %v269_v11 = vmul.f32 %v748_v0, %v201_v57  ;;  %v270_v12 = vmul.f32 %v748_v0, %v202_v62  ;;  %v271_v13 = vmul.f32 %v748_v0, %v203_v63  ;;  %v214_v62 = vld [vmem:[%s754_s20 + $0x140] sm:$0xff] }
  0x30   : > { %588 = vst [vmem:[%s787_s25 + $0xb0] sm:$0xff] %v524_v5  ;;  %v526_v15 = vsel %vm398_vm8, %v334_v55, %v462_v6  ;;  %vm399_vm9 = vcmp.gt.f32.partialorder %v335_v7, 0.0  ;;  %v463_v16 = vmul.f32 0.2, %v335_v7  ;;  %v336_v17 = vadd.f32 %v759_v1, %v268_v8 }
  0x31   : > { %589 = vst [vmem:[%s787_s25 + $0xb8] sm:$0xff] %v525_v10  ;;  %v337_v18 = vadd.f32 %v759_v1, %v269_v11  ;;  %v338_v19 = vadd.f32 %v759_v1, %v270_v12  ;;  %v339_v20 = vadd.f32 %v759_v1, %v271_v13  ;;  %v272_v21 = vmul.f32 %v748_v0, %v204_v9  ;;  %v215_v10 = vld [vmem:[%s754_s20 + $0x148] sm:$0xff]  ;;  %v216_v11 = vld [vmem:[%s754_s20 + $0x150] sm:$0xff] }
  0x32   : > { %590 = vst [vmem:[%s787_s25 + $0xc0] sm:$0xff] %v526_v15  ;;  %v527_v22 = vsel %vm399_vm9, %v335_v7, %v463_v16  ;;  %vm400_vm10 = vcmp.gt.f32.partialorder %v336_v17, 0.0  ;;  %v464_v23 = vmul.f32 0.2, %v336_v17  ;;  %v273_v24 = vmul.f32 %v748_v0, %v205_v14  ;;  %v217_v15 = vld [vmem:[%s754_s20 + $0x158] sm:$0xff] }
  0x33   : > { %591 = vst [vmem:[%s787_s25 + $0xc8] sm:$0xff] %v527_v22  ;;  %vm401_vm11 = vcmp.gt.f32.partialorder %v337_v18, 0.0  ;;  %v465_v27 = vmul.f32 0.2, %v337_v18  ;;  %vm402_vm12 = vcmp.gt.f32.partialorder %v338_v19, 0.0  ;;  %vm403_vm13 = vcmp.gt.f32.partialorder %v339_v20, 0.0 }
  0x34   : > { %v528_v28 = vsel %vm400_vm10, %v336_v17, %v464_v23  ;;  %v466_v29 = vmul.f32 0.2, %v338_v19  ;;  %v467_v30 = vmul.f32 0.2, %v339_v20  ;;  %v340_v31 = vadd.f32 %v759_v1, %v272_v21  ;;  %v219_v23 = vld [vmem:[%s754_s20 + $0x168] sm:$0xff] }
  0x35   : > { %592 = vst [vmem:[%s787_s25 + $0xd0] sm:$0xff] %v528_v28  ;;  %v529_v32 = vsel %vm401_vm11, %v337_v18, %v465_v27  ;;  %v341_v33 = vadd.f32 %v759_v1, %v273_v24  ;;  %v274_v34 = vmul.f32 %v748_v0, %v206_v25  ;;  %v275_v35 = vmul.f32 %v748_v0, %v207_v26  ;;  %v218_v18 = vld [vmem:[%s754_s20 + $0x160] sm:$0xff]  ;;  %v220_v24 = vld [vmem:[%s754_s20 + $0x170] sm:$0xff] }
  0x36   : > { %593 = vst [vmem:[%s787_s25 + $0xd8] sm:$0xff] %v529_v32  ;;  %v530_v39 = vsel %vm402_vm12, %v338_v19, %v466_v29  ;;  %v531_v40 = vsel %vm403_vm13, %v339_v20, %v467_v30  ;;  %vm404_vm14 = vcmp.gt.f32.partialorder %v340_v31, 0.0  ;;  %v468_v41 = vmul.f32 0.2, %v340_v31 }
  0x37   : > { %594 = vst [vmem:[%s787_s25 + $0xe0] sm:$0xff] %v530_v39  ;;  %vm405_vm15 = vcmp.gt.f32.partialorder %v341_v33, 0.0  ;;  %v469_v42 = vmul.f32 0.2, %v341_v33  ;;  %v342_v43 = vadd.f32 %v759_v1, %v274_v34  ;;  %v343_v44 = vadd.f32 %v759_v1, %v275_v35 }
  0x38   : > { %595 = vst [vmem:[%s787_s25 + $0xe8] sm:$0xff] %v531_v40  ;;  %v532_v45 = vsel %vm404_vm14, %v340_v31, %v468_v41  ;;  %v276_v46 = vmul.f32 %v748_v0, %v208_v36  ;;  %v277_v47 = vmul.f32 %v748_v0, %v209_v37  ;;  %v278_v48 = vmul.f32 %v748_v0, %v210_v38  ;;  %v221_v41 = vld [vmem:[%s754_s20 + $0x178] sm:$0xff] }
  0x39   : > { %596 = vst [vmem:[%s787_s25 + $0xf0] sm:$0xff] %v532_v45  ;;  %v533_v52 = vsel %vm405_vm15, %v341_v33, %v469_v42  ;;  %vm406_vm0 = vcmp.gt.f32.partialorder %v342_v43, 0.0  ;;  %v470_v53 = vmul.f32 0.2, %v342_v43  ;;  %vm407_vm1 = vcmp.gt.f32.partialorder %v343_v44, 0.0  ;;  %v222_v45 = vld [vmem:[%s754_s20 + $0x180] sm:$0xff] }
  0x3a   : > { %597 = vst [vmem:[%s787_s25 + $0xf8] sm:$0xff] %v533_v52  ;;  %v471_v54 = vmul.f32 0.2, %v343_v44  ;;  %v344_v55 = vadd.f32 %v759_v1, %v276_v46  ;;  %v345_v56 = vadd.f32 %v759_v1, %v277_v47  ;;  %v346_v57 = vadd.f32 %v759_v1, %v278_v48  ;;  %v223_v46 = vld [vmem:[%s754_s20 + $0x188] sm:$0xff]  ;;  %v224_v47 = vld [vmem:[%s754_s20 + $0x190] sm:$0xff]  ;;  %v226_v52 = vld [vmem:[%s754_s20 + $0x1a0] sm:$0xff] }
  0x3b   : > { %v534_v58 = vsel %vm406_vm0, %v342_v43, %v470_v53  ;;  %v279_v59 = vmul.f32 %v748_v0, %v211_v49  ;;  %v280_v60 = vmul.f32 %v748_v0, %v212_v50  ;;  %v281_v61 = vmul.f32 %v748_v0, %v213_v51  ;;  %v225_v51 = vld [vmem:[%s754_s20 + $0x198] sm:$0xff] }
  0x3c   : > { %598 = vst [vmem:[%s787_s25 + $0x100] sm:$0xff] %v534_v58  ;;  %v535_v63 = vsel %vm407_vm1, %v343_v44, %v471_v54  ;;  %vm408_vm2 = vcmp.gt.f32.partialorder %v344_v55, 0.0  ;;  %v472_v2 = vmul.f32 0.2, %v344_v55  ;;  %vm409_vm3 = vcmp.gt.f32.partialorder %v345_v56, 0.0 }
  0x3d   : > { %599 = vst [vmem:[%s787_s25 + $0x108] sm:$0xff] %v535_v63  ;;  %v473_v3 = vmul.f32 0.2, %v345_v56  ;;  %vm410_vm4 = vcmp.gt.f32.partialorder %v346_v57, 0.0  ;;  %v474_v4 = vmul.f32 0.2, %v346_v57  ;;  %v347_v5 = vadd.f32 %v759_v1, %v279_v59 }
  0x3e   : > { %v536_v6 = vsel %vm408_vm2, %v344_v55, %v472_v2  ;;  %v348_v7 = vadd.f32 %v759_v1, %v280_v60  ;;  %v349_v8 = vadd.f32 %v759_v1, %v281_v61  ;;  %v282_v9 = vmul.f32 %v748_v0, %v214_v62 }
  0x3f   : > { %600 = vst [vmem:[%s787_s25 + $0x110] sm:$0xff] %v536_v6  ;;  %v537_v12 = vsel %vm409_vm3, %v345_v56, %v473_v3  ;;  %v538_v13 = vsel %vm410_vm4, %v346_v57, %v474_v4  ;;  %vm411_vm5 = vcmp.gt.f32.partialorder %v347_v5, 0.0  ;;  %v475_v14 = vmul.f32 0.2, %v347_v5  ;;  %v227_v56 = vld [vmem:[%s754_s20 + $0x1a8] sm:$0xff] }
  0x40   : > { %601 = vst [vmem:[%s787_s25 + $0x118] sm:$0xff] %v537_v12  ;;  %vm412_vm6 = vcmp.gt.f32.partialorder %v348_v7, 0.0  ;;  %v476_v16 = vmul.f32 0.2, %v348_v7  ;;  %vm413_vm7 = vcmp.gt.f32.partialorder %v349_v8, 0.0  ;;  %v350_v17 = vadd.f32 %v759_v1, %v282_v9 }
  0x41   : > { %602 = vst [vmem:[%s787_s25 + $0x120] sm:$0xff] %v538_v13  ;;  %v539_v19 = vsel %vm411_vm5, %v347_v5, %v475_v14  ;;  %v477_v20 = vmul.f32 0.2, %v349_v8  ;;  %v283_v21 = vmul.f32 %v748_v0, %v215_v10  ;;  %v284_v22 = vmul.f32 %v748_v0, %v216_v11  ;;  %v228_v10 = vld [vmem:[%s754_s20 + $0x1b0] sm:$0xff]  ;;  %v229_v11 = vld [vmem:[%s754_s20 + $0x1b8] sm:$0xff] }
  0x42   : > { %603 = vst [vmem:[%s787_s25 + $0x128] sm:$0xff] %v539_v19  ;;  %v540_v25 = vsel %vm412_vm6, %v348_v7, %v476_v16  ;;  %vm414_vm8 = vcmp.gt.f32.partialorder %v350_v17, 0.0  ;;  %v478_v26 = vmul.f32 0.2, %v350_v17  ;;  %v285_v27 = vmul.f32 %v748_v0, %v217_v15  ;;  %v230_v16 = vld [vmem:[%s754_s20 + $0x1c0] sm:$0xff] }
  0x43   : > { %604 = vst [vmem:[%s787_s25 + $0x130] sm:$0xff] %v540_v25  ;;  %v541_v28 = vsel %vm413_vm7, %v349_v8, %v477_v20  ;;  %v351_v29 = vadd.f32 %v759_v1, %v283_v21  ;;  %v352_v30 = vadd.f32 %v759_v1, %v284_v22  ;;  %v286_v31 = vmul.f32 %v748_v0, %v218_v18  ;;  %v232_v25 = vld [vmem:[%s754_s20 + $0x1d0] sm:$0xff] }
  0x44   : > { %605 = vst [vmem:[%s787_s25 + $0x138] sm:$0xff] %v541_v28  ;;  %v542_v32 = vsel %vm414_vm8, %v350_v17, %v478_v26  ;;  %v353_v33 = vadd.f32 %v759_v1, %v285_v27  ;;  %v287_v34 = vmul.f32 %v748_v0, %v219_v23  ;;  %v288_v35 = vmul.f32 %v748_v0, %v220_v24  ;;  %v231_v17 = vld [vmem:[%s754_s20 + $0x1c8] sm:$0xff] }
  0x45   : > { %606 = vst [vmem:[%s787_s25 + $0x140] sm:$0xff] %v542_v32  ;;  %vm415_vm9 = vcmp.gt.f32.partialorder %v351_v29, 0.0  ;;  %v479_v36 = vmul.f32 0.2, %v351_v29  ;;  %vm416_vm10 = vcmp.gt.f32.partialorder %v352_v30, 0.0  ;;  %v354_v37 = vadd.f32 %v759_v1, %v286_v31 }
  0x46   : > { %v480_v38 = vmul.f32 0.2, %v352_v30  ;;  %vm417_vm11 = vcmp.gt.f32.partialorder %v353_v33, 0.0  ;;  %v481_v39 = vmul.f32 0.2, %v353_v33  ;;  %v355_v40 = vadd.f32 %v759_v1, %v287_v34 }
  0x47   : > { %v543_v42 = vsel %vm415_vm9, %v351_v29, %v479_v36  ;;  %vm418_vm12 = vcmp.gt.f32.partialorder %v354_v37, 0.0  ;;  %v482_v43 = vmul.f32 0.2, %v354_v37  ;;  %v356_v44 = vadd.f32 %v759_v1, %v288_v35 }
  0x48   : > { %607 = vst [vmem:[%s787_s25 + $0x148] sm:$0xff] %v543_v42  ;;  %v544_v48 = vsel %vm416_vm10, %v352_v30, %v480_v38  ;;  %v545_v49 = vsel %vm417_vm11, %v353_v33, %v481_v39  ;;  %vm419_vm13 = vcmp.gt.f32.partialorder %v355_v40, 0.0  ;;  %v483_v50 = vmul.f32 0.2, %v355_v40  ;;  %v233_v30 = vld [vmem:[%s754_s20 + $0x1d8] sm:$0xff]  ;;  %v235_v42 = vld [vmem:[%s754_s20 + $0x1e8] sm:$0xff] }
  0x49   : > { %608 = vst [vmem:[%s787_s25 + $0x150] sm:$0xff] %v544_v48  ;;  %v546_v53 = vsel %vm418_vm12, %v354_v37, %v482_v43  ;;  %vm420_vm14 = vcmp.gt.f32.partialorder %v356_v44, 0.0  ;;  %v484_v54 = vmul.f32 0.2, %v356_v44  ;;  %v289_v55 = vmul.f32 %v748_v0, %v221_v41  ;;  %v234_v41 = vld [vmem:[%s754_s20 + $0x1e0] sm:$0xff] }
  0x4a   : > { %609 = vst [vmem:[%s787_s25 + $0x158] sm:$0xff] %v545_v49  ;;  %v547_v57 = vsel %vm419_vm13, %v355_v40, %v483_v50  ;;  %v290_v58 = vmul.f32 %v748_v0, %v222_v45  ;;  %v291_v59 = vmul.f32 %v748_v0, %v223_v46  ;;  %v292_v60 = vmul.f32 %v748_v0, %v224_v47 }
  0x4b   : > { %610 = vst [vmem:[%s787_s25 + $0x160] sm:$0xff] %v546_v53  ;;  %v548_v61 = vsel %vm420_vm14, %v356_v44, %v484_v54  ;;  %v357_v62 = vadd.f32 %v759_v1, %v289_v55  ;;  %v293_v63 = vmul.f32 %v748_v0, %v225_v51  ;;  %v294_v2 = vmul.f32 %v748_v0, %v226_v52  ;;  %v236_v52 = vld [vmem:[%s754_s20 + $0x1f0] sm:$0xff]  ;;  %v237_v53 = vld [vmem:[%s754_s20 + $0x1f8] sm:$0xff] }
  0x4c   : > { %611 = vst [vmem:[%s787_s25 + $0x168] sm:$0xff] %v547_v57  ;;  %v358_v3 = vadd.f32 %v759_v1, %v290_v58  ;;  %v359_v4 = vadd.f32 %v759_v1, %v291_v59  ;;  %v360_v5 = vadd.f32 %v759_v1, %v292_v60  ;;  %v295_v6 = vmul.f32 %v748_v0, %v227_v56 }
  0x4d   : > { %612 = vst [vmem:[%s787_s25 + $0x170] sm:$0xff] %v548_v61  ;;  %vm421_vm15 = vcmp.gt.f32.partialorder %v357_v62, 0.0  ;;  %v485_v7 = vmul.f32 0.2, %v357_v62  ;;  %v361_v8 = vadd.f32 %v759_v1, %v293_v63  ;;  %v362_v9 = vadd.f32 %v759_v1, %v294_v2 }
  0x4e   : > { %vm422_vm0 = vcmp.gt.f32.partialorder %v358_v3, 0.0  ;;  %v486_v12 = vmul.f32 0.2, %v358_v3  ;;  %vm423_vm1 = vcmp.gt.f32.partialorder %v359_v4, 0.0  ;;  %v487_v13 = vmul.f32 0.2, %v359_v4 }
  0x4f   : > { %v549_v14 = vsel %vm421_vm15, %v357_v62, %v485_v7  ;;  %vm424_vm2 = vcmp.gt.f32.partialorder %v360_v5, 0.0  ;;  %v488_v15 = vmul.f32 0.2, %v360_v5  ;;  %vm425_vm3 = vcmp.gt.f32.partialorder %v361_v8, 0.0 }
  0x50   : > { %613 = vst [vmem:[%s787_s25 + $0x178] sm:$0xff] %v549_v14  ;;  %v550_v18 = vsel %vm422_vm0, %v358_v3, %v486_v12  ;;  %v551_v19 = vsel %vm423_vm1, %v359_v4, %v487_v13  ;;  %v489_v20 = vmul.f32 0.2, %v361_v8  ;;  %vm426_vm4 = vcmp.gt.f32.partialorder %v362_v9, 0.0 }
  0x51   : > { %614 = vst [vmem:[%s787_s25 + $0x180] sm:$0xff] %v550_v18  ;;  %v552_v21 = vsel %vm424_vm2, %v360_v5, %v488_v15  ;;  %v490_v22 = vmul.f32 0.2, %v362_v9  ;;  %v363_v23 = vadd.f32 %v759_v1, %v295_v6  ;;  %v296_v24 = vmul.f32 %v748_v0, %v228_v10 }
  0x52   : > { %615 = vst [vmem:[%s787_s25 + $0x188] sm:$0xff] %v551_v19  ;;  %v553_v26 = vsel %vm425_vm3, %v361_v8, %v489_v20  ;;  %v297_v27 = vmul.f32 %v748_v0, %v229_v11  ;;  %v298_v28 = vmul.f32 %v748_v0, %v230_v16  ;;  %v299_v29 = vmul.f32 %v748_v0, %v231_v17 }
  0x53   : > { %616 = vst [vmem:[%s787_s25 + $0x190] sm:$0xff] %v552_v21  ;;  %v554_v31 = vsel %vm426_vm4, %v362_v9, %v490_v22  ;;  %vm427_vm5 = vcmp.gt.f32.partialorder %v363_v23, 0.0  ;;  %v491_v32 = vmul.f32 0.2, %v363_v23  ;;  %v364_v33 = vadd.f32 %v759_v1, %v296_v24 }
  0x54   : > { %617 = vst [vmem:[%s787_s25 + $0x198] sm:$0xff] %v553_v26  ;;  %v365_v34 = vadd.f32 %v759_v1, %v297_v27  ;;  %v366_v35 = vadd.f32 %v759_v1, %v298_v28  ;;  %v367_v36 = vadd.f32 %v759_v1, %v299_v29  ;;  %v300_v37 = vmul.f32 %v748_v0, %v232_v25 }
  0x55   : > { %618 = vst [vmem:[%s787_s25 + $0x1a0] sm:$0xff] %v554_v31  ;;  %v555_v38 = vsel %vm427_vm5, %v363_v23, %v491_v32  ;;  %vm428_vm6 = vcmp.gt.f32.partialorder %v364_v33, 0.0  ;;  %v492_v39 = vmul.f32 0.2, %v364_v33  ;;  %v301_v40 = vmul.f32 %v748_v0, %v233_v30 }
  0x56   : > { %619 = vst [vmem:[%s787_s25 + $0x1a8] sm:$0xff] %v555_v38  ;;  %vm429_vm7 = vcmp.gt.f32.partialorder %v365_v34, 0.0  ;;  %v493_v43 = vmul.f32 0.2, %v365_v34  ;;  %vm430_vm8 = vcmp.gt.f32.partialorder %v366_v35, 0.0  ;;  %vm431_vm9 = vcmp.gt.f32.partialorder %v367_v36, 0.0 }
  0x57   : > { %v556_v44 = vsel %vm428_vm6, %v364_v33, %v492_v39  ;;  %v494_v45 = vmul.f32 0.2, %v366_v35  ;;  %v495_v46 = vmul.f32 0.2, %v367_v36  ;;  %v368_v47 = vadd.f32 %v759_v1, %v300_v37 }
  0x58   : > { %620 = vst [vmem:[%s787_s25 + $0x1b0] sm:$0xff] %v556_v44  ;;  %v557_v48 = vsel %vm429_vm7, %v365_v34, %v493_v43  ;;  %v369_v49 = vadd.f32 %v759_v1, %v301_v40  ;;  %v302_v50 = vmul.f32 %v748_v0, %v234_v41  ;;  %v303_v51 = vmul.f32 %v748_v0, %v235_v42 }
  0x59   : > { %621 = vst [vmem:[%s787_s25 + $0x1b8] sm:$0xff] %v557_v48  ;;  %v558_v54 = vsel %vm430_vm8, %v366_v35, %v494_v45  ;;  %v559_v55 = vsel %vm431_vm9, %v367_v36, %v495_v46  ;;  %vm432_vm10 = vcmp.gt.f32.partialorder %v368_v47, 0.0  ;;  %v496_v56 = vmul.f32 0.2, %v368_v47 }
  0x5a   : > { %622 = vst [vmem:[%s787_s25 + $0x1c0] sm:$0xff] %v558_v54  ;;  %vm433_vm11 = vcmp.gt.f32.partialorder %v369_v49, 0.0  ;;  %v497_v57 = vmul.f32 0.2, %v369_v49  ;;  %v370_v58 = vadd.f32 %v759_v1, %v302_v50  ;;  %v371_v59 = vadd.f32 %v759_v1, %v303_v51 }
  0x5b   : > { %623 = vst [vmem:[%s787_s25 + $0x1c8] sm:$0xff] %v559_v55  ;;  %v560_v60 = vsel %vm432_vm10, %v368_v47, %v496_v56  ;;  %v304_v61 = vmul.f32 %v748_v0, %v236_v52  ;;  %v305_v62 = vmul.f32 %v748_v0, %v237_v53 }
  0x5c   : > { %624 = vst [vmem:[%s787_s25 + $0x1d0] sm:$0xff] %v560_v60  ;;  %v561_v63 = vsel %vm433_vm11, %v369_v49, %v497_v57  ;;  %vm434_vm12 = vcmp.gt.f32.partialorder %v370_v58, 0.0  ;;  %v498_v2 = vmul.f32 0.2, %v370_v58  ;;  %vm435_vm13 = vcmp.gt.f32.partialorder %v371_v59, 0.0 }
  0x5d   : > { %625 = vst [vmem:[%s787_s25 + $0x1d8] sm:$0xff] %v561_v63  ;;  %v499_v3 = vmul.f32 0.2, %v371_v59  ;;  %v372_v4 = vadd.f32 %v759_v1, %v304_v61  ;;  %v373_v5 = vadd.f32 %v759_v1, %v305_v62 }
  0x5e   : > { %v562_v6 = vsel %vm434_vm12, %v370_v58, %v498_v2 }
  0x5f   : > { %626 = vst [vmem:[%s787_s25 + $0x1e0] sm:$0xff] %v562_v6  ;;  %v563_v7 = vsel %vm435_vm13, %v371_v59, %v499_v3  ;;  %vm436_vm14 = vcmp.gt.f32.partialorder %v372_v4, 0.0  ;;  %v500_v8 = vmul.f32 0.2, %v372_v4  ;;  %vm437_vm15 = vcmp.gt.f32.partialorder %v373_v5, 0.0 }
  0x60   : > { %627 = vst [vmem:[%s787_s25 + $0x1e8] sm:$0xff] %v563_v7  ;;  %v501_v0 = vmul.f32 0.2, %v373_v5 }
  0x61   : > { %v564_v9 = vsel %vm436_vm14, %v372_v4, %v500_v8 }
  0x62   : > { %628 = vst [vmem:[%s787_s25 + $0x1f0] sm:$0xff] %v564_v9  ;;  %v565_v10 = vsel %vm437_vm15, %v373_v5, %v501_v0 }
  0x63   : > { %629 = vst [vmem:[%s787_s25 + $0x1f8] sm:$0xff] %v565_v10 }
  0x64 PF: > { %s13_s12 = sadd.s32 1, %s713_s12  }
  0x65   : > { %p10_p4 = scmp.ge.s32.totalorder %s13_s12, 5  }
  0x67   :  { %12 = sbr.rel (!%p10_p4) target bundleno = 1 (0x1), region = 62 }

// kernel: _lambda_.12
= control target key start
LH: loop header
LB: loop body
LE: loop exit
PB: predicated region body
PF: predicated region fallthrough
CT: control target
= control target key end

     0   :  { %s599_s0 = inlined_call_operand.vmem [shape: f32[288,128], index: 0, kind: input, shape index: {}]   ;;  %s600_s1 = inlined_call_operand.vmem [shape: f32[1,128], index: 1, kind: input, shape index: {}]   ;;  %s601_s2 = inlined_call_operand.vmem [shape: f32[1,128], index: 2, kind: input, shape index: {}]   ;;  %s602_s3 = inlined_call_operand.vmem [shape: f32[288,128], index: 3, kind: output, shape index: {}]  }
   0x1   :  { %v14_v0 = vld [vmem:[%s599_s0] sm:$0xff]  ;;  %v15_v3 = vld [vmem:[%s599_s0 + $0x8] sm:$0xff]  ;;  %v16_v6 = vld [vmem:[%s599_s0 + $0x10] sm:$0xff] }
   0x2   :  { %v306_v1 = vld [vmem:[%s600_s1] ss:$0 sm:$0xff]  ;;  %v17_v7 = vld [vmem:[%s599_s0 + $0x18] sm:$0xff]  ;;  %v19_v12 = vld [vmem:[%s599_s0 + $0x28] sm:$0xff] }
   0x3   :  { %v311_v2 = vld [vmem:[%s601_s2] ss:$0 sm:$0xff]  ;;  %v54_v4 = vmul.f32 %v306_v1, %v14_v0  ;;  %v55_v5 = vmul.f32 %v306_v1, %v15_v3  ;;  %v56_v9 = vmul.f32 %v306_v1, %v16_v6  ;;  %v57_v10 = vmul.f32 %v306_v1, %v17_v7  ;;  %v20_v13 = vld [vmem:[%s599_s0 + $0x30] sm:$0xff]  ;;  %v21_v14 = vld [vmem:[%s599_s0 + $0x38] sm:$0xff] }
   0x4   :  { %v18_v8 = vld [vmem:[%s599_s0 + $0x20] sm:$0xff]  ;;  %v59_v17 = vmul.f32 %v306_v1, %v19_v12  ;;  %v60_v18 = vmul.f32 %v306_v1, %v20_v13  ;;  %v61_v22 = vmul.f32 %v306_v1, %v21_v14  ;;  %v23_v24 = vld [vmem:[%s599_s0 + $0x48] sm:$0xff]  ;;  %v24_v32 = vld [vmem:[%s599_s0 + $0x50] sm:$0xff] }
   0x5   :  { %v58_v11 = vmul.f32 %v306_v1, %v18_v8  ;;  %v94_v15 = vadd.f32 %v311_v2, %v54_v4  ;;  %v95_v16 = vadd.f32 %v311_v2, %v55_v5  ;;  %v96_v19 = vadd.f32 %v311_v2, %v56_v9  ;;  %v22_v23 = vld [vmem:[%s599_s0 + $0x40] sm:$0xff]  ;;  %v25_v41 = vld [vmem:[%s599_s0 + $0x58] sm:$0xff]  ;;  %v27_v52 = vld [vmem:[%s599_s0 + $0x68] sm:$0xff] }
   0x6   :  { %v97_v20 = vadd.f32 %v311_v2, %v57_v10  ;;  %v99_v35 = vadd.f32 %v311_v2, %v59_v17  ;;  %v100_v36 = vadd.f32 %v311_v2, %v60_v18  ;;  %v101_v38 = vadd.f32 %v311_v2, %v61_v22  ;;  %v26_v51 = vld [vmem:[%s599_s0 + $0x60] sm:$0xff]  ;;  %v28_v56 = vld [vmem:[%s599_s0 + $0x70] sm:$0xff]  ;;  %v29_v59 = vld [vmem:[%s599_s0 + $0x78] sm:$0xff] }
   0x7   :  { %v98_v21 = vadd.f32 %v311_v2, %v58_v11  ;;  %vm130_vm0 = vcmp.gt.f32.partialorder %v94_v15, 0.0  ;;  %v166_v25 = vmul.f32 0.2, %v94_v15  ;;  %vm131_vm1 = vcmp.gt.f32.partialorder %v95_v16, 0.0  ;;  %v30_v0 = vld [vmem:[%s599_s0 + $0x80] sm:$0xff]  ;;  %v31_v3 = vld [vmem:[%s599_s0 + $0x88] sm:$0xff] }
   0x8   :  { %v167_v26 = vmul.f32 0.2, %v95_v16  ;;  %vm132_vm2 = vcmp.gt.f32.partialorder %v96_v19, 0.0  ;;  %v168_v27 = vmul.f32 0.2, %v96_v19  ;;  %vm133_vm3 = vcmp.gt.f32.partialorder %v97_v20, 0.0 }
   0x9   :  { %v169_v28 = vmul.f32 0.2, %v97_v20  ;;  %v202_v29 = vsel %vm130_vm0, %v94_v15, %v166_v25  ;;  %vm134_vm4 = vcmp.gt.f32.partialorder %v98_v21, 0.0  ;;  %v170_v31 = vmul.f32 0.2, %v98_v21  ;;  %v34_v25 = vld [vmem:[%s599_s0 + $0xa0] sm:$0xff] }
   0xa   :  { %v203_v30 = vsel %vm131_vm1, %v95_v16, %v167_v26  ;;  %238 = vst [vmem:[%s602_s3] sm:$0xff] %v202_v29  ;;  %v204_v33 = vsel %vm132_vm2, %v96_v19, %v168_v27  ;;  %v62_v39 = vmul.f32 %v306_v1, %v22_v23  ;;  %v63_v40 = vmul.f32 %v306_v1, %v23_v24  ;;  %v33_v24 = vld [vmem:[%s599_s0 + $0x98] sm:$0xff]  ;;  %v35_v26 = vld [vmem:[%s599_s0 + $0xa8] sm:$0xff] }
   0xb   :  { %v205_v34 = vsel %vm133_vm3, %v97_v20, %v169_v28  ;;  %239 = vst [vmem:[%s602_s3 + $0x8] sm:$0xff] %v203_v30  ;;  %v206_v37 = vsel %vm134_vm4, %v98_v21, %v170_v31  ;;  %vm135_vm5 = vcmp.gt.f32.partialorder %v99_v35, 0.0  ;;  %v171_v42 = vmul.f32 0.2, %v99_v35  ;;  %v32_v20 = vld [vmem:[%s599_s0 + $0x90] sm:$0xff]  ;;  %v37_v31 = vld [vmem:[%s599_s0 + $0xb8] sm:$0xff] }
   0xc   :  { %240 = vst [vmem:[%s602_s3 + $0x10] sm:$0xff] %v204_v33  ;;  %vm136_vm6 = vcmp.gt.f32.partialorder %v100_v36, 0.0  ;;  %v64_v43 = vmul.f32 %v306_v1, %v24_v32  ;;  %v172_v44 = vmul.f32 0.2, %v100_v36  ;;  %vm137_vm7 = vcmp.gt.f32.partialorder %v101_v38, 0.0  ;;  %v36_v30 = vld [vmem:[%s599_s0 + $0xb0] sm:$0xff] }
   0xd   :  { %241 = vst [vmem:[%s602_s3 + $0x18] sm:$0xff] %v205_v34  ;;  %v173_v45 = vmul.f32 0.2, %v101_v38  ;;  %v102_v46 = vadd.f32 %v311_v2, %v62_v39  ;;  %v207_v47 = vsel %vm135_vm5, %v99_v35, %v171_v42  ;;  %v103_v48 = vadd.f32 %v311_v2, %v63_v40  ;;  %v38_v35 = vld [vmem:[%s599_s0 + $0xc0] sm:$0xff] }
   0xe   :  { %242 = vst [vmem:[%s602_s3 + $0x20] sm:$0xff] %v206_v37  ;;  %v104_v49 = vadd.f32 %v311_v2, %v64_v43  ;;  %v65_v50 = vmul.f32 %v306_v1, %v25_v41  ;;  %v208_v53 = vsel %vm136_vm6, %v100_v36, %v172_v44  ;;  %v66_v62 = vmul.f32 %v306_v1, %v26_v51  ;;  %v39_v51 = vld [vmem:[%s599_s0 + $0xc8] sm:$0xff] }
   0xf   :  { %243 = vst [vmem:[%s602_s3 + $0x28] sm:$0xff] %v207_v47  ;;  %v209_v54 = vsel %vm137_vm7, %v101_v38, %v173_v45  ;;  %vm138_vm8 = vcmp.gt.f32.partialorder %v102_v46, 0.0  ;;  %v174_v55 = vmul.f32 0.2, %v102_v46  ;;  %vm139_vm9 = vcmp.gt.f32.partialorder %v103_v48, 0.0 }
  0x10   :  { %244 = vst [vmem:[%s602_s3 + $0x30] sm:$0xff] %v208_v53  ;;  %v175_v57 = vmul.f32 0.2, %v103_v48  ;;  %vm140_vm10 = vcmp.gt.f32.partialorder %v104_v49, 0.0  ;;  %v105_v58 = vadd.f32 %v311_v2, %v65_v50  ;;  %v176_v61 = vmul.f32 0.2, %v104_v49 }
  0x11   :  { %245 = vst [vmem:[%s602_s3 + $0x38] sm:$0xff] %v209_v54  ;;  %v210_v60 = vsel %vm138_vm8, %v102_v46, %v174_v55  ;;  %v67_v63 = vmul.f32 %v306_v1, %v27_v52  ;;  %v68_v6 = vmul.f32 %v306_v1, %v28_v56  ;;  %v106_v8 = vadd.f32 %v311_v2, %v66_v62  ;;  %v40_v52 = vld [vmem:[%s599_s0 + $0xd0] sm:$0xff] }
  0x12   :  { %246 = vst [vmem:[%s602_s3 + $0x40] sm:$0xff] %v210_v60  ;;  %v211_v4 = vsel %vm139_vm9, %v103_v48, %v175_v57  ;;  %vm141_vm11 = vcmp.gt.f32.partialorder %v105_v58, 0.0  ;;  %v177_v5 = vmul.f32 0.2, %v105_v58  ;;  %v212_v7 = vsel %vm140_vm10, %v104_v49, %v176_v61  ;;  %v41_v57 = vld [vmem:[%s599_s0 + $0xd8] sm:$0xff] }
  0x13   :  { %247 = vst [vmem:[%s602_s3 + $0x48] sm:$0xff] %v211_v4  ;;  %v107_v9 = vadd.f32 %v311_v2, %v67_v63  ;;  %v69_v10 = vmul.f32 %v306_v1, %v29_v59  ;;  %v108_v12 = vadd.f32 %v311_v2, %v68_v6  ;;  %v70_v13 = vmul.f32 %v306_v1, %v30_v0  ;;  %v43_v4 = vld [vmem:[%s599_s0 + $0xe8] sm:$0xff] }
  0x14   :  { %248 = vst [vmem:[%s602_s3 + $0x50] sm:$0xff] %v212_v7  ;;  %v213_v11 = vsel %vm141_vm11, %v105_v58, %v177_v5  ;;  %v71_v14 = vmul.f32 %v306_v1, %v31_v3  ;;  %vm142_vm12 = vcmp.gt.f32.partialorder %v106_v8, 0.0  ;;  %v178_v15 = vmul.f32 0.2, %v106_v8  ;;  %v42_v58 = vld [vmem:[%s599_s0 + $0xe0] sm:$0xff] }
  0x15   :  { %249 = vst [vmem:[%s602_s3 + $0x58] sm:$0xff] %v213_v11  ;;  %vm143_vm13 = vcmp.gt.f32.partialorder %v107_v9, 0.0  ;;  %v109_v16 = vadd.f32 %v311_v2, %v69_v10  ;;  %v179_v17 = vmul.f32 0.2, %v107_v9  ;;  %vm144_vm14 = vcmp.gt.f32.partialorder %v108_v12, 0.0 }
  0x16   :  { %v180_v18 = vmul.f32 0.2, %v108_v12  ;;  %v110_v19 = vadd.f32 %v311_v2, %v70_v13  ;;  %v214_v21 = vsel %vm142_vm12, %v106_v8, %v178_v15  ;;  %v111_v23 = vadd.f32 %v311_v2, %v71_v14 }
  0x17   :  { %vm145_vm15 = vcmp.gt.f32.partialorder %v109_v16, 0.0  ;;  %v181_v22 = vmul.f32 0.2, %v109_v16  ;;  %250 = vst [vmem:[%s602_s3 + $0x60] sm:$0xff] %v214_v21  ;;  %v215_v27 = vsel %vm143_vm13, %v107_v9, %v179_v17  ;;  %v72_v34 = vmul.f32 %v306_v1, %v32_v20  ;;  %v44_v9 = vld [vmem:[%s599_s0 + $0xf0] sm:$0xff]  ;;  %v45_v20 = vld [vmem:[%s599_s0 + $0xf8] sm:$0xff] }
  0x18   :  { %v216_v28 = vsel %vm144_vm14, %v108_v12, %v180_v18  ;;  %vm146_vm0 = vcmp.gt.f32.partialorder %v110_v19, 0.0  ;;  %v182_v29 = vmul.f32 0.2, %v110_v19  ;;  %251 = vst [vmem:[%s602_s3 + $0x68] sm:$0xff] %v215_v27  ;;  %vm147_vm1 = vcmp.gt.f32.partialorder %v111_v23, 0.0  ;;  %v46_v21 = vld [vmem:[%s599_s0 + $0x100] sm:$0xff] }
  0x19   :  { %v217_v32 = vsel %vm145_vm15, %v109_v16, %v181_v22  ;;  %v183_v33 = vmul.f32 0.2, %v111_v23  ;;  %252 = vst [vmem:[%s602_s3 + $0x70] sm:$0xff] %v216_v28  ;;  %v73_v37 = vmul.f32 %v306_v1, %v33_v24  ;;  %v74_v38 = vmul.f32 %v306_v1, %v34_v25 }
  0x1a   :  { %v218_v36 = vsel %vm146_vm0, %v110_v19, %v182_v29  ;;  %v75_v39 = vmul.f32 %v306_v1, %v35_v26  ;;  %253 = vst [vmem:[%s602_s3 + $0x78] sm:$0xff] %v217_v32  ;;  %v112_v41 = vadd.f32 %v311_v2, %v72_v34  ;;  %v76_v42 = vmul.f32 %v306_v1, %v36_v30  ;;  %v48_v32 = vld [vmem:[%s599_s0 + $0x110] sm:$0xff] }
  0x1b   :  { %v219_v40 = vsel %vm147_vm1, %v111_v23, %v183_v33  ;;  %v77_v43 = vmul.f32 %v306_v1, %v37_v31  ;;  %254 = vst [vmem:[%s602_s3 + $0x80] sm:$0xff] %v218_v36  ;;  %v113_v44 = vadd.f32 %v311_v2, %v73_v37  ;;  %v114_v45 = vadd.f32 %v311_v2, %v74_v38  ;;  %v47_v31 = vld [vmem:[%s599_s0 + $0x108] sm:$0xff]  ;;  %v49_v33 = vld [vmem:[%s599_s0 + $0x118] sm:$0xff] }
  0x1c   :  { %v115_v46 = vadd.f32 %v311_v2, %v75_v39  ;;  %v78_v47 = vmul.f32 %v306_v1, %v38_v35  ;;  %255 = vst [vmem:[%s602_s3 + $0x88] sm:$0xff] %v219_v40  ;;  %vm148_vm2 = vcmp.gt.f32.partialorder %v112_v41, 0.0  ;;  %v184_v48 = vmul.f32 0.2, %v112_v41 }
  0x1d   :  { %v116_v49 = vadd.f32 %v311_v2, %v76_v42  ;;  %v117_v50 = vadd.f32 %v311_v2, %v77_v43  ;;  %vm149_vm3 = vcmp.gt.f32.partialorder %v113_v44, 0.0  ;;  %v185_v53 = vmul.f32 0.2, %v113_v44 }
  0x1e   :  { %vm150_vm4 = vcmp.gt.f32.partialorder %v114_v45, 0.0  ;;  %v186_v54 = vmul.f32 0.2, %v114_v45  ;;  %v220_v55 = vsel %vm148_vm2, %v112_v41, %v184_v48  ;;  %vm151_vm5 = vcmp.gt.f32.partialorder %v115_v46, 0.0 }
  0x1f   :  { %v187_v56 = vmul.f32 0.2, %v115_v46  ;;  %vm152_vm6 = vcmp.gt.f32.partialorder %v116_v49, 0.0  ;;  %256 = vst [vmem:[%s602_s3 + $0x90] sm:$0xff] %v220_v55  ;;  %v221_v59 = vsel %vm149_vm3, %v113_v44, %v185_v53  ;;  %v188_v61 = vmul.f32 0.2, %v116_v49 }
  0x20   :  { %v222_v60 = vsel %vm150_vm4, %v114_v45, %v186_v54  ;;  %vm153_vm7 = vcmp.gt.f32.partialorder %v117_v50, 0.0  ;;  %257 = vst [vmem:[%s602_s3 + $0x98] sm:$0xff] %v221_v59  ;;  %v189_v63 = vmul.f32 0.2, %v117_v50  ;;  %v118_v0 = vadd.f32 %v311_v2, %v78_v47 }
  0x21   :  { %v223_v62 = vsel %vm151_vm5, %v115_v46, %v187_v56  ;;  %v79_v3 = vmul.f32 %v306_v1, %v39_v51  ;;  %258 = vst [vmem:[%s602_s3 + $0xa0] sm:$0xff] %v222_v60  ;;  %v224_v5 = vsel %vm152_vm6, %v116_v49, %v188_v61  ;;  %v80_v6 = vmul.f32 %v306_v1, %v40_v52 }
  0x22   :  { %v81_v7 = vmul.f32 %v306_v1, %v41_v57  ;;  %v82_v8 = vmul.f32 %v306_v1, %v42_v58  ;;  %259 = vst [vmem:[%s602_s3 + $0xa8] sm:$0xff] %v223_v62  ;;  %v225_v10 = vsel %vm153_vm7, %v117_v50, %v189_v63  ;;  %vm154_vm8 = vcmp.gt.f32.partialorder %v118_v0, 0.0 }
  0x23   :  { %v190_v11 = vmul.f32 0.2, %v118_v0  ;;  %v119_v12 = vadd.f32 %v311_v2, %v79_v3  ;;  %260 = vst [vmem:[%s602_s3 + $0xb0] sm:$0xff] %v224_v5  ;;  %v120_v13 = vadd.f32 %v311_v2, %v80_v6  ;;  %v83_v16 = vmul.f32 %v306_v1, %v43_v4 }
  0x24   :  { %v121_v14 = vadd.f32 %v311_v2, %v81_v7  ;;  %v122_v15 = vadd.f32 %v311_v2, %v82_v8  ;;  %261 = vst [vmem:[%s602_s3 + $0xb8] sm:$0xff] %v225_v10  ;;  %v84_v19 = vmul.f32 %v306_v1, %v44_v9  ;;  %v85_v29 = vmul.f32 %v306_v1, %v45_v20 }
  0x25   :  { %v226_v17 = vsel %vm154_vm8, %v118_v0, %v190_v11  ;;  %vm155_vm9 = vcmp.gt.f32.partialorder %v119_v12, 0.0  ;;  %v191_v18 = vmul.f32 0.2, %v119_v12  ;;  %vm156_vm10 = vcmp.gt.f32.partialorder %v120_v13, 0.0 }
  0x26   :  { %262 = vst [vmem:[%s602_s3 + $0xc0] sm:$0xff] %v226_v17  ;;  %v192_v22 = vmul.f32 0.2, %v120_v13  ;;  %vm157_vm11 = vcmp.gt.f32.partialorder %v121_v14, 0.0  ;;  %vm158_vm12 = vcmp.gt.f32.partialorder %v122_v15, 0.0  ;;  %v123_v26 = vadd.f32 %v311_v2, %v83_v16 }
  0x27   :  { %v227_v23 = vsel %vm155_vm9, %v119_v12, %v191_v18  ;;  %v193_v24 = vmul.f32 0.2, %v121_v14  ;;  %v194_v25 = vmul.f32 0.2, %v122_v15  ;;  %v124_v28 = vadd.f32 %v311_v2, %v84_v19 }
  0x28   :  { %263 = vst [vmem:[%s602_s3 + $0xc8] sm:$0xff] %v227_v23  ;;  %v228_v27 = vsel %vm156_vm10, %v120_v13, %v192_v22  ;;  %v86_v30 = vmul.f32 %v306_v1, %v46_v21  ;;  %vm159_vm13 = vcmp.gt.f32.partialorder %v123_v26, 0.0  ;;  %v195_v36 = vmul.f32 0.2, %v123_v26 }
  0x29   :  { %264 = vst [vmem:[%s602_s3 + $0xd0] sm:$0xff] %v228_v27  ;;  %v229_v34 = vsel %vm157_vm11, %v121_v14, %v193_v24  ;;  %v230_v35 = vsel %vm158_vm12, %v122_v15, %v194_v25  ;;  %vm160_vm14 = vcmp.gt.f32.partialorder %v124_v28, 0.0  ;;  %v196_v37 = vmul.f32 0.2, %v124_v28 }
  0x2a   :  { %265 = vst [vmem:[%s602_s3 + $0xd8] sm:$0xff] %v229_v34  ;;  %v125_v38 = vadd.f32 %v311_v2, %v85_v29  ;;  %v126_v39 = vadd.f32 %v311_v2, %v86_v30  ;;  %v231_v40 = vsel %vm159_vm13, %v123_v26, %v195_v36  ;;  %v87_v41 = vmul.f32 %v306_v1, %v47_v31 }
  0x2b   :  { %266 = vst [vmem:[%s602_s3 + $0xe0] sm:$0xff] %v230_v35  ;;  %v88_v42 = vmul.f32 %v306_v1, %v48_v32  ;;  %v89_v43 = vmul.f32 %v306_v1, %v49_v33  ;;  %v232_v44 = vsel %vm160_vm14, %v124_v28, %v196_v37 }
  0x2c   :  { %267 = vst [vmem:[%s602_s3 + $0xe8] sm:$0xff] %v231_v40  ;;  %vm161_vm15 = vcmp.gt.f32.partialorder %v125_v38, 0.0  ;;  %v197_v45 = vmul.f32 0.2, %v125_v38  ;;  %vm162_vm0 = vcmp.gt.f32.partialorder %v126_v39, 0.0  ;;  %v127_v47 = vadd.f32 %v311_v2, %v87_v41 }
  0x2d   :  { %268 = vst [vmem:[%s602_s3 + $0xf0] sm:$0xff] %v232_v44  ;;  %v198_v46 = vmul.f32 0.2, %v126_v39  ;;  %v128_v48 = vadd.f32 %v311_v2, %v88_v42  ;;  %v129_v49 = vadd.f32 %v311_v2, %v89_v43 }
  0x2e   :  { %v233_v1 = vsel %vm161_vm15, %v125_v38, %v197_v45  ;;  %vm163_vm1 = vcmp.gt.f32.partialorder %v127_v47, 0.0  ;;  %v199_v51 = vmul.f32 0.2, %v127_v47 }
  0x2f   :  { %269 = vst [vmem:[%s602_s3 + $0xf8] sm:$0xff] %v233_v1  ;;  %v234_v50 = vsel %vm162_vm0, %v126_v39, %v198_v46  ;;  %vm164_vm2 = vcmp.gt.f32.partialorder %v128_v48, 0.0  ;;  %v200_v52 = vmul.f32 0.2, %v128_v48  ;;  %vm165_vm3 = vcmp.gt.f32.partialorder %v129_v49, 0.0 }
  0x30   :  { %270 = vst [vmem:[%s602_s3 + $0x100] sm:$0xff] %v234_v50  ;;  %v201_v53 = vmul.f32 0.2, %v129_v49  ;;  %v235_v54 = vsel %vm163_vm1, %v127_v47, %v199_v51 }
  0x31   :  { %271 = vst [vmem:[%s602_s3 + $0x108] sm:$0xff] %v235_v54  ;;  %v236_v2 = vsel %vm164_vm2, %v128_v48, %v200_v52 }
  0x32   :  { %v237_v55 = vsel %vm165_vm3, %v129_v49, %v201_v53  ;;  %272 = vst [vmem:[%s602_s3 + $0x110] sm:$0xff] %v236_v2 }
  0x33   :  { %273 = vst [vmem:[%s602_s3 + $0x118] sm:$0xff] %v237_v55 }

// kernel: _lambda_.11
= control target key start
LH: loop header
LB: loop body
LE: loop exit
PB: predicated region body
PF: predicated region fallthrough
CT: control target
= control target key end

     0   :  { %s1157_s1 = inlined_call_operand.vmem [shape: f32[256,128], index: 1, kind: input, shape index: {}]   ;;  %s1158_s0 = inlined_call_operand.vmem [shape: f32[288,256], index: 0, kind: input, shape index: {}]   ;;  %s1159_s2 = inlined_call_operand.vmem [shape: f32[288,128], index: 2, kind: output, shape index: {0}]   ;;  %s1160_s3 = inlined_call_operand.vmem [shape: f32[1,128], index: 3, kind: output, shape index: {1}]   ;;  %s1161_s4 = inlined_call_operand.vmem [shape: f32[1,128], index: 4, kind: output, shape index: {2}]  }
   0x1   :  { %v101_v0 = vld [vmem:[%s1157_s1 + $0x78] sm:$0xff]  ;;  %v100_v2 = vld [vmem:[%s1157_s1 + $0x70] sm:$0xff]  ;;  %v99_v4 = vld [vmem:[%s1157_s1 + $0x68] sm:$0xff] }
   0x2   :  { %v117_v1 = vld [vmem:[%s1157_s1 + $0xf8] sm:$0xff]  ;;  %118 = vmatpush.msra.mxu0 %v101_v0  ;;  %v116_v3 = vld [vmem:[%s1157_s1 + $0xf0] sm:$0xff]  ;;  %v115_v5 = vld [vmem:[%s1157_s1 + $0xe8] sm:$0xff]  ;;  %546 = vmatpush.msra.mxu2 %v101_v0 }
   0x3   :  { %243 = vmatpush.msra.mxu1 %v117_v1  ;;  %562 = vmatpush.msra.mxu3 %v117_v1  ;;  %v98_v6 = vld [vmem:[%s1157_s1 + $0x60] sm:$0xff]  ;;  %v97_v8 = vld [vmem:[%s1157_s1 + $0x58] sm:$0xff]  ;;  %v96_v10 = vld [vmem:[%s1157_s1 + $0x50] sm:$0xff] }
   0x4   :  { %119 = vmatpush.msra.mxu0 %v100_v2  ;;  %v114_v7 = vld [vmem:[%s1157_s1 + $0xe0] sm:$0xff]  ;;  %547 = vmatpush.msra.mxu2 %v100_v2  ;;  %v113_v9 = vld [vmem:[%s1157_s1 + $0xd8] sm:$0xff]  ;;  %v112_v11 = vld [vmem:[%s1157_s1 + $0xd0] sm:$0xff] }
   0x5   :  { %244 = vmatpush.msra.mxu1 %v116_v3  ;;  %563 = vmatpush.msra.mxu3 %v116_v3  ;;  %v95_v12 = vld [vmem:[%s1157_s1 + $0x48] sm:$0xff]  ;;  %v94_v14 = vld [vmem:[%s1157_s1 + $0x40] sm:$0xff]  ;;  %v93_v16 = vld [vmem:[%s1157_s1 + $0x38] sm:$0xff] }
   0x6   :  { %120 = vmatpush.msra.mxu0 %v99_v4  ;;  %548 = vmatpush.msra.mxu2 %v99_v4  ;;  %v111_v13 = vld [vmem:[%s1157_s1 + $0xc8] sm:$0xff]  ;;  %v110_v15 = vld [vmem:[%s1157_s1 + $0xc0] sm:$0xff]  ;;  %v109_v17 = vld [vmem:[%s1157_s1 + $0xb8] sm:$0xff] }
   0x7   :  { %245 = vmatpush.msra.mxu1 %v115_v5  ;;  %564 = vmatpush.msra.mxu3 %v115_v5  ;;  %v92_v18 = vld [vmem:[%s1157_s1 + $0x30] sm:$0xff]  ;;  %v91_v20 = vld [vmem:[%s1157_s1 + $0x28] sm:$0xff]  ;;  %v90_v22 = vld [vmem:[%s1157_s1 + $0x20] sm:$0xff] }
   0x8   :  { %121 = vmatpush.msra.mxu0 %v98_v6  ;;  %549 = vmatpush.msra.mxu2 %v98_v6  ;;  %v108_v19 = vld [vmem:[%s1157_s1 + $0xb0] sm:$0xff]  ;;  %v107_v21 = vld [vmem:[%s1157_s1 + $0xa8] sm:$0xff]  ;;  %v106_v23 = vld [vmem:[%s1157_s1 + $0xa0] sm:$0xff] }
   0x9   :  { %246 = vmatpush.msra.mxu1 %v114_v7  ;;  %565 = vmatpush.msra.mxu3 %v114_v7  ;;  %v89_v24 = vld [vmem:[%s1157_s1 + $0x18] sm:$0xff]  ;;  %v88_v26 = vld [vmem:[%s1157_s1 + $0x10] sm:$0xff]  ;;  %v87_v28 = vld [vmem:[%s1157_s1 + $0x8] sm:$0xff] }
   0xa   :  { %122 = vmatpush.msra.mxu0 %v97_v8  ;;  %550 = vmatpush.msra.mxu2 %v97_v8  ;;  %v105_v25 = vld [vmem:[%s1157_s1 + $0x98] sm:$0xff]  ;;  %v104_v27 = vld [vmem:[%s1157_s1 + $0x90] sm:$0xff]  ;;  %v103_v29 = vld [vmem:[%s1157_s1 + $0x88] sm:$0xff] }
   0xb   :  { %247 = vmatpush.msra.mxu1 %v113_v9  ;;  %566 = vmatpush.msra.mxu3 %v113_v9  ;;  %v86_v30 = vld [vmem:[%s1157_s1] sm:$0xff]  ;;  %v15_v33 = vld [vmem:[%s1158_s0 + $0x8] sm:$0xff]  ;;  %v16_v36 = vld [vmem:[%s1158_s0 + $0x10] sm:$0xff] }
   0xc   :  { %123 = vmatpush.msra.mxu0 %v96_v10  ;;  %551 = vmatpush.msra.mxu2 %v96_v10  ;;  %v102_v31 = vld [vmem:[%s1157_s1 + $0x80] sm:$0xff]  ;;  %v51_v35 = vld [vmem:[%s1158_s0 + $0x128] sm:$0xff]  ;;  %v17_v37 = vld [vmem:[%s1158_s0 + $0x18] sm:$0xff] }
   0xd   :  { %248 = vmatpush.msra.mxu1 %v112_v11  ;;  %567 = vmatpush.msra.mxu3 %v112_v11  ;;  %v14_v32 = vld [vmem:[%s1158_s0] sm:$0xff]  ;;  %v52_v38 = vld [vmem:[%s1158_s0 + $0x130] sm:$0xff]  ;;  %v53_v39 = vld [vmem:[%s1158_s0 + $0x138] sm:$0xff] }
   0xe   :  { %124 = vmatpush.msra.mxu0 %v95_v12  ;;  %552 = vmatpush.msra.mxu2 %v95_v12  ;;  %v50_v34 = vld [vmem:[%s1158_s0 + $0x120] sm:$0xff]  ;;  %v19_v41 = vld [vmem:[%s1158_s0 + $0x28] sm:$0xff]  ;;  %v20_v44 = vld [vmem:[%s1158_s0 + $0x30] sm:$0xff] }
   0xf   :  { %249 = vmatpush.msra.mxu1 %v111_v13  ;;  %568 = vmatpush.msra.mxu3 %v111_v13  ;;  %v18_v40 = vld [vmem:[%s1158_s0 + $0x20] sm:$0xff]  ;;  %v55_v43 = vld [vmem:[%s1158_s0 + $0x148] sm:$0xff]  ;;  %v21_v45 = vld [vmem:[%s1158_s0 + $0x38] sm:$0xff] }
  0x10   :  { %125 = vmatpush.msra.mxu0 %v94_v14  ;;  %553 = vmatpush.msra.mxu2 %v94_v14  ;;  %v54_v42 = vld [vmem:[%s1158_s0 + $0x140] sm:$0xff]  ;;  %v56_v46 = vld [vmem:[%s1158_s0 + $0x150] sm:$0xff]  ;;  %v57_v47 = vld [vmem:[%s1158_s0 + $0x158] sm:$0xff] }
  0x11   :  { %250 = vmatpush.msra.mxu1 %v110_v15  ;;  %569 = vmatpush.msra.mxu3 %v110_v15  ;;  %v22_v48 = vld [vmem:[%s1158_s0 + $0x40] sm:$0xff]  ;;  %v23_v49 = vld [vmem:[%s1158_s0 + $0x48] sm:$0xff]  ;;  %v24_v52 = vld [vmem:[%s1158_s0 + $0x50] sm:$0xff] }
  0x12   :  { %126 = vmatpush.msra.mxu0 %v93_v16  ;;  %554 = vmatpush.msra.mxu2 %v93_v16  ;;  %v58_v50 = vld [vmem:[%s1158_s0 + $0x160] sm:$0xff]  ;;  %v59_v51 = vld [vmem:[%s1158_s0 + $0x168] sm:$0xff]  ;;  %v25_v53 = vld [vmem:[%s1158_s0 + $0x58] sm:$0xff] }
  0x13   :  { %251 = vmatpush.msra.mxu1 %v109_v17  ;;  %570 = vmatpush.msra.mxu3 %v109_v17  ;;  %v60_v54 = vld [vmem:[%s1158_s0 + $0x170] sm:$0xff]  ;;  %v61_v55 = vld [vmem:[%s1158_s0 + $0x178] sm:$0xff]  ;;  %v26_v56 = vld [vmem:[%s1158_s0 + $0x60] sm:$0xff] }
  0x14   :  { %127 = vmatpush.msra.mxu0 %v92_v18  ;;  %555 = vmatpush.msra.mxu2 %v92_v18  ;;  %v27_v57 = vld [vmem:[%s1158_s0 + $0x68] sm:$0xff]  ;;  %v62_v58 = vld [vmem:[%s1158_s0 + $0x180] sm:$0xff]  ;;  %v28_v60 = vld [vmem:[%s1158_s0 + $0x70] sm:$0xff] }
  0x15   :  { %252 = vmatpush.msra.mxu1 %v108_v19  ;;  %571 = vmatpush.msra.mxu3 %v108_v19  ;;  %v63_v59 = vld [vmem:[%s1158_s0 + $0x188] sm:$0xff]  ;;  %v29_v61 = vld [vmem:[%s1158_s0 + $0x78] sm:$0xff]  ;;  %v64_v62 = vld [vmem:[%s1158_s0 + $0x190] sm:$0xff] }
  0x16   :  { %128 = vmatpush.msra.mxu0 %v91_v20  ;;  %556 = vmatpush.msra.mxu2 %v91_v20  ;;  %v65_v63 = vld [vmem:[%s1158_s0 + $0x198] sm:$0xff]  ;;  %v30_v0 = vld [vmem:[%s1158_s0 + $0x80] sm:$0xff]  ;;  %v31_v1 = vld [vmem:[%s1158_s0 + $0x88] sm:$0xff] }
  0x17   :  { %253 = vmatpush.msra.mxu1 %v107_v21  ;;  %572 = vmatpush.msra.mxu3 %v107_v21  ;;  %v66_v2 = vld [vmem:[%s1158_s0 + $0x1a0] sm:$0xff]  ;;  %v67_v3 = vld [vmem:[%s1158_s0 + $0x1a8] sm:$0xff]  ;;  %v32_v4 = vld [vmem:[%s1158_s0 + $0x90] sm:$0xff] }
  0x18   :  { %129 = vmatpush.msra.mxu0 %v90_v22  ;;  %557 = vmatpush.msra.mxu2 %v90_v22  ;;  %v33_v5 = vld [vmem:[%s1158_s0 + $0x98] sm:$0xff]  ;;  %v68_v6 = vld [vmem:[%s1158_s0 + $0x1b0] sm:$0xff]  ;;  %v34_v8 = vld [vmem:[%s1158_s0 + $0xa0] sm:$0xff] }
  0x19   :  { %254 = vmatpush.msra.mxu1 %v106_v23  ;;  %573 = vmatpush.msra.mxu3 %v106_v23  ;;  %v69_v7 = vld [vmem:[%s1158_s0 + $0x1b8] sm:$0xff]  ;;  %v35_v9 = vld [vmem:[%s1158_s0 + $0xa8] sm:$0xff]  ;;  %v70_v10 = vld [vmem:[%s1158_s0 + $0x1c0] sm:$0xff] }
  0x1a   :  { %130 = vmatpush.msra.mxu0 %v89_v24  ;;  %558 = vmatpush.msra.mxu2 %v89_v24  ;;  %v71_v11 = vld [vmem:[%s1158_s0 + $0x1c8] sm:$0xff]  ;;  %v36_v12 = vld [vmem:[%s1158_s0 + $0xb0] sm:$0xff]  ;;  %v37_v13 = vld [vmem:[%s1158_s0 + $0xb8] sm:$0xff] }
  0x1b   :  { %255 = vmatpush.msra.mxu1 %v105_v25  ;;  %574 = vmatpush.msra.mxu3 %v105_v25  ;;  %v72_v14 = vld [vmem:[%s1158_s0 + $0x1d0] sm:$0xff]  ;;  %v73_v15 = vld [vmem:[%s1158_s0 + $0x1d8] sm:$0xff]  ;;  %v38_v16 = vld [vmem:[%s1158_s0 + $0xc0] sm:$0xff] }
  0x1c   :  { %131 = vmatpush.msra.mxu0 %v88_v26  ;;  %559 = vmatpush.msra.mxu2 %v88_v26  ;;  %v39_v17 = vld [vmem:[%s1158_s0 + $0xc8] sm:$0xff]  ;;  %v74_v18 = vld [vmem:[%s1158_s0 + $0x1e0] sm:$0xff]  ;;  %v40_v20 = vld [vmem:[%s1158_s0 + $0xd0] sm:$0xff] }
  0x1d   :  { %256 = vmatpush.msra.mxu1 %v104_v27  ;;  %575 = vmatpush.msra.mxu3 %v104_v27  ;;  %v75_v19 = vld [vmem:[%s1158_s0 + $0x1e8] sm:$0xff]  ;;  %v41_v21 = vld [vmem:[%s1158_s0 + $0xd8] sm:$0xff]  ;;  %v76_v22 = vld [vmem:[%s1158_s0 + $0x1f0] sm:$0xff] }
  0x1e   :  { %132 = vmatpush.msra.mxu0 %v87_v28  ;;  %560 = vmatpush.msra.mxu2 %v87_v28  ;;  %v77_v23 = vld [vmem:[%s1158_s0 + $0x1f8] sm:$0xff]  ;;  %v42_v24 = vld [vmem:[%s1158_s0 + $0xe0] sm:$0xff]  ;;  %v43_v25 = vld [vmem:[%s1158_s0 + $0xe8] sm:$0xff] }
  0x1f   :  { %257 = vmatpush.msra.mxu1 %v103_v29  ;;  %576 = vmatpush.msra.mxu3 %v103_v29  ;;  %v78_v26 = vld [vmem:[%s1158_s0 + $0x200] sm:$0xff]  ;;  %v79_v27 = vld [vmem:[%s1158_s0 + $0x208] sm:$0xff]  ;;  %v44_v28 = vld [vmem:[%s1158_s0 + $0xf0] sm:$0xff] }
  0x20   :  { %133 = vmatpush.msra.mxu0 %v86_v30  ;;  %561 = vmatpush.msra.mxu2 %v86_v30  ;;  %v45_v29 = vld [vmem:[%s1158_s0 + $0xf8] sm:$0xff]  ;;  %v80_v30 = vld [vmem:[%s1158_s0 + $0x210] sm:$0xff] }
  0x21   :  { %258 = vmatpush.msra.mxu1 %v102_v31  ;;  %134 = vmatmul.f32.vlgmr.msra.gmra.mxu0 %v14_v32 }
  0x22   :  { %259 = vmatmul.f32.vlgmr.msra.gmra.mxu1 %v15_v33  ;;  %577 = vmatpush.msra.mxu3 %v102_v31  ;;  %v81_v31 = vld [vmem:[%s1158_s0 + $0x218] sm:$0xff] }
  0x23   :  { %188 = vmatmul.f32.vlgmr.msra.gmra.mxu2 %v50_v34  ;;  %313 = vmatmul.f32.vlgmr.msra.gmra.mxu3 %v51_v35  ;;  %v46_v34 = vld [vmem:[%s1158_s0 + $0x100] sm:$0xff]  ;;  %v47_v35 = vld [vmem:[%s1158_s0 + $0x108] sm:$0xff] }
  0x29   :  { %137 = vmatmul.f32.gmra.mxu0 %v16_v36 }
  0x2a   :  { %262 = vmatmul.f32.gmra.mxu1 %v17_v37  ;;  %v82_v37 = vld [vmem:[%s1158_s0 + $0x220] sm:$0xff] }
  0x2b   :  { %191 = vmatmul.f32.gmra.mxu2 %v52_v38  ;;  %316 = vmatmul.f32.gmra.mxu3 %v53_v39  ;;  %v83_v38 = vld [vmem:[%s1158_s0 + $0x228] sm:$0xff] }
  0x31   :  { %140 = vmatmul.f32.gmra.mxu0 %v18_v40 }
  0x32   :  { %265 = vmatmul.f32.gmra.mxu1 %v19_v41  ;;  %v48_v41 = vld [vmem:[%s1158_s0 + $0x110] sm:$0xff] }
  0x33   :  { %194 = vmatmul.f32.gmra.mxu2 %v54_v42  ;;  %319 = vmatmul.f32.gmra.mxu3 %v55_v43  ;;  %v49_v42 = vld [vmem:[%s1158_s0 + $0x118] sm:$0xff] }
  0x39   :  { %143 = vmatmul.f32.gmra.mxu0 %v20_v44 }
  0x3a   :  { %268 = vmatmul.f32.gmra.mxu1 %v21_v45 }
  0x3b   :  { %197 = vmatmul.f32.gmra.mxu2 %v56_v46  ;;  %322 = vmatmul.f32.gmra.mxu3 %v57_v47  ;;  %v84_v47 = vld [vmem:[%s1158_s0 + $0x230] sm:$0xff] }
  0x41   :  { %146 = vmatmul.f32.gmra.mxu0 %v22_v48  ;;  %v85_v48 = vld [vmem:[%s1158_s0 + $0x238] sm:$0xff] }
  0x42   :  { %271 = vmatmul.f32.gmra.mxu1 %v23_v49 }
  0x43   :  { %200 = vmatmul.f32.gmra.mxu2 %v58_v50  ;;  %325 = vmatmul.f32.gmra.mxu3 %v59_v51 }
  0x49   :  { %149 = vmatmul.f32.gmra.mxu0 %v24_v52 }
  0x4a   :  { %274 = vmatmul.f32.gmra.mxu1 %v25_v53 }
  0x4b   :  { %203 = vmatmul.f32.gmra.mxu2 %v60_v54  ;;  %328 = vmatmul.f32.gmra.mxu3 %v61_v55 }
  0x51   :  { %152 = vmatmul.f32.gmra.mxu0 %v26_v56 }
  0x52   :  { %277 = vmatmul.f32.gmra.mxu1 %v27_v57 }
  0x53   :  { %206 = vmatmul.f32.gmra.mxu2 %v62_v58  ;;  %331 = vmatmul.f32.gmra.mxu3 %v63_v59 }
  0x59   :  { %155 = vmatmul.f32.gmra.mxu0 %v28_v60 }
  0x5a   :  { %280 = vmatmul.f32.gmra.mxu1 %v29_v61 }
  0x5b   :  { %209 = vmatmul.f32.gmra.mxu2 %v64_v62  ;;  %334 = vmatmul.f32.gmra.mxu3 %v65_v63 }
  0x61   :  { %158 = vmatmul.f32.gmra.mxu0 %v30_v0 }
  0x62   :  { %283 = vmatmul.f32.gmra.mxu1 %v31_v1 }
  0x63   :  { %212 = vmatmul.f32.gmra.mxu2 %v66_v2  ;;  %337 = vmatmul.f32.gmra.mxu3 %v67_v3 }
  0x69   :  { %161 = vmatmul.f32.gmra.mxu0 %v32_v4 }
  0x6a   :  { %286 = vmatmul.f32.gmra.mxu1 %v33_v5 }
  0x6b   :  { %215 = vmatmul.f32.gmra.mxu2 %v68_v6  ;;  %340 = vmatmul.f32.gmra.mxu3 %v69_v7 }
  0x71   :  { %164 = vmatmul.f32.gmra.mxu0 %v34_v8 }
  0x72   :  { %289 = vmatmul.f32.gmra.mxu1 %v35_v9 }
  0x73   :  { %218 = vmatmul.f32.gmra.mxu2 %v70_v10  ;;  %343 = vmatmul.f32.gmra.mxu3 %v71_v11 }
  0x79   :  { %167 = vmatmul.f32.gmra.mxu0 %v36_v12 }
  0x7a   :  { %292 = vmatmul.f32.gmra.mxu1 %v37_v13 }
  0x7b   :  { %221 = vmatmul.f32.gmra.mxu2 %v72_v14  ;;  %346 = vmatmul.f32.gmra.mxu3 %v73_v15 }
  0x81   :  { %170 = vmatmul.f32.gmra.mxu0 %v38_v16 }
  0x82   :  { %295 = vmatmul.f32.gmra.mxu1 %v39_v17 }
  0x83   :  { %224 = vmatmul.f32.gmra.mxu2 %v74_v18  ;;  %349 = vmatmul.f32.gmra.mxu3 %v75_v19 }
  0x89   :  { %173 = vmatmul.f32.gmra.mxu0 %v40_v20 }
  0x8a   :  { %298 = vmatmul.f32.gmra.mxu1 %v41_v21 }
  0x8b   :  { %227 = vmatmul.f32.gmra.mxu2 %v76_v22  ;;  %352 = vmatmul.f32.gmra.mxu3 %v77_v23 }
  0x91   :  { %176 = vmatmul.f32.gmra.mxu0 %v42_v24 }
  0x92   :  { %301 = vmatmul.f32.gmra.mxu1 %v43_v25 }
  0x93   :  { %230 = vmatmul.f32.gmra.mxu2 %v78_v26  ;;  %355 = vmatmul.f32.gmra.mxu3 %v79_v27 }
  0x99   :  { %179 = vmatmul.f32.gmra.mxu0 %v44_v28 }
  0x9a   :  { %304 = vmatmul.f32.gmra.mxu1 %v45_v29 }
  0x9b   :  { %233 = vmatmul.f32.gmra.mxu2 %v80_v30  ;;  %358 = vmatmul.f32.gmra.mxu3 %v81_v31 }
  0x9e   :  { %v135_v32 = vpop.f32.mrf.mxu0 }
  0x9f   :  { %v260_v33 = vpop.f32.mrf.mxu1 }
  0xa0   :  { %v261_v36 = vadd.f32 %v260_v33, %v135_v32 }
  0xa1   :  { %182 = vmatmul.f32.gmra.mxu0 %v46_v34 }
  0xa2   :  { %368 = vst [vmem:[%s1159_s2] sm:$0xff] %v261_v36  ;;  %307 = vmatmul.f32.gmra.mxu1 %v47_v35  ;;  %v455_v49 = vmul.f32 %v261_v36, %v261_v36 }
  0xa3   :  { %236 = vmatmul.f32.gmra.mxu2 %v82_v37  ;;  %361 = vmatmul.f32.gmra.mxu3 %v83_v38 }
  0xa6   :  { %v138_v39 = vpop.f32.mrf.mxu0  ;;  %v189_v44 = vpop.f32.mrf.mxu2 }
  0xa7   :  { %v263_v40 = vpop.f32.mrf.mxu1  ;;  %v314_v45 = vpop.f32.mrf.mxu3 }
  0xa8   :  { %v264_v43 = vadd.f32 %v263_v40, %v138_v39  ;;  %v914_v46 = vadd.f32 %v314_v45, %v189_v44 }
  0xa9   :  { %185 = vmatmul.f32.gmra.mxu0 %v48_v41 }
  0xaa   :  { %369 = vst [vmem:[%s1159_s2 + $0x8] sm:$0xff] %v264_v43  ;;  %v411_v50 = vadd.f32 %v264_v43, %v261_v36  ;;  %v456_v51 = vmul.f32 %v264_v43, %v264_v43  ;;  %310 = vmatmul.f32.gmra.mxu1 %v49_v42 }
  0xab   :  { %386 = vst [vmem:[%s1159_s2 + $0x90] sm:$0xff] %v914_v46  ;;  %239 = vmatmul.f32.gmra.mxu2 %v84_v47  ;;  %364 = vmatmul.f32.gmra.mxu3 %v85_v48 }
  0xac   :  { %v491_v52 = vadd.f32 %v456_v51, %v455_v49 }
  0xae   :  { %v141_v53 = vpop.f32.mrf.mxu0  ;;  %v192_v56 = vpop.f32.mrf.mxu2 }
  0xaf   :  { %v266_v54 = vpop.f32.mrf.mxu1  ;;  %v317_v57 = vpop.f32.mrf.mxu3 }
  0xb0   :  { %v267_v55 = vadd.f32 %v266_v54, %v141_v53  ;;  %v929_v58 = vadd.f32 %v317_v57, %v192_v56 }
  0xb2   :  { %370 = vst [vmem:[%s1159_s2 + $0x10] sm:$0xff] %v267_v55  ;;  %v412_v59 = vadd.f32 %v411_v50, %v267_v55  ;;  %v457_v60 = vmul.f32 %v267_v55, %v267_v55 }
  0xb3   :  { %387 = vst [vmem:[%s1159_s2 + $0x98] sm:$0xff] %v929_v58 }
  0xb4   :  { %v492_v61 = vadd.f32 %v491_v52, %v457_v60 }
  0xb6   :  { %v144_v62 = vpop.f32.mrf.mxu0  ;;  %v195_v1 = vpop.f32.mrf.mxu2 }
  0xb7   :  { %v269_v63 = vpop.f32.mrf.mxu1  ;;  %v320_v2 = vpop.f32.mrf.mxu3 }
  0xb8   :  { %v270_v0 = vadd.f32 %v269_v63, %v144_v62  ;;  %v938_v3 = vadd.f32 %v320_v2, %v195_v1 }
  0xba   :  { %371 = vst [vmem:[%s1159_s2 + $0x18] sm:$0xff] %v270_v0  ;;  %v413_v4 = vadd.f32 %v412_v59, %v270_v0  ;;  %v458_v5 = vmul.f32 %v270_v0, %v270_v0 }
  0xbb   :  { %388 = vst [vmem:[%s1159_s2 + $0xa0] sm:$0xff] %v938_v3 }
  0xbc   :  { %v493_v6 = vadd.f32 %v492_v61, %v458_v5 }
  0xbe   :  { %v147_v7 = vpop.f32.mrf.mxu0  ;;  %v198_v10 = vpop.f32.mrf.mxu2 }
  0xbf   :  { %v272_v8 = vpop.f32.mrf.mxu1  ;;  %v323_v11 = vpop.f32.mrf.mxu3 }
  0xc0   :  { %v273_v9 = vadd.f32 %v272_v8, %v147_v7  ;;  %v947_v12 = vadd.f32 %v323_v11, %v198_v10 }
  0xc2   :  { %372 = vst [vmem:[%s1159_s2 + $0x20] sm:$0xff] %v273_v9  ;;  %v414_v13 = vadd.f32 %v413_v4, %v273_v9  ;;  %v459_v14 = vmul.f32 %v273_v9, %v273_v9 }
  0xc3   :  { %389 = vst [vmem:[%s1159_s2 + $0xa8] sm:$0xff] %v947_v12 }
  0xc4   :  { %v494_v15 = vadd.f32 %v493_v6, %v459_v14 }
  0xc6   :  { %v150_v16 = vpop.f32.mrf.mxu0  ;;  %v201_v19 = vpop.f32.mrf.mxu2 }
  0xc7   :  { %v275_v17 = vpop.f32.mrf.mxu1  ;;  %v326_v20 = vpop.f32.mrf.mxu3 }
  0xc8   :  { %v276_v18 = vadd.f32 %v275_v17, %v150_v16  ;;  %v956_v21 = vadd.f32 %v326_v20, %v201_v19 }
  0xca   :  { %373 = vst [vmem:[%s1159_s2 + $0x28] sm:$0xff] %v276_v18  ;;  %v415_v22 = vadd.f32 %v414_v13, %v276_v18  ;;  %v460_v23 = vmul.f32 %v276_v18, %v276_v18 }
  0xcb   :  { %390 = vst [vmem:[%s1159_s2 + $0xb0] sm:$0xff] %v956_v21 }
  0xcc   :  { %v495_v24 = vadd.f32 %v494_v15, %v460_v23 }
  0xce   :  { %v153_v25 = vpop.f32.mrf.mxu0  ;;  %v204_v28 = vpop.f32.mrf.mxu2 }
  0xcf   :  { %v278_v26 = vpop.f32.mrf.mxu1  ;;  %v329_v29 = vpop.f32.mrf.mxu3 }
  0xd0   :  { %v279_v27 = vadd.f32 %v278_v26, %v153_v25  ;;  %v965_v30 = vadd.f32 %v329_v29, %v204_v28 }
  0xd2   :  { %374 = vst [vmem:[%s1159_s2 + $0x30] sm:$0xff] %v279_v27  ;;  %v970_v31 = vadd.f32 %v415_v22, %v279_v27  ;;  %v461_v32 = vmul.f32 %v279_v27, %v279_v27 }
  0xd3   :  { %391 = vst [vmem:[%s1159_s2 + $0xb8] sm:$0xff] %v965_v30 }
  0xd4   :  { %v976_v33 = vadd.f32 %v495_v24, %v461_v32 }
  0xd6   :  { %v156_v34 = vpop.f32.mrf.mxu0  ;;  %v207_v37 = vpop.f32.mrf.mxu2 }
  0xd7   :  { %v281_v35 = vpop.f32.mrf.mxu1  ;;  %v332_v38 = vpop.f32.mrf.mxu3 }
  0xd8   :  { %v978_v36 = vadd.f32 %v281_v35, %v156_v34  ;;  %v980_v39 = vadd.f32 %v332_v38, %v207_v37 }
  0xda   :  { %375 = vst [vmem:[%s1159_s2 + $0x38] sm:$0xff] %v978_v36  ;;  %v462_v23 = vmul.f32 %v978_v36, %v978_v36  ;;  %v417_v24 = vadd.f32 %v970_v31, %v978_v36 }
  0xdb   :  { %392 = vst [vmem:[%s1159_s2 + $0xc0] sm:$0xff] %v980_v39 }
  0xdc   :  { %v497_v28 = vadd.f32 %v976_v33, %v462_v23  ;;  %v473_v23 = vmul.f32 %v914_v46, %v914_v46 }
  0xde   :  { %v159_v40 = vpop.f32.mrf.mxu0  ;;  %v210_v43 = vpop.f32.mrf.mxu2 }
  0xdf   :  { %v284_v41 = vpop.f32.mrf.mxu1  ;;  %v335_v44 = vpop.f32.mrf.mxu3 }
  0xe0   :  { %v285_v42 = vadd.f32 %v284_v41, %v159_v40  ;;  %v990_v45 = vadd.f32 %v335_v44, %v210_v43 }
  0xe2   :  { %376 = vst [vmem:[%s1159_s2 + $0x40] sm:$0xff] %v285_v42  ;;  %v463_v25 = vmul.f32 %v285_v42, %v285_v42  ;;  %v418_v29 = vadd.f32 %v417_v24, %v285_v42 }
  0xe3   :  { %393 = vst [vmem:[%s1159_s2 + $0xc8] sm:$0xff] %v990_v45 }
  0xe4   :  { %v498_v40 = vadd.f32 %v497_v28, %v463_v25 }
  0xe6   :  { %v162_v47 = vpop.f32.mrf.mxu0  ;;  %v213_v50 = vpop.f32.mrf.mxu2 }
  0xe7   :  { %v287_v48 = vpop.f32.mrf.mxu1  ;;  %v338_v51 = vpop.f32.mrf.mxu3 }
  0xe8   :  { %v288_v49 = vadd.f32 %v287_v48, %v162_v47  ;;  %v999_v52 = vadd.f32 %v338_v51, %v213_v50 }
  0xea   :  { %377 = vst [vmem:[%s1159_s2 + $0x48] sm:$0xff] %v288_v49  ;;  %v464_v32 = vmul.f32 %v288_v49, %v288_v49  ;;  %v419_v41 = vadd.f32 %v418_v29, %v288_v49  ;;  %v579_v29 = vmov 0.0  }
  0xeb   :  { %394 = vst [vmem:[%s1159_s2 + $0xd0] sm:$0xff] %v999_v52 }
  0xec   :  { %v499_v31 = vadd.f32 %v498_v40, %v464_v32  ;;  %408 = vst [vmem:[%s1160_s3] sm:$0x1] %v579_v29  ;;  %v475_v32 = vmul.f32 %v938_v3, %v938_v3 }
  0xed   :  { %409 = vst [vmem:[%s1161_s4] sm:$0x1] %v579_v29 }
  0xee   :  { %v165_v53 = vpop.f32.mrf.mxu0  ;;  %v216_v56 = vpop.f32.mrf.mxu2 }
  0xef   :  { %v290_v54 = vpop.f32.mrf.mxu1  ;;  %v341_v57 = vpop.f32.mrf.mxu3 }
  0xf0   :  { %v291_v55 = vadd.f32 %v290_v54, %v165_v53  ;;  %v1008_v59 = vadd.f32 %v341_v57, %v216_v56 }
  0xf2   :  { %378 = vst [vmem:[%s1159_s2 + $0x50] sm:$0xff] %v291_v55  ;;  %v465_v43 = vmul.f32 %v291_v55, %v291_v55  ;;  %v420_v33 = vadd.f32 %v419_v41, %v291_v55 }
  0xf3   :  { %395 = vst [vmem:[%s1159_s2 + $0xd8] sm:$0xff] %v1008_v59 }
  0xf4   :  { %v500_v42 = vadd.f32 %v499_v31, %v465_v43 }
  0xf6   :  { %v168_v60 = vpop.f32.mrf.mxu0  ;;  %v219_v63 = vpop.f32.mrf.mxu2 }
  0xf7   :  { %v293_v61 = vpop.f32.mrf.mxu1  ;;  %v344_v0 = vpop.f32.mrf.mxu3 }
  0xf8   :  { %v294_v62 = vadd.f32 %v293_v61, %v168_v60  ;;  %v1017_v1 = vadd.f32 %v344_v0, %v219_v63 }
  0xfa   :  { %379 = vst [vmem:[%s1159_s2 + $0x58] sm:$0xff] %v294_v62  ;;  %v466_v36 = vmul.f32 %v294_v62, %v294_v62  ;;  %v421_v44 = vadd.f32 %v420_v33, %v294_v62 }
  0xfb   :  { %396 = vst [vmem:[%s1159_s2 + $0xe0] sm:$0xff] %v1017_v1 }
  0xfc   :  { %v501_v51 = vadd.f32 %v500_v42, %v466_v36  ;;  %v478_v36 = vmul.f32 %v965_v30, %v965_v30 }
  0xfe   :  { %v171_v2 = vpop.f32.mrf.mxu0  ;;  %v222_v6 = vpop.f32.mrf.mxu2 }
  0xff   :  { %v296_v4 = vpop.f32.mrf.mxu1  ;;  %v347_v7 = vpop.f32.mrf.mxu3 }
 0x100   :  { %v297_v5 = vadd.f32 %v296_v4, %v171_v2  ;;  %v1026_v8 = vadd.f32 %v347_v7, %v222_v6 }
 0x102   :  { %380 = vst [vmem:[%s1159_s2 + $0x60] sm:$0xff] %v297_v5  ;;  %v467_v47 = vmul.f32 %v297_v5, %v297_v5  ;;  %v422_v49 = vadd.f32 %v421_v44, %v297_v5 }
 0x103   :  { %397 = vst [vmem:[%s1159_s2 + $0xe8] sm:$0xff] %v1026_v8 }
 0x104   :  { %v502_v61 = vadd.f32 %v501_v51, %v467_v47 }
 0x106   :  { %v174_v9 = vpop.f32.mrf.mxu0  ;;  %v225_v13 = vpop.f32.mrf.mxu2 }
 0x107   :  { %v299_v10 = vpop.f32.mrf.mxu1  ;;  %v350_v14 = vpop.f32.mrf.mxu3 }
 0x108   :  { %v300_v11 = vadd.f32 %v299_v10, %v174_v9  ;;  %v1035_v15 = vadd.f32 %v350_v14, %v225_v13 }
 0x10a   :  { %381 = vst [vmem:[%s1159_s2 + $0x68] sm:$0xff] %v300_v11  ;;  %v468_v53 = vmul.f32 %v300_v11, %v300_v11  ;;  %v423_v63 = vadd.f32 %v422_v49, %v300_v11 }
 0x10b   :  { %398 = vst [vmem:[%s1159_s2 + $0xf0] sm:$0xff] %v1035_v15 }
 0x10c   :  { %v503_v55 = vadd.f32 %v502_v61, %v468_v53 }
 0x10e   :  { %v177_v16 = vpop.f32.mrf.mxu0  ;;  %v228_v19 = vpop.f32.mrf.mxu2 }
 0x10f   :  { %v302_v17 = vpop.f32.mrf.mxu1  ;;  %v353_v20 = vpop.f32.mrf.mxu3 }
 0x110   :  { %v303_v18 = vadd.f32 %v302_v17, %v177_v16  ;;  %v1044_v22 = vadd.f32 %v353_v20, %v228_v19 }
 0x112   :  { %382 = vst [vmem:[%s1159_s2 + $0x70] sm:$0xff] %v303_v18  ;;  %v469_v0 = vmul.f32 %v303_v18, %v303_v18  ;;  %v424_v62 = vadd.f32 %v423_v63, %v303_v18 }
 0x113   :  { %399 = vst [vmem:[%s1159_s2 + $0xf8] sm:$0xff] %v1044_v22 }
 0x114   :  { %v504_v4 = vadd.f32 %v503_v55, %v469_v0 }
 0x116   :  { %v180_v26 = vpop.f32.mrf.mxu0  ;;  %v231_v35 = vpop.f32.mrf.mxu2 }
 0x117   :  { %v305_v27 = vpop.f32.mrf.mxu1  ;;  %v356_v37 = vpop.f32.mrf.mxu3 }
 0x118   :  { %v306_v34 = vadd.f32 %v305_v27, %v180_v26  ;;  %v1058_v38 = vadd.f32 %v356_v37, %v231_v35  ;;  %v474_v26 = vmul.f32 %v929_v58, %v929_v58 }
 0x11a   :  { %383 = vst [vmem:[%s1159_s2 + $0x78] sm:$0xff] %v306_v34  ;;  %v470_v2 = vmul.f32 %v306_v34, %v306_v34  ;;  %v425_v5 = vadd.f32 %v424_v62, %v306_v34 }
 0x11b   :  { %400 = vst [vmem:[%s1159_s2 + $0x100] sm:$0xff] %v1058_v38 }
 0x11c   :  { %v505_v10 = vadd.f32 %v504_v4, %v470_v2  ;;  %v486_v4 = vmul.f32 %v1044_v22, %v1044_v22 }
 0x11e   :  { %v183_v48 = vpop.f32.mrf.mxu0  ;;  %v234_v56 = vpop.f32.mrf.mxu2 }
 0x11f   :  { %v308_v50 = vpop.f32.mrf.mxu1  ;;  %v359_v57 = vpop.f32.mrf.mxu3 }
 0x120   :  { %v309_v54 = vadd.f32 %v308_v50, %v183_v48  ;;  %v1067_v60 = vadd.f32 %v359_v57, %v234_v56  ;;  %v480_v50 = vmul.f32 %v990_v45, %v990_v45 }
 0x122   :  { %384 = vst [vmem:[%s1159_s2 + $0x80] sm:$0xff] %v309_v54  ;;  %v471_v6 = vmul.f32 %v309_v54, %v309_v54  ;;  %v426_v11 = vadd.f32 %v425_v5, %v309_v54 }
 0x123   :  { %401 = vst [vmem:[%s1159_s2 + $0x108] sm:$0xff] %v1067_v60 }
 0x124   :  { %v506_v19 = vadd.f32 %v505_v10, %v471_v6  ;;  %v488_v10 = vmul.f32 %v1067_v60, %v1067_v60 }
 0x126   :  { %v186_v7 = vpop.f32.mrf.mxu0  ;;  %v237_v14 = vpop.f32.mrf.mxu2 }
 0x127   :  { %v311_v9 = vpop.f32.mrf.mxu1  ;;  %v362_v16 = vpop.f32.mrf.mxu3 }
 0x128   :  { %v312_v13 = vadd.f32 %v311_v9, %v186_v7  ;;  %v1076_v17 = vadd.f32 %v362_v16, %v237_v14  ;;  %v487_v7 = vmul.f32 %v1058_v38, %v1058_v38 }
 0x12a   :  { %385 = vst [vmem:[%s1159_s2 + $0x88] sm:$0xff] %v312_v13  ;;  %v427_v20 = vadd.f32 %v426_v11, %v312_v13  ;;  %v472_v18 = vmul.f32 %v312_v13, %v312_v13  ;;  %v489_v13 = vmul.f32 %v1076_v17, %v1076_v17 }
 0x12b   :  { %402 = vst [vmem:[%s1159_s2 + $0x110] sm:$0xff] %v1076_v17 }
 0x12c   :  { %v428_v24 = vadd.f32 %v427_v20, %v914_v46  ;;  %v507_v25 = vadd.f32 %v506_v19, %v472_v18 }
 0x12e   :  { %v429_v27 = vadd.f32 %v428_v24, %v929_v58  ;;  %v508_v28 = vadd.f32 %v507_v25, %v473_v23  ;;  %v240_v37 = vpop.f32.mrf.mxu2  ;;  %v476_v58 = vmul.f32 %v947_v12, %v947_v12 }
 0x12f   :  { %v365_v46 = vpop.f32.mrf.mxu3 }
 0x130   :  { %v430_v34 = vadd.f32 %v429_v27, %v938_v3  ;;  %v509_v35 = vadd.f32 %v508_v28, %v474_v26  ;;  %v366_v40 = vadd.f32 %v365_v46, %v240_v37  ;;  %v477_v3 = vmul.f32 %v956_v21, %v956_v21 }
 0x132   :  { %v431_v41 = vadd.f32 %v430_v34, %v947_v12  ;;  %v510_v43 = vadd.f32 %v509_v35, %v475_v32  ;;  %403 = vst [vmem:[%s1159_s2 + $0x118] sm:$0xff] %v366_v40  ;;  %v479_v12 = vmul.f32 %v980_v39, %v980_v39 }
 0x134   :  { %v432_v31 = vadd.f32 %v431_v41, %v956_v21  ;;  %v511_v33 = vadd.f32 %v510_v43, %v476_v58  ;;  %v481_v21 = vmul.f32 %v999_v52, %v999_v52 }
 0x136   :  { %v433_v42 = vadd.f32 %v432_v31, %v965_v30  ;;  %v512_v44 = vadd.f32 %v511_v33, %v477_v3  ;;  %v482_v30 = vmul.f32 %v1008_v59, %v1008_v59 }
 0x138   :  { %v513_v47 = vadd.f32 %v512_v44, %v478_v36  ;;  %v434_v48 = vadd.f32 %v433_v42, %v980_v39  ;;  %v483_v39 = vmul.f32 %v1017_v1, %v1017_v1 }
 0x13a   :  { %v435_v51 = vadd.f32 %v434_v48, %v990_v45  ;;  %v514_v49 = vadd.f32 %v513_v47, %v479_v12  ;;  %v484_v45 = vmul.f32 %v1026_v8, %v1026_v8 }
 0x13c   :  { %v436_v53 = vadd.f32 %v435_v51, %v999_v52  ;;  %v515_v54 = vadd.f32 %v514_v49, %v480_v50  ;;  %v485_v52 = vmul.f32 %v1035_v15, %v1035_v15 }
 0x13e   :  { %v437_v56 = vadd.f32 %v436_v53, %v1008_v59  ;;  %v516_v57 = vadd.f32 %v515_v54, %v481_v21 }
 0x140   :  { %v438_v61 = vadd.f32 %v437_v56, %v1017_v1  ;;  %v517_v63 = vadd.f32 %v516_v57, %v482_v30 }
 0x142   :  { %v439_v0 = vadd.f32 %v438_v61, %v1026_v8  ;;  %v518_v55 = vadd.f32 %v517_v63, %v483_v39 }
 0x144   :  { %v440_v62 = vadd.f32 %v439_v0, %v1035_v15  ;;  %v519_v2 = vadd.f32 %v518_v55, %v484_v45 }
 0x146   :  { %v441_v59 = vadd.f32 %v440_v62, %v1044_v22  ;;  %v520_v5 = vadd.f32 %v519_v2, %v485_v52  ;;  %v490_v22 = vmul.f32 %v366_v40, %v366_v40 }
 0x148   :  { %v521_v1 = vadd.f32 %v520_v5, %v486_v4  ;;  %v442_v6 = vadd.f32 %v441_v59, %v1058_v38 }
 0x14a   :  { %v522_v8 = vadd.f32 %v521_v1, %v487_v7  ;;  %v443_v9 = vadd.f32 %v442_v6, %v1067_v60  ;;  %v410_v60 = vld [vmem:[%s1160_s3] sm:$0x1] }
 0x14c   :  { %v523_v15 = vadd.f32 %v522_v8, %v488_v10  ;;  %v444_v11 = vadd.f32 %v443_v9, %v1076_v17  ;;  %v454_v17 = vld [vmem:[%s1161_s4] sm:$0x1] }
 0x14e   :  { %v524_v14 = vadd.f32 %v523_v15, %v489_v13  ;;  %v445_v16 = vadd.f32 %v444_v11, %v366_v40 }
 0x150   :  { %v446_v19 = vrot.slane %v445_v16, 4  ;;  %v525_v20 = vadd.f32 %v524_v14, %v490_v22 }
 0x152   :  { %v447_v18 = vadd.f32 %v446_v19, %v445_v16  ;;  %v526_v23 = vrot.slane %v525_v20, 4 }
 0x154   :  { %v448_v38 = vrot.slane %v447_v18, 2  ;;  %v527_v24 = vadd.f32 %v526_v23, %v525_v20 }
 0x156   :  { %v449_v25 = vadd.f32 %v448_v38, %v447_v18  ;;  %v528_v26 = vrot.slane %v527_v24, 2 }
 0x158   :  { %v450_v27 = vrot.slane %v449_v25, 1  ;;  %v529_v28 = vadd.f32 %v528_v26, %v527_v24 }
 0x15a   :  { %v451_v29 = vadd.f32 %v450_v27, %v449_v25  ;;  %v530_v32 = vrot.slane %v529_v28, 1 }
 0x15c   :  { %v452_v34 = vadd.f32 %v451_v29, %v410_v60  ;;  %v531_v35 = vadd.f32 %v530_v32, %v529_v28 }
 0x15e   :  { %453 = vst [vmem:[%s1160_s3] sm:$0x1] %v452_v34  ;;  %v532_v37 = vadd.f32 %v531_v35, %v454_v17 }
 0x160   :  { %533 = vst [vmem:[%s1161_s4] sm:$0x1] %v532_v37 }

// kernel: _lambda_.14
= control target key start
LH: loop header
LB: loop body
LE: loop exit
PB: predicated region body
PF: predicated region fallthrough
CT: control target
= control target key end

     0   :  { %s524_s0 = inlined_call_operand.vmem [shape: f32[248,128], index: 0, kind: input, shape index: {}]   ;;  %s525_s1 = inlined_call_operand.vmem [shape: f32[1,128], index: 1, kind: input, shape index: {}]   ;;  %s526_s2 = inlined_call_operand.vmem [shape: f32[1,128], index: 2, kind: input, shape index: {}]   ;;  %s527_s3 = inlined_call_operand.vmem [shape: f32[248,128], index: 3, kind: output, shape index: {}]  }
   0x1   :  { %v14_v0 = vld [vmem:[%s524_s0] sm:$0xff]  ;;  %v15_v3 = vld [vmem:[%s524_s0 + $0x8] sm:$0xff]  ;;  %v16_v6 = vld [vmem:[%s524_s0 + $0x10] sm:$0xff] }
   0x2   :  { %v271_v1 = vld [vmem:[%s525_s1] ss:$0 sm:$0xff]  ;;  %v17_v7 = vld [vmem:[%s524_s0 + $0x18] sm:$0xff]  ;;  %v19_v12 = vld [vmem:[%s524_s0 + $0x28] sm:$0xff] }
   0x3   :  { %v276_v2 = vld [vmem:[%s526_s2] ss:$0 sm:$0xff]  ;;  %v49_v4 = vmul.f32 %v271_v1, %v14_v0  ;;  %v50_v5 = vmul.f32 %v271_v1, %v15_v3  ;;  %v51_v9 = vmul.f32 %v271_v1, %v16_v6  ;;  %v52_v10 = vmul.f32 %v271_v1, %v17_v7  ;;  %v20_v13 = vld [vmem:[%s524_s0 + $0x30] sm:$0xff]  ;;  %v21_v14 = vld [vmem:[%s524_s0 + $0x38] sm:$0xff] }
   0x4   :  { %v18_v8 = vld [vmem:[%s524_s0 + $0x20] sm:$0xff]  ;;  %v54_v17 = vmul.f32 %v271_v1, %v19_v12  ;;  %v55_v18 = vmul.f32 %v271_v1, %v20_v13  ;;  %v56_v22 = vmul.f32 %v271_v1, %v21_v14  ;;  %v23_v24 = vld [vmem:[%s524_s0 + $0x48] sm:$0xff]  ;;  %v24_v32 = vld [vmem:[%s524_s0 + $0x50] sm:$0xff] }
   0x5   :  { %v53_v11 = vmul.f32 %v271_v1, %v18_v8  ;;  %v84_v15 = vadd.f32 %v276_v2, %v49_v4  ;;  %v85_v16 = vadd.f32 %v276_v2, %v50_v5  ;;  %v86_v19 = vadd.f32 %v276_v2, %v51_v9  ;;  %v22_v23 = vld [vmem:[%s524_s0 + $0x40] sm:$0xff]  ;;  %v25_v41 = vld [vmem:[%s524_s0 + $0x58] sm:$0xff]  ;;  %v27_v52 = vld [vmem:[%s524_s0 + $0x68] sm:$0xff] }
   0x6   :  { %v87_v20 = vadd.f32 %v276_v2, %v52_v10  ;;  %v89_v35 = vadd.f32 %v276_v2, %v54_v17  ;;  %v90_v36 = vadd.f32 %v276_v2, %v55_v18  ;;  %v91_v38 = vadd.f32 %v276_v2, %v56_v22  ;;  %v26_v51 = vld [vmem:[%s524_s0 + $0x60] sm:$0xff]  ;;  %v28_v56 = vld [vmem:[%s524_s0 + $0x70] sm:$0xff]  ;;  %v29_v59 = vld [vmem:[%s524_s0 + $0x78] sm:$0xff] }
   0x7   :  { %v88_v21 = vadd.f32 %v276_v2, %v53_v11  ;;  %vm115_vm0 = vcmp.gt.f32.partialorder %v84_v15, 0.0  ;;  %v146_v25 = vmul.f32 0.2, %v84_v15  ;;  %vm116_vm1 = vcmp.gt.f32.partialorder %v85_v16, 0.0  ;;  %v30_v0 = vld [vmem:[%s524_s0 + $0x80] sm:$0xff]  ;;  %v31_v3 = vld [vmem:[%s524_s0 + $0x88] sm:$0xff] }
   0x8   :  { %v147_v26 = vmul.f32 0.2, %v85_v16  ;;  %vm117_vm2 = vcmp.gt.f32.partialorder %v86_v19, 0.0  ;;  %v148_v27 = vmul.f32 0.2, %v86_v19  ;;  %vm118_vm3 = vcmp.gt.f32.partialorder %v87_v20, 0.0 }
   0x9   :  { %v149_v28 = vmul.f32 0.2, %v87_v20  ;;  %v177_v29 = vsel %vm115_vm0, %v84_v15, %v146_v25  ;;  %vm119_vm4 = vcmp.gt.f32.partialorder %v88_v21, 0.0  ;;  %v150_v31 = vmul.f32 0.2, %v88_v21  ;;  %v34_v25 = vld [vmem:[%s524_s0 + $0xa0] sm:$0xff] }
   0xa   :  { %v178_v30 = vsel %vm116_vm1, %v85_v16, %v147_v26  ;;  %208 = vst [vmem:[%s527_s3] sm:$0xff] %v177_v29  ;;  %v179_v33 = vsel %vm117_vm2, %v86_v19, %v148_v27  ;;  %v57_v39 = vmul.f32 %v271_v1, %v22_v23  ;;  %v58_v40 = vmul.f32 %v271_v1, %v23_v24  ;;  %v33_v24 = vld [vmem:[%s524_s0 + $0x98] sm:$0xff]  ;;  %v35_v26 = vld [vmem:[%s524_s0 + $0xa8] sm:$0xff] }
   0xb   :  { %v180_v34 = vsel %vm118_vm3, %v87_v20, %v149_v28  ;;  %209 = vst [vmem:[%s527_s3 + $0x8] sm:$0xff] %v178_v30  ;;  %v181_v37 = vsel %vm119_vm4, %v88_v21, %v150_v31  ;;  %vm120_vm5 = vcmp.gt.f32.partialorder %v89_v35, 0.0  ;;  %v151_v42 = vmul.f32 0.2, %v89_v35  ;;  %v32_v20 = vld [vmem:[%s524_s0 + $0x90] sm:$0xff]  ;;  %v37_v31 = vld [vmem:[%s524_s0 + $0xb8] sm:$0xff] }
   0xc   :  { %210 = vst [vmem:[%s527_s3 + $0x10] sm:$0xff] %v179_v33  ;;  %vm121_vm6 = vcmp.gt.f32.partialorder %v90_v36, 0.0  ;;  %v59_v43 = vmul.f32 %v271_v1, %v24_v32  ;;  %v152_v44 = vmul.f32 0.2, %v90_v36  ;;  %vm122_vm7 = vcmp.gt.f32.partialorder %v91_v38, 0.0  ;;  %v36_v30 = vld [vmem:[%s524_s0 + $0xb0] sm:$0xff] }
   0xd   :  { %211 = vst [vmem:[%s527_s3 + $0x18] sm:$0xff] %v180_v34  ;;  %v153_v45 = vmul.f32 0.2, %v91_v38  ;;  %v92_v46 = vadd.f32 %v276_v2, %v57_v39  ;;  %v182_v47 = vsel %vm120_vm5, %v89_v35, %v151_v42  ;;  %v93_v48 = vadd.f32 %v276_v2, %v58_v40  ;;  %v38_v35 = vld [vmem:[%s524_s0 + $0xc0] sm:$0xff] }
   0xe   :  { %212 = vst [vmem:[%s527_s3 + $0x20] sm:$0xff] %v181_v37  ;;  %v94_v49 = vadd.f32 %v276_v2, %v59_v43  ;;  %v60_v50 = vmul.f32 %v271_v1, %v25_v41  ;;  %v183_v53 = vsel %vm121_vm6, %v90_v36, %v152_v44  ;;  %v61_v62 = vmul.f32 %v271_v1, %v26_v51  ;;  %v39_v51 = vld [vmem:[%s524_s0 + $0xc8] sm:$0xff] }
   0xf   :  { %213 = vst [vmem:[%s527_s3 + $0x28] sm:$0xff] %v182_v47  ;;  %v184_v54 = vsel %vm122_vm7, %v91_v38, %v153_v45  ;;  %vm123_vm8 = vcmp.gt.f32.partialorder %v92_v46, 0.0  ;;  %v154_v55 = vmul.f32 0.2, %v92_v46  ;;  %vm124_vm9 = vcmp.gt.f32.partialorder %v93_v48, 0.0 }
  0x10   :  { %214 = vst [vmem:[%s527_s3 + $0x30] sm:$0xff] %v183_v53  ;;  %v155_v57 = vmul.f32 0.2, %v93_v48  ;;  %vm125_vm10 = vcmp.gt.f32.partialorder %v94_v49, 0.0  ;;  %v95_v58 = vadd.f32 %v276_v2, %v60_v50  ;;  %v156_v61 = vmul.f32 0.2, %v94_v49 }
  0x11   :  { %215 = vst [vmem:[%s527_s3 + $0x38] sm:$0xff] %v184_v54  ;;  %v185_v60 = vsel %vm123_vm8, %v92_v46, %v154_v55  ;;  %v62_v63 = vmul.f32 %v271_v1, %v27_v52  ;;  %v63_v6 = vmul.f32 %v271_v1, %v28_v56  ;;  %v96_v8 = vadd.f32 %v276_v2, %v61_v62  ;;  %v40_v52 = vld [vmem:[%s524_s0 + $0xd0] sm:$0xff] }
  0x12   :  { %216 = vst [vmem:[%s527_s3 + $0x40] sm:$0xff] %v185_v60  ;;  %v186_v4 = vsel %vm124_vm9, %v93_v48, %v155_v57  ;;  %vm126_vm11 = vcmp.gt.f32.partialorder %v95_v58, 0.0  ;;  %v157_v5 = vmul.f32 0.2, %v95_v58  ;;  %v187_v7 = vsel %vm125_vm10, %v94_v49, %v156_v61  ;;  %v41_v57 = vld [vmem:[%s524_s0 + $0xd8] sm:$0xff] }
  0x13   :  { %217 = vst [vmem:[%s527_s3 + $0x48] sm:$0xff] %v186_v4  ;;  %v97_v9 = vadd.f32 %v276_v2, %v62_v63  ;;  %v64_v10 = vmul.f32 %v271_v1, %v29_v59  ;;  %v98_v12 = vadd.f32 %v276_v2, %v63_v6  ;;  %v65_v13 = vmul.f32 %v271_v1, %v30_v0  ;;  %v43_v4 = vld [vmem:[%s524_s0 + $0xe8] sm:$0xff] }
  0x14   :  { %218 = vst [vmem:[%s527_s3 + $0x50] sm:$0xff] %v187_v7  ;;  %v188_v11 = vsel %vm126_vm11, %v95_v58, %v157_v5  ;;  %v66_v14 = vmul.f32 %v271_v1, %v31_v3  ;;  %vm127_vm12 = vcmp.gt.f32.partialorder %v96_v8, 0.0  ;;  %v158_v15 = vmul.f32 0.2, %v96_v8  ;;  %v42_v58 = vld [vmem:[%s524_s0 + $0xe0] sm:$0xff] }
  0x15   :  { %219 = vst [vmem:[%s527_s3 + $0x58] sm:$0xff] %v188_v11  ;;  %vm128_vm13 = vcmp.gt.f32.partialorder %v97_v9, 0.0  ;;  %v99_v16 = vadd.f32 %v276_v2, %v64_v10  ;;  %v159_v17 = vmul.f32 0.2, %v97_v9  ;;  %vm129_vm14 = vcmp.gt.f32.partialorder %v98_v12, 0.0 }
  0x16   :  { %v160_v18 = vmul.f32 0.2, %v98_v12  ;;  %v100_v19 = vadd.f32 %v276_v2, %v65_v13  ;;  %v189_v21 = vsel %vm127_vm12, %v96_v8, %v158_v15  ;;  %v101_v23 = vadd.f32 %v276_v2, %v66_v14 }
  0x17   :  { %vm130_vm15 = vcmp.gt.f32.partialorder %v99_v16, 0.0  ;;  %v161_v22 = vmul.f32 0.2, %v99_v16  ;;  %220 = vst [vmem:[%s527_s3 + $0x60] sm:$0xff] %v189_v21  ;;  %v190_v27 = vsel %vm128_vm13, %v97_v9, %v159_v17  ;;  %v67_v34 = vmul.f32 %v271_v1, %v32_v20  ;;  %v44_v9 = vld [vmem:[%s524_s0 + $0xf0] sm:$0xff] }
  0x18   :  { %v191_v28 = vsel %vm129_vm14, %v98_v12, %v160_v18  ;;  %vm131_vm0 = vcmp.gt.f32.partialorder %v100_v19, 0.0  ;;  %v162_v29 = vmul.f32 0.2, %v100_v19  ;;  %221 = vst [vmem:[%s527_s3 + $0x68] sm:$0xff] %v190_v27  ;;  %vm132_vm1 = vcmp.gt.f32.partialorder %v101_v23, 0.0 }
  0x19   :  { %v192_v32 = vsel %vm130_vm15, %v99_v16, %v161_v22  ;;  %v163_v33 = vmul.f32 0.2, %v101_v23  ;;  %222 = vst [vmem:[%s527_s3 + $0x70] sm:$0xff] %v191_v28  ;;  %v68_v37 = vmul.f32 %v271_v1, %v33_v24  ;;  %v69_v38 = vmul.f32 %v271_v1, %v34_v25 }
  0x1a   :  { %v193_v36 = vsel %vm131_vm0, %v100_v19, %v162_v29  ;;  %v70_v39 = vmul.f32 %v271_v1, %v35_v26  ;;  %223 = vst [vmem:[%s527_s3 + $0x78] sm:$0xff] %v192_v32  ;;  %v102_v41 = vadd.f32 %v276_v2, %v67_v34  ;;  %v71_v42 = vmul.f32 %v271_v1, %v36_v30 }
  0x1b   :  { %v194_v40 = vsel %vm132_vm1, %v101_v23, %v163_v33  ;;  %v72_v43 = vmul.f32 %v271_v1, %v37_v31  ;;  %224 = vst [vmem:[%s527_s3 + $0x80] sm:$0xff] %v193_v36  ;;  %v103_v44 = vadd.f32 %v276_v2, %v68_v37  ;;  %v104_v45 = vadd.f32 %v276_v2, %v69_v38 }
  0x1c   :  { %v105_v46 = vadd.f32 %v276_v2, %v70_v39  ;;  %v73_v47 = vmul.f32 %v271_v1, %v38_v35  ;;  %225 = vst [vmem:[%s527_s3 + $0x88] sm:$0xff] %v194_v40  ;;  %vm133_vm2 = vcmp.gt.f32.partialorder %v102_v41, 0.0  ;;  %v164_v48 = vmul.f32 0.2, %v102_v41 }
  0x1d   :  { %v106_v49 = vadd.f32 %v276_v2, %v71_v42  ;;  %v107_v50 = vadd.f32 %v276_v2, %v72_v43  ;;  %vm134_vm3 = vcmp.gt.f32.partialorder %v103_v44, 0.0  ;;  %v165_v53 = vmul.f32 0.2, %v103_v44 }
  0x1e   :  { %vm135_vm4 = vcmp.gt.f32.partialorder %v104_v45, 0.0  ;;  %v166_v54 = vmul.f32 0.2, %v104_v45  ;;  %v195_v55 = vsel %vm133_vm2, %v102_v41, %v164_v48  ;;  %vm136_vm5 = vcmp.gt.f32.partialorder %v105_v46, 0.0 }
  0x1f   :  { %v167_v56 = vmul.f32 0.2, %v105_v46  ;;  %vm137_vm6 = vcmp.gt.f32.partialorder %v106_v49, 0.0  ;;  %226 = vst [vmem:[%s527_s3 + $0x90] sm:$0xff] %v195_v55  ;;  %v196_v59 = vsel %vm134_vm3, %v103_v44, %v165_v53  ;;  %v168_v61 = vmul.f32 0.2, %v106_v49 }
  0x20   :  { %v197_v60 = vsel %vm135_vm4, %v104_v45, %v166_v54  ;;  %vm138_vm7 = vcmp.gt.f32.partialorder %v107_v50, 0.0  ;;  %227 = vst [vmem:[%s527_s3 + $0x98] sm:$0xff] %v196_v59  ;;  %v169_v63 = vmul.f32 0.2, %v107_v50  ;;  %v108_v0 = vadd.f32 %v276_v2, %v73_v47 }
  0x21   :  { %v198_v62 = vsel %vm136_vm5, %v105_v46, %v167_v56  ;;  %v74_v3 = vmul.f32 %v271_v1, %v39_v51  ;;  %228 = vst [vmem:[%s527_s3 + $0xa0] sm:$0xff] %v197_v60  ;;  %v199_v5 = vsel %vm137_vm6, %v106_v49, %v168_v61  ;;  %v75_v6 = vmul.f32 %v271_v1, %v40_v52 }
  0x22   :  { %v76_v7 = vmul.f32 %v271_v1, %v41_v57  ;;  %v77_v8 = vmul.f32 %v271_v1, %v42_v58  ;;  %229 = vst [vmem:[%s527_s3 + $0xa8] sm:$0xff] %v198_v62  ;;  %v200_v10 = vsel %vm138_vm7, %v107_v50, %v169_v63  ;;  %vm139_vm8 = vcmp.gt.f32.partialorder %v108_v0, 0.0 }
  0x23   :  { %v170_v11 = vmul.f32 0.2, %v108_v0  ;;  %v109_v12 = vadd.f32 %v276_v2, %v74_v3  ;;  %230 = vst [vmem:[%s527_s3 + $0xb0] sm:$0xff] %v199_v5  ;;  %v110_v13 = vadd.f32 %v276_v2, %v75_v6  ;;  %v78_v16 = vmul.f32 %v271_v1, %v43_v4 }
  0x24   :  { %v111_v14 = vadd.f32 %v276_v2, %v76_v7  ;;  %v112_v15 = vadd.f32 %v276_v2, %v77_v8  ;;  %231 = vst [vmem:[%s527_s3 + $0xb8] sm:$0xff] %v200_v10  ;;  %v79_v19 = vmul.f32 %v271_v1, %v44_v9 }
  0x25   :  { %v201_v17 = vsel %vm139_vm8, %v108_v0, %v170_v11  ;;  %vm140_vm9 = vcmp.gt.f32.partialorder %v109_v12, 0.0  ;;  %v171_v18 = vmul.f32 0.2, %v109_v12  ;;  %vm141_vm10 = vcmp.gt.f32.partialorder %v110_v13, 0.0 }
  0x26   :  { %232 = vst [vmem:[%s527_s3 + $0xc0] sm:$0xff] %v201_v17  ;;  %v172_v20 = vmul.f32 0.2, %v110_v13  ;;  %vm142_vm11 = vcmp.gt.f32.partialorder %v111_v14, 0.0  ;;  %vm143_vm12 = vcmp.gt.f32.partialorder %v112_v15, 0.0  ;;  %v113_v24 = vadd.f32 %v276_v2, %v78_v16 }
  0x27   :  { %v202_v21 = vsel %vm140_vm9, %v109_v12, %v171_v18  ;;  %v173_v22 = vmul.f32 0.2, %v111_v14  ;;  %v174_v23 = vmul.f32 0.2, %v112_v15  ;;  %v114_v1 = vadd.f32 %v276_v2, %v79_v19 }
  0x28   :  { %233 = vst [vmem:[%s527_s3 + $0xc8] sm:$0xff] %v202_v21  ;;  %v203_v25 = vsel %vm141_vm10, %v110_v13, %v172_v20  ;;  %vm144_vm13 = vcmp.gt.f32.partialorder %v113_v24, 0.0  ;;  %v175_v28 = vmul.f32 0.2, %v113_v24 }
  0x29   :  { %234 = vst [vmem:[%s527_s3 + $0xd0] sm:$0xff] %v203_v25  ;;  %v204_v26 = vsel %vm142_vm11, %v111_v14, %v173_v22  ;;  %v205_v27 = vsel %vm143_vm12, %v112_v15, %v174_v23  ;;  %vm145_vm14 = vcmp.gt.f32.partialorder %v114_v1, 0.0  ;;  %v176_v29 = vmul.f32 0.2, %v114_v1 }
  0x2a   :  { %235 = vst [vmem:[%s527_s3 + $0xd8] sm:$0xff] %v204_v26  ;;  %v206_v30 = vsel %vm144_vm13, %v113_v24, %v175_v28 }
  0x2b   :  { %236 = vst [vmem:[%s527_s3 + $0xe0] sm:$0xff] %v205_v27  ;;  %v207_v2 = vsel %vm145_vm14, %v114_v1, %v176_v29 }
  0x2c   :  { %237 = vst [vmem:[%s527_s3 + $0xe8] sm:$0xff] %v206_v30 }
  0x2d   :  { %238 = vst [vmem:[%s527_s3 + $0xf0] sm:$0xff] %v207_v2 }

// kernel: _lambda_.13
= control target key start
LH: loop header
LB: loop body
LE: loop exit
PB: predicated region body
PF: predicated region fallthrough
CT: control target
= control target key end

     0   :  { %s1526_s1 = inlined_call_operand.vmem [shape: f32[512,128], index: 1, kind: input, shape index: {}]   ;;  %s1527_s0 = inlined_call_operand.vmem [shape: f32[248,512], index: 0, kind: input, shape index: {}]   ;;  %s1528_s2 = inlined_call_operand.vmem [shape: f32[248,128], index: 2, kind: output, shape index: {0}]   ;;  %s1529_s3 = inlined_call_operand.vmem [shape: f32[1,128], index: 3, kind: output, shape index: {1}]   ;;  %s1530_s4 = inlined_call_operand.vmem [shape: f32[1,128], index: 4, kind: output, shape index: {2}]  }
   0x1   :  { %v185_v0 = vld [vmem:[%s1526_s1 + $0x178] sm:$0xff]  ;;  %v184_v1 = vld [vmem:[%s1526_s1 + $0x170] sm:$0xff]  ;;  %v183_v5 = vld [vmem:[%s1526_s1 + $0x168] sm:$0xff] }
   0x2   :  { %v201_v2 = vld [vmem:[%s1526_s1 + $0x1f8] sm:$0xff]  ;;  %422 = vmatpush.msra.mxu2 %v185_v0  ;;  %v200_v6 = vld [vmem:[%s1526_s1 + $0x1f0] sm:$0xff]  ;;  %v199_v9 = vld [vmem:[%s1526_s1 + $0x1e8] sm:$0xff] }
   0x3   :  { %532 = vmatpush.msra.mxu3 %v201_v2  ;;  %v153_v3 = vld [vmem:[%s1526_s1 + $0x78] sm:$0xff]  ;;  %v152_v7 = vld [vmem:[%s1526_s1 + $0x70] sm:$0xff]  ;;  %v151_v10 = vld [vmem:[%s1526_s1 + $0x68] sm:$0xff] }
   0x4   :  { %v169_v4 = vld [vmem:[%s1526_s1 + $0xf8] sm:$0xff]  ;;  %202 = vmatpush.msra.mxu0 %v153_v3  ;;  %v168_v8 = vld [vmem:[%s1526_s1 + $0xf0] sm:$0xff]  ;;  %423 = vmatpush.msra.mxu2 %v184_v1  ;;  %v182_v11 = vld [vmem:[%s1526_s1 + $0x160] sm:$0xff] }
   0x5   :  { %312 = vmatpush.msra.mxu1 %v169_v4  ;;  %533 = vmatpush.msra.mxu3 %v200_v6  ;;  %v167_v12 = vld [vmem:[%s1526_s1 + $0xe8] sm:$0xff]  ;;  %v198_v13 = vld [vmem:[%s1526_s1 + $0x1e0] sm:$0xff]  ;;  %v181_v16 = vld [vmem:[%s1526_s1 + $0x158] sm:$0xff] }
   0x6   :  { %203 = vmatpush.msra.mxu0 %v152_v7  ;;  %424 = vmatpush.msra.mxu2 %v183_v5  ;;  %v150_v14 = vld [vmem:[%s1526_s1 + $0x60] sm:$0xff]  ;;  %v197_v17 = vld [vmem:[%s1526_s1 + $0x1d8] sm:$0xff]  ;;  %v180_v20 = vld [vmem:[%s1526_s1 + $0x150] sm:$0xff] }
   0x7   :  { %313 = vmatpush.msra.mxu1 %v168_v8  ;;  %534 = vmatpush.msra.mxu3 %v199_v9  ;;  %v166_v15 = vld [vmem:[%s1526_s1 + $0xe0] sm:$0xff]  ;;  %v149_v18 = vld [vmem:[%s1526_s1 + $0x58] sm:$0xff]  ;;  %v196_v21 = vld [vmem:[%s1526_s1 + $0x1d0] sm:$0xff] }
   0x8   :  { %204 = vmatpush.msra.mxu0 %v151_v10  ;;  %425 = vmatpush.msra.mxu2 %v182_v11  ;;  %v165_v19 = vld [vmem:[%s1526_s1 + $0xd8] sm:$0xff]  ;;  %v148_v22 = vld [vmem:[%s1526_s1 + $0x50] sm:$0xff]  ;;  %v179_v24 = vld [vmem:[%s1526_s1 + $0x148] sm:$0xff] }
   0x9   :  { %314 = vmatpush.msra.mxu1 %v167_v12  ;;  %535 = vmatpush.msra.mxu3 %v198_v13  ;;  %v164_v23 = vld [vmem:[%s1526_s1 + $0xd0] sm:$0xff]  ;;  %v195_v25 = vld [vmem:[%s1526_s1 + $0x1c8] sm:$0xff]  ;;  %v178_v28 = vld [vmem:[%s1526_s1 + $0x140] sm:$0xff] }
   0xa   :  { %205 = vmatpush.msra.mxu0 %v150_v14  ;;  %426 = vmatpush.msra.mxu2 %v181_v16  ;;  %v147_v26 = vld [vmem:[%s1526_s1 + $0x48] sm:$0xff]  ;;  %v194_v29 = vld [vmem:[%s1526_s1 + $0x1c0] sm:$0xff]  ;;  %v177_v32 = vld [vmem:[%s1526_s1 + $0x138] sm:$0xff] }
   0xb   :  { %315 = vmatpush.msra.mxu1 %v166_v15  ;;  %536 = vmatpush.msra.mxu3 %v197_v17  ;;  %v163_v27 = vld [vmem:[%s1526_s1 + $0xc8] sm:$0xff]  ;;  %v146_v30 = vld [vmem:[%s1526_s1 + $0x40] sm:$0xff]  ;;  %v193_v33 = vld [vmem:[%s1526_s1 + $0x1b8] sm:$0xff] }
   0xc   :  { %206 = vmatpush.msra.mxu0 %v149_v18  ;;  %427 = vmatpush.msra.mxu2 %v180_v20  ;;  %v162_v31 = vld [vmem:[%s1526_s1 + $0xc0] sm:$0xff]  ;;  %v145_v34 = vld [vmem:[%s1526_s1 + $0x38] sm:$0xff]  ;;  %v176_v36 = vld [vmem:[%s1526_s1 + $0x130] sm:$0xff] }
   0xd   :  { %316 = vmatpush.msra.mxu1 %v165_v19  ;;  %537 = vmatpush.msra.mxu3 %v196_v21  ;;  %v161_v35 = vld [vmem:[%s1526_s1 + $0xb8] sm:$0xff]  ;;  %v192_v37 = vld [vmem:[%s1526_s1 + $0x1b0] sm:$0xff]  ;;  %v175_v40 = vld [vmem:[%s1526_s1 + $0x128] sm:$0xff] }
   0xe   :  { %207 = vmatpush.msra.mxu0 %v148_v22  ;;  %428 = vmatpush.msra.mxu2 %v179_v24  ;;  %v144_v38 = vld [vmem:[%s1526_s1 + $0x30] sm:$0xff]  ;;  %v191_v41 = vld [vmem:[%s1526_s1 + $0x1a8] sm:$0xff]  ;;  %v174_v44 = vld [vmem:[%s1526_s1 + $0x120] sm:$0xff] }
   0xf   :  { %317 = vmatpush.msra.mxu1 %v164_v23  ;;  %538 = vmatpush.msra.mxu3 %v195_v25  ;;  %v160_v39 = vld [vmem:[%s1526_s1 + $0xb0] sm:$0xff]  ;;  %v143_v42 = vld [vmem:[%s1526_s1 + $0x28] sm:$0xff]  ;;  %v190_v45 = vld [vmem:[%s1526_s1 + $0x1a0] sm:$0xff] }
  0x10   :  { %208 = vmatpush.msra.mxu0 %v147_v26  ;;  %429 = vmatpush.msra.mxu2 %v178_v28  ;;  %v159_v43 = vld [vmem:[%s1526_s1 + $0xa8] sm:$0xff]  ;;  %v142_v46 = vld [vmem:[%s1526_s1 + $0x20] sm:$0xff]  ;;  %v173_v48 = vld [vmem:[%s1526_s1 + $0x118] sm:$0xff] }
  0x11   :  { %318 = vmatpush.msra.mxu1 %v163_v27  ;;  %539 = vmatpush.msra.mxu3 %v194_v29  ;;  %v158_v47 = vld [vmem:[%s1526_s1 + $0xa0] sm:$0xff]  ;;  %v189_v49 = vld [vmem:[%s1526_s1 + $0x198] sm:$0xff]  ;;  %v172_v52 = vld [vmem:[%s1526_s1 + $0x110] sm:$0xff] }
  0x12   :  { %209 = vmatpush.msra.mxu0 %v146_v30  ;;  %430 = vmatpush.msra.mxu2 %v177_v32  ;;  %v141_v50 = vld [vmem:[%s1526_s1 + $0x18] sm:$0xff]  ;;  %v188_v53 = vld [vmem:[%s1526_s1 + $0x190] sm:$0xff]  ;;  %v171_v56 = vld [vmem:[%s1526_s1 + $0x108] sm:$0xff] }
  0x13   :  { %319 = vmatpush.msra.mxu1 %v162_v31  ;;  %540 = vmatpush.msra.mxu3 %v193_v33  ;;  %v157_v51 = vld [vmem:[%s1526_s1 + $0x98] sm:$0xff]  ;;  %v140_v54 = vld [vmem:[%s1526_s1 + $0x10] sm:$0xff]  ;;  %v187_v57 = vld [vmem:[%s1526_s1 + $0x188] sm:$0xff] }
  0x14   :  { %210 = vmatpush.msra.mxu0 %v145_v34  ;;  %431 = vmatpush.msra.mxu2 %v176_v36  ;;  %v156_v55 = vld [vmem:[%s1526_s1 + $0x90] sm:$0xff]  ;;  %v139_v58 = vld [vmem:[%s1526_s1 + $0x8] sm:$0xff]  ;;  %v170_v60 = vld [vmem:[%s1526_s1 + $0x100] sm:$0xff] }
  0x15   :  { %320 = vmatpush.msra.mxu1 %v161_v35  ;;  %541 = vmatpush.msra.mxu3 %v192_v37  ;;  %v155_v59 = vld [vmem:[%s1526_s1 + $0x88] sm:$0xff]  ;;  %v186_v61 = vld [vmem:[%s1526_s1 + $0x180] sm:$0xff]  ;;  %v16_v62 = vld [vmem:[%s1527_s0 + $0x10] sm:$0xff] }
  0x16   :  { %211 = vmatpush.msra.mxu0 %v144_v38  ;;  %432 = vmatpush.msra.mxu2 %v175_v40  ;;  %v17_v63 = vld [vmem:[%s1527_s0 + $0x18] sm:$0xff]  ;;  %v138_v0 = vld [vmem:[%s1526_s1] sm:$0xff]  ;;  %v15_v3 = vld [vmem:[%s1527_s0 + $0x8] sm:$0xff] }
  0x17   :  { %321 = vmatpush.msra.mxu1 %v160_v39  ;;  %542 = vmatpush.msra.mxu3 %v191_v41  ;;  %v154_v1 = vld [vmem:[%s1526_s1 + $0x80] sm:$0xff]  ;;  %v20_v4 = vld [vmem:[%s1527_s0 + $0x30] sm:$0xff]  ;;  %v21_v5 = vld [vmem:[%s1527_s0 + $0x38] sm:$0xff] }
  0x18   :  { %212 = vmatpush.msra.mxu0 %v143_v42  ;;  %433 = vmatpush.msra.mxu2 %v174_v44  ;;  %v14_v2 = vld [vmem:[%s1527_s0] sm:$0xff]  ;;  %v19_v7 = vld [vmem:[%s1527_s0 + $0x28] sm:$0xff]  ;;  %v24_v8 = vld [vmem:[%s1527_s0 + $0x50] sm:$0xff] }
  0x19   :  { %322 = vmatpush.msra.mxu1 %v159_v43  ;;  %543 = vmatpush.msra.mxu3 %v190_v45  ;;  %v18_v6 = vld [vmem:[%s1527_s0 + $0x20] sm:$0xff]  ;;  %v25_v9 = vld [vmem:[%s1527_s0 + $0x58] sm:$0xff]  ;;  %v23_v11 = vld [vmem:[%s1527_s0 + $0x48] sm:$0xff] }
  0x1a   :  { %213 = vmatpush.msra.mxu0 %v142_v46  ;;  %434 = vmatpush.msra.mxu2 %v173_v48  ;;  %v22_v10 = vld [vmem:[%s1527_s0 + $0x40] sm:$0xff]  ;;  %v28_v12 = vld [vmem:[%s1527_s0 + $0x70] sm:$0xff]  ;;  %v29_v13 = vld [vmem:[%s1527_s0 + $0x78] sm:$0xff] }
  0x1b   :  { %323 = vmatpush.msra.mxu1 %v158_v47  ;;  %544 = vmatpush.msra.mxu3 %v189_v49  ;;  %v26_v14 = vld [vmem:[%s1527_s0 + $0x60] sm:$0xff]  ;;  %v27_v15 = vld [vmem:[%s1527_s0 + $0x68] sm:$0xff]  ;;  %v32_v16 = vld [vmem:[%s1527_s0 + $0x90] sm:$0xff] }
  0x1c   :  { %214 = vmatpush.msra.mxu0 %v141_v50  ;;  %435 = vmatpush.msra.mxu2 %v172_v52  ;;  %v33_v17 = vld [vmem:[%s1527_s0 + $0x98] sm:$0xff]  ;;  %v30_v18 = vld [vmem:[%s1527_s0 + $0x80] sm:$0xff]  ;;  %v31_v19 = vld [vmem:[%s1527_s0 + $0x88] sm:$0xff] }
  0x1d   :  { %324 = vmatpush.msra.mxu1 %v157_v51  ;;  %545 = vmatpush.msra.mxu3 %v188_v53  ;;  %v36_v20 = vld [vmem:[%s1527_s0 + $0xb0] sm:$0xff]  ;;  %v37_v21 = vld [vmem:[%s1527_s0 + $0xb8] sm:$0xff]  ;;  %v34_v22 = vld [vmem:[%s1527_s0 + $0xa0] sm:$0xff] }
  0x1e   :  { %215 = vmatpush.msra.mxu0 %v140_v54  ;;  %436 = vmatpush.msra.mxu2 %v171_v56  ;;  %v35_v23 = vld [vmem:[%s1527_s0 + $0xa8] sm:$0xff]  ;;  %v40_v24 = vld [vmem:[%s1527_s0 + $0xd0] sm:$0xff]  ;;  %v41_v25 = vld [vmem:[%s1527_s0 + $0xd8] sm:$0xff] }
  0x1f   :  { %325 = vmatpush.msra.mxu1 %v156_v55  ;;  %546 = vmatpush.msra.mxu3 %v187_v57  ;;  %v38_v26 = vld [vmem:[%s1527_s0 + $0xc0] sm:$0xff]  ;;  %v39_v27 = vld [vmem:[%s1527_s0 + $0xc8] sm:$0xff]  ;;  %v44_v28 = vld [vmem:[%s1527_s0 + $0xf0] sm:$0xff] }
  0x20   :  { %216 = vmatpush.msra.mxu0 %v139_v58  ;;  %437 = vmatpush.msra.mxu2 %v170_v60  ;;  %v45_v29 = vld [vmem:[%s1527_s0 + $0xf8] sm:$0xff]  ;;  %v42_v30 = vld [vmem:[%s1527_s0 + $0xe0] sm:$0xff]  ;;  %v43_v31 = vld [vmem:[%s1527_s0 + $0xe8] sm:$0xff] }
  0x21   :  { %326 = vmatpush.msra.mxu1 %v155_v59  ;;  %547 = vmatpush.msra.mxu3 %v186_v61  ;;  %v48_v32 = vld [vmem:[%s1527_s0 + $0x110] sm:$0xff]  ;;  %v49_v33 = vld [vmem:[%s1527_s0 + $0x118] sm:$0xff]  ;;  %v46_v34 = vld [vmem:[%s1527_s0 + $0x100] sm:$0xff] }
  0x22   :  { %438 = vmatmul.f32.vlgmr.msra.gmra.mxu2 %v16_v62  ;;  %548 = vmatmul.f32.vlgmr.msra.gmra.mxu3 %v17_v63  ;;  %v47_v35 = vld [vmem:[%s1527_s0 + $0x108] sm:$0xff]  ;;  %v52_v36 = vld [vmem:[%s1527_s0 + $0x130] sm:$0xff]  ;;  %v53_v37 = vld [vmem:[%s1527_s0 + $0x138] sm:$0xff] }
  0x23   :  { %217 = vmatpush.msra.mxu0 %v138_v0  ;;  %327 = vmatpush.msra.mxu1 %v154_v1  ;;  %v50_v38 = vld [vmem:[%s1527_s0 + $0x120] sm:$0xff]  ;;  %v51_v39 = vld [vmem:[%s1527_s0 + $0x128] sm:$0xff]  ;;  %v56_v40 = vld [vmem:[%s1527_s0 + $0x150] sm:$0xff] }
  0x24   :  { %218 = vmatmul.f32.vlgmr.msra.gmra.mxu0 %v14_v2  ;;  %328 = vmatmul.f32.vlgmr.msra.gmra.mxu1 %v15_v3  ;;  %v57_v41 = vld [vmem:[%s1527_s0 + $0x158] sm:$0xff]  ;;  %v54_v42 = vld [vmem:[%s1527_s0 + $0x140] sm:$0xff]  ;;  %v55_v43 = vld [vmem:[%s1527_s0 + $0x148] sm:$0xff] }
  0x25   :  { %v60_v44 = vld [vmem:[%s1527_s0 + $0x170] sm:$0xff]  ;;  %v61_v45 = vld [vmem:[%s1527_s0 + $0x178] sm:$0xff]  ;;  %v58_v46 = vld [vmem:[%s1527_s0 + $0x160] sm:$0xff] }
  0x26   :  { %v59_v47 = vld [vmem:[%s1527_s0 + $0x168] sm:$0xff]  ;;  %v64_v48 = vld [vmem:[%s1527_s0 + $0x190] sm:$0xff]  ;;  %v65_v49 = vld [vmem:[%s1527_s0 + $0x198] sm:$0xff] }
  0x27   :  { %v62_v50 = vld [vmem:[%s1527_s0 + $0x180] sm:$0xff]  ;;  %v63_v51 = vld [vmem:[%s1527_s0 + $0x188] sm:$0xff]  ;;  %v68_v52 = vld [vmem:[%s1527_s0 + $0x1b0] sm:$0xff] }
  0x28   :  { %v69_v53 = vld [vmem:[%s1527_s0 + $0x1b8] sm:$0xff]  ;;  %v66_v54 = vld [vmem:[%s1527_s0 + $0x1a0] sm:$0xff]  ;;  %v67_v55 = vld [vmem:[%s1527_s0 + $0x1a8] sm:$0xff] }
  0x29   :  { %v72_v56 = vld [vmem:[%s1527_s0 + $0x1d0] sm:$0xff]  ;;  %v73_v57 = vld [vmem:[%s1527_s0 + $0x1d8] sm:$0xff]  ;;  %v70_v58 = vld [vmem:[%s1527_s0 + $0x1c0] sm:$0xff] }
  0x2a   :  { %441 = vmatmul.f32.gmra.mxu2 %v20_v4  ;;  %551 = vmatmul.f32.gmra.mxu3 %v21_v5  ;;  %v71_v59 = vld [vmem:[%s1527_s0 + $0x1c8] sm:$0xff]  ;;  %v76_v60 = vld [vmem:[%s1527_s0 + $0x1f0] sm:$0xff]  ;;  %v77_v61 = vld [vmem:[%s1527_s0 + $0x1f8] sm:$0xff] }
  0x2b   :  { %v74_v62 = vld [vmem:[%s1527_s0 + $0x1e0] sm:$0xff]  ;;  %v75_v63 = vld [vmem:[%s1527_s0 + $0x1e8] sm:$0xff]  ;;  %v80_v0 = vld [vmem:[%s1527_s0 + $0x210] sm:$0xff] }
  0x2c   :  { %221 = vmatmul.f32.gmra.mxu0 %v18_v6  ;;  %331 = vmatmul.f32.gmra.mxu1 %v19_v7  ;;  %v81_v1 = vld [vmem:[%s1527_s0 + $0x218] sm:$0xff]  ;;  %v78_v4 = vld [vmem:[%s1527_s0 + $0x200] sm:$0xff]  ;;  %v79_v5 = vld [vmem:[%s1527_s0 + $0x208] sm:$0xff] }
  0x32   :  { %444 = vmatmul.f32.gmra.mxu2 %v24_v8  ;;  %554 = vmatmul.f32.gmra.mxu3 %v25_v9 }
  0x34   :  { %224 = vmatmul.f32.gmra.mxu0 %v22_v10  ;;  %334 = vmatmul.f32.gmra.mxu1 %v23_v11  ;;  %v84_v10 = vld [vmem:[%s1527_s0 + $0x230] sm:$0xff]  ;;  %v85_v11 = vld [vmem:[%s1527_s0 + $0x238] sm:$0xff] }
  0x3a   :  { %447 = vmatmul.f32.gmra.mxu2 %v28_v12  ;;  %557 = vmatmul.f32.gmra.mxu3 %v29_v13 }
  0x3c   :  { %227 = vmatmul.f32.gmra.mxu0 %v26_v14  ;;  %337 = vmatmul.f32.gmra.mxu1 %v27_v15  ;;  %v82_v15 = vld [vmem:[%s1527_s0 + $0x220] sm:$0xff] }
  0x42   :  { %450 = vmatmul.f32.gmra.mxu2 %v32_v16  ;;  %560 = vmatmul.f32.gmra.mxu3 %v33_v17  ;;  %v83_v16 = vld [vmem:[%s1527_s0 + $0x228] sm:$0xff] }
  0x44   :  { %230 = vmatmul.f32.gmra.mxu0 %v30_v18  ;;  %340 = vmatmul.f32.gmra.mxu1 %v31_v19 }
  0x4a   :  { %453 = vmatmul.f32.gmra.mxu2 %v36_v20  ;;  %563 = vmatmul.f32.gmra.mxu3 %v37_v21  ;;  %v88_v21 = vld [vmem:[%s1527_s0 + $0x250] sm:$0xff] }
  0x4c   :  { %233 = vmatmul.f32.gmra.mxu0 %v34_v22  ;;  %343 = vmatmul.f32.gmra.mxu1 %v35_v23  ;;  %v89_v22 = vld [vmem:[%s1527_s0 + $0x258] sm:$0xff] }
  0x52   :  { %456 = vmatmul.f32.gmra.mxu2 %v40_v24  ;;  %566 = vmatmul.f32.gmra.mxu3 %v41_v25 }
  0x54   :  { %236 = vmatmul.f32.gmra.mxu0 %v38_v26  ;;  %346 = vmatmul.f32.gmra.mxu1 %v39_v27  ;;  %v86_v27 = vld [vmem:[%s1527_s0 + $0x240] sm:$0xff] }
  0x5a   :  { %459 = vmatmul.f32.gmra.mxu2 %v44_v28  ;;  %569 = vmatmul.f32.gmra.mxu3 %v45_v29  ;;  %v87_v28 = vld [vmem:[%s1527_s0 + $0x248] sm:$0xff] }
  0x5c   :  { %239 = vmatmul.f32.gmra.mxu0 %v42_v30  ;;  %349 = vmatmul.f32.gmra.mxu1 %v43_v31 }
  0x62   :  { %462 = vmatmul.f32.gmra.mxu2 %v48_v32  ;;  %572 = vmatmul.f32.gmra.mxu3 %v49_v33 }
  0x64   :  { %242 = vmatmul.f32.gmra.mxu0 %v46_v34  ;;  %352 = vmatmul.f32.gmra.mxu1 %v47_v35 }
  0x6a   :  { %465 = vmatmul.f32.gmra.mxu2 %v52_v36  ;;  %575 = vmatmul.f32.gmra.mxu3 %v53_v37  ;;  %v92_v36 = vld [vmem:[%s1527_s0 + $0x270] sm:$0xff]  ;;  %v93_v37 = vld [vmem:[%s1527_s0 + $0x278] sm:$0xff] }
  0x6c   :  { %245 = vmatmul.f32.gmra.mxu0 %v50_v38  ;;  %355 = vmatmul.f32.gmra.mxu1 %v51_v39 }
  0x72   :  { %468 = vmatmul.f32.gmra.mxu2 %v56_v40  ;;  %578 = vmatmul.f32.gmra.mxu3 %v57_v41  ;;  %v90_v41 = vld [vmem:[%s1527_s0 + $0x260] sm:$0xff] }
  0x74   :  { %248 = vmatmul.f32.gmra.mxu0 %v54_v42  ;;  %358 = vmatmul.f32.gmra.mxu1 %v55_v43  ;;  %v91_v42 = vld [vmem:[%s1527_s0 + $0x268] sm:$0xff] }
  0x7a   :  { %471 = vmatmul.f32.gmra.mxu2 %v60_v44  ;;  %581 = vmatmul.f32.gmra.mxu3 %v61_v45 }
  0x7c   :  { %251 = vmatmul.f32.gmra.mxu0 %v58_v46  ;;  %361 = vmatmul.f32.gmra.mxu1 %v59_v47 }
  0x82   :  { %474 = vmatmul.f32.gmra.mxu2 %v64_v48  ;;  %584 = vmatmul.f32.gmra.mxu3 %v65_v49 }
  0x84   :  { %254 = vmatmul.f32.gmra.mxu0 %v62_v50  ;;  %364 = vmatmul.f32.gmra.mxu1 %v63_v51  ;;  %v96_v50 = vld [vmem:[%s1527_s0 + $0x290] sm:$0xff]  ;;  %v97_v51 = vld [vmem:[%s1527_s0 + $0x298] sm:$0xff] }
  0x8a   :  { %477 = vmatmul.f32.gmra.mxu2 %v68_v52  ;;  %587 = vmatmul.f32.gmra.mxu3 %v69_v53 }
  0x8c   :  { %257 = vmatmul.f32.gmra.mxu0 %v66_v54  ;;  %367 = vmatmul.f32.gmra.mxu1 %v67_v55  ;;  %v94_v55 = vld [vmem:[%s1527_s0 + $0x280] sm:$0xff] }
  0x92   :  { %480 = vmatmul.f32.gmra.mxu2 %v72_v56  ;;  %590 = vmatmul.f32.gmra.mxu3 %v73_v57  ;;  %v95_v56 = vld [vmem:[%s1527_s0 + $0x288] sm:$0xff] }
  0x94   :  { %260 = vmatmul.f32.gmra.mxu0 %v70_v58  ;;  %370 = vmatmul.f32.gmra.mxu1 %v71_v59 }
  0x9a   :  { %483 = vmatmul.f32.gmra.mxu2 %v76_v60  ;;  %593 = vmatmul.f32.gmra.mxu3 %v77_v61 }
  0x9c   :  { %263 = vmatmul.f32.gmra.mxu0 %v74_v62  ;;  %373 = vmatmul.f32.gmra.mxu1 %v75_v63 }
  0xa1   :  { %v219_v2 = vpop.f32.mrf.mxu0  ;;  %v329_v3 = vpop.f32.mrf.mxu1 }
  0xa2   :  { %486 = vmatmul.f32.gmra.mxu2 %v80_v0  ;;  %v330_v6 = vadd.f32 %v329_v3, %v219_v2  ;;  %596 = vmatmul.f32.gmra.mxu3 %v81_v1  ;;  %v100_v0 = vld [vmem:[%s1527_s0 + $0x2b0] sm:$0xff]  ;;  %v101_v1 = vld [vmem:[%s1527_s0 + $0x2b8] sm:$0xff] }
  0xa4   :  { %266 = vmatmul.f32.gmra.mxu0 %v78_v4  ;;  %376 = vmatmul.f32.gmra.mxu1 %v79_v5  ;;  %v98_v5 = vld [vmem:[%s1527_s0 + $0x2a0] sm:$0xff] }
  0xa5   :  { %v439_v7 = vpop.f32.mrf.mxu2  ;;  %v549_v8 = vpop.f32.mrf.mxu3 }
  0xa6   :  { %v440_v9 = vadd.f32 %v439_v7, %v330_v6  ;;  %v99_v6 = vld [vmem:[%s1527_s0 + $0x2a8] sm:$0xff] }
  0xa8   :  { %v550_v12 = vadd.f32 %v549_v8, %v440_v9 }
  0xa9   :  { %v222_v13 = vpop.f32.mrf.mxu0  ;;  %v332_v14 = vpop.f32.mrf.mxu1 }
  0xaa   :  { %642 = vst [vmem:[%s1528_s2] sm:$0xff] %v550_v12  ;;  %489 = vmatmul.f32.gmra.mxu2 %v84_v10  ;;  %v333_v17 = vadd.f32 %v332_v14, %v222_v13  ;;  %599 = vmatmul.f32.gmra.mxu3 %v85_v11  ;;  %v719_v24 = vmul.f32 %v550_v12, %v550_v12  ;;  %v104_v14 = vld [vmem:[%s1527_s0 + $0x2d0] sm:$0xff] }
  0xac   :  { %269 = vmatmul.f32.gmra.mxu0 %v82_v15  ;;  %379 = vmatmul.f32.gmra.mxu1 %v83_v16  ;;  %v105_v15 = vld [vmem:[%s1527_s0 + $0x2d8] sm:$0xff] }
  0xad   :  { %v442_v18 = vpop.f32.mrf.mxu2  ;;  %v552_v19 = vpop.f32.mrf.mxu3 }
  0xae   :  { %v443_v20 = vadd.f32 %v442_v18, %v333_v17 }
  0xb0   :  { %v553_v23 = vadd.f32 %v552_v19, %v443_v20  ;;  %v102_v19 = vld [vmem:[%s1527_s0 + $0x2c0] sm:$0xff]  ;;  %v103_v20 = vld [vmem:[%s1527_s0 + $0x2c8] sm:$0xff] }
  0xb1   :  { %v225_v25 = vpop.f32.mrf.mxu0  ;;  %v335_v26 = vpop.f32.mrf.mxu1 }
  0xb2   :  { %643 = vst [vmem:[%s1528_s2 + $0x8] sm:$0xff] %v553_v23  ;;  %v680_v29 = vadd.f32 %v553_v23, %v550_v12  ;;  %v720_v30 = vmul.f32 %v553_v23, %v553_v23  ;;  %492 = vmatmul.f32.gmra.mxu2 %v88_v21  ;;  %v336_v31 = vadd.f32 %v335_v26, %v225_v25 }
  0xb3   :  { %602 = vmatmul.f32.gmra.mxu3 %v89_v22 }
  0xb4   :  { %v750_v32 = vadd.f32 %v720_v30, %v719_v24  ;;  %272 = vmatmul.f32.gmra.mxu0 %v86_v27  ;;  %382 = vmatmul.f32.gmra.mxu1 %v87_v28  ;;  %v108_v28 = vld [vmem:[%s1527_s0 + $0x2f0] sm:$0xff] }
  0xb5   :  { %v445_v33 = vpop.f32.mrf.mxu2  ;;  %v555_v34 = vpop.f32.mrf.mxu3 }
  0xb6   :  { %v446_v35 = vadd.f32 %v445_v33, %v336_v31  ;;  %v106_v33 = vld [vmem:[%s1527_s0 + $0x2e0] sm:$0xff] }
  0xb8   :  { %v556_v38 = vadd.f32 %v555_v34, %v446_v35  ;;  %v107_v34 = vld [vmem:[%s1527_s0 + $0x2e8] sm:$0xff] }
  0xb9   :  { %v228_v39 = vpop.f32.mrf.mxu0  ;;  %v338_v40 = vpop.f32.mrf.mxu1 }
  0xba   :  { %644 = vst [vmem:[%s1528_s2 + $0x10] sm:$0xff] %v556_v38  ;;  %v681_v43 = vadd.f32 %v680_v29, %v556_v38  ;;  %v721_v44 = vmul.f32 %v556_v38, %v556_v38  ;;  %495 = vmatmul.f32.gmra.mxu2 %v92_v36  ;;  %v339_v45 = vadd.f32 %v338_v40, %v228_v39  ;;  %v109_v29 = vld [vmem:[%s1527_s0 + $0x2f8] sm:$0xff] }
  0xbb   :  { %605 = vmatmul.f32.gmra.mxu3 %v93_v37 }
  0xbc   :  { %v751_v46 = vadd.f32 %v750_v32, %v721_v44  ;;  %275 = vmatmul.f32.gmra.mxu0 %v90_v41  ;;  %385 = vmatmul.f32.gmra.mxu1 %v91_v42  ;;  %v112_v42 = vld [vmem:[%s1527_s0 + $0x310] sm:$0xff] }
  0xbd   :  { %v448_v47 = vpop.f32.mrf.mxu2  ;;  %v558_v48 = vpop.f32.mrf.mxu3 }
  0xbe   :  { %v449_v49 = vadd.f32 %v448_v47, %v339_v45  ;;  %v110_v47 = vld [vmem:[%s1527_s0 + $0x300] sm:$0xff] }
  0xc0   :  { %v559_v52 = vadd.f32 %v558_v48, %v449_v49  ;;  %v111_v48 = vld [vmem:[%s1527_s0 + $0x308] sm:$0xff] }
  0xc1   :  { %v231_v53 = vpop.f32.mrf.mxu0  ;;  %v341_v54 = vpop.f32.mrf.mxu1 }
  0xc2   :  { %645 = vst [vmem:[%s1528_s2 + $0x18] sm:$0xff] %v559_v52  ;;  %v682_v57 = vadd.f32 %v681_v43, %v559_v52  ;;  %v722_v58 = vmul.f32 %v559_v52, %v559_v52  ;;  %498 = vmatmul.f32.gmra.mxu2 %v96_v50  ;;  %v342_v59 = vadd.f32 %v341_v54, %v231_v53  ;;  %v113_v43 = vld [vmem:[%s1527_s0 + $0x318] sm:$0xff] }
  0xc3   :  { %608 = vmatmul.f32.gmra.mxu3 %v97_v51 }
  0xc4   :  { %v752_v60 = vadd.f32 %v751_v46, %v722_v58  ;;  %278 = vmatmul.f32.gmra.mxu0 %v94_v55  ;;  %388 = vmatmul.f32.gmra.mxu1 %v95_v56  ;;  %v116_v56 = vld [vmem:[%s1527_s0 + $0x330] sm:$0xff] }
  0xc5   :  { %v451_v61 = vpop.f32.mrf.mxu2  ;;  %v561_v62 = vpop.f32.mrf.mxu3 }
  0xc6   :  { %v452_v63 = vadd.f32 %v451_v61, %v342_v59  ;;  %v114_v61 = vld [vmem:[%s1527_s0 + $0x320] sm:$0xff] }
  0xc8   :  { %v562_v2 = vadd.f32 %v561_v62, %v452_v63  ;;  %v115_v62 = vld [vmem:[%s1527_s0 + $0x328] sm:$0xff] }
  0xc9   :  { %v234_v3 = vpop.f32.mrf.mxu0  ;;  %v344_v4 = vpop.f32.mrf.mxu1 }
  0xca   :  { %646 = vst [vmem:[%s1528_s2 + $0x20] sm:$0xff] %v562_v2  ;;  %v683_v7 = vadd.f32 %v682_v57, %v562_v2  ;;  %v723_v8 = vmul.f32 %v562_v2, %v562_v2  ;;  %501 = vmatmul.f32.gmra.mxu2 %v100_v0  ;;  %v345_v9 = vadd.f32 %v344_v4, %v234_v3  ;;  %v117_v57 = vld [vmem:[%s1527_s0 + $0x338] sm:$0xff] }
  0xcb   :  { %611 = vmatmul.f32.gmra.mxu3 %v101_v1 }
  0xcc   :  { %v753_v10 = vadd.f32 %v752_v60, %v723_v8  ;;  %281 = vmatmul.f32.gmra.mxu0 %v98_v5  ;;  %391 = vmatmul.f32.gmra.mxu1 %v99_v6  ;;  %v120_v6 = vld [vmem:[%s1527_s0 + $0x350] sm:$0xff] }
  0xcd   :  { %v454_v11 = vpop.f32.mrf.mxu2  ;;  %v564_v12 = vpop.f32.mrf.mxu3 }
  0xce   :  { %v455_v13 = vadd.f32 %v454_v11, %v345_v9  ;;  %v118_v11 = vld [vmem:[%s1527_s0 + $0x340] sm:$0xff] }
  0xd0   :  { %v565_v16 = vadd.f32 %v564_v12, %v455_v13  ;;  %v119_v12 = vld [vmem:[%s1527_s0 + $0x348] sm:$0xff] }
  0xd1   :  { %v237_v17 = vpop.f32.mrf.mxu0  ;;  %v347_v18 = vpop.f32.mrf.mxu1 }
  0xd2   :  { %647 = vst [vmem:[%s1528_s2 + $0x28] sm:$0xff] %v565_v16  ;;  %v684_v21 = vadd.f32 %v683_v7, %v565_v16  ;;  %v724_v22 = vmul.f32 %v565_v16, %v565_v16  ;;  %504 = vmatmul.f32.gmra.mxu2 %v104_v14  ;;  %v348_v23 = vadd.f32 %v347_v18, %v237_v17  ;;  %v121_v7 = vld [vmem:[%s1527_s0 + $0x358] sm:$0xff] }
  0xd3   :  { %614 = vmatmul.f32.gmra.mxu3 %v105_v15 }
  0xd4   :  { %v754_v24 = vadd.f32 %v753_v10, %v724_v22  ;;  %284 = vmatmul.f32.gmra.mxu0 %v102_v19  ;;  %394 = vmatmul.f32.gmra.mxu1 %v103_v20  ;;  %v124_v20 = vld [vmem:[%s1527_s0 + $0x370] sm:$0xff] }
  0xd5   :  { %v457_v25 = vpop.f32.mrf.mxu2  ;;  %v567_v26 = vpop.f32.mrf.mxu3 }
  0xd6   :  { %v458_v27 = vadd.f32 %v457_v25, %v348_v23  ;;  %v122_v25 = vld [vmem:[%s1527_s0 + $0x360] sm:$0xff] }
  0xd8   :  { %v568_v30 = vadd.f32 %v567_v26, %v458_v27  ;;  %v123_v26 = vld [vmem:[%s1527_s0 + $0x368] sm:$0xff] }
  0xd9   :  { %v240_v31 = vpop.f32.mrf.mxu0  ;;  %v350_v32 = vpop.f32.mrf.mxu1 }
  0xda   :  { %648 = vst [vmem:[%s1528_s2 + $0x30] sm:$0xff] %v568_v30  ;;  %v685_v35 = vadd.f32 %v684_v21, %v568_v30  ;;  %v725_v36 = vmul.f32 %v568_v30, %v568_v30  ;;  %507 = vmatmul.f32.gmra.mxu2 %v108_v28  ;;  %v351_v37 = vadd.f32 %v350_v32, %v240_v31  ;;  %v125_v21 = vld [vmem:[%s1527_s0 + $0x378] sm:$0xff] }
  0xdb   :  { %617 = vmatmul.f32.gmra.mxu3 %v109_v29 }
  0xdc   :  { %v755_v38 = vadd.f32 %v754_v24, %v725_v36  ;;  %287 = vmatmul.f32.gmra.mxu0 %v106_v33  ;;  %397 = vmatmul.f32.gmra.mxu1 %v107_v34  ;;  %v128_v34 = vld [vmem:[%s1527_s0 + $0x390] sm:$0xff] }
  0xdd   :  { %v460_v39 = vpop.f32.mrf.mxu2  ;;  %v570_v40 = vpop.f32.mrf.mxu3 }
  0xde   :  { %v461_v41 = vadd.f32 %v460_v39, %v351_v37  ;;  %v126_v39 = vld [vmem:[%s1527_s0 + $0x380] sm:$0xff] }
  0xe0   :  { %v571_v44 = vadd.f32 %v570_v40, %v461_v41  ;;  %v127_v40 = vld [vmem:[%s1527_s0 + $0x388] sm:$0xff] }
  0xe1   :  { %v243_v45 = vpop.f32.mrf.mxu0  ;;  %v353_v46 = vpop.f32.mrf.mxu1 }
  0xe2   :  { %649 = vst [vmem:[%s1528_s2 + $0x38] sm:$0xff] %v571_v44  ;;  %v686_v49 = vadd.f32 %v685_v35, %v571_v44  ;;  %v726_v50 = vmul.f32 %v571_v44, %v571_v44  ;;  %510 = vmatmul.f32.gmra.mxu2 %v112_v42  ;;  %v354_v51 = vadd.f32 %v353_v46, %v243_v45  ;;  %v129_v35 = vld [vmem:[%s1527_s0 + $0x398] sm:$0xff] }
  0xe3   :  { %620 = vmatmul.f32.gmra.mxu3 %v113_v43 }
  0xe4   :  { %v756_v52 = vadd.f32 %v755_v38, %v726_v50  ;;  %290 = vmatmul.f32.gmra.mxu0 %v110_v47  ;;  %400 = vmatmul.f32.gmra.mxu1 %v111_v48  ;;  %v132_v48 = vld [vmem:[%s1527_s0 + $0x3b0] sm:$0xff] }
  0xe5   :  { %v463_v53 = vpop.f32.mrf.mxu2  ;;  %v573_v54 = vpop.f32.mrf.mxu3 }
  0xe6   :  { %v464_v55 = vadd.f32 %v463_v53, %v354_v51  ;;  %v130_v53 = vld [vmem:[%s1527_s0 + $0x3a0] sm:$0xff] }
  0xe8   :  { %v574_v58 = vadd.f32 %v573_v54, %v464_v55  ;;  %v131_v54 = vld [vmem:[%s1527_s0 + $0x3a8] sm:$0xff] }
  0xe9   :  { %v246_v59 = vpop.f32.mrf.mxu0  ;;  %v356_v60 = vpop.f32.mrf.mxu1 }
  0xea   :  { %650 = vst [vmem:[%s1528_s2 + $0x40] sm:$0xff] %v574_v58  ;;  %v687_v63 = vadd.f32 %v686_v49, %v574_v58  ;;  %v727_v0 = vmul.f32 %v574_v58, %v574_v58  ;;  %513 = vmatmul.f32.gmra.mxu2 %v116_v56  ;;  %v357_v1 = vadd.f32 %v356_v60, %v246_v59  ;;  %v133_v49 = vld [vmem:[%s1527_s0 + $0x3b8] sm:$0xff] }
  0xeb   :  { %623 = vmatmul.f32.gmra.mxu3 %v117_v57 }
  0xec   :  { %v757_v2 = vadd.f32 %v756_v52, %v727_v0  ;;  %293 = vmatmul.f32.gmra.mxu0 %v114_v61  ;;  %403 = vmatmul.f32.gmra.mxu1 %v115_v62  ;;  %v136_v62 = vld [vmem:[%s1527_s0 + $0x3d0] sm:$0xff] }
  0xed   :  { %v466_v3 = vpop.f32.mrf.mxu2  ;;  %v576_v4 = vpop.f32.mrf.mxu3 }
  0xee   :  { %v467_v5 = vadd.f32 %v466_v3, %v357_v1  ;;  %v134_v3 = vld [vmem:[%s1527_s0 + $0x3c0] sm:$0xff] }
  0xf0   :  { %v577_v8 = vadd.f32 %v576_v4, %v467_v5  ;;  %v135_v4 = vld [vmem:[%s1527_s0 + $0x3c8] sm:$0xff] }
  0xf1   :  { %v249_v9 = vpop.f32.mrf.mxu0  ;;  %v359_v10 = vpop.f32.mrf.mxu1 }
  0xf2   :  { %651 = vst [vmem:[%s1528_s2 + $0x48] sm:$0xff] %v577_v8  ;;  %v688_v13 = vadd.f32 %v687_v63, %v577_v8  ;;  %v728_v14 = vmul.f32 %v577_v8, %v577_v8  ;;  %516 = vmatmul.f32.gmra.mxu2 %v120_v6  ;;  %v360_v15 = vadd.f32 %v359_v10, %v249_v9  ;;  %v137_v63 = vld [vmem:[%s1527_s0 + $0x3d8] sm:$0xff] }
  0xf3   :  { %626 = vmatmul.f32.gmra.mxu3 %v121_v7 }
  0xf4   :  { %v758_v16 = vadd.f32 %v757_v2, %v728_v14  ;;  %296 = vmatmul.f32.gmra.mxu0 %v118_v11  ;;  %406 = vmatmul.f32.gmra.mxu1 %v119_v12 }
  0xf5   :  { %v469_v17 = vpop.f32.mrf.mxu2  ;;  %v579_v18 = vpop.f32.mrf.mxu3 }
  0xf6   :  { %v470_v19 = vadd.f32 %v469_v17, %v360_v15 }
  0xf8   :  { %v580_v22 = vadd.f32 %v579_v18, %v470_v19 }
  0xf9   :  { %v252_v23 = vpop.f32.mrf.mxu0  ;;  %v362_v24 = vpop.f32.mrf.mxu1 }
  0xfa   :  { %652 = vst [vmem:[%s1528_s2 + $0x50] sm:$0xff] %v580_v22  ;;  %v689_v27 = vadd.f32 %v688_v13, %v580_v22  ;;  %v729_v28 = vmul.f32 %v580_v22, %v580_v22  ;;  %519 = vmatmul.f32.gmra.mxu2 %v124_v20  ;;  %v363_v29 = vadd.f32 %v362_v24, %v252_v23 }
  0xfb   :  { %629 = vmatmul.f32.gmra.mxu3 %v125_v21 }
  0xfc   :  { %v759_v30 = vadd.f32 %v758_v16, %v729_v28  ;;  %299 = vmatmul.f32.gmra.mxu0 %v122_v25  ;;  %409 = vmatmul.f32.gmra.mxu1 %v123_v26 }
  0xfd   :  { %v472_v31 = vpop.f32.mrf.mxu2  ;;  %v582_v32 = vpop.f32.mrf.mxu3 }
  0xfe   :  { %v473_v33 = vadd.f32 %v472_v31, %v363_v29 }
 0x100   :  { %v583_v36 = vadd.f32 %v582_v32, %v473_v33 }
 0x101   :  { %v255_v37 = vpop.f32.mrf.mxu0  ;;  %v365_v38 = vpop.f32.mrf.mxu1 }
 0x102   :  { %653 = vst [vmem:[%s1528_s2 + $0x58] sm:$0xff] %v583_v36  ;;  %v690_v41 = vadd.f32 %v689_v27, %v583_v36  ;;  %v730_v42 = vmul.f32 %v583_v36, %v583_v36  ;;  %522 = vmatmul.f32.gmra.mxu2 %v128_v34  ;;  %v366_v43 = vadd.f32 %v365_v38, %v255_v37 }
 0x103   :  { %632 = vmatmul.f32.gmra.mxu3 %v129_v35 }
 0x104   :  { %v760_v44 = vadd.f32 %v759_v30, %v730_v42  ;;  %302 = vmatmul.f32.gmra.mxu0 %v126_v39  ;;  %412 = vmatmul.f32.gmra.mxu1 %v127_v40 }
 0x105   :  { %v475_v45 = vpop.f32.mrf.mxu2  ;;  %v585_v46 = vpop.f32.mrf.mxu3 }
 0x106   :  { %v476_v47 = vadd.f32 %v475_v45, %v366_v43 }
 0x108   :  { %v586_v50 = vadd.f32 %v585_v46, %v476_v47 }
 0x109   :  { %v258_v51 = vpop.f32.mrf.mxu0  ;;  %v368_v52 = vpop.f32.mrf.mxu1 }
 0x10a   :  { %654 = vst [vmem:[%s1528_s2 + $0x60] sm:$0xff] %v586_v50  ;;  %v691_v55 = vadd.f32 %v690_v41, %v586_v50  ;;  %v731_v56 = vmul.f32 %v586_v50, %v586_v50  ;;  %525 = vmatmul.f32.gmra.mxu2 %v132_v48  ;;  %v369_v57 = vadd.f32 %v368_v52, %v258_v51 }
 0x10b   :  { %635 = vmatmul.f32.gmra.mxu3 %v133_v49 }
 0x10c   :  { %v761_v58 = vadd.f32 %v760_v44, %v731_v56  ;;  %305 = vmatmul.f32.gmra.mxu0 %v130_v53  ;;  %415 = vmatmul.f32.gmra.mxu1 %v131_v54 }
 0x10d   :  { %v478_v59 = vpop.f32.mrf.mxu2  ;;  %v588_v60 = vpop.f32.mrf.mxu3 }
 0x10e   :  { %v479_v61 = vadd.f32 %v478_v59, %v369_v57 }
 0x110   :  { %v589_v0 = vadd.f32 %v588_v60, %v479_v61 }
 0x111   :  { %v261_v1 = vpop.f32.mrf.mxu0  ;;  %v371_v2 = vpop.f32.mrf.mxu1 }
 0x112   :  { %655 = vst [vmem:[%s1528_s2 + $0x68] sm:$0xff] %v589_v0  ;;  %v692_v5 = vadd.f32 %v691_v55, %v589_v0  ;;  %v732_v6 = vmul.f32 %v589_v0, %v589_v0  ;;  %528 = vmatmul.f32.gmra.mxu2 %v136_v62  ;;  %v372_v7 = vadd.f32 %v371_v2, %v261_v1 }
 0x113   :  { %638 = vmatmul.f32.gmra.mxu3 %v137_v63 }
 0x114   :  { %v762_v8 = vadd.f32 %v761_v58, %v732_v6  ;;  %308 = vmatmul.f32.gmra.mxu0 %v134_v3  ;;  %418 = vmatmul.f32.gmra.mxu1 %v135_v4 }
 0x115   :  { %v481_v9 = vpop.f32.mrf.mxu2  ;;  %v591_v10 = vpop.f32.mrf.mxu3 }
 0x116   :  { %v482_v11 = vadd.f32 %v481_v9, %v372_v7 }
 0x118   :  { %v592_v12 = vadd.f32 %v591_v10, %v482_v11 }
 0x119   :  { %v264_v13 = vpop.f32.mrf.mxu0  ;;  %v374_v14 = vpop.f32.mrf.mxu1 }
 0x11a   :  { %656 = vst [vmem:[%s1528_s2 + $0x70] sm:$0xff] %v592_v12  ;;  %v693_v15 = vadd.f32 %v692_v5, %v592_v12  ;;  %v733_v16 = vmul.f32 %v592_v12, %v592_v12  ;;  %v375_v17 = vadd.f32 %v374_v14, %v264_v13 }
 0x11c   :  { %v763_v18 = vadd.f32 %v762_v8, %v733_v16 }
 0x11d   :  { %v484_v19 = vpop.f32.mrf.mxu2  ;;  %v594_v20 = vpop.f32.mrf.mxu3 }
 0x11e   :  { %v485_v21 = vadd.f32 %v484_v19, %v375_v17 }
 0x120   :  { %v595_v22 = vadd.f32 %v594_v20, %v485_v21 }
 0x121   :  { %v267_v23 = vpop.f32.mrf.mxu0  ;;  %v377_v24 = vpop.f32.mrf.mxu1 }
 0x122   :  { %657 = vst [vmem:[%s1528_s2 + $0x78] sm:$0xff] %v595_v22  ;;  %v694_v25 = vadd.f32 %v693_v15, %v595_v22  ;;  %v734_v26 = vmul.f32 %v595_v22, %v595_v22  ;;  %v378_v27 = vadd.f32 %v377_v24, %v267_v23 }
 0x124   :  { %v764_v28 = vadd.f32 %v763_v18, %v734_v26 }
 0x125   :  { %v487_v29 = vpop.f32.mrf.mxu2  ;;  %v597_v30 = vpop.f32.mrf.mxu3 }
 0x126   :  { %v488_v31 = vadd.f32 %v487_v29, %v378_v27 }
 0x128   :  { %v598_v32 = vadd.f32 %v597_v30, %v488_v31 }
 0x129   :  { %v270_v33 = vpop.f32.mrf.mxu0  ;;  %v380_v34 = vpop.f32.mrf.mxu1 }
 0x12a   :  { %658 = vst [vmem:[%s1528_s2 + $0x80] sm:$0xff] %v598_v32  ;;  %v695_v35 = vadd.f32 %v694_v25, %v598_v32  ;;  %v735_v36 = vmul.f32 %v598_v32, %v598_v32  ;;  %v381_v37 = vadd.f32 %v380_v34, %v270_v33 }
 0x12c   :  { %v765_v38 = vadd.f32 %v764_v28, %v735_v36 }
 0x12d   :  { %v490_v39 = vpop.f32.mrf.mxu2  ;;  %v600_v40 = vpop.f32.mrf.mxu3 }
 0x12e   :  { %v491_v41 = vadd.f32 %v490_v39, %v381_v37 }
 0x130   :  { %v601_v42 = vadd.f32 %v600_v40, %v491_v41 }
 0x131   :  { %v273_v43 = vpop.f32.mrf.mxu0  ;;  %v383_v44 = vpop.f32.mrf.mxu1 }
 0x132   :  { %659 = vst [vmem:[%s1528_s2 + $0x88] sm:$0xff] %v601_v42  ;;  %v696_v45 = vadd.f32 %v695_v35, %v601_v42  ;;  %v736_v46 = vmul.f32 %v601_v42, %v601_v42  ;;  %v384_v47 = vadd.f32 %v383_v44, %v273_v43 }
 0x134   :  { %v766_v48 = vadd.f32 %v765_v38, %v736_v46 }
 0x135   :  { %v493_v49 = vpop.f32.mrf.mxu2 }
 0x136   :  { %v603_v50 = vpop.f32.mrf.mxu3  ;;  %v494_v51 = vadd.f32 %v493_v49, %v384_v47 }
 0x138   :  { %v604_v52 = vadd.f32 %v603_v50, %v494_v51 }
 0x139   :  { %v276_v53 = vpop.f32.mrf.mxu0  ;;  %v386_v54 = vpop.f32.mrf.mxu1 }
 0x13a   :  { %660 = vst [vmem:[%s1528_s2 + $0x90] sm:$0xff] %v604_v52  ;;  %v697_v55 = vadd.f32 %v696_v45, %v604_v52  ;;  %v737_v56 = vmul.f32 %v604_v52, %v604_v52  ;;  %v387_v57 = vadd.f32 %v386_v54, %v276_v53  ;;  %v801_v54 = vmov 0.0  }
 0x13b   :  { %677 = vst [vmem:[%s1529_s3] sm:$0x1] %v801_v54 }
 0x13c   :  { %v767_v58 = vadd.f32 %v766_v48, %v737_v56  ;;  %678 = vst [vmem:[%s1530_s4] sm:$0x1] %v801_v54 }
 0x13d   :  { %v496_v59 = vpop.f32.mrf.mxu2 }
 0x13e   :  { %v606_v60 = vpop.f32.mrf.mxu3  ;;  %v497_v61 = vadd.f32 %v496_v59, %v387_v57 }
 0x140   :  { %v607_v62 = vadd.f32 %v606_v60, %v497_v61 }
 0x141   :  { %v279_v63 = vpop.f32.mrf.mxu0  ;;  %v389_v0 = vpop.f32.mrf.mxu1 }
 0x142   :  { %661 = vst [vmem:[%s1528_s2 + $0x98] sm:$0xff] %v607_v62  ;;  %v1451_v1 = vadd.f32 %v697_v55, %v607_v62  ;;  %v738_v2 = vmul.f32 %v607_v62, %v607_v62  ;;  %v390_v3 = vadd.f32 %v389_v0, %v279_v63 }
 0x144   :  { %v1453_v4 = vadd.f32 %v767_v58, %v738_v2 }
 0x145   :  { %v499_v5 = vpop.f32.mrf.mxu2 }
 0x146   :  { %v609_v6 = vpop.f32.mrf.mxu3  ;;  %v500_v7 = vadd.f32 %v499_v5, %v390_v3 }
 0x148   :  { %v1455_v8 = vadd.f32 %v609_v6, %v500_v7 }
 0x149   :  { %v282_v9 = vpop.f32.mrf.mxu0  ;;  %v392_v10 = vpop.f32.mrf.mxu1 }
 0x14a   :  { %662 = vst [vmem:[%s1528_s2 + $0xa0] sm:$0xff] %v1455_v8  ;;  %v393_v11 = vadd.f32 %v392_v10, %v282_v9  ;;  %v739_v62 = vmul.f32 %v1455_v8, %v1455_v8  ;;  %v699_v2 = vadd.f32 %v1451_v1, %v1455_v8 }
 0x14c   :  { %v769_v6 = vadd.f32 %v1453_v4, %v739_v62 }
 0x14d   :  { %v502_v12 = vpop.f32.mrf.mxu2 }
 0x14e   :  { %v612_v13 = vpop.f32.mrf.mxu3  ;;  %v503_v14 = vadd.f32 %v502_v12, %v393_v11 }
 0x150   :  { %v1461_v15 = vadd.f32 %v612_v13, %v503_v14 }
 0x151   :  { %v285_v16 = vpop.f32.mrf.mxu0  ;;  %v395_v17 = vpop.f32.mrf.mxu1 }
 0x152   :  { %663 = vst [vmem:[%s1528_s2 + $0xa8] sm:$0xff] %v1461_v15  ;;  %v396_v18 = vadd.f32 %v395_v17, %v285_v16  ;;  %v740_v3 = vmul.f32 %v1461_v15, %v1461_v15  ;;  %v700_v7 = vadd.f32 %v699_v2, %v1461_v15 }
 0x154   :  { %v770_v13 = vadd.f32 %v769_v6, %v740_v3 }
 0x155   :  { %v505_v19 = vpop.f32.mrf.mxu2 }
 0x156   :  { %v615_v20 = vpop.f32.mrf.mxu3  ;;  %v506_v21 = vadd.f32 %v505_v19, %v396_v18 }
 0x158   :  { %v1467_v22 = vadd.f32 %v615_v20, %v506_v21 }
 0x159   :  { %v288_v23 = vpop.f32.mrf.mxu0  ;;  %v398_v24 = vpop.f32.mrf.mxu1 }
 0x15a   :  { %664 = vst [vmem:[%s1528_s2 + $0xb0] sm:$0xff] %v1467_v22  ;;  %v399_v25 = vadd.f32 %v398_v24, %v288_v23  ;;  %v741_v9 = vmul.f32 %v1467_v22, %v1467_v22  ;;  %v701_v14 = vadd.f32 %v700_v7, %v1467_v22 }
 0x15c   :  { %v771_v8 = vadd.f32 %v770_v13, %v741_v9 }
 0x15d   :  { %v508_v26 = vpop.f32.mrf.mxu2 }
 0x15e   :  { %v618_v27 = vpop.f32.mrf.mxu3  ;;  %v509_v28 = vadd.f32 %v508_v26, %v399_v25 }
 0x160   :  { %v619_v29 = vadd.f32 %v618_v27, %v509_v28 }
 0x161   :  { %v291_v30 = vpop.f32.mrf.mxu0  ;;  %v401_v31 = vpop.f32.mrf.mxu1 }
 0x162   :  { %665 = vst [vmem:[%s1528_s2 + $0xb8] sm:$0xff] %v619_v29  ;;  %v402_v32 = vadd.f32 %v401_v31, %v291_v30  ;;  %v742_v16 = vmul.f32 %v619_v29, %v619_v29  ;;  %v702_v17 = vadd.f32 %v701_v14, %v619_v29 }
 0x164   :  { %v772_v19 = vadd.f32 %v771_v8, %v742_v16 }
 0x165   :  { %v511_v33 = vpop.f32.mrf.mxu2 }
 0x166   :  { %v621_v34 = vpop.f32.mrf.mxu3  ;;  %v512_v35 = vadd.f32 %v511_v33, %v402_v32 }
 0x168   :  { %v622_v36 = vadd.f32 %v621_v34, %v512_v35 }
 0x169   :  { %v294_v37 = vpop.f32.mrf.mxu0  ;;  %v404_v38 = vpop.f32.mrf.mxu1 }
 0x16a   :  { %666 = vst [vmem:[%s1528_s2 + $0xc0] sm:$0xff] %v622_v36  ;;  %v405_v39 = vadd.f32 %v404_v38, %v294_v37  ;;  %v743_v4 = vmul.f32 %v622_v36, %v622_v36  ;;  %v703_v20 = vadd.f32 %v702_v17, %v622_v36 }
 0x16c   :  { %v773_v24 = vadd.f32 %v772_v19, %v743_v4 }
 0x16d   :  { %v514_v40 = vpop.f32.mrf.mxu2 }
 0x16e   :  { %v624_v41 = vpop.f32.mrf.mxu3  ;;  %v515_v42 = vadd.f32 %v514_v40, %v405_v39 }
 0x170   :  { %v625_v43 = vadd.f32 %v624_v41, %v515_v42 }
 0x171   :  { %v297_v44 = vpop.f32.mrf.mxu0  ;;  %v407_v45 = vpop.f32.mrf.mxu1 }
 0x172   :  { %667 = vst [vmem:[%s1528_s2 + $0xc8] sm:$0xff] %v625_v43  ;;  %v408_v46 = vadd.f32 %v407_v45, %v297_v44  ;;  %v744_v21 = vmul.f32 %v625_v43, %v625_v43  ;;  %v704_v25 = vadd.f32 %v703_v20, %v625_v43 }
 0x174   :  { %v774_v30 = vadd.f32 %v773_v24, %v744_v21 }
 0x175   :  { %v517_v47 = vpop.f32.mrf.mxu2 }
 0x176   :  { %v627_v48 = vpop.f32.mrf.mxu3  ;;  %v518_v49 = vadd.f32 %v517_v47, %v408_v46 }
 0x178   :  { %v628_v50 = vadd.f32 %v627_v48, %v518_v49 }
 0x179   :  { %v300_v51 = vpop.f32.mrf.mxu0  ;;  %v410_v52 = vpop.f32.mrf.mxu1 }
 0x17a   :  { %668 = vst [vmem:[%s1528_s2 + $0xd0] sm:$0xff] %v628_v50  ;;  %v411_v53 = vadd.f32 %v410_v52, %v300_v51  ;;  %v745_v26 = vmul.f32 %v628_v50, %v628_v50  ;;  %v705_v31 = vadd.f32 %v704_v25, %v628_v50 }
 0x17c   :  { %v775_v33 = vadd.f32 %v774_v30, %v745_v26 }
 0x17d   :  { %v520_v55 = vpop.f32.mrf.mxu2 }
 0x17e   :  { %v630_v56 = vpop.f32.mrf.mxu3  ;;  %v521_v57 = vadd.f32 %v520_v55, %v411_v53 }
 0x180   :  { %v631_v58 = vadd.f32 %v630_v56, %v521_v57 }
 0x181   :  { %v303_v59 = vpop.f32.mrf.mxu0  ;;  %v413_v60 = vpop.f32.mrf.mxu1 }
 0x182   :  { %669 = vst [vmem:[%s1528_s2 + $0xd8] sm:$0xff] %v631_v58  ;;  %v414_v61 = vadd.f32 %v413_v60, %v303_v59  ;;  %v746_v32 = vmul.f32 %v631_v58, %v631_v58  ;;  %v706_v34 = vadd.f32 %v705_v31, %v631_v58  ;;  %v679_v58 = vld [vmem:[%s1529_s3] sm:$0x1] }
 0x184   :  { %v776_v38 = vadd.f32 %v775_v33, %v746_v32 }
 0x185   :  { %v523_v63 = vpop.f32.mrf.mxu2 }
 0x186   :  { %v633_v0 = vpop.f32.mrf.mxu3  ;;  %v524_v5 = vadd.f32 %v523_v63, %v414_v61  ;;  %v718_v61 = vld [vmem:[%s1530_s4] sm:$0x1] }
 0x188   :  { %v634_v10 = vadd.f32 %v633_v0, %v524_v5 }
 0x189   :  { %v306_v11 = vpop.f32.mrf.mxu0  ;;  %v416_v12 = vpop.f32.mrf.mxu1 }
 0x18a   :  { %670 = vst [vmem:[%s1528_s2 + $0xe0] sm:$0xff] %v634_v10  ;;  %v417_v1 = vadd.f32 %v416_v12, %v306_v11  ;;  %v747_v35 = vmul.f32 %v634_v10, %v634_v10  ;;  %v707_v39 = vadd.f32 %v706_v34, %v634_v10 }
 0x18c   :  { %v777_v42 = vadd.f32 %v776_v38, %v747_v35 }
 0x18d   :  { %v526_v18 = vpop.f32.mrf.mxu2 }
 0x18e   :  { %v636_v15 = vpop.f32.mrf.mxu3  ;;  %v527_v23 = vadd.f32 %v526_v18, %v417_v1 }
 0x190   :  { %v637_v27 = vadd.f32 %v636_v15, %v527_v23 }
 0x191   :  { %v309_v22 = vpop.f32.mrf.mxu0  ;;  %v419_v28 = vpop.f32.mrf.mxu1 }
 0x192   :  { %671 = vst [vmem:[%s1528_s2 + $0xe8] sm:$0xff] %v637_v27  ;;  %v420_v29 = vadd.f32 %v419_v28, %v309_v22  ;;  %v748_v40 = vmul.f32 %v637_v27, %v637_v27  ;;  %v708_v43 = vadd.f32 %v707_v39, %v637_v27 }
 0x194   :  { %v778_v45 = vadd.f32 %v777_v42, %v748_v40 }
 0x195   :  { %v529_v36 = vpop.f32.mrf.mxu2 }
 0x196   :  { %v639_v37 = vpop.f32.mrf.mxu3  ;;  %v530_v41 = vadd.f32 %v529_v36, %v420_v29 }
 0x198   :  { %v640_v44 = vadd.f32 %v639_v37, %v530_v41 }
 0x19a   :  { %672 = vst [vmem:[%s1528_s2 + $0xf0] sm:$0xff] %v640_v44  ;;  %v709_v46 = vadd.f32 %v708_v43, %v640_v44  ;;  %v749_v47 = vmul.f32 %v640_v44, %v640_v44 }
 0x19c   :  { %v710_v48 = vrot.slane %v709_v46, 4  ;;  %v779_v49 = vadd.f32 %v778_v45, %v749_v47 }
 0x19e   :  { %v711_v50 = vadd.f32 %v710_v48, %v709_v46  ;;  %v780_v51 = vrot.slane %v779_v49, 4 }
 0x1a0   :  { %v712_v52 = vrot.slane %v711_v50, 2  ;;  %v781_v53 = vadd.f32 %v780_v51, %v779_v49 }
 0x1a2   :  { %v713_v54 = vadd.f32 %v712_v52, %v711_v50  ;;  %v782_v55 = vrot.slane %v781_v53, 2 }
 0x1a4   :  { %v714_v56 = vrot.slane %v713_v54, 1  ;;  %v783_v57 = vadd.f32 %v782_v55, %v781_v53 }
 0x1a6   :  { %v715_v59 = vadd.f32 %v714_v56, %v713_v54  ;;  %v784_v60 = vrot.slane %v783_v57, 1 }
 0x1a8   :  { %v716_v62 = vadd.f32 %v715_v59, %v679_v58  ;;  %v785_v63 = vadd.f32 %v784_v60, %v783_v57 }
 0x1aa   :  { %717 = vst [vmem:[%s1529_s3] sm:$0x1] %v716_v62  ;;  %v786_v0 = vadd.f32 %v785_v63, %v718_v61 }
 0x1ac   :  { %787 = vst [vmem:[%s1530_s4] sm:$0x1] %v786_v0 }

// kernel: _lambda_.15
= control target key start
LH: loop header
LB: loop body
LE: loop exit
PB: predicated region body
PF: predicated region fallthrough
CT: control target
= control target key end

     0   :  { %s2296_s1 = inlined_call_operand.vmem [shape: f32[1024,128], index: 1, kind: input, shape index: {}]   ;;  %s2297_s0 = inlined_call_operand.vmem [shape: f32[200,1024], index: 0, kind: input, shape index: {}]   ;;  %s2298_s2 = inlined_call_operand.vmem [shape: f32[1,128], index: 2, kind: input, shape index: {}]   ;;  %s2299_s3 = inlined_call_operand.vmem [shape: f32[200,128], index: 3, kind: output, shape index: {}]  }
   0x1   :  { %v229_v0 = vld [vmem:[%s2296_s1 + $0x78] sm:$0xff]  ;;  %v228_v2 = vld [vmem:[%s2296_s1 + $0x70] sm:$0xff]  ;;  %v227_v6 = vld [vmem:[%s2296_s1 + $0x68] sm:$0xff] }
   0x2   :  { %v261_v1 = vld [vmem:[%s2296_s1 + $0x178] sm:$0xff]  ;;  %346 = vmatpush.msra.mxu0 %v229_v0  ;;  %v260_v4 = vld [vmem:[%s2296_s1 + $0x170] sm:$0xff]  ;;  %v259_v8 = vld [vmem:[%s2296_s1 + $0x168] sm:$0xff] }
   0x3   :  { %530 = vmatpush.msra.mxu2 %v261_v1  ;;  %v245_v3 = vld [vmem:[%s2296_s1 + $0xf8] sm:$0xff]  ;;  %v244_v7 = vld [vmem:[%s2296_s1 + $0xf0] sm:$0xff]  ;;  %v243_v10 = vld [vmem:[%s2296_s1 + $0xe8] sm:$0xff] }
   0x4   :  { %v277_v5 = vld [vmem:[%s2296_s1 + $0x1f8] sm:$0xff]  ;;  %438 = vmatpush.msra.mxu1 %v245_v3  ;;  %347 = vmatpush.msra.mxu0 %v228_v2  ;;  %v276_v9 = vld [vmem:[%s2296_s1 + $0x1f0] sm:$0xff]  ;;  %v226_v11 = vld [vmem:[%s2296_s1 + $0x60] sm:$0xff] }
   0x5   :  { %622 = vmatpush.msra.mxu3 %v277_v5  ;;  %531 = vmatpush.msra.mxu2 %v260_v4  ;;  %v258_v12 = vld [vmem:[%s2296_s1 + $0x160] sm:$0xff]  ;;  %v275_v13 = vld [vmem:[%s2296_s1 + $0x1e8] sm:$0xff]  ;;  %v225_v16 = vld [vmem:[%s2296_s1 + $0x58] sm:$0xff] }
   0x6   :  { %439 = vmatpush.msra.mxu1 %v244_v7  ;;  %348 = vmatpush.msra.mxu0 %v227_v6  ;;  %v242_v14 = vld [vmem:[%s2296_s1 + $0xe0] sm:$0xff]  ;;  %v257_v17 = vld [vmem:[%s2296_s1 + $0x158] sm:$0xff]  ;;  %v224_v20 = vld [vmem:[%s2296_s1 + $0x50] sm:$0xff] }
   0x7   :  { %623 = vmatpush.msra.mxu3 %v276_v9  ;;  %532 = vmatpush.msra.mxu2 %v259_v8  ;;  %v274_v15 = vld [vmem:[%s2296_s1 + $0x1e0] sm:$0xff]  ;;  %v241_v18 = vld [vmem:[%s2296_s1 + $0xd8] sm:$0xff]  ;;  %v256_v21 = vld [vmem:[%s2296_s1 + $0x150] sm:$0xff] }
   0x8   :  { %440 = vmatpush.msra.mxu1 %v243_v10  ;;  %349 = vmatpush.msra.mxu0 %v226_v11  ;;  %v273_v19 = vld [vmem:[%s2296_s1 + $0x1d8] sm:$0xff]  ;;  %v240_v22 = vld [vmem:[%s2296_s1 + $0xd0] sm:$0xff]  ;;  %v223_v24 = vld [vmem:[%s2296_s1 + $0x48] sm:$0xff] }
   0x9   :  { %624 = vmatpush.msra.mxu3 %v275_v13  ;;  %533 = vmatpush.msra.mxu2 %v258_v12  ;;  %v272_v23 = vld [vmem:[%s2296_s1 + $0x1d0] sm:$0xff]  ;;  %v255_v25 = vld [vmem:[%s2296_s1 + $0x148] sm:$0xff]  ;;  %v222_v28 = vld [vmem:[%s2296_s1 + $0x40] sm:$0xff] }
   0xa   :  { %441 = vmatpush.msra.mxu1 %v242_v14  ;;  %350 = vmatpush.msra.mxu0 %v225_v16  ;;  %v239_v26 = vld [vmem:[%s2296_s1 + $0xc8] sm:$0xff]  ;;  %v254_v29 = vld [vmem:[%s2296_s1 + $0x140] sm:$0xff]  ;;  %v221_v32 = vld [vmem:[%s2296_s1 + $0x38] sm:$0xff] }
   0xb   :  { %625 = vmatpush.msra.mxu3 %v274_v15  ;;  %534 = vmatpush.msra.mxu2 %v257_v17  ;;  %v271_v27 = vld [vmem:[%s2296_s1 + $0x1c8] sm:$0xff]  ;;  %v238_v30 = vld [vmem:[%s2296_s1 + $0xc0] sm:$0xff]  ;;  %v253_v33 = vld [vmem:[%s2296_s1 + $0x138] sm:$0xff] }
   0xc   :  { %442 = vmatpush.msra.mxu1 %v241_v18  ;;  %351 = vmatpush.msra.mxu0 %v224_v20  ;;  %v270_v31 = vld [vmem:[%s2296_s1 + $0x1c0] sm:$0xff]  ;;  %v237_v34 = vld [vmem:[%s2296_s1 + $0xb8] sm:$0xff]  ;;  %v220_v36 = vld [vmem:[%s2296_s1 + $0x30] sm:$0xff] }
   0xd   :  { %626 = vmatpush.msra.mxu3 %v273_v19  ;;  %535 = vmatpush.msra.mxu2 %v256_v21  ;;  %v269_v35 = vld [vmem:[%s2296_s1 + $0x1b8] sm:$0xff]  ;;  %v252_v37 = vld [vmem:[%s2296_s1 + $0x130] sm:$0xff]  ;;  %v219_v40 = vld [vmem:[%s2296_s1 + $0x28] sm:$0xff] }
   0xe   :  { %443 = vmatpush.msra.mxu1 %v240_v22  ;;  %352 = vmatpush.msra.mxu0 %v223_v24  ;;  %v236_v38 = vld [vmem:[%s2296_s1 + $0xb0] sm:$0xff]  ;;  %v251_v41 = vld [vmem:[%s2296_s1 + $0x128] sm:$0xff]  ;;  %v218_v44 = vld [vmem:[%s2296_s1 + $0x20] sm:$0xff] }
   0xf   :  { %627 = vmatpush.msra.mxu3 %v272_v23  ;;  %536 = vmatpush.msra.mxu2 %v255_v25  ;;  %v268_v39 = vld [vmem:[%s2296_s1 + $0x1b0] sm:$0xff]  ;;  %v235_v42 = vld [vmem:[%s2296_s1 + $0xa8] sm:$0xff]  ;;  %v250_v45 = vld [vmem:[%s2296_s1 + $0x120] sm:$0xff] }
  0x10   :  { %444 = vmatpush.msra.mxu1 %v239_v26  ;;  %353 = vmatpush.msra.mxu0 %v222_v28  ;;  %v267_v43 = vld [vmem:[%s2296_s1 + $0x1a8] sm:$0xff]  ;;  %v234_v46 = vld [vmem:[%s2296_s1 + $0xa0] sm:$0xff]  ;;  %v217_v48 = vld [vmem:[%s2296_s1 + $0x18] sm:$0xff] }
  0x11   :  { %628 = vmatpush.msra.mxu3 %v271_v27  ;;  %537 = vmatpush.msra.mxu2 %v254_v29  ;;  %v266_v47 = vld [vmem:[%s2296_s1 + $0x1a0] sm:$0xff]  ;;  %v249_v49 = vld [vmem:[%s2296_s1 + $0x118] sm:$0xff]  ;;  %v216_v52 = vld [vmem:[%s2296_s1 + $0x10] sm:$0xff] }
  0x12   :  { %445 = vmatpush.msra.mxu1 %v238_v30  ;;  %354 = vmatpush.msra.mxu0 %v221_v32  ;;  %v233_v50 = vld [vmem:[%s2296_s1 + $0x98] sm:$0xff]  ;;  %v248_v53 = vld [vmem:[%s2296_s1 + $0x110] sm:$0xff]  ;;  %v215_v56 = vld [vmem:[%s2296_s1 + $0x8] sm:$0xff] }
  0x13   :  { %629 = vmatpush.msra.mxu3 %v270_v31  ;;  %538 = vmatpush.msra.mxu2 %v253_v33  ;;  %v265_v51 = vld [vmem:[%s2296_s1 + $0x198] sm:$0xff]  ;;  %v232_v54 = vld [vmem:[%s2296_s1 + $0x90] sm:$0xff]  ;;  %v247_v57 = vld [vmem:[%s2296_s1 + $0x108] sm:$0xff] }
  0x14   :  { %446 = vmatpush.msra.mxu1 %v237_v34  ;;  %355 = vmatpush.msra.mxu0 %v220_v36  ;;  %v264_v55 = vld [vmem:[%s2296_s1 + $0x190] sm:$0xff]  ;;  %v231_v58 = vld [vmem:[%s2296_s1 + $0x88] sm:$0xff]  ;;  %v214_v60 = vld [vmem:[%s2296_s1] sm:$0xff] }
  0x15   :  { %630 = vmatpush.msra.mxu3 %v269_v35  ;;  %539 = vmatpush.msra.mxu2 %v252_v37  ;;  %v263_v59 = vld [vmem:[%s2296_s1 + $0x188] sm:$0xff]  ;;  %v246_v61 = vld [vmem:[%s2296_s1 + $0x100] sm:$0xff]  ;;  %v16_v63 = vld [vmem:[%s2297_s0 + $0x10] sm:$0xff] }
  0x16   :  { %447 = vmatpush.msra.mxu1 %v236_v38  ;;  %356 = vmatpush.msra.mxu0 %v219_v40  ;;  %v14_v62 = vld [vmem:[%s2297_s0] sm:$0xff]  ;;  %v325_v0 = vld [vmem:[%s2296_s1 + $0x378] sm:$0xff]  ;;  %v15_v3 = vld [vmem:[%s2297_s0 + $0x8] sm:$0xff] }
  0x17   :  { %631 = vmatpush.msra.mxu3 %v268_v39  ;;  %540 = vmatpush.msra.mxu2 %v251_v41  ;;  %v230_v1 = vld [vmem:[%s2296_s1 + $0x80] sm:$0xff]  ;;  %v17_v4 = vld [vmem:[%s2297_s0 + $0x18] sm:$0xff]  ;;  %v324_v8 = vld [vmem:[%s2296_s1 + $0x370] sm:$0xff] }
  0x18   :  { %448 = vmatpush.msra.mxu1 %v235_v42  ;;  %357 = vmatpush.msra.mxu0 %v218_v44  ;;  %v262_v2 = vld [vmem:[%s2296_s1 + $0x180] sm:$0xff]  ;;  %v293_v5 = vld [vmem:[%s2296_s1 + $0x278] sm:$0xff]  ;;  %v292_v9 = vld [vmem:[%s2296_s1 + $0x270] sm:$0xff] }
  0x19   :  { %632 = vmatpush.msra.mxu3 %v267_v43  ;;  %541 = vmatpush.msra.mxu2 %v250_v45  ;;  %v341_v6 = vld [vmem:[%s2296_s1 + $0x3f8] sm:$0xff]  ;;  %v340_v10 = vld [vmem:[%s2296_s1 + $0x3f0] sm:$0xff]  ;;  %v323_v12 = vld [vmem:[%s2296_s1 + $0x368] sm:$0xff] }
  0x1a   :  { %449 = vmatpush.msra.mxu1 %v234_v46  ;;  %358 = vmatpush.msra.mxu0 %v217_v48  ;;  %v309_v7 = vld [vmem:[%s2296_s1 + $0x2f8] sm:$0xff]  ;;  %v308_v11 = vld [vmem:[%s2296_s1 + $0x2f0] sm:$0xff]  ;;  %v291_v13 = vld [vmem:[%s2296_s1 + $0x268] sm:$0xff] }
  0x1b   :  { %633 = vmatpush.msra.mxu3 %v266_v47  ;;  %542 = vmatpush.msra.mxu2 %v249_v49  ;;  %v22_v14 = vld [vmem:[%s2297_s0 + $0x40] sm:$0xff]  ;;  %v24_v15 = vld [vmem:[%s2297_s0 + $0x50] sm:$0xff]  ;;  %v339_v16 = vld [vmem:[%s2296_s1 + $0x3e8] sm:$0xff] }
  0x1c   :  { %450 = vmatpush.msra.mxu1 %v233_v50  ;;  %359 = vmatpush.msra.mxu0 %v216_v52  ;;  %v307_v17 = vld [vmem:[%s2296_s1 + $0x2e8] sm:$0xff]  ;;  %v322_v19 = vld [vmem:[%s2296_s1 + $0x360] sm:$0xff]  ;;  %v25_v20 = vld [vmem:[%s2297_s0 + $0x58] sm:$0xff] }
  0x1d   :  { %634 = vmatpush.msra.mxu3 %v265_v51  ;;  %543 = vmatpush.msra.mxu2 %v248_v53  ;;  %v23_v18 = vld [vmem:[%s2297_s0 + $0x48] sm:$0xff]  ;;  %v290_v21 = vld [vmem:[%s2296_s1 + $0x260] sm:$0xff]  ;;  %v32_v25 = vld [vmem:[%s2297_s0 + $0x90] sm:$0xff] }
  0x1e   :  { %451 = vmatpush.msra.mxu1 %v232_v54  ;;  %360 = vmatpush.msra.mxu0 %v215_v56  ;;  %v338_v22 = vld [vmem:[%s2296_s1 + $0x3e0] sm:$0xff]  ;;  %v31_v26 = vld [vmem:[%s2297_s0 + $0x88] sm:$0xff]  ;;  %v33_v27 = vld [vmem:[%s2297_s0 + $0x98] sm:$0xff] }
  0x1f   :  { %635 = vmatpush.msra.mxu3 %v264_v55  ;;  %544 = vmatpush.msra.mxu2 %v247_v57  ;;  %v306_v23 = vld [vmem:[%s2296_s1 + $0x2e0] sm:$0xff]  ;;  %v321_v28 = vld [vmem:[%s2296_s1 + $0x358] sm:$0xff]  ;;  %v40_v33 = vld [vmem:[%s2297_s0 + $0xd0] sm:$0xff] }
  0x20   :  { %452 = vmatpush.msra.mxu1 %v231_v58  ;;  %361 = vmatpush.msra.mxu0 %v214_v60  ;;  %v30_v24 = vld [vmem:[%s2297_s0 + $0x80] sm:$0xff]  ;;  %v289_v29 = vld [vmem:[%s2296_s1 + $0x258] sm:$0xff]  ;;  %v39_v34 = vld [vmem:[%s2297_s0 + $0xc8] sm:$0xff] }
  0x21   :  { %636 = vmatpush.msra.mxu3 %v263_v59  ;;  %545 = vmatpush.msra.mxu2 %v246_v61  ;;  %v337_v30 = vld [vmem:[%s2296_s1 + $0x3d8] sm:$0xff]  ;;  %v38_v32 = vld [vmem:[%s2297_s0 + $0xc0] sm:$0xff]  ;;  %v320_v36 = vld [vmem:[%s2296_s1 + $0x350] sm:$0xff] }
  0x22   :  { %362 = vmatmul.f32.vlgmr.msra.gmra.mxu0 %v14_v62  ;;  %546 = vmatmul.f32.vlgmr.msra.gmra.mxu2 %v16_v63  ;;  %v305_v31 = vld [vmem:[%s2296_s1 + $0x2d8] sm:$0xff]  ;;  %v46_v37 = vld [vmem:[%s2297_s0 + $0x100] sm:$0xff]  ;;  %v48_v38 = vld [vmem:[%s2297_s0 + $0x110] sm:$0xff] }
  0x23   :  { %898 = vmatpush.msrb.mxu2 %v325_v0  ;;  %453 = vmatpush.msra.mxu1 %v230_v1  ;;  %v41_v35 = vld [vmem:[%s2297_s0 + $0xd8] sm:$0xff]  ;;  %v47_v39 = vld [vmem:[%s2297_s0 + $0x108] sm:$0xff]  ;;  %v288_v41 = vld [vmem:[%s2296_s1 + $0x250] sm:$0xff] }
  0x24   :  { %637 = vmatpush.msra.mxu3 %v262_v2  ;;  %454 = vmatmul.f32.vlgmr.msra.gmra.mxu1 %v15_v3  ;;  %v49_v40 = vld [vmem:[%s2297_s0 + $0x118] sm:$0xff]  ;;  %v336_v42 = vld [vmem:[%s2296_s1 + $0x3d0] sm:$0xff]  ;;  %v54_v44 = vld [vmem:[%s2297_s0 + $0x140] sm:$0xff] }
  0x25   :  { %638 = vmatmul.f32.vlgmr.msra.gmra.mxu3 %v17_v4  ;;  %714 = vmatpush.msrb.mxu0 %v293_v5  ;;  %v304_v43 = vld [vmem:[%s2296_s1 + $0x2d0] sm:$0xff]  ;;  %v55_v46 = vld [vmem:[%s2297_s0 + $0x148] sm:$0xff]  ;;  %v57_v47 = vld [vmem:[%s2297_s0 + $0x158] sm:$0xff] }
  0x26   :  { %990 = vmatpush.msrb.mxu3 %v341_v6  ;;  %806 = vmatpush.msrb.mxu1 %v309_v7  ;;  %v56_v45 = vld [vmem:[%s2297_s0 + $0x150] sm:$0xff]  ;;  %v319_v48 = vld [vmem:[%s2296_s1 + $0x348] sm:$0xff]  ;;  %v62_v52 = vld [vmem:[%s2297_s0 + $0x180] sm:$0xff] }
  0x27   :  { %899 = vmatpush.msrb.mxu2 %v324_v8  ;;  %715 = vmatpush.msrb.mxu0 %v292_v9  ;;  %v287_v49 = vld [vmem:[%s2296_s1 + $0x248] sm:$0xff]  ;;  %v64_v53 = vld [vmem:[%s2297_s0 + $0x190] sm:$0xff]  ;;  %v65_v55 = vld [vmem:[%s2297_s0 + $0x198] sm:$0xff] }
  0x28   :  { %991 = vmatpush.msrb.mxu3 %v340_v10  ;;  %807 = vmatpush.msrb.mxu1 %v308_v11  ;;  %v335_v50 = vld [vmem:[%s2296_s1 + $0x3c8] sm:$0xff]  ;;  %v70_v56 = vld [vmem:[%s2297_s0 + $0x1c0] sm:$0xff]  ;;  %v72_v57 = vld [vmem:[%s2297_s0 + $0x1d0] sm:$0xff] }
  0x29   :  { %900 = vmatpush.msrb.mxu2 %v323_v12  ;;  %716 = vmatpush.msrb.mxu0 %v291_v13  ;;  %v303_v51 = vld [vmem:[%s2296_s1 + $0x2c8] sm:$0xff]  ;;  %v73_v59 = vld [vmem:[%s2297_s0 + $0x1d8] sm:$0xff]  ;;  %v318_v60 = vld [vmem:[%s2296_s1 + $0x340] sm:$0xff] }
  0x2a   :  { %365 = vmatmul.f32.gmra.mxu0 %v22_v14  ;;  %549 = vmatmul.f32.gmra.mxu2 %v24_v15  ;;  %v63_v54 = vld [vmem:[%s2297_s0 + $0x188] sm:$0xff]  ;;  %v286_v61 = vld [vmem:[%s2296_s1 + $0x240] sm:$0xff]  ;;  %v80_v1 = vld [vmem:[%s2297_s0 + $0x210] sm:$0xff] }
  0x2b   :  { %992 = vmatpush.msrb.mxu3 %v339_v16  ;;  %808 = vmatpush.msrb.mxu1 %v307_v17  ;;  %v71_v58 = vld [vmem:[%s2297_s0 + $0x1c8] sm:$0xff]  ;;  %v334_v62 = vld [vmem:[%s2296_s1 + $0x3c0] sm:$0xff]  ;;  %v81_v3 = vld [vmem:[%s2297_s0 + $0x218] sm:$0xff] }
  0x2c   :  { %457 = vmatmul.f32.gmra.mxu1 %v23_v18  ;;  %901 = vmatpush.msrb.mxu2 %v322_v19  ;;  %v302_v63 = vld [vmem:[%s2296_s1 + $0x2c0] sm:$0xff]  ;;  %v79_v2 = vld [vmem:[%s2297_s0 + $0x208] sm:$0xff]  ;;  %v317_v4 = vld [vmem:[%s2296_s1 + $0x338] sm:$0xff] }
  0x2d   :  { %641 = vmatmul.f32.gmra.mxu3 %v25_v20  ;;  %717 = vmatpush.msrb.mxu0 %v290_v21  ;;  %v78_v0 = vld [vmem:[%s2297_s0 + $0x200] sm:$0xff]  ;;  %v285_v5 = vld [vmem:[%s2296_s1 + $0x238] sm:$0xff]  ;;  %v88_v8 = vld [vmem:[%s2297_s0 + $0x250] sm:$0xff] }
  0x2e   :  { %993 = vmatpush.msrb.mxu3 %v338_v22  ;;  %809 = vmatpush.msrb.mxu1 %v306_v23  ;;  %v333_v6 = vld [vmem:[%s2296_s1 + $0x3b8] sm:$0xff]  ;;  %v86_v7 = vld [vmem:[%s2297_s0 + $0x240] sm:$0xff]  ;;  %v87_v9 = vld [vmem:[%s2297_s0 + $0x248] sm:$0xff] }
  0x2f   :  { %902 = vmatpush.msrb.mxu2 %v321_v28  ;;  %718 = vmatpush.msrb.mxu0 %v289_v29  ;;  %v89_v10 = vld [vmem:[%s2297_s0 + $0x258] sm:$0xff]  ;;  %v94_v12 = vld [vmem:[%s2297_s0 + $0x280] sm:$0xff]  ;;  %v96_v13 = vld [vmem:[%s2297_s0 + $0x290] sm:$0xff] }
  0x30   :  { %994 = vmatpush.msrb.mxu3 %v337_v30  ;;  %810 = vmatpush.msrb.mxu1 %v305_v31  ;;  %v301_v11 = vld [vmem:[%s2296_s1 + $0x2b8] sm:$0xff]  ;;  %v95_v14 = vld [vmem:[%s2297_s0 + $0x288] sm:$0xff]  ;;  %v316_v16 = vld [vmem:[%s2296_s1 + $0x330] sm:$0xff] }
  0x31   :  { %903 = vmatpush.msrb.mxu2 %v320_v36  ;;  %719 = vmatpush.msrb.mxu0 %v288_v41  ;;  %v97_v15 = vld [vmem:[%s2297_s0 + $0x298] sm:$0xff]  ;;  %v284_v17 = vld [vmem:[%s2296_s1 + $0x230] sm:$0xff]  ;;  %v102_v20 = vld [vmem:[%s2297_s0 + $0x2c0] sm:$0xff] }
  0x32   :  { %368 = vmatmul.f32.gmra.mxu0 %v30_v24  ;;  %552 = vmatmul.f32.gmra.mxu2 %v32_v25  ;;  %v332_v18 = vld [vmem:[%s2296_s1 + $0x3b0] sm:$0xff]  ;;  %v103_v22 = vld [vmem:[%s2297_s0 + $0x2c8] sm:$0xff]  ;;  %v105_v23 = vld [vmem:[%s2297_s0 + $0x2d8] sm:$0xff] }
  0x33   :  { %995 = vmatpush.msrb.mxu3 %v336_v42  ;;  %811 = vmatpush.msrb.mxu1 %v304_v43  ;;  %v300_v19 = vld [vmem:[%s2296_s1 + $0x2b0] sm:$0xff]  ;;  %v110_v24 = vld [vmem:[%s2297_s0 + $0x300] sm:$0xff]  ;;  %v113_v28 = vld [vmem:[%s2297_s0 + $0x318] sm:$0xff] }
  0x34   :  { %460 = vmatmul.f32.gmra.mxu1 %v31_v26  ;;  %904 = vmatpush.msrb.mxu2 %v319_v48  ;;  %v104_v21 = vld [vmem:[%s2297_s0 + $0x2d0] sm:$0xff]  ;;  %v315_v26 = vld [vmem:[%s2296_s1 + $0x328] sm:$0xff]  ;;  %v314_v36 = vld [vmem:[%s2296_s1 + $0x320] sm:$0xff] }
  0x35   :  { %644 = vmatmul.f32.gmra.mxu3 %v33_v27  ;;  %720 = vmatpush.msrb.mxu0 %v287_v49  ;;  %v112_v25 = vld [vmem:[%s2297_s0 + $0x310] sm:$0xff]  ;;  %v111_v27 = vld [vmem:[%s2297_s0 + $0x308] sm:$0xff]  ;;  %v298_v42 = vld [vmem:[%s2296_s1 + $0x2a0] sm:$0xff] }
  0x36   :  { %996 = vmatpush.msrb.mxu3 %v335_v50  ;;  %812 = vmatpush.msrb.mxu1 %v303_v51  ;;  %v283_v29 = vld [vmem:[%s2296_s1 + $0x228] sm:$0xff]  ;;  %v129_v43 = vld [vmem:[%s2297_s0 + $0x398] sm:$0xff]  ;;  %v1672_v51 = vld [vmem:[%s2298_s2] ss:$0 sm:$0xff] }
  0x37   :  { %905 = vmatpush.msrb.mxu2 %v318_v60  ;;  %721 = vmatpush.msrb.mxu0 %v286_v61  ;;  %v331_v30 = vld [vmem:[%s2296_s1 + $0x3a8] sm:$0xff]  ;;  %v137_v48 = vld [vmem:[%s2297_s0 + $0x3d8] sm:$0xff] }
  0x38   :  { %997 = vmatpush.msrb.mxu3 %v334_v62  ;;  %813 = vmatpush.msrb.mxu1 %v302_v63  ;;  %v299_v31 = vld [vmem:[%s2296_s1 + $0x2a8] sm:$0xff]  ;;  %v281_v49 = vld [vmem:[%s2296_s1 + $0x218] sm:$0xff]  ;;  %v312_v63 = vld [vmem:[%s2296_s1 + $0x310] sm:$0xff] }
  0x39   :  { %906 = vmatpush.msrb.mxu2 %v317_v4  ;;  %722 = vmatpush.msrb.mxu0 %v285_v5  ;;  %v127_v41 = vld [vmem:[%s2297_s0 + $0x388] sm:$0xff]  ;;  %v329_v50 = vld [vmem:[%s2296_s1 + $0x398] sm:$0xff] }
  0x3a   :  { %371 = vmatmul.f32.gmra.mxu0 %v38_v32  ;;  %555 = vmatmul.f32.gmra.mxu2 %v40_v33  ;;  %v118_v32 = vld [vmem:[%s2297_s0 + $0x340] sm:$0xff]  ;;  %v120_v33 = vld [vmem:[%s2297_s0 + $0x350] sm:$0xff]  ;;  %v145_v60 = vld [vmem:[%s2297_s0 + $0x418] sm:$0xff] }
  0x3b   :  { %998 = vmatpush.msrb.mxu3 %v333_v6  ;;  %814 = vmatpush.msrb.mxu1 %v301_v11  ;;  %v153_v11 = vld [vmem:[%s2297_s0 + $0x458] sm:$0xff] }
  0x3c   :  { %463 = vmatmul.f32.gmra.mxu1 %v39_v34  ;;  %907 = vmatpush.msrb.mxu2 %v316_v16  ;;  %v119_v34 = vld [vmem:[%s2297_s0 + $0x348] sm:$0xff]  ;;  %v158_v16 = vld [vmem:[%s2297_s0 + $0x480] sm:$0xff] }
  0x3d   :  { %647 = vmatmul.f32.gmra.mxu3 %v41_v35  ;;  %723 = vmatpush.msrb.mxu0 %v284_v17  ;;  %v121_v35 = vld [vmem:[%s2297_s0 + $0x358] sm:$0xff]  ;;  %v160_v17 = vld [vmem:[%s2297_s0 + $0x490] sm:$0xff] }
  0x3e   :  { %999 = vmatpush.msrb.mxu3 %v332_v18  ;;  %815 = vmatpush.msrb.mxu1 %v300_v19 }
  0x3f   :  { %908 = vmatpush.msrb.mxu2 %v315_v26  ;;  %724 = vmatpush.msrb.mxu0 %v283_v29  ;;  %v279_v26 = vld [vmem:[%s2296_s1 + $0x208] sm:$0xff] }
  0x40   :  { %1000 = vmatpush.msrb.mxu3 %v331_v30  ;;  %816 = vmatpush.msrb.mxu1 %v299_v31  ;;  %v295_v30 = vld [vmem:[%s2296_s1 + $0x288] sm:$0xff] }
  0x41   :  { %909 = vmatpush.msrb.mxu2 %v314_v36 }
  0x42   :  { %374 = vmatmul.f32.gmra.mxu0 %v46_v37  ;;  %558 = vmatmul.f32.gmra.mxu2 %v48_v38  ;;  %v282_v37 = vld [vmem:[%s2296_s1 + $0x220] sm:$0xff] }
  0x43   :  { %v330_v38 = vld [vmem:[%s2296_s1 + $0x3a0] sm:$0xff]  ;;  %725 = vmatpush.msrb.mxu0 %v282_v37  ;;  %817 = vmatpush.msrb.mxu1 %v298_v42 }
  0x44   :  { %466 = vmatmul.f32.gmra.mxu1 %v47_v39  ;;  %v126_v39 = vld [vmem:[%s2297_s0 + $0x380] sm:$0xff]  ;;  %1001 = vmatpush.msrb.mxu3 %v330_v38  ;;  %v167_v38 = vld [vmem:[%s2297_s0 + $0x4c8] sm:$0xff] }
  0x45   :  { %650 = vmatmul.f32.gmra.mxu3 %v49_v40  ;;  %v128_v40 = vld [vmem:[%s2297_s0 + $0x390] sm:$0xff]  ;;  %726 = vmatpush.msrb.mxu0 %v281_v49 }
  0x46   :  { %1002 = vmatpush.msrb.mxu3 %v329_v50 }
  0x4a   :  { %377 = vmatmul.f32.gmra.mxu0 %v54_v44  ;;  %561 = vmatmul.f32.gmra.mxu2 %v56_v45  ;;  %v134_v44 = vld [vmem:[%s2297_s0 + $0x3c0] sm:$0xff]  ;;  %v136_v45 = vld [vmem:[%s2297_s0 + $0x3d0] sm:$0xff] }
  0x4c   :  { %469 = vmatmul.f32.gmra.mxu1 %v55_v46  ;;  %v135_v46 = vld [vmem:[%s2297_s0 + $0x3c8] sm:$0xff] }
  0x4d   :  { %653 = vmatmul.f32.gmra.mxu3 %v57_v47  ;;  %v313_v47 = vld [vmem:[%s2296_s1 + $0x318] sm:$0xff] }
  0x4e   :  { %910 = vmatpush.msrb.mxu2 %v313_v47 }
  0x50   :  { %911 = vmatpush.msrb.mxu2 %v312_v63 }
  0x52   :  { %380 = vmatmul.f32.gmra.mxu0 %v62_v52  ;;  %564 = vmatmul.f32.gmra.mxu2 %v64_v53  ;;  %v297_v52 = vld [vmem:[%s2296_s1 + $0x298] sm:$0xff] }
  0x53   :  { %818 = vmatpush.msrb.mxu1 %v297_v52  ;;  %v175_v52 = vld [vmem:[%s2297_s0 + $0x508] sm:$0xff] }
  0x54   :  { %472 = vmatmul.f32.gmra.mxu1 %v63_v54  ;;  %v142_v54 = vld [vmem:[%s2297_s0 + $0x400] sm:$0xff] }
  0x55   :  { %656 = vmatmul.f32.gmra.mxu3 %v65_v55  ;;  %v144_v55 = vld [vmem:[%s2297_s0 + $0x410] sm:$0xff] }
  0x5a   :  { %383 = vmatmul.f32.gmra.mxu0 %v70_v56  ;;  %567 = vmatmul.f32.gmra.mxu2 %v72_v57 }
  0x5c   :  { %475 = vmatmul.f32.gmra.mxu1 %v71_v58  ;;  %v143_v58 = vld [vmem:[%s2297_s0 + $0x408] sm:$0xff] }
  0x5d   :  { %659 = vmatmul.f32.gmra.mxu3 %v73_v59 }
  0x62   :  { %386 = vmatmul.f32.gmra.mxu0 %v78_v0  ;;  %570 = vmatmul.f32.gmra.mxu2 %v80_v1  ;;  %v150_v1 = vld [vmem:[%s2297_s0 + $0x440] sm:$0xff] }
  0x64   :  { %478 = vmatmul.f32.gmra.mxu1 %v79_v2  ;;  %v152_v2 = vld [vmem:[%s2297_s0 + $0x450] sm:$0xff] }
  0x65   :  { %662 = vmatmul.f32.gmra.mxu3 %v81_v3 }
  0x6a   :  { %389 = vmatmul.f32.gmra.mxu0 %v86_v7  ;;  %573 = vmatmul.f32.gmra.mxu2 %v88_v8  ;;  %v151_v7 = vld [vmem:[%s2297_s0 + $0x448] sm:$0xff]  ;;  %v280_v8 = vld [vmem:[%s2296_s1 + $0x210] sm:$0xff] }
  0x6b   :  { %727 = vmatpush.msrb.mxu0 %v280_v8 }
  0x6c   :  { %481 = vmatmul.f32.gmra.mxu1 %v87_v9  ;;  %v328_v9 = vld [vmem:[%s2296_s1 + $0x390] sm:$0xff] }
  0x6d   :  { %665 = vmatmul.f32.gmra.mxu3 %v89_v10  ;;  %728 = vmatpush.msrb.mxu0 %v279_v26 }
  0x6e   :  { %1003 = vmatpush.msrb.mxu3 %v328_v9 }
  0x72   :  { %392 = vmatmul.f32.gmra.mxu0 %v94_v12  ;;  %576 = vmatmul.f32.gmra.mxu2 %v96_v13  ;;  %v296_v12 = vld [vmem:[%s2296_s1 + $0x290] sm:$0xff] }
  0x73   :  { %819 = vmatpush.msrb.mxu1 %v296_v12 }
  0x74   :  { %484 = vmatmul.f32.gmra.mxu1 %v95_v14 }
  0x75   :  { %668 = vmatmul.f32.gmra.mxu3 %v97_v15  ;;  %820 = vmatpush.msrb.mxu1 %v295_v30 }
  0x7a   :  { %395 = vmatmul.f32.gmra.mxu0 %v102_v20  ;;  %579 = vmatmul.f32.gmra.mxu2 %v104_v21 }
  0x7c   :  { %487 = vmatmul.f32.gmra.mxu1 %v103_v22  ;;  %v159_v22 = vld [vmem:[%s2297_s0 + $0x488] sm:$0xff] }
  0x7d   :  { %671 = vmatmul.f32.gmra.mxu3 %v105_v23 }
  0x82   :  { %398 = vmatmul.f32.gmra.mxu0 %v110_v24  ;;  %582 = vmatmul.f32.gmra.mxu2 %v112_v25  ;;  %v161_v24 = vld [vmem:[%s2297_s0 + $0x498] sm:$0xff]  ;;  %v311_v25 = vld [vmem:[%s2296_s1 + $0x308] sm:$0xff] }
  0x83   :  { %912 = vmatpush.msrb.mxu2 %v311_v25 }
  0x84   :  { %490 = vmatmul.f32.gmra.mxu1 %v111_v27  ;;  %v327_v27 = vld [vmem:[%s2296_s1 + $0x388] sm:$0xff] }
  0x85   :  { %674 = vmatmul.f32.gmra.mxu3 %v113_v28 }
  0x86   :  { %1004 = vmatpush.msrb.mxu3 %v327_v27 }
  0x8a   :  { %401 = vmatmul.f32.gmra.mxu0 %v118_v32  ;;  %585 = vmatmul.f32.gmra.mxu2 %v120_v33  ;;  %v166_v32 = vld [vmem:[%s2297_s0 + $0x4c0] sm:$0xff]  ;;  %v168_v33 = vld [vmem:[%s2297_s0 + $0x4d0] sm:$0xff] }
  0x8c   :  { %493 = vmatmul.f32.gmra.mxu1 %v119_v34 }
  0x8d   :  { %677 = vmatmul.f32.gmra.mxu3 %v121_v35 }
  0x92   :  { %404 = vmatmul.f32.gmra.mxu0 %v126_v39  ;;  %588 = vmatmul.f32.gmra.mxu2 %v128_v40  ;;  %v169_v40 = vld [vmem:[%s2297_s0 + $0x4d8] sm:$0xff] }
  0x94   :  { %496 = vmatmul.f32.gmra.mxu1 %v127_v41 }
  0x95   :  { %680 = vmatmul.f32.gmra.mxu3 %v129_v43  ;;  %v310_v43 = vld [vmem:[%s2296_s1 + $0x300] sm:$0xff] }
  0x96   :  { %913 = vmatpush.msrb.mxu2 %v310_v43 }
  0x9a   :  { %407 = vmatmul.f32.gmra.mxu0 %v134_v44  ;;  %591 = vmatmul.f32.gmra.mxu2 %v136_v45  ;;  %v174_v45 = vld [vmem:[%s2297_s0 + $0x500] sm:$0xff] }
  0x9c   :  { %499 = vmatmul.f32.gmra.mxu1 %v135_v46  ;;  %v176_v46 = vld [vmem:[%s2297_s0 + $0x510] sm:$0xff] }
  0x9d   :  { %683 = vmatmul.f32.gmra.mxu3 %v137_v48 }
  0x9f   :  { %v363_v53 = vpop.f32.mrf.mxu0 }
  0xa0   :  { %v364_v56 = vadd.f32 %v1672_v51, %v363_v53  ;;  %v278_v53 = vld [vmem:[%s2296_s1 + $0x200] sm:$0xff] }
  0xa1   :  { %v455_v57 = vpop.f32.mrf.mxu1  ;;  %729 = vmatpush.msrb.mxu0 %v278_v53 }
  0xa2   :  { %v456_v59 = vadd.f32 %v455_v57, %v364_v56  ;;  %410 = vmatmul.f32.gmra.mxu0 %v142_v54  ;;  %594 = vmatmul.f32.gmra.mxu2 %v144_v55  ;;  %v326_v54 = vld [vmem:[%s2296_s1 + $0x380] sm:$0xff]  ;;  %v177_v56 = vld [vmem:[%s2297_s0 + $0x518] sm:$0xff] }
  0xa3   :  { %v294_v57 = vld [vmem:[%s2296_s1 + $0x280] sm:$0xff]  ;;  %1005 = vmatpush.msrb.mxu3 %v326_v54 }
  0xa4   :  { %502 = vmatmul.f32.gmra.mxu1 %v143_v58 }
  0xa5   :  { %686 = vmatmul.f32.gmra.mxu3 %v145_v60  ;;  %v547_v61 = vpop.f32.mrf.mxu2  ;;  %821 = vmatpush.msrb.mxu1 %v294_v57 }
  0xa6   :  { %v548_v62 = vadd.f32 %v547_v61, %v456_v59  ;;  %v182_v61 = vld [vmem:[%s2297_s0 + $0x540] sm:$0xff] }
  0xa7   :  { %v366_v0 = vpop.f32.mrf.mxu0 }
  0xa8   :  { %v367_v3 = vadd.f32 %v1672_v51, %v366_v0  ;;  %v639_v4 = vpop.f32.mrf.mxu3 }
  0xa9   :  { %v1700_v5 = vadd.f32 %v639_v4, %v548_v62  ;;  %v458_v6 = vpop.f32.mrf.mxu1  ;;  %v184_v62 = vld [vmem:[%s2297_s0 + $0x550] sm:$0xff] }
  0xaa   :  { %v459_v10 = vadd.f32 %v458_v6, %v367_v3  ;;  %413 = vmatmul.f32.gmra.mxu0 %v150_v1  ;;  %597 = vmatmul.f32.gmra.mxu2 %v152_v2  ;;  %v183_v3 = vld [vmem:[%s2297_s0 + $0x548] sm:$0xff]  ;;  %v185_v6 = vld [vmem:[%s2297_s0 + $0x558] sm:$0xff] }
  0xac   :  { %505 = vmatmul.f32.gmra.mxu1 %v151_v7 }
  0xad   :  { %689 = vmatmul.f32.gmra.mxu3 %v153_v11  ;;  %v550_v13 = vpop.f32.mrf.mxu2  ;;  %v192_v11 = vld [vmem:[%s2297_s0 + $0x590] sm:$0xff] }
  0xae   :  { %v551_v14 = vadd.f32 %v550_v13, %v459_v10  ;;  %v190_v10 = vld [vmem:[%s2297_s0 + $0x580] sm:$0xff] }
  0xaf   :  { %v369_v15 = vpop.f32.mrf.mxu0 }
  0xb0   :  { %v370_v18 = vadd.f32 %v1672_v51, %v369_v15  ;;  %v642_v19 = vpop.f32.mrf.mxu3 }
  0xb1   :  { %v1724_v20 = vadd.f32 %v642_v19, %v551_v14  ;;  %v461_v21 = vpop.f32.mrf.mxu1 }
  0xb2   :  { %v462_v23 = vadd.f32 %v461_v21, %v370_v18  ;;  %416 = vmatmul.f32.gmra.mxu0 %v158_v16  ;;  %600 = vmatmul.f32.gmra.mxu2 %v160_v17  ;;  %v191_v16 = vld [vmem:[%s2297_s0 + $0x588] sm:$0xff]  ;;  %v193_v18 = vld [vmem:[%s2297_s0 + $0x598] sm:$0xff] }
  0xb4   :  { %508 = vmatmul.f32.gmra.mxu1 %v159_v22 }
  0xb5   :  { %692 = vmatmul.f32.gmra.mxu3 %v161_v24  ;;  %v553_v28 = vpop.f32.mrf.mxu2  ;;  %v200_v24 = vld [vmem:[%s2297_s0 + $0x5d0] sm:$0xff] }
  0xb6   :  { %v554_v29 = vadd.f32 %v553_v28, %v462_v23  ;;  %v198_v23 = vld [vmem:[%s2297_s0 + $0x5c0] sm:$0xff] }
  0xb7   :  { %v372_v31 = vpop.f32.mrf.mxu0 }
  0xb8   :  { %v373_v34 = vadd.f32 %v1672_v51, %v372_v31  ;;  %v645_v35 = vpop.f32.mrf.mxu3  ;;  %v201_v31 = vld [vmem:[%s2297_s0 + $0x5d8] sm:$0xff] }
  0xb9   :  { %v1751_v36 = vadd.f32 %v645_v35, %v554_v29  ;;  %v464_v37 = vpop.f32.mrf.mxu1  ;;  %v199_v29 = vld [vmem:[%s2297_s0 + $0x5c8] sm:$0xff]  ;;  %v206_v35 = vld [vmem:[%s2297_s0 + $0x600] sm:$0xff] }
  0xba   :  { %v465_v39 = vadd.f32 %v464_v37, %v373_v34  ;;  %419 = vmatmul.f32.gmra.mxu0 %v166_v32  ;;  %603 = vmatmul.f32.gmra.mxu2 %v168_v33  ;;  %v208_v37 = vld [vmem:[%s2297_s0 + $0x610] sm:$0xff] }
  0xbc   :  { %511 = vmatmul.f32.gmra.mxu1 %v167_v38 }
  0xbd   :  { %695 = vmatmul.f32.gmra.mxu3 %v169_v40  ;;  %v556_v41 = vpop.f32.mrf.mxu2 }
  0xbe   :  { %v557_v42 = vadd.f32 %v556_v41, %v465_v39 }
  0xbf   :  { %v375_v44 = vpop.f32.mrf.mxu0 }
  0xc0   :  { %v376_v47 = vadd.f32 %v1672_v51, %v375_v44  ;;  %v648_v48 = vpop.f32.mrf.mxu3  ;;  %v209_v44 = vld [vmem:[%s2297_s0 + $0x618] sm:$0xff] }
  0xc1   :  { %v1769_v49 = vadd.f32 %v648_v48, %v557_v42  ;;  %v467_v50 = vpop.f32.mrf.mxu1  ;;  %v207_v42 = vld [vmem:[%s2297_s0 + $0x608] sm:$0xff]  ;;  %v18_v48 = vld [vmem:[%s2297_s0 + $0x20] sm:$0xff] }
  0xc2   :  { %v468_v55 = vadd.f32 %v467_v50, %v376_v47  ;;  %422 = vmatmul.f32.gmra.mxu0 %v174_v45  ;;  %606 = vmatmul.f32.gmra.mxu2 %v176_v46  ;;  %v20_v50 = vld [vmem:[%s2297_s0 + $0x30] sm:$0xff] }
  0xc4   :  { %514 = vmatmul.f32.gmra.mxu1 %v175_v52 }
  0xc5   :  { %698 = vmatmul.f32.gmra.mxu3 %v177_v56  ;;  %v559_v58 = vpop.f32.mrf.mxu2  ;;  %v19_v56 = vld [vmem:[%s2297_s0 + $0x28] sm:$0xff] }
  0xc6   :  { %v560_v59 = vadd.f32 %v559_v58, %v468_v55  ;;  %v21_v58 = vld [vmem:[%s2297_s0 + $0x38] sm:$0xff] }
  0xc7   :  { %v378_v60 = vpop.f32.mrf.mxu0 }
  0xc8   :  { %v379_v63 = vadd.f32 %v1672_v51, %v378_v60  ;;  %v651_v0 = vpop.f32.mrf.mxu3 }
  0xc9   :  { %v1793_v1 = vadd.f32 %v651_v0, %v560_v59  ;;  %v470_v2 = vpop.f32.mrf.mxu1 }
  0xca   :  { %v471_v4 = vadd.f32 %v470_v2, %v379_v63  ;;  %425 = vmatmul.f32.gmra.mxu0 %v182_v61  ;;  %609 = vmatmul.f32.gmra.mxu2 %v184_v62  ;;  %v26_v62 = vld [vmem:[%s2297_s0 + $0x60] sm:$0xff]  ;;  %v28_v63 = vld [vmem:[%s2297_s0 + $0x70] sm:$0xff] }
  0xcc   :  { %517 = vmatmul.f32.gmra.mxu1 %v183_v3 }
  0xcd   :  { %701 = vmatmul.f32.gmra.mxu3 %v185_v6  ;;  %v562_v7 = vpop.f32.mrf.mxu2  ;;  %v27_v6 = vld [vmem:[%s2297_s0 + $0x68] sm:$0xff] }
  0xce   :  { %v563_v8 = vadd.f32 %v562_v7, %v471_v4 }
  0xcf   :  { %v381_v9 = vpop.f32.mrf.mxu0 }
  0xd0   :  { %v382_v12 = vadd.f32 %v1672_v51, %v381_v9  ;;  %v654_v13 = vpop.f32.mrf.mxu3 }
  0xd1   :  { %v1808_v14 = vadd.f32 %v654_v13, %v563_v8  ;;  %v473_v15 = vpop.f32.mrf.mxu1  ;;  %v29_v8 = vld [vmem:[%s2297_s0 + $0x78] sm:$0xff]  ;;  %v36_v13 = vld [vmem:[%s2297_s0 + $0xb0] sm:$0xff] }
  0xd2   :  { %v474_v17 = vadd.f32 %v473_v15, %v382_v12  ;;  %428 = vmatmul.f32.gmra.mxu0 %v190_v10  ;;  %612 = vmatmul.f32.gmra.mxu2 %v192_v11  ;;  %v34_v12 = vld [vmem:[%s2297_s0 + $0xa0] sm:$0xff] }
  0xd4   :  { %520 = vmatmul.f32.gmra.mxu1 %v191_v16 }
  0xd5   :  { %704 = vmatmul.f32.gmra.mxu3 %v193_v18  ;;  %v565_v19 = vpop.f32.mrf.mxu2 }
  0xd6   :  { %v566_v21 = vadd.f32 %v565_v19, %v474_v17  ;;  %v35_v19 = vld [vmem:[%s2297_s0 + $0xa8] sm:$0xff] }
  0xd7   :  { %v384_v22 = vpop.f32.mrf.mxu0 }
  0xd8   :  { %v385_v25 = vadd.f32 %v1672_v51, %v384_v22  ;;  %v657_v26 = vpop.f32.mrf.mxu3  ;;  %v37_v22 = vld [vmem:[%s2297_s0 + $0xb8] sm:$0xff] }
  0xd9   :  { %v1823_v27 = vadd.f32 %v657_v26, %v566_v21  ;;  %v476_v28 = vpop.f32.mrf.mxu1  ;;  %v42_v26 = vld [vmem:[%s2297_s0 + $0xe0] sm:$0xff] }
  0xda   :  { %v477_v30 = vadd.f32 %v476_v28, %v385_v25  ;;  %431 = vmatmul.f32.gmra.mxu0 %v198_v23  ;;  %615 = vmatmul.f32.gmra.mxu2 %v200_v24  ;;  %v44_v28 = vld [vmem:[%s2297_s0 + $0xf0] sm:$0xff] }
  0xdc   :  { %523 = vmatmul.f32.gmra.mxu1 %v199_v29 }
  0xdd   :  { %707 = vmatmul.f32.gmra.mxu3 %v201_v31  ;;  %v568_v32 = vpop.f32.mrf.mxu2 }
  0xde   :  { %v569_v33 = vadd.f32 %v568_v32, %v477_v30 }
  0xdf   :  { %v387_v34 = vpop.f32.mrf.mxu0 }
  0xe0   :  { %v388_v38 = vadd.f32 %v1672_v51, %v387_v34  ;;  %v660_v39 = vpop.f32.mrf.mxu3 }
  0xe1   :  { %v1838_v40 = vadd.f32 %v660_v39, %v569_v33  ;;  %v479_v41 = vpop.f32.mrf.mxu1  ;;  %v43_v33 = vld [vmem:[%s2297_s0 + $0xe8] sm:$0xff] }
  0xe2   :  { %v480_v43 = vadd.f32 %v479_v41, %v388_v38  ;;  %434 = vmatmul.f32.gmra.mxu0 %v206_v35  ;;  %618 = vmatmul.f32.gmra.mxu2 %v208_v37  ;;  %v45_v35 = vld [vmem:[%s2297_s0 + $0xf8] sm:$0xff]  ;;  %v50_v41 = vld [vmem:[%s2297_s0 + $0x120] sm:$0xff] }
  0xe4   :  { %526 = vmatmul.f32.gmra.mxu1 %v207_v42  ;;  %v52_v42 = vld [vmem:[%s2297_s0 + $0x130] sm:$0xff] }
  0xe5   :  { %710 = vmatmul.f32.gmra.mxu3 %v209_v44  ;;  %v571_v45 = vpop.f32.mrf.mxu2 }
  0xe6   :  { %v572_v46 = vadd.f32 %v571_v45, %v480_v43 }
  0xe7   :  { %v390_v47 = vpop.f32.mrf.mxu0 }
  0xe8   :  { %v391_v52 = vadd.f32 %v1672_v51, %v390_v47  ;;  %v663_v53 = vpop.f32.mrf.mxu3  ;;  %v51_v47 = vld [vmem:[%s2297_s0 + $0x128] sm:$0xff] }
  0xe9   :  { %v1853_v54 = vadd.f32 %v663_v53, %v572_v46  ;;  %v482_v55 = vpop.f32.mrf.mxu1 }
  0xea   :  { %v483_v57 = vadd.f32 %v482_v55, %v391_v52  ;;  %730 = vmatmul.f32.vlgmr.msrb.gmra.mxu0 %v18_v48  ;;  %914 = vmatmul.f32.vlgmr.msrb.gmra.mxu2 %v20_v50  ;;  %v53_v50 = vld [vmem:[%s2297_s0 + $0x138] sm:$0xff] }
  0xec   :  { %822 = vmatmul.f32.vlgmr.msrb.gmra.mxu1 %v19_v56  ;;  %v58_v56 = vld [vmem:[%s2297_s0 + $0x160] sm:$0xff] }
  0xed   :  { %1006 = vmatmul.f32.vlgmr.msrb.gmra.mxu3 %v21_v58  ;;  %v574_v59 = vpop.f32.mrf.mxu2 }
  0xee   :  { %v575_v60 = vadd.f32 %v574_v59, %v483_v57  ;;  %v60_v57 = vld [vmem:[%s2297_s0 + $0x170] sm:$0xff] }
  0xef   :  { %v393_v61 = vpop.f32.mrf.mxu0 }
  0xf0   :  { %v394_v0 = vadd.f32 %v1672_v51, %v393_v61  ;;  %v666_v2 = vpop.f32.mrf.mxu3 }
  0xf1   :  { %v1868_v3 = vadd.f32 %v666_v2, %v575_v60  ;;  %v485_v4 = vpop.f32.mrf.mxu1 }
  0xf2   :  { %v486_v7 = vadd.f32 %v485_v4, %v394_v0  ;;  %733 = vmatmul.f32.gmra.mxu0 %v26_v62  ;;  %917 = vmatmul.f32.gmra.mxu2 %v28_v63  ;;  %v59_v62 = vld [vmem:[%s2297_s0 + $0x168] sm:$0xff]  ;;  %v61_v0 = vld [vmem:[%s2297_s0 + $0x178] sm:$0xff] }
  0xf4   :  { %825 = vmatmul.f32.gmra.mxu1 %v27_v6 }
  0xf5   :  { %1009 = vmatmul.f32.gmra.mxu3 %v29_v8  ;;  %v577_v9 = vpop.f32.mrf.mxu2  ;;  %v68_v8 = vld [vmem:[%s2297_s0 + $0x1b0] sm:$0xff] }
  0xf6   :  { %v578_v10 = vadd.f32 %v577_v9, %v486_v7  ;;  %v66_v7 = vld [vmem:[%s2297_s0 + $0x1a0] sm:$0xff] }
  0xf7   :  { %v396_v11 = vpop.f32.mrf.mxu0 }
  0xf8   :  { %v397_v15 = vadd.f32 %v1672_v51, %v396_v11  ;;  %v669_v16 = vpop.f32.mrf.mxu3 }
  0xf9   :  { %v1883_v17 = vadd.f32 %v669_v16, %v578_v10  ;;  %v488_v18 = vpop.f32.mrf.mxu1  ;;  %v69_v16 = vld [vmem:[%s2297_s0 + $0x1b8] sm:$0xff] }
  0xfa   :  { %v489_v21 = vadd.f32 %v488_v18, %v397_v15  ;;  %736 = vmatmul.f32.gmra.mxu0 %v34_v12  ;;  %920 = vmatmul.f32.gmra.mxu2 %v36_v13  ;;  %v67_v13 = vld [vmem:[%s2297_s0 + $0x1a8] sm:$0xff] }
  0xfc   :  { %828 = vmatmul.f32.gmra.mxu1 %v35_v19 }
  0xfd   :  { %1012 = vmatmul.f32.gmra.mxu3 %v37_v22  ;;  %v580_v23 = vpop.f32.mrf.mxu2  ;;  %v74_v22 = vld [vmem:[%s2297_s0 + $0x1e0] sm:$0xff] }
  0xfe   :  { %v581_v24 = vadd.f32 %v580_v23, %v489_v21  ;;  %v76_v23 = vld [vmem:[%s2297_s0 + $0x1f0] sm:$0xff] }
  0xff   :  { %v399_v25 = vpop.f32.mrf.mxu0 }
 0x100   :  { %v400_v29 = vadd.f32 %v1672_v51, %v399_v25  ;;  %v672_v30 = vpop.f32.mrf.mxu3 }
 0x101   :  { %v1898_v31 = vadd.f32 %v672_v30, %v581_v24  ;;  %v491_v32 = vpop.f32.mrf.mxu1 }
 0x102   :  { %v492_v34 = vadd.f32 %v491_v32, %v400_v29  ;;  %739 = vmatmul.f32.gmra.mxu0 %v42_v26  ;;  %923 = vmatmul.f32.gmra.mxu2 %v44_v28  ;;  %v75_v29 = vld [vmem:[%s2297_s0 + $0x1e8] sm:$0xff]  ;;  %v77_v32 = vld [vmem:[%s2297_s0 + $0x1f8] sm:$0xff] }
 0x104   :  { %831 = vmatmul.f32.gmra.mxu1 %v43_v33 }
 0x105   :  { %1015 = vmatmul.f32.gmra.mxu3 %v45_v35  ;;  %v583_v37 = vpop.f32.mrf.mxu2 }
 0x106   :  { %v584_v38 = vadd.f32 %v583_v37, %v492_v34  ;;  %v82_v37 = vld [vmem:[%s2297_s0 + $0x220] sm:$0xff] }
 0x107   :  { %v402_v39 = vpop.f32.mrf.mxu0 }
 0x108   :  { %v403_v43 = vadd.f32 %v1672_v51, %v402_v39  ;;  %v675_v44 = vpop.f32.mrf.mxu3 }
 0x109   :  { %v1913_v45 = vadd.f32 %v675_v44, %v584_v38  ;;  %v494_v46 = vpop.f32.mrf.mxu1  ;;  %v84_v38 = vld [vmem:[%s2297_s0 + $0x230] sm:$0xff]  ;;  %v83_v44 = vld [vmem:[%s2297_s0 + $0x228] sm:$0xff] }
 0x10a   :  { %v495_v48 = vadd.f32 %v494_v46, %v403_v43  ;;  %742 = vmatmul.f32.gmra.mxu0 %v50_v41  ;;  %926 = vmatmul.f32.gmra.mxu2 %v52_v42 }
 0x10c   :  { %834 = vmatmul.f32.gmra.mxu1 %v51_v47  ;;  %v85_v47 = vld [vmem:[%s2297_s0 + $0x238] sm:$0xff] }
 0x10d   :  { %1018 = vmatmul.f32.gmra.mxu3 %v53_v50  ;;  %v586_v52 = vpop.f32.mrf.mxu2 }
 0x10e   :  { %v587_v53 = vadd.f32 %v586_v52, %v495_v48 }
 0x10f   :  { %v405_v55 = vpop.f32.mrf.mxu0 }
 0x110   :  { %v406_v58 = vadd.f32 %v1672_v51, %v405_v55  ;;  %v678_v59 = vpop.f32.mrf.mxu3  ;;  %v92_v55 = vld [vmem:[%s2297_s0 + $0x270] sm:$0xff] }
 0x111   :  { %v1928_v60 = vadd.f32 %v678_v59, %v587_v53  ;;  %v497_v61 = vpop.f32.mrf.mxu1  ;;  %v90_v53 = vld [vmem:[%s2297_s0 + $0x260] sm:$0xff] }
 0x112   :  { %v498_v63 = vadd.f32 %v497_v61, %v406_v58  ;;  %745 = vmatmul.f32.gmra.mxu0 %v58_v56  ;;  %929 = vmatmul.f32.gmra.mxu2 %v60_v57  ;;  %v91_v61 = vld [vmem:[%s2297_s0 + $0x268] sm:$0xff] }
 0x114   :  { %837 = vmatmul.f32.gmra.mxu1 %v59_v62 }
 0x115   :  { %1021 = vmatmul.f32.gmra.mxu3 %v61_v0  ;;  %v589_v2 = vpop.f32.mrf.mxu2 }
 0x116   :  { %v590_v4 = vadd.f32 %v589_v2, %v498_v63  ;;  %v93_v63 = vld [vmem:[%s2297_s0 + $0x278] sm:$0xff] }
 0x117   :  { %v408_v6 = vpop.f32.mrf.mxu0 }
 0x118   :  { %v409_v9 = vadd.f32 %v1672_v51, %v408_v6  ;;  %v681_v10 = vpop.f32.mrf.mxu3  ;;  %v98_v6 = vld [vmem:[%s2297_s0 + $0x2a0] sm:$0xff] }
 0x119   :  { %v1943_v11 = vadd.f32 %v681_v10, %v590_v4  ;;  %v500_v12 = vpop.f32.mrf.mxu1 }
 0x11a   :  { %v501_v15 = vadd.f32 %v500_v12, %v409_v9  ;;  %748 = vmatmul.f32.gmra.mxu0 %v66_v7  ;;  %932 = vmatmul.f32.gmra.mxu2 %v68_v8  ;;  %v100_v7 = vld [vmem:[%s2297_s0 + $0x2b0] sm:$0xff] }
 0x11c   :  { %840 = vmatmul.f32.gmra.mxu1 %v67_v13  ;;  %v99_v13 = vld [vmem:[%s2297_s0 + $0x2a8] sm:$0xff] }
 0x11d   :  { %1024 = vmatmul.f32.gmra.mxu3 %v69_v16  ;;  %v592_v18 = vpop.f32.mrf.mxu2  ;;  %v101_v16 = vld [vmem:[%s2297_s0 + $0x2b8] sm:$0xff] }
 0x11e   :  { %v593_v19 = vadd.f32 %v592_v18, %v501_v15 }
 0x11f   :  { %v411_v21 = vpop.f32.mrf.mxu0 }
 0x120   :  { %v412_v24 = vadd.f32 %v1672_v51, %v411_v21  ;;  %v684_v25 = vpop.f32.mrf.mxu3 }
 0x121   :  { %v1958_v26 = vadd.f32 %v684_v25, %v593_v19  ;;  %v503_v28 = vpop.f32.mrf.mxu1 }
 0x122   :  { %v504_v30 = vadd.f32 %v503_v28, %v412_v24  ;;  %751 = vmatmul.f32.gmra.mxu0 %v74_v22  ;;  %935 = vmatmul.f32.gmra.mxu2 %v76_v23  ;;  %v106_v22 = vld [vmem:[%s2297_s0 + $0x2e0] sm:$0xff]  ;;  %v108_v23 = vld [vmem:[%s2297_s0 + $0x2f0] sm:$0xff] }
 0x124   :  { %843 = vmatmul.f32.gmra.mxu1 %v75_v29 }
 0x125   :  { %1027 = vmatmul.f32.gmra.mxu3 %v77_v32  ;;  %v595_v33 = vpop.f32.mrf.mxu2 }
 0x126   :  { %v596_v34 = vadd.f32 %v595_v33, %v504_v30  ;;  %v107_v30 = vld [vmem:[%s2297_s0 + $0x2e8] sm:$0xff]  ;;  %v109_v33 = vld [vmem:[%s2297_s0 + $0x2f8] sm:$0xff] }
 0x127   :  { %v414_v35 = vpop.f32.mrf.mxu0 }
 0x128   :  { %v415_v39 = vadd.f32 %v1672_v51, %v414_v35  ;;  %v687_v41 = vpop.f32.mrf.mxu3 }
 0x129   :  { %v1973_v42 = vadd.f32 %v687_v41, %v596_v34  ;;  %v506_v43 = vpop.f32.mrf.mxu1 }
 0x12a   :  { %v507_v46 = vadd.f32 %v506_v43, %v415_v39  ;;  %754 = vmatmul.f32.gmra.mxu0 %v82_v37  ;;  %938 = vmatmul.f32.gmra.mxu2 %v84_v38  ;;  %v114_v38 = vld [vmem:[%s2297_s0 + $0x320] sm:$0xff]  ;;  %v116_v39 = vld [vmem:[%s2297_s0 + $0x330] sm:$0xff] }
 0x12c   :  { %846 = vmatmul.f32.gmra.mxu1 %v83_v44 }
 0x12d   :  { %1030 = vmatmul.f32.gmra.mxu3 %v85_v47  ;;  %v598_v48 = vpop.f32.mrf.mxu2  ;;  %v115_v47 = vld [vmem:[%s2297_s0 + $0x328] sm:$0xff] }
 0x12e   :  { %v599_v50 = vadd.f32 %v598_v48, %v507_v46 }
 0x12f   :  { %v417_v52 = vpop.f32.mrf.mxu0 }
 0x130   :  { %v418_v56 = vadd.f32 %v1672_v51, %v417_v52  ;;  %v690_v57 = vpop.f32.mrf.mxu3 }
 0x131   :  { %v1988_v58 = vadd.f32 %v690_v57, %v599_v50  ;;  %v509_v59 = vpop.f32.mrf.mxu1  ;;  %v117_v50 = vld [vmem:[%s2297_s0 + $0x338] sm:$0xff]  ;;  %v124_v57 = vld [vmem:[%s2297_s0 + $0x370] sm:$0xff] }
 0x132   :  { %v510_v62 = vadd.f32 %v509_v59, %v418_v56  ;;  %757 = vmatmul.f32.gmra.mxu0 %v90_v53  ;;  %941 = vmatmul.f32.gmra.mxu2 %v92_v55  ;;  %v122_v56 = vld [vmem:[%s2297_s0 + $0x360] sm:$0xff] }
 0x134   :  { %849 = vmatmul.f32.gmra.mxu1 %v91_v61 }
 0x135   :  { %1033 = vmatmul.f32.gmra.mxu3 %v93_v63  ;;  %v601_v0 = vpop.f32.mrf.mxu2 }
 0x136   :  { %v602_v2 = vadd.f32 %v601_v0, %v510_v62  ;;  %v123_v0 = vld [vmem:[%s2297_s0 + $0x368] sm:$0xff] }
 0x137   :  { %v420_v4 = vpop.f32.mrf.mxu0 }
 0x138   :  { %v421_v8 = vadd.f32 %v1672_v51, %v420_v4  ;;  %v693_v9 = vpop.f32.mrf.mxu3  ;;  %v125_v4 = vld [vmem:[%s2297_s0 + $0x378] sm:$0xff] }
 0x139   :  { %v2003_v10 = vadd.f32 %v693_v9, %v602_v2  ;;  %v512_v12 = vpop.f32.mrf.mxu1  ;;  %v130_v9 = vld [vmem:[%s2297_s0 + $0x3a0] sm:$0xff] }
 0x13a   :  { %v513_v15 = vadd.f32 %v512_v12, %v421_v8  ;;  %760 = vmatmul.f32.gmra.mxu0 %v98_v6  ;;  %944 = vmatmul.f32.gmra.mxu2 %v100_v7  ;;  %v132_v12 = vld [vmem:[%s2297_s0 + $0x3b0] sm:$0xff] }
 0x13c   :  { %852 = vmatmul.f32.gmra.mxu1 %v99_v13 }
 0x13d   :  { %1036 = vmatmul.f32.gmra.mxu3 %v101_v16  ;;  %v604_v18 = vpop.f32.mrf.mxu2 }
 0x13e   :  { %v605_v19 = vadd.f32 %v604_v18, %v513_v15 }
 0x13f   :  { %v423_v21 = vpop.f32.mrf.mxu0 }
 0x140   :  { %v424_v24 = vadd.f32 %v1672_v51, %v423_v21  ;;  %v696_v25 = vpop.f32.mrf.mxu3 }
 0x141   :  { %v2018_v28 = vadd.f32 %v696_v25, %v605_v19  ;;  %v515_v29 = vpop.f32.mrf.mxu1  ;;  %v131_v19 = vld [vmem:[%s2297_s0 + $0x3a8] sm:$0xff] }
 0x142   :  { %v516_v32 = vadd.f32 %v515_v29, %v424_v24  ;;  %763 = vmatmul.f32.gmra.mxu0 %v106_v22  ;;  %947 = vmatmul.f32.gmra.mxu2 %v108_v23  ;;  %v133_v22 = vld [vmem:[%s2297_s0 + $0x3b8] sm:$0xff]  ;;  %v138_v29 = vld [vmem:[%s2297_s0 + $0x3e0] sm:$0xff] }
 0x144   :  { %855 = vmatmul.f32.gmra.mxu1 %v107_v30  ;;  %v140_v30 = vld [vmem:[%s2297_s0 + $0x3f0] sm:$0xff] }
 0x145   :  { %1039 = vmatmul.f32.gmra.mxu3 %v109_v33  ;;  %v607_v34 = vpop.f32.mrf.mxu2 }
 0x146   :  { %v608_v35 = vadd.f32 %v607_v34, %v516_v32 }
 0x147   :  { %v426_v37 = vpop.f32.mrf.mxu0 }
 0x148   :  { %v427_v41 = vadd.f32 %v1672_v51, %v426_v37  ;;  %v699_v43 = vpop.f32.mrf.mxu3  ;;  %v139_v37 = vld [vmem:[%s2297_s0 + $0x3e8] sm:$0xff] }
 0x149   :  { %v2033_v44 = vadd.f32 %v699_v43, %v608_v35  ;;  %v518_v46 = vpop.f32.mrf.mxu1 }
 0x14a   :  { %v519_v48 = vadd.f32 %v518_v46, %v427_v41  ;;  %766 = vmatmul.f32.gmra.mxu0 %v114_v38  ;;  %950 = vmatmul.f32.gmra.mxu2 %v116_v39  ;;  %v141_v39 = vld [vmem:[%s2297_s0 + $0x3f8] sm:$0xff]  ;;  %v146_v46 = vld [vmem:[%s2297_s0 + $0x420] sm:$0xff] }
 0x14c   :  { %858 = vmatmul.f32.gmra.mxu1 %v115_v47  ;;  %v148_v47 = vld [vmem:[%s2297_s0 + $0x430] sm:$0xff] }
 0x14d   :  { %1042 = vmatmul.f32.gmra.mxu3 %v117_v50  ;;  %v610_v52 = vpop.f32.mrf.mxu2 }
 0x14e   :  { %v611_v53 = vadd.f32 %v610_v52, %v519_v48 }
 0x14f   :  { %v429_v55 = vpop.f32.mrf.mxu0 }
 0x150   :  { %v430_v59 = vadd.f32 %v1672_v51, %v429_v55  ;;  %v702_v61 = vpop.f32.mrf.mxu3  ;;  %v147_v55 = vld [vmem:[%s2297_s0 + $0x428] sm:$0xff] }
 0x151   :  { %v2048_v62 = vadd.f32 %v702_v61, %v611_v53  ;;  %v521_v63 = vpop.f32.mrf.mxu1 }
 0x152   :  { %v522_v2 = vadd.f32 %v521_v63, %v430_v59  ;;  %769 = vmatmul.f32.gmra.mxu0 %v122_v56  ;;  %953 = vmatmul.f32.gmra.mxu2 %v124_v57  ;;  %v149_v56 = vld [vmem:[%s2297_s0 + $0x438] sm:$0xff] }
 0x154   :  { %861 = vmatmul.f32.gmra.mxu1 %v123_v0  ;;  %v156_v0 = vld [vmem:[%s2297_s0 + $0x470] sm:$0xff] }
 0x155   :  { %1045 = vmatmul.f32.gmra.mxu3 %v125_v4  ;;  %v613_v6 = vpop.f32.mrf.mxu2 }
 0x156   :  { %v614_v7 = vadd.f32 %v613_v6, %v522_v2 }
 0x157   :  { %v432_v8 = vpop.f32.mrf.mxu0 }
 0x158   :  { %v433_v13 = vadd.f32 %v1672_v51, %v432_v8  ;;  %v705_v15 = vpop.f32.mrf.mxu3  ;;  %v155_v8 = vld [vmem:[%s2297_s0 + $0x468] sm:$0xff] }
 0x159   :  { %v2063_v16 = vadd.f32 %v705_v15, %v614_v7  ;;  %v524_v18 = vpop.f32.mrf.mxu1 }
 0x15a   :  { %v525_v21 = vadd.f32 %v524_v18, %v433_v13  ;;  %772 = vmatmul.f32.gmra.mxu0 %v130_v9  ;;  %956 = vmatmul.f32.gmra.mxu2 %v132_v12  ;;  %v157_v9 = vld [vmem:[%s2297_s0 + $0x478] sm:$0xff]  ;;  %v162_v18 = vld [vmem:[%s2297_s0 + $0x4a0] sm:$0xff] }
 0x15c   :  { %864 = vmatmul.f32.gmra.mxu1 %v131_v19  ;;  %v164_v19 = vld [vmem:[%s2297_s0 + $0x4b0] sm:$0xff] }
 0x15d   :  { %1048 = vmatmul.f32.gmra.mxu3 %v133_v22  ;;  %v616_v23 = vpop.f32.mrf.mxu2 }
 0x15e   :  { %v617_v24 = vadd.f32 %v616_v23, %v525_v21 }
 0x15f   :  { %v435_v25 = vpop.f32.mrf.mxu0 }
 0x160   :  { %v436_v32 = vadd.f32 %v1672_v51, %v435_v25  ;;  %v708_v33 = vpop.f32.mrf.mxu3  ;;  %v163_v25 = vld [vmem:[%s2297_s0 + $0x4a8] sm:$0xff] }
 0x161   :  { %v2078_v34 = vadd.f32 %v708_v33, %v617_v24  ;;  %v527_v35 = vpop.f32.mrf.mxu1 }
 0x162   :  { %v528_v38 = vadd.f32 %v527_v35, %v436_v32  ;;  %775 = vmatmul.f32.gmra.mxu0 %v138_v29  ;;  %959 = vmatmul.f32.gmra.mxu2 %v140_v30  ;;  %v165_v29 = vld [vmem:[%s2297_s0 + $0x4b8] sm:$0xff]  ;;  %v170_v35 = vld [vmem:[%s2297_s0 + $0x4e0] sm:$0xff] }
 0x164   :  { %867 = vmatmul.f32.gmra.mxu1 %v139_v37  ;;  %v172_v37 = vld [vmem:[%s2297_s0 + $0x4f0] sm:$0xff] }
 0x165   :  { %1051 = vmatmul.f32.gmra.mxu3 %v141_v39  ;;  %v619_v41 = vpop.f32.mrf.mxu2 }
 0x166   :  { %v620_v43 = vadd.f32 %v619_v41, %v528_v38 }
 0x167   :  { %v731_v51 = vpop.f32.mrf.mxu0 }
 0x168   :  { %v711_v48 = vpop.f32.mrf.mxu3  ;;  %v732_v50 = vadd.f32 %v731_v51, %v1700_v5  ;;  %v154_v5 = vld [vmem:[%s2297_s0 + $0x460] sm:$0xff]  ;;  %v171_v51 = vld [vmem:[%s2297_s0 + $0x4e8] sm:$0xff] }
 0x169   :  { %v2093_v52 = vadd.f32 %v711_v48, %v620_v43  ;;  %v823_v53 = vpop.f32.mrf.mxu1 }
 0x16a   :  { %778 = vmatmul.f32.gmra.mxu0 %v146_v46  ;;  %962 = vmatmul.f32.gmra.mxu2 %v148_v47  ;;  %v824_v57 = vadd.f32 %v823_v53, %v732_v50  ;;  %v173_v46 = vld [vmem:[%s2297_s0 + $0x4f8] sm:$0xff]  ;;  %v178_v53 = vld [vmem:[%s2297_s0 + $0x520] sm:$0xff] }
 0x16c   :  { %870 = vmatmul.f32.gmra.mxu1 %v147_v55  ;;  %v180_v55 = vld [vmem:[%s2297_s0 + $0x530] sm:$0xff] }
 0x16d   :  { %1054 = vmatmul.f32.gmra.mxu3 %v149_v56  ;;  %v915_v59 = vpop.f32.mrf.mxu2 }
 0x16e   :  { %v916_v61 = vadd.f32 %v915_v59, %v824_v57 }
 0x16f   :  { %v734_v63 = vpop.f32.mrf.mxu0 }
 0x170   :  { %v735_v2 = vadd.f32 %v734_v63, %v1724_v20  ;;  %v1007_v4 = vpop.f32.mrf.mxu3  ;;  %v179_v63 = vld [vmem:[%s2297_s0 + $0x528] sm:$0xff] }
 0x171   :  { %v1008_v6 = vadd.f32 %v1007_v4, %v916_v61  ;;  %v826_v7 = vpop.f32.mrf.mxu1 }
 0x172   :  { %781 = vmatmul.f32.gmra.mxu0 %v154_v5  ;;  %965 = vmatmul.f32.gmra.mxu2 %v156_v0  ;;  %v827_v12 = vadd.f32 %v826_v7, %v735_v2  ;;  %v181_v5 = vld [vmem:[%s2297_s0 + $0x538] sm:$0xff]  ;;  %v188_v7 = vld [vmem:[%s2297_s0 + $0x570] sm:$0xff] }
 0x173   :  { %1082 = vst [vmem:[%s2299_s3] sm:$0xff] %v1008_v6  ;;  %v186_v6 = vld [vmem:[%s2297_s0 + $0x560] sm:$0xff] }
 0x174   :  { %873 = vmatmul.f32.gmra.mxu1 %v155_v8 }
 0x175   :  { %1057 = vmatmul.f32.gmra.mxu3 %v157_v9  ;;  %v918_v20 = vpop.f32.mrf.mxu2 }
 0x176   :  { %v919_v13 = vadd.f32 %v918_v20, %v827_v12 }
 0x177   :  { %v737_v15 = vpop.f32.mrf.mxu0 }
 0x178   :  { %v738_v21 = vadd.f32 %v737_v15, %v1751_v36  ;;  %v1010_v22 = vpop.f32.mrf.mxu3  ;;  %v189_v15 = vld [vmem:[%s2297_s0 + $0x578] sm:$0xff] }
 0x179   :  { %v1011_v23 = vadd.f32 %v1010_v22, %v919_v13  ;;  %v829_v24 = vpop.f32.mrf.mxu1  ;;  %v187_v13 = vld [vmem:[%s2297_s0 + $0x568] sm:$0xff]  ;;  %v194_v22 = vld [vmem:[%s2297_s0 + $0x5a0] sm:$0xff] }
 0x17a   :  { %784 = vmatmul.f32.gmra.mxu0 %v162_v18  ;;  %968 = vmatmul.f32.gmra.mxu2 %v164_v19  ;;  %v830_v30 = vadd.f32 %v829_v24, %v738_v21 }
 0x17b   :  { %1083 = vst [vmem:[%s2299_s3 + $0x8] sm:$0xff] %v1011_v23  ;;  %v196_v23 = vld [vmem:[%s2297_s0 + $0x5b0] sm:$0xff] }
 0x17c   :  { %876 = vmatmul.f32.gmra.mxu1 %v163_v25 }
 0x17d   :  { %1060 = vmatmul.f32.gmra.mxu3 %v165_v29  ;;  %v921_v36 = vpop.f32.mrf.mxu2 }
 0x17e   :  { %v922_v32 = vadd.f32 %v921_v36, %v830_v30  ;;  %v195_v36 = vld [vmem:[%s2297_s0 + $0x5a8] sm:$0xff] }
 0x17f   :  { %v740_v33 = vpop.f32.mrf.mxu0 }
 0x180   :  { %v741_v38 = vadd.f32 %v740_v33, %v1769_v49  ;;  %v1013_v39 = vpop.f32.mrf.mxu3 }
 0x181   :  { %v1014_v41 = vadd.f32 %v1013_v39, %v922_v32  ;;  %v832_v43 = vpop.f32.mrf.mxu1  ;;  %v197_v32 = vld [vmem:[%s2297_s0 + $0x5b8] sm:$0xff]  ;;  %v204_v39 = vld [vmem:[%s2297_s0 + $0x5f0] sm:$0xff] }
 0x182   :  { %787 = vmatmul.f32.gmra.mxu0 %v170_v35  ;;  %971 = vmatmul.f32.gmra.mxu2 %v172_v37  ;;  %v833_v47 = vadd.f32 %v832_v43, %v741_v38  ;;  %v202_v38 = vld [vmem:[%s2297_s0 + $0x5e0] sm:$0xff] }
 0x183   :  { %1084 = vst [vmem:[%s2299_s3 + $0x10] sm:$0xff] %v1014_v41 }
 0x184   :  { %879 = vmatmul.f32.gmra.mxu1 %v171_v51 }
 0x185   :  { %1063 = vmatmul.f32.gmra.mxu3 %v173_v46  ;;  %v924_v49 = vpop.f32.mrf.mxu2 }
 0x186   :  { %v925_v48 = vadd.f32 %v924_v49, %v833_v47  ;;  %v203_v47 = vld [vmem:[%s2297_s0 + $0x5e8] sm:$0xff]  ;;  %v205_v49 = vld [vmem:[%s2297_s0 + $0x5f8] sm:$0xff] }
 0x187   :  { %v743_v50 = vpop.f32.mrf.mxu0 }
 0x188   :  { %v744_v56 = vadd.f32 %v743_v50, %v1793_v1  ;;  %v1016_v57 = vpop.f32.mrf.mxu3 }
 0x189   :  { %v1017_v59 = vadd.f32 %v1016_v57, %v925_v48  ;;  %v835_v61 = vpop.f32.mrf.mxu1 }
 0x18a   :  { %790 = vmatmul.f32.gmra.mxu0 %v178_v53  ;;  %974 = vmatmul.f32.gmra.mxu2 %v180_v55  ;;  %v836_v0 = vadd.f32 %v835_v61, %v744_v56  ;;  %v210_v55 = vld [vmem:[%s2297_s0 + $0x620] sm:$0xff]  ;;  %v212_v56 = vld [vmem:[%s2297_s0 + $0x630] sm:$0xff] }
 0x18b   :  { %1085 = vst [vmem:[%s2299_s3 + $0x18] sm:$0xff] %v1017_v59 }
 0x18c   :  { %882 = vmatmul.f32.gmra.mxu1 %v179_v63 }
 0x18d   :  { %1066 = vmatmul.f32.gmra.mxu3 %v181_v5  ;;  %v927_v1 = vpop.f32.mrf.mxu2  ;;  %v211_v5 = vld [vmem:[%s2297_s0 + $0x628] sm:$0xff] }
 0x18e   :  { %v928_v2 = vadd.f32 %v927_v1, %v836_v0  ;;  %v213_v0 = vld [vmem:[%s2297_s0 + $0x638] sm:$0xff] }
 0x18f   :  { %v746_v4 = vpop.f32.mrf.mxu0 }
 0x190   :  { %v747_v8 = vadd.f32 %v746_v4, %v1808_v14  ;;  %v1019_v9 = vpop.f32.mrf.mxu3 }
 0x191   :  { %v1020_v12 = vadd.f32 %v1019_v9, %v928_v2  ;;  %v838_v20 = vpop.f32.mrf.mxu1 }
 0x192   :  { %793 = vmatmul.f32.gmra.mxu0 %v186_v6  ;;  %977 = vmatmul.f32.gmra.mxu2 %v188_v7  ;;  %v839_v18 = vadd.f32 %v838_v20, %v747_v8 }
 0x193   :  { %1086 = vst [vmem:[%s2299_s3 + $0x20] sm:$0xff] %v1020_v12 }
 0x194   :  { %885 = vmatmul.f32.gmra.mxu1 %v187_v13 }
 0x195   :  { %1069 = vmatmul.f32.gmra.mxu3 %v189_v15  ;;  %v930_v14 = vpop.f32.mrf.mxu2 }
 0x196   :  { %v931_v19 = vadd.f32 %v930_v14, %v839_v18 }
 0x197   :  { %v749_v21 = vpop.f32.mrf.mxu0 }
 0x198   :  { %v750_v24 = vadd.f32 %v749_v21, %v1823_v27  ;;  %v1022_v25 = vpop.f32.mrf.mxu3 }
 0x199   :  { %v1023_v29 = vadd.f32 %v1022_v25, %v931_v19  ;;  %v841_v30 = vpop.f32.mrf.mxu1 }
 0x19a   :  { %796 = vmatmul.f32.gmra.mxu0 %v194_v22  ;;  %980 = vmatmul.f32.gmra.mxu2 %v196_v23  ;;  %v842_v33 = vadd.f32 %v841_v30, %v750_v24 }
 0x19b   :  { %1087 = vst [vmem:[%s2299_s3 + $0x28] sm:$0xff] %v1023_v29 }
 0x19c   :  { %888 = vmatmul.f32.gmra.mxu1 %v195_v36 }
 0x19d   :  { %1072 = vmatmul.f32.gmra.mxu3 %v197_v32  ;;  %v933_v27 = vpop.f32.mrf.mxu2 }
 0x19e   :  { %v934_v35 = vadd.f32 %v933_v27, %v842_v33 }
 0x19f   :  { %v752_v37 = vpop.f32.mrf.mxu0 }
 0x1a0   :  { %v753_v41 = vadd.f32 %v752_v37, %v1838_v40  ;;  %v1025_v43 = vpop.f32.mrf.mxu3 }
 0x1a1   :  { %v1026_v51 = vadd.f32 %v1025_v43, %v934_v35  ;;  %v844_v46 = vpop.f32.mrf.mxu1 }
 0x1a2   :  { %799 = vmatmul.f32.gmra.mxu0 %v202_v38  ;;  %983 = vmatmul.f32.gmra.mxu2 %v204_v39  ;;  %v845_v48 = vadd.f32 %v844_v46, %v753_v41 }
 0x1a3   :  { %1088 = vst [vmem:[%s2299_s3 + $0x30] sm:$0xff] %v1026_v51 }
 0x1a4   :  { %891 = vmatmul.f32.gmra.mxu1 %v203_v47 }
 0x1a5   :  { %1075 = vmatmul.f32.gmra.mxu3 %v205_v49  ;;  %v936_v40 = vpop.f32.mrf.mxu2 }
 0x1a6   :  { %v937_v50 = vadd.f32 %v936_v40, %v845_v48 }
 0x1a7   :  { %v755_v53 = vpop.f32.mrf.mxu0 }
 0x1a8   :  { %v756_v57 = vadd.f32 %v755_v53, %v1853_v54  ;;  %v1028_v59 = vpop.f32.mrf.mxu3 }
 0x1a9   :  { %v1029_v61 = vadd.f32 %v1028_v59, %v937_v50  ;;  %v847_v63 = vpop.f32.mrf.mxu1 }
 0x1aa   :  { %802 = vmatmul.f32.gmra.mxu0 %v210_v55  ;;  %986 = vmatmul.f32.gmra.mxu2 %v212_v56  ;;  %v848_v1 = vadd.f32 %v847_v63, %v756_v57 }
 0x1ab   :  { %1089 = vst [vmem:[%s2299_s3 + $0x38] sm:$0xff] %v1029_v61 }
 0x1ac   :  { %894 = vmatmul.f32.gmra.mxu1 %v211_v5 }
 0x1ad   :  { %1078 = vmatmul.f32.gmra.mxu3 %v213_v0  ;;  %v939_v54 = vpop.f32.mrf.mxu2 }
 0x1ae   :  { %v940_v2 = vadd.f32 %v939_v54, %v848_v1 }
 0x1af   :  { %v758_v4 = vpop.f32.mrf.mxu0 }
 0x1b0   :  { %v759_v6 = vadd.f32 %v758_v4, %v1868_v3  ;;  %v1031_v7 = vpop.f32.mrf.mxu3 }
 0x1b1   :  { %v1032_v8 = vadd.f32 %v1031_v7, %v940_v2  ;;  %v850_v9 = vpop.f32.mrf.mxu1 }
 0x1b2   :  { %v851_v12 = vadd.f32 %v850_v9, %v759_v6 }
 0x1b3   :  { %1090 = vst [vmem:[%s2299_s3 + $0x40] sm:$0xff] %v1032_v8 }
 0x1b5   :  { %v942_v20 = vpop.f32.mrf.mxu2 }
 0x1b6   :  { %v943_v13 = vadd.f32 %v942_v20, %v851_v12 }
 0x1b7   :  { %v761_v15 = vpop.f32.mrf.mxu0 }
 0x1b8   :  { %v762_v18 = vadd.f32 %v761_v15, %v1883_v17  ;;  %v1034_v14 = vpop.f32.mrf.mxu3 }
 0x1b9   :  { %v1035_v19 = vadd.f32 %v1034_v14, %v943_v13  ;;  %v853_v21 = vpop.f32.mrf.mxu1 }
 0x1ba   :  { %v854_v3 = vadd.f32 %v853_v21, %v762_v18 }
 0x1bb   :  { %1091 = vst [vmem:[%s2299_s3 + $0x48] sm:$0xff] %v1035_v19 }
 0x1bd   :  { %v945_v22 = vpop.f32.mrf.mxu2 }
 0x1be   :  { %v946_v23 = vadd.f32 %v945_v22, %v854_v3 }
 0x1bf   :  { %v764_v24 = vpop.f32.mrf.mxu0 }
 0x1c0   :  { %v765_v25 = vadd.f32 %v764_v24, %v1898_v31  ;;  %v1037_v29 = vpop.f32.mrf.mxu3 }
 0x1c1   :  { %v1038_v30 = vadd.f32 %v1037_v29, %v946_v23  ;;  %v856_v36 = vpop.f32.mrf.mxu1 }
 0x1c2   :  { %v857_v17 = vadd.f32 %v856_v36, %v765_v25 }
 0x1c3   :  { %1092 = vst [vmem:[%s2299_s3 + $0x50] sm:$0xff] %v1038_v30 }
 0x1c5   :  { %v948_v32 = vpop.f32.mrf.mxu2 }
 0x1c6   :  { %v949_v33 = vadd.f32 %v948_v32, %v857_v17 }
 0x1c7   :  { %v767_v27 = vpop.f32.mrf.mxu0 }
 0x1c8   :  { %v768_v35 = vadd.f32 %v767_v27, %v1913_v45  ;;  %v1040_v37 = vpop.f32.mrf.mxu3 }
 0x1c9   :  { %v1041_v38 = vadd.f32 %v1040_v37, %v949_v33  ;;  %v859_v39 = vpop.f32.mrf.mxu1 }
 0x1ca   :  { %v860_v31 = vadd.f32 %v859_v39, %v768_v35 }
 0x1cb   :  { %1093 = vst [vmem:[%s2299_s3 + $0x58] sm:$0xff] %v1041_v38 }
 0x1cd   :  { %v951_v41 = vpop.f32.mrf.mxu2 }
 0x1ce   :  { %v952_v43 = vadd.f32 %v951_v41, %v860_v31 }
 0x1cf   :  { %v770_v51 = vpop.f32.mrf.mxu0 }
 0x1d0   :  { %v771_v46 = vadd.f32 %v770_v51, %v1928_v60  ;;  %v1043_v47 = vpop.f32.mrf.mxu3 }
 0x1d1   :  { %v1044_v49 = vadd.f32 %v1043_v47, %v952_v43  ;;  %v862_v48 = vpop.f32.mrf.mxu1 }
 0x1d2   :  { %v863_v45 = vadd.f32 %v862_v48, %v771_v46 }
 0x1d3   :  { %1094 = vst [vmem:[%s2299_s3 + $0x60] sm:$0xff] %v1044_v49 }
 0x1d5   :  { %v954_v40 = vpop.f32.mrf.mxu2 }
 0x1d6   :  { %v955_v50 = vadd.f32 %v954_v40, %v863_v45 }
 0x1d7   :  { %v773_v53 = vpop.f32.mrf.mxu0 }
 0x1d8   :  { %v774_v55 = vadd.f32 %v773_v53, %v1943_v11  ;;  %v1046_v56 = vpop.f32.mrf.mxu3 }
 0x1d9   :  { %v1047_v57 = vadd.f32 %v1046_v56, %v955_v50  ;;  %v865_v59 = vpop.f32.mrf.mxu1 }
 0x1da   :  { %v866_v60 = vadd.f32 %v865_v59, %v774_v55 }
 0x1db   :  { %1095 = vst [vmem:[%s2299_s3 + $0x68] sm:$0xff] %v1047_v57 }
 0x1dd   :  { %v957_v61 = vpop.f32.mrf.mxu2 }
 0x1de   :  { %v958_v63 = vadd.f32 %v957_v61, %v866_v60 }
 0x1df   :  { %v776_v5 = vpop.f32.mrf.mxu0 }
 0x1e0   :  { %v777_v0 = vadd.f32 %v776_v5, %v1958_v26  ;;  %v1049_v1 = vpop.f32.mrf.mxu3 }
 0x1e1   :  { %v1050_v54 = vadd.f32 %v1049_v1, %v958_v63  ;;  %v868_v2 = vpop.f32.mrf.mxu1 }
 0x1e2   :  { %v869_v11 = vadd.f32 %v868_v2, %v777_v0 }
 0x1e3   :  { %1096 = vst [vmem:[%s2299_s3 + $0x70] sm:$0xff] %v1050_v54 }
 0x1e5   :  { %v960_v4 = vpop.f32.mrf.mxu2 }
 0x1e6   :  { %v961_v6 = vadd.f32 %v960_v4, %v869_v11 }
 0x1e7   :  { %v779_v7 = vpop.f32.mrf.mxu0 }
 0x1e8   :  { %v780_v8 = vadd.f32 %v779_v7, %v1973_v42  ;;  %v1052_v9 = vpop.f32.mrf.mxu3 }
 0x1e9   :  { %v1053_v12 = vadd.f32 %v1052_v9, %v961_v6  ;;  %v871_v20 = vpop.f32.mrf.mxu1 }
 0x1ea   :  { %v872_v26 = vadd.f32 %v871_v20, %v780_v8 }
 0x1eb   :  { %1097 = vst [vmem:[%s2299_s3 + $0x78] sm:$0xff] %v1053_v12 }
 0x1ed   :  { %v963_v13 = vpop.f32.mrf.mxu2 }
 0x1ee   :  { %v964_v15 = vadd.f32 %v963_v13, %v872_v26 }
 0x1ef   :  { %v782_v18 = vpop.f32.mrf.mxu0 }
 0x1f0   :  { %v783_v14 = vadd.f32 %v782_v18, %v1988_v58  ;;  %v1055_v19 = vpop.f32.mrf.mxu3 }
 0x1f1   :  { %v1056_v21 = vadd.f32 %v1055_v19, %v964_v15  ;;  %v874_v3 = vpop.f32.mrf.mxu1 }
 0x1f2   :  { %v875_v42 = vadd.f32 %v874_v3, %v783_v14 }
 0x1f3   :  { %1098 = vst [vmem:[%s2299_s3 + $0x80] sm:$0xff] %v1056_v21 }
 0x1f5   :  { %v966_v22 = vpop.f32.mrf.mxu2 }
 0x1f6   :  { %v967_v23 = vadd.f32 %v966_v22, %v875_v42 }
 0x1f7   :  { %v785_v24 = vpop.f32.mrf.mxu0 }
 0x1f8   :  { %v786_v25 = vadd.f32 %v785_v24, %v2003_v10  ;;  %v1058_v29 = vpop.f32.mrf.mxu3 }
 0x1f9   :  { %v1059_v30 = vadd.f32 %v1058_v29, %v967_v23  ;;  %v877_v36 = vpop.f32.mrf.mxu1 }
 0x1fa   :  { %v878_v58 = vadd.f32 %v877_v36, %v786_v25 }
 0x1fb   :  { %1099 = vst [vmem:[%s2299_s3 + $0x88] sm:$0xff] %v1059_v30 }
 0x1fd   :  { %v969_v17 = vpop.f32.mrf.mxu2 }
 0x1fe   :  { %v970_v32 = vadd.f32 %v969_v17, %v878_v58 }
 0x1ff   :  { %v788_v33 = vpop.f32.mrf.mxu0 }
 0x200   :  { %v789_v27 = vadd.f32 %v788_v33, %v2018_v28  ;;  %v1061_v35 = vpop.f32.mrf.mxu3 }
 0x201   :  { %v1062_v37 = vadd.f32 %v1061_v35, %v970_v32  ;;  %v880_v38 = vpop.f32.mrf.mxu1 }
 0x202   :  { %v881_v10 = vadd.f32 %v880_v38, %v789_v27 }
 0x203   :  { %1100 = vst [vmem:[%s2299_s3 + $0x90] sm:$0xff] %v1062_v37 }
 0x205   :  { %v972_v39 = vpop.f32.mrf.mxu2 }
 0x206   :  { %v973_v31 = vadd.f32 %v972_v39, %v881_v10 }
 0x207   :  { %v791_v41 = vpop.f32.mrf.mxu0 }
 0x208   :  { %v792_v43 = vadd.f32 %v791_v41, %v2033_v44  ;;  %v1064_v51 = vpop.f32.mrf.mxu3 }
 0x209   :  { %v1065_v46 = vadd.f32 %v1064_v51, %v973_v31  ;;  %v883_v47 = vpop.f32.mrf.mxu1 }
 0x20a   :  { %v884_v28 = vadd.f32 %v883_v47, %v792_v43 }
 0x20b   :  { %1101 = vst [vmem:[%s2299_s3 + $0x98] sm:$0xff] %v1065_v46 }
 0x20d   :  { %v975_v49 = vpop.f32.mrf.mxu2 }
 0x20e   :  { %v976_v48 = vadd.f32 %v975_v49, %v884_v28 }
 0x20f   :  { %v794_v45 = vpop.f32.mrf.mxu0 }
 0x210   :  { %v795_v40 = vadd.f32 %v794_v45, %v2048_v62  ;;  %v1067_v50 = vpop.f32.mrf.mxu3 }
 0x211   :  { %v1068_v53 = vadd.f32 %v1067_v50, %v976_v48  ;;  %v886_v55 = vpop.f32.mrf.mxu1 }
 0x212   :  { %v887_v44 = vadd.f32 %v886_v55, %v795_v40 }
 0x213   :  { %1102 = vst [vmem:[%s2299_s3 + $0xa0] sm:$0xff] %v1068_v53 }
 0x215   :  { %v978_v56 = vpop.f32.mrf.mxu2 }
 0x216   :  { %v979_v57 = vadd.f32 %v978_v56, %v887_v44 }
 0x217   :  { %v797_v59 = vpop.f32.mrf.mxu0 }
 0x218   :  { %v798_v60 = vadd.f32 %v797_v59, %v2063_v16  ;;  %v1070_v61 = vpop.f32.mrf.mxu3 }
 0x219   :  { %v1071_v63 = vadd.f32 %v1070_v61, %v979_v57  ;;  %v889_v5 = vpop.f32.mrf.mxu1 }
 0x21a   :  { %v890_v62 = vadd.f32 %v889_v5, %v798_v60 }
 0x21b   :  { %1103 = vst [vmem:[%s2299_s3 + $0xa8] sm:$0xff] %v1071_v63 }
 0x21d   :  { %v981_v0 = vpop.f32.mrf.mxu2 }
 0x21e   :  { %v982_v1 = vadd.f32 %v981_v0, %v890_v62 }
 0x21f   :  { %v800_v54 = vpop.f32.mrf.mxu0 }
 0x220   :  { %v801_v2 = vadd.f32 %v800_v54, %v2078_v34  ;;  %v1073_v11 = vpop.f32.mrf.mxu3 }
 0x221   :  { %v1074_v4 = vadd.f32 %v1073_v11, %v982_v1  ;;  %v892_v6 = vpop.f32.mrf.mxu1 }
 0x222   :  { %v893_v16 = vadd.f32 %v892_v6, %v801_v2 }
 0x223   :  { %1104 = vst [vmem:[%s2299_s3 + $0xb0] sm:$0xff] %v1074_v4 }
 0x225   :  { %v984_v7 = vpop.f32.mrf.mxu2 }
 0x226   :  { %v985_v8 = vadd.f32 %v984_v7, %v893_v16 }
 0x227   :  { %v803_v9 = vpop.f32.mrf.mxu0 }
 0x228   :  { %v804_v12 = vadd.f32 %v803_v9, %v2093_v52  ;;  %v1076_v20 = vpop.f32.mrf.mxu3 }
 0x229   :  { %v1077_v26 = vadd.f32 %v1076_v20, %v985_v8  ;;  %v895_v13 = vpop.f32.mrf.mxu1 }
 0x22a   :  { %v896_v34 = vadd.f32 %v895_v13, %v804_v12 }
 0x22b   :  { %1105 = vst [vmem:[%s2299_s3 + $0xb8] sm:$0xff] %v1077_v26 }
 0x22d   :  { %v987_v15 = vpop.f32.mrf.mxu2 }
 0x22e   :  { %v988_v18 = vadd.f32 %v987_v15, %v896_v34 }
 0x230   :  { %v1079_v14 = vpop.f32.mrf.mxu3 }
 0x231   :  { %v1080_v19 = vadd.f32 %v1079_v14, %v988_v18 }
 0x233   :  { %1106 = vst [vmem:[%s2299_s3 + $0xc0] sm:$0xff] %v1080_v19 }

</bundles_post_ra>
